<compile_context>
chip_gen: v7x
topology: tpu7x:2x2x1
jax: 0.10.0
libtpu: 0.0.40
codegen_flags: <defaults>
</compile_context>

<pallas_src>
import functools

import numpy as np
import jax
import jax.numpy as jnp
from jax import lax
from jax.experimental import pallas as pl
from jax.experimental.pallas import tpu as pltpu


def _round_up(x, m):
    return (x + m - 1) // m * m


def _vmem_capacity_bytes():
    """Physical per-core VMEM (generation aware); conservative fallback."""
    try:
        cap = int(pltpu.get_tpu_info().vmem_capacity_bytes)
        if cap > 0:
            return cap
    except Exception:
        pass
    return 64 * 1024 * 1024       # v7x per-TensorCore size (smallest of v5e/v6e/v7x)


# ---------------------------------------------------------------------------
# Kernel: one (batch, row-strip) tile per grid step.
# ---------------------------------------------------------------------------
def bottleneck_kernel(x_ref, halo_ref, w1_ref, w2_ref, w3_ref,
                      b1_ref, b2_ref, b3_ref, out_ref, pad_ref,
                      *, TH, W8, Wr, Cin, Cout, Ppad, d, c0):
    """
    x_ref    : (1, TH, W8, Cin)    bf16  strip of the input (also the residual)
    halo_ref : (1, 2d, W8, Cin)    bf16  d rows above + d rows below the strip
                                         (zeros at the image border)
    w1_ref   : (Cin, Ppad)         bf16  conv1 1x1 weight, BN1 scale folded in
    w2_ref   : (9*Ppad, Ppad)      bf16  conv2 3x3 weight, rows = (kh*3+kw)*Ppad + cin
    w3_ref   : (Ppad, Cout)        bf16  conv3 1x1 weight, BN3 scale folded in
    b*_ref   : (1, C)              f32   folded BN biases
    out_ref  : (1, TH, W8, Cout)
    pad_ref  : (TH+2d, Wbuf, Ppad) bf16  zero-halo conv2 input; interior starts
                                         at column c0 (multiple of 8 -> aligned stores)
    """
    f32, bf16 = jnp.float32, jnp.bfloat16
    h = pl.program_id(1)
    n_h = pl.num_programs(1)
    THp = TH + 2 * d
    THW = TH * W8

    # ---- conv1 (1x1) + bias + ReLU on the strip's own rows.  The same bf16
    #      load is reused for the residual add (no second pass over x). ----
    xb = x_ref[0].reshape(THW, Cin)
    h1 = jnp.dot(xb.astype(bf16), w1_ref[...], preferred_element_type=f32)
    h1 = jnp.maximum(h1 + b1_ref[...], 0.0)                        # (THW, Ppad)

    # ---- conv1 recompute on the 2d halo rows (cheap: 2d rows per strip).
    #      At the image border the conv2 zero-padding applies -> mask to 0. ----
    hx = halo_ref[0].reshape(2 * d * W8, Cin)
    hh = jnp.dot(hx.astype(bf16), w1_ref[...], preferred_element_type=f32)
    hh = jnp.maximum(hh + b1_ref[...], 0.0).reshape(2 * d, W8, Ppad)
    top = jnp.where(h > 0, hh[:d], 0.0)
    bot = jnp.where(h < n_h - 1, hh[d:], 0.0)

    # ---- build the zero-padded conv2 input.  The interior store starts at
    #      the sublane-aligned column c0 -> unmasked bulk store. ----
    pad_ref[d:d + TH, c0:c0 + W8, :] = h1.reshape(TH, W8, Ppad).astype(bf16)
    pad_ref[0:d, c0:c0 + W8, :] = top.astype(bf16)
    pad_ref[d + TH:THp, c0:c0 + W8, :] = bot.astype(bf16)
    # Vertical zero halos.  The right one is written AFTER the stores above so
    # it also clears conv1 outputs of any W-padding columns (Wr < W8 case).
    pad_ref[:, c0 - d:c0, :] = jnp.zeros((THp, d, Ppad), bf16)
    pad_ref[:, c0 + Wr:c0 + W8 + d, :] = jnp.zeros((THp, W8 - Wr + d, Ppad), bf16)

    # ---- conv2 (3x3, stride 1, dilation d): three im2col matmuls (one per
    #      kernel row, K = 3*Ppad each) accumulated in f32. ----
    h2 = None
    for kh in range(3):
        taps = [pad_ref[kh * d:kh * d + TH,
                        c0 + (kw - 1) * d:c0 + (kw - 1) * d + W8, :]
                for kw in range(3)]
        col = jnp.concatenate(taps, axis=-1).reshape(THW, 3 * Ppad)
        part = jnp.dot(col, w2_ref[kh * 3 * Ppad:(kh + 1) * 3 * Ppad, :],
                       preferred_element_type=f32)
        h2 = part if h2 is None else h2 + part
    h2 = jnp.maximum(h2 + b2_ref[...], 0.0)                        # (THW, Ppad)

    # ---- conv3 (1x1) + bias + residual + ReLU ----
    h3 = jnp.dot(h2.astype(bf16), w3_ref[...], preferred_element_type=f32)
    out = jnp.maximum(h3 + b3_ref[...] + xb.astype(f32), 0.0)
    out_ref[0] = out.reshape(TH, W8, Cout).astype(out_ref.dtype)


# ---------------------------------------------------------------------------
# Parameter prep: fold BN into weights, pad mid channels to lane-dense width.
# ---------------------------------------------------------------------------
def fold_and_pad_params(params, ppad):
    w1, w2, w3, s1, b1, s2, b2, s3, b3 = params
    Cin, P = w1.shape
    Cout = w3.shape[1]
    s1, b1, s2, b2, s3, b3 = [jnp.reshape(a, (-1,)).astype(jnp.float32)
                              for a in (s1, b1, s2, b2, s3, b3)]

    w1f = w1.astype(jnp.float32) * s1[None, :]
    w2f = w2.astype(jnp.float32) * s2[None, None, None, :]        # HWIO
    w3f = w3.astype(jnp.float32) * s3[None, :]

    w1p = jnp.zeros((Cin, ppad), jnp.float32).at[:, :P].set(w1f)
    w2p = jnp.zeros((3, 3, ppad, ppad), jnp.float32).at[:, :, :P, :P].set(w2f)
    w3p = jnp.zeros((ppad, Cout), jnp.float32).at[:P, :].set(w3f)

    w1p = w1p.astype(jnp.bfloat16)
    w2p = w2p.reshape(9 * ppad, ppad).astype(jnp.bfloat16)
    w3p = w3p.astype(jnp.bfloat16)

    b1p = jnp.zeros((1, ppad), jnp.float32).at[0, :P].set(b1)
    b2p = jnp.zeros((1, ppad), jnp.float32).at[0, :P].set(b2)
    b3p = jnp.reshape(b3, (1, Cout)).astype(jnp.float32)
    return w1p, w2p, w3p, b1p, b2p, b3p


# ---------------------------------------------------------------------------
# NHWC entry point (no layout transposes).
# ---------------------------------------------------------------------------
def bottleneck_forward_nhwc(x_nhwc, params, dilation=1, tile_h=None):
    w1 = params[0]
    N, H, Wr, Cin = x_nhwc.shape
    P = w1.shape[1]
    Cout = 4 * P
    assert Cin == Cout, "residual add requires inplanes == planes * expansion"
    d = int(dilation)
    assert 1 <= d <= 8 and H >= d

    Ppad = _round_up(max(P, 128), 128)        # lane-dense mid channels
    c0 = 8                                    # sublane-aligned interior column offset
    W8 = _round_up(Wr, 8)                     # keep reshapes layout-preserving
    Wbuf = _round_up(c0 + W8 + d, 8)

    # ---- VMEM budget (generation aware) and row-strip size ----
    cap = _vmem_capacity_bytes()
    budget = int(0.75 * cap)

    def est_vmem(th):
        thp = th + 2 * d
        io = 2 * th * W8 * (Cin + Cout) * 2            # bf16 strips, double buffered
        hal = 2 * 2 * d * W8 * Cin * 2
        wts = (Cin * Ppad + 9 * Ppad * Ppad + Ppad * Cout) * 2 + (2 * Ppad + Cout) * 4
        padb = thp * Wbuf * Ppad * 2
        colb = th * W8 * 3 * Ppad * 2
        tmpb = th * W8 * (2 * Ppad + 2 * Cout) * 4     # f32 intermediates
        slack = th * W8 * max(Ppad, Cout) * 4
        return io + hal + wts + padb + colb + tmpb + slack

    if tile_h is not None:
        TH = int(tile_h)
        assert H % TH == 0 and TH >= d
    else:
        divs = [t for t in range(1, H + 1) if H % t == 0 and t >= d]
        cand = [t for t in divs if t % 8 == 0] or divs
        fit = [t for t in cand if est_vmem(t) <= budget]
        TH = max(fit) if fit else min(cand)
    nH = H // TH
    vmem_limit = int(min(int(0.92 * cap), max(int(1.4 * est_vmem(TH)), 32 * 2 ** 20)))

    # ---- bf16 activations at the kernel boundary; pad W to a multiple of 8.
    #      (In a real network keep activations bf16/NHWC so no cast is paid.)
    x_p = x_nhwc.astype(jnp.bfloat16)
    if W8 != Wr:
        x_p = jnp.pad(x_p, ((0, 0), (0, 0), (0, W8 - Wr), (0, 0)))

    # Halo rows (d above / d below every strip) gathered once in the wrapper so
    # the kernel's input blocks stay strip-sized (BlockSpecs cannot express
    # overlapping blocks).  Zeros at the image border.
    zrow = jnp.zeros((N, d, W8, Cin), jnp.bfloat16)
    pieces = []
    for hh in range(nH):
        pieces.append(x_p[:, hh * TH - d:hh * TH] if hh > 0 else zrow)
        pieces.append(x_p[:, (hh + 1) * TH:(hh + 1) * TH + d] if hh < nH - 1 else zrow)
    halo = jnp.concatenate(pieces, axis=1)             # (N, nH*2d, W8, Cin)

    w1p, w2p, w3p, b1p, b2p, b3p = fold_and_pad_params(params, Ppad)

    kernel = functools.partial(bottleneck_kernel, TH=TH, W8=W8, Wr=Wr, Cin=Cin,
                               Cout=Cout, Ppad=Ppad, d=d, c0=c0)

    def build(single_buffer_consts):
        def const_spec(shape):
            idx = lambda n, h: (0,) * len(shape)
            if single_buffer_consts:
                return pl.BlockSpec(shape, idx,
                                    pipeline_mode=pl.Buffered(buffer_count=1))
            return pl.BlockSpec(shape, idx)

        grid_spec = pltpu.PrefetchScalarGridSpec(
            num_scalar_prefetch=0,
            grid=(N, nH),
            in_specs=[
                pl.BlockSpec((1, TH, W8, Cin), lambda n, h: (n, h, 0, 0)),
                pl.BlockSpec((1, 2 * d, W8, Cin), lambda n, h: (n, h, 0, 0)),
                const_spec((Cin, Ppad)),
                const_spec((9 * Ppad, Ppad)),
                const_spec((Ppad, Cout)),
                const_spec((1, Ppad)),
                const_spec((1, Ppad)),
                const_spec((1, Cout)),
            ],
            out_specs=pl.BlockSpec((1, TH, W8, Cout), lambda n, h: (n, h, 0, 0)),
            scratch_shapes=[pltpu.VMEM((TH + 2 * d, Wbuf, Ppad), jnp.bfloat16)],
        )
        return pl.pallas_call(
            kernel,
            out_shape=jax.ShapeDtypeStruct((N, H, W8, Cout), jnp.bfloat16),
            grid_spec=grid_spec,
            compiler_params=pltpu.CompilerParams(
                dimension_semantics=("parallel", "parallel"),
                vmem_limit_bytes=vmem_limit),
        )

    args = (x_p, halo, w1p, w2p, w3p, b1p, b2p, b3p)
    try:
        out = build(True)(*args)       # constants single-buffered (VMEM saving)
    except Exception:
        # Older JAX without pipeline_mode=pl.Buffered support: default buffering.
        out = build(False)(*args)

    if W8 != Wr:
        out = out[:, :, :Wr, :]
    return out


# ---------------------------------------------------------------------------
# NCHW wrapper -- matches the PyTorch module's convention.  At real sizes keep
# the surrounding network NHWC/bf16 and call bottleneck_forward_nhwc directly.
# ---------------------------------------------------------------------------
def bottleneck_forward(x_nchw, params, dilation=1, tile_h=None):
    x = jnp.transpose(x_nchw, (0, 2, 3, 1))
    out = bottleneck_forward_nhwc(x, params, dilation=dilation, tile_h=tile_h)
    return jnp.transpose(out, (0, 3, 1, 2))


# ---------------------------------------------------------------------------
# Pure-JAX f32 reference (unfolded BN, lax.conv) for correctness checking.
# ---------------------------------------------------------------------------
def ref_forward(x_nchw, params, dilation=1):
    w1, w2, w3, s1, b1, s2, b2, s3, b3 = params
    x = jnp.transpose(x_nchw, (0, 2, 3, 1))
    h = jnp.einsum('nhwc,cp->nhwp', x, w1)
    h = jnp.maximum(h * s1 + b1, 0.0)
    h = lax.conv_general_dilated(
        h, w2, window_strides=(1, 1),
        padding=[(dilation, dilation), (dilation, dilation)],
        rhs_dilation=(dilation, dilation),
        dimension_numbers=('NHWC', 'HWIO', 'NHWC'))
    h = jnp.maximum(h * s2 + b2, 0.0)
    h = jnp.einsum('nhwp,po->nhwo', h, w3)
    h = h * s3 + b3
    h = jnp.maximum(h + x, 0.0)
    return jnp.transpose(h, (0, 3, 1, 2))


def make_bn_fold(key, c):
    kg, kb, km, kv = jax.random.split(key, 4)
    gamma = 1.0 + 0.1 * jax.random.normal(kg, (c,), jnp.float32)
    beta = 0.1 * jax.random.normal(kb, (c,), jnp.float32)
    mean = 0.1 * jax.random.normal(km, (c,), jnp.float32)
    var = jax.random.uniform(kv, (c,), jnp.float32, minval=0.5, maxval=1.5)
    scale = gamma / jnp.sqrt(var + 1e-5)
    bias = beta - mean * scale
    return scale, bias


if __name__ == "__main__":
    # Small shapes consistent with the module: inplanes = planes * expansion
    # (required for the residual add when downsample is None, stride=1).
    N, inplanes, H, W = 2, 16, 16, 16
    planes = 4

    key = jax.random.PRNGKey(0)
    kx, k1, k2, k3, kb1, kb2, kb3 = jax.random.split(key, 7)

    x = jax.random.normal(kx, (N, inplanes, H, W), jnp.float32)

    # conv weights in the layouts the math uses (1x1 as matrices, 3x3 as HWIO)
    w1 = 0.2 * jax.random.normal(k1, (inplanes, planes), jnp.float32)
    w2 = 0.2 * jax.random.normal(k2, (3, 3, planes, planes), jnp.float32)
    w3 = 0.2 * jax.random.normal(k3, (planes, planes * 4), jnp.float32)

    s1, b1 = make_bn_fold(kb1, planes)
    s2, b2 = make_bn_fold(kb2, planes)
    s3, b3 = make_bn_fold(kb3, planes * 4)
    params = (w1, w2, w3, s1, b1, s2, b2, s3, b3)

    # (input, dilation, row-strip height): exercises multi-strip halos,
    # dilation 2, auto strip sizing and the odd-width (W padded) path.
    cases = [
        (x, 1, 8),
        (x, 2, 8),
        (x, 1, None),
        (x[:, :, :, :12], 1, 8),
    ]
    for xi, dil, th in cases:
        out = bottleneck_forward(xi, params, dilation=dil, tile_h=th)
        out = jax.block_until_ready(out)
        ref = ref_forward(xi, params, dilation=dil)
        np.testing.assert_allclose(np.asarray(out.astype(jnp.float32)),
                                   np.asarray(ref), rtol=5e-2, atol=5e-2)

    print("KERNEL_OK")
</pallas_src>

<mosaic_0001>
module attributes {stable_mosaic.version = 11 : i64} {
  func.func @bottleneck_kernel(%arg0: i32, %arg1: i32, %arg2: memref<1x8x16x16xbf16, #tpu.memory_space<vmem>>, %arg3: memref<1x2x16x16xbf16, #tpu.memory_space<vmem>>, %arg4: memref<16x128xbf16, #tpu.memory_space<vmem>>, %arg5: memref<1152x128xbf16, #tpu.memory_space<vmem>>, %arg6: memref<128x16xbf16, #tpu.memory_space<vmem>>, %arg7: memref<1x128xf32, #tpu.memory_space<vmem>>, %arg8: memref<1x128xf32, #tpu.memory_space<vmem>>, %arg9: memref<1x16xf32, #tpu.memory_space<vmem>>, %arg10: memref<1x8x16x16xbf16, #tpu.memory_space<vmem>>, %arg11: memref<10x32x128xbf16, #tpu.memory_space<vmem>>) attributes {dimension_semantics = [#tpu.dimension_semantics<parallel>, #tpu.dimension_semantics<parallel>], iteration_bounds = array<i64: 2, 2>, scalar_prefetch = 0 : i64, scratch_operands = 1 : i64, tpu.core_type = #tpu.core_type<tc>, window_params = [{transform_indices = @transform_0, window_bounds = array<i64: 1, 8, 16, 16>}, {transform_indices = @transform_1, window_bounds = array<i64: 1, 2, 16, 16>}, {pipeline_mode = #tpu.pipeline_mode<synchronous>, transform_indices = @transform_2, window_bounds = array<i64: 16, 128>}, {pipeline_mode = #tpu.pipeline_mode<synchronous>, transform_indices = @transform_3, window_bounds = array<i64: 1152, 128>}, {pipeline_mode = #tpu.pipeline_mode<synchronous>, transform_indices = @transform_4, window_bounds = array<i64: 128, 16>}, {pipeline_mode = #tpu.pipeline_mode<synchronous>, transform_indices = @transform_5, window_bounds = array<i64: 1, 128>}, {pipeline_mode = #tpu.pipeline_mode<synchronous>, transform_indices = @transform_6, window_bounds = array<i64: 1, 128>}, {pipeline_mode = #tpu.pipeline_mode<synchronous>, transform_indices = @transform_7, window_bounds = array<i64: 1, 16>}, {transform_indices = @transform_8, window_bounds = array<i64: 1, 8, 16, 16>}]} {
    %c0 = arith.constant 0 : index
    %c0_0 = arith.constant 0 : index
    %c0_1 = arith.constant 0 : index
    %c0_2 = arith.constant 0 : index
    %0 = vector.load %arg2[%c0, %c0_0, %c0_1, %c0_2] : memref<1x8x16x16xbf16, #tpu.memory_space<vmem>>, vector<1x8x16x16xbf16>
    %1 = vector.shape_cast %0 : vector<1x8x16x16xbf16> to vector<8x16x16xbf16>
    %2 = vector.shape_cast %1 : vector<8x16x16xbf16> to vector<128x16xbf16>
    %c0_3 = arith.constant 0 : index
    %c0_4 = arith.constant 0 : index
    %3 = vector.load %arg4[%c0_3, %c0_4] : memref<16x128xbf16, #tpu.memory_space<vmem>>, vector<16x128xbf16>
    %cst = arith.constant dense<0.000000e+00> : vector<128x128xf32>
    %4 = tpu.matmul %2, %3, %cst {dimension_numbers = #tpu.dot_dimension_numbers<[1], [0], [0], [1], [0, 0, 1, 1], [], []>} : vector<128x16xbf16>, vector<16x128xbf16>, vector<128x128xf32> -> vector<128x128xf32>
    %c0_5 = arith.constant 0 : index
    %c0_6 = arith.constant 0 : index
    %5 = vector.load %arg7[%c0_5, %c0_6] : memref<1x128xf32, #tpu.memory_space<vmem>>, vector<1x128xf32>
    %6 = vector.broadcast %5 : vector<1x128xf32> to vector<128x128xf32>
    %7 = arith.addf %4, %6 : vector<128x128xf32>
    %cst_7 = arith.constant 0.000000e+00 : f32
    %8 = vector.broadcast %cst_7 : f32 to vector<128x128xf32>
    %9 = arith.maximumf %7, %8 : vector<128x128xf32>
    %c0_8 = arith.constant 0 : index
    %c0_9 = arith.constant 0 : index
    %c0_10 = arith.constant 0 : index
    %c0_11 = arith.constant 0 : index
    %10 = vector.load %arg3[%c0_8, %c0_9, %c0_10, %c0_11] : memref<1x2x16x16xbf16, #tpu.memory_space<vmem>>, vector<1x2x16x16xbf16>
    %11 = vector.shape_cast %10 : vector<1x2x16x16xbf16> to vector<2x16x16xbf16>
    %12 = vector.shape_cast %11 : vector<2x16x16xbf16> to vector<32x16xbf16>
    %c0_12 = arith.constant 0 : index
    %c0_13 = arith.constant 0 : index
    %13 = vector.load %arg4[%c0_12, %c0_13] : memref<16x128xbf16, #tpu.memory_space<vmem>>, vector<16x128xbf16>
    %cst_14 = arith.constant dense<0.000000e+00> : vector<32x128xf32>
    %14 = tpu.matmul %12, %13, %cst_14 {dimension_numbers = #tpu.dot_dimension_numbers<[1], [0], [0], [1], [0, 0, 1, 1], [], []>} : vector<32x16xbf16>, vector<16x128xbf16>, vector<32x128xf32> -> vector<32x128xf32>
    %c0_15 = arith.constant 0 : index
    %c0_16 = arith.constant 0 : index
    %15 = vector.load %arg7[%c0_15, %c0_16] : memref<1x128xf32, #tpu.memory_space<vmem>>, vector<1x128xf32>
    %16 = vector.broadcast %15 : vector<1x128xf32> to vector<32x128xf32>
    %17 = arith.addf %14, %16 : vector<32x128xf32>
    %cst_17 = arith.constant 0.000000e+00 : f32
    %18 = vector.broadcast %cst_17 : f32 to vector<32x128xf32>
    %19 = arith.maximumf %17, %18 : vector<32x128xf32>
    %20 = vector.shape_cast %19 : vector<32x128xf32> to vector<2x16x128xf32>
    %c0_i32 = arith.constant 0 : i32
    %21 = arith.cmpi sgt, %arg1, %c0_i32 : i32
    %22 = vector.extract_strided_slice %20 {offsets = [0, 0, 0], sizes = [1, 16, 128], strides = [1, 1, 1]} : vector<2x16x128xf32> to vector<1x16x128xf32>
    %cst_18 = arith.constant 0.000000e+00 : f32
    %23 = vector.broadcast %cst_18 : f32 to vector<1x16x128xf32>
    %24 = arith.select %21, %22, %23 : vector<1x16x128xf32>
    %c1_i32 = arith.constant 1 : i32
    %25 = arith.cmpi slt, %arg1, %c1_i32 : i32
    %26 = vector.extract_strided_slice %20 {offsets = [1, 0, 0], sizes = [1, 16, 128], strides = [1, 1, 1]} : vector<2x16x128xf32> to vector<1x16x128xf32>
    %cst_19 = arith.constant 0.000000e+00 : f32
    %27 = vector.broadcast %cst_19 : f32 to vector<1x16x128xf32>
    %28 = arith.select %25, %26, %27 : vector<1x16x128xf32>
    %29 = vector.shape_cast %9 : vector<128x128xf32> to vector<8x16x128xf32>
    %30 = arith.truncf %29 : vector<8x16x128xf32> to vector<8x16x128xbf16>
    %c1 = arith.constant 1 : index
    %c8 = arith.constant 8 : index
    %c0_20 = arith.constant 0 : index
    %31 = vector.load %arg11[%c1, %c8, %c0_20] : memref<10x32x128xbf16, #tpu.memory_space<vmem>>, vector<8x16x128xbf16>
    tpu.vector_store %arg11[%c1, %c8, %c0_20], %30 {strides = array<i32>} : memref<10x32x128xbf16, #tpu.memory_space<vmem>>, vector<8x16x128xbf16>,
    %32 = arith.truncf %24 : vector<1x16x128xf32> to vector<1x16x128xbf16>
    %c0_21 = arith.constant 0 : index
    %c8_22 = arith.constant 8 : index
    %c0_23 = arith.constant 0 : index
    %33 = vector.load %arg11[%c0_21, %c8_22, %c0_23] : memref<10x32x128xbf16, #tpu.memory_space<vmem>>, vector<1x16x128xbf16>
    tpu.vector_store %arg11[%c0_21, %c8_22, %c0_23], %32 {strides = array<i32>} : memref<10x32x128xbf16, #tpu.memory_space<vmem>>, vector<1x16x128xbf16>,
    %34 = arith.truncf %28 : vector<1x16x128xf32> to vector<1x16x128xbf16>
    %c9 = arith.constant 9 : index
    %c8_24 = arith.constant 8 : index
    %c0_25 = arith.constant 0 : index
    %35 = vector.load %arg11[%c9, %c8_24, %c0_25] : memref<10x32x128xbf16, #tpu.memory_space<vmem>>, vector<1x16x128xbf16>
    tpu.vector_store %arg11[%c9, %c8_24, %c0_25], %34 {strides = array<i32>} : memref<10x32x128xbf16, #tpu.memory_space<vmem>>, vector<1x16x128xbf16>,
    %cst_26 = arith.constant 0.000000e+00 : bf16
    %36 = vector.broadcast %cst_26 : bf16 to vector<10x1x128xbf16>
    %c0_27 = arith.constant 0 : index
    %c7 = arith.constant 7 : index
    %c0_28 = arith.constant 0 : index
    %37 = vector.load %arg11[%c0_27, %c7, %c0_28] : memref<10x32x128xbf16, #tpu.memory_space<vmem>>, vector<10x1x128xbf16>
    tpu.vector_store %arg11[%c0_27, %c7, %c0_28], %36 {strides = array<i32>} : memref<10x32x128xbf16, #tpu.memory_space<vmem>>, vector<10x1x128xbf16>,
    %cst_29 = arith.constant 0.000000e+00 : bf16
    %38 = vector.broadcast %cst_29 : bf16 to vector<10x1x128xbf16>
    %c0_30 = arith.constant 0 : index
    %c24 = arith.constant 24 : index
    %c0_31 = arith.constant 0 : index
    %39 = vector.load %arg11[%c0_30, %c24, %c0_31] : memref<10x32x128xbf16, #tpu.memory_space<vmem>>, vector<10x1x128xbf16>
    tpu.vector_store %arg11[%c0_30, %c24, %c0_31], %38 {strides = array<i32>} : memref<10x32x128xbf16, #tpu.memory_space<vmem>>, vector<10x1x128xbf16>,
    %c0_32 = arith.constant 0 : index
    %c7_33 = arith.constant 7 : index
    %c0_34 = arith.constant 0 : index
    %40 = vector.load %arg11[%c0_32, %c7_33, %c0_34] : memref<10x32x128xbf16, #tpu.memory_space<vmem>>, vector<8x16x128xbf16>
    %c0_35 = arith.constant 0 : index
    %c8_36 = arith.constant 8 : index
    %c0_37 = arith.constant 0 : index
    %41 = vector.load %arg11[%c0_35, %c8_36, %c0_37] : memref<10x32x128xbf16, #tpu.memory_space<vmem>>, vector<8x16x128xbf16>
    %c0_38 = arith.constant 0 : index
    %c9_39 = arith.constant 9 : index
    %c0_40 = arith.constant 0 : index
    %42 = vector.load %arg11[%c0_38, %c9_39, %c0_40] : memref<10x32x128xbf16, #tpu.memory_space<vmem>>, vector<8x16x128xbf16>
    %43 = tpu.concatenate %40, %41, %42 in 2 : vector<8x16x128xbf16>, vector<8x16x128xbf16>, vector<8x16x128xbf16> -> vector<8x16x384xbf16>
    %44 = vector.shape_cast %43 : vector<8x16x384xbf16> to vector<128x384xbf16>
    %c0_41 = arith.constant 0 : index
    %c0_42 = arith.constant 0 : index
    %45 = vector.load %arg5[%c0_41, %c0_42] : memref<1152x128xbf16, #tpu.memory_space<vmem>>, vector<384x128xbf16>
    %cst_43 = arith.constant dense<0.000000e+00> : vector<128x128xf32>
    %46 = tpu.matmul %44, %45, %cst_43 {dimension_numbers = #tpu.dot_dimension_numbers<[1], [0], [0], [1], [0, 0, 1, 1], [], []>} : vector<128x384xbf16>, vector<384x128xbf16>, vector<128x128xf32> -> vector<128x128xf32>
    %c1_44 = arith.constant 1 : index
    %c7_45 = arith.constant 7 : index
    %c0_46 = arith.constant 0 : index
    %47 = vector.load %arg11[%c1_44, %c7_45, %c0_46] : memref<10x32x128xbf16, #tpu.memory_space<vmem>>, vector<8x16x128xbf16>
    %c1_47 = arith.constant 1 : index
    %c8_48 = arith.constant 8 : index
    %c0_49 = arith.constant 0 : index
    %48 = vector.load %arg11[%c1_47, %c8_48, %c0_49] : memref<10x32x128xbf16, #tpu.memory_space<vmem>>, vector<8x16x128xbf16>
    %c1_50 = arith.constant 1 : index
    %c9_51 = arith.constant 9 : index
    %c0_52 = arith.constant 0 : index
    %49 = vector.load %arg11[%c1_50, %c9_51, %c0_52] : memref<10x32x128xbf16, #tpu.memory_space<vmem>>, vector<8x16x128xbf16>
    %50 = tpu.concatenate %47, %48, %49 in 2 : vector<8x16x128xbf16>, vector<8x16x128xbf16>, vector<8x16x128xbf16> -> vector<8x16x384xbf16>
    %51 = vector.shape_cast %50 : vector<8x16x384xbf16> to vector<128x384xbf16>
    %c384 = arith.constant 384 : index
    %c0_53 = arith.constant 0 : index
    %52 = vector.load %arg5[%c384, %c0_53] : memref<1152x128xbf16, #tpu.memory_space<vmem>>, vector<384x128xbf16>
    %cst_54 = arith.constant dense<0.000000e+00> : vector<128x128xf32>
    %53 = tpu.matmul %51, %52, %cst_54 {dimension_numbers = #tpu.dot_dimension_numbers<[1], [0], [0], [1], [0, 0, 1, 1], [], []>} : vector<128x384xbf16>, vector<384x128xbf16>, vector<128x128xf32> -> vector<128x128xf32>
    %54 = arith.addf %46, %53 : vector<128x128xf32>
    %c2 = arith.constant 2 : index
    %c7_55 = arith.constant 7 : index
    %c0_56 = arith.constant 0 : index
    %55 = vector.load %arg11[%c2, %c7_55, %c0_56] : memref<10x32x128xbf16, #tpu.memory_space<vmem>>, vector<8x16x128xbf16>
    %c2_57 = arith.constant 2 : index
    %c8_58 = arith.constant 8 : index
    %c0_59 = arith.constant 0 : index
    %56 = vector.load %arg11[%c2_57, %c8_58, %c0_59] : memref<10x32x128xbf16, #tpu.memory_space<vmem>>, vector<8x16x128xbf16>
    %c2_60 = arith.constant 2 : index
    %c9_61 = arith.constant 9 : index
    %c0_62 = arith.constant 0 : index
    %57 = vector.load %arg11[%c2_60, %c9_61, %c0_62] : memref<10x32x128xbf16, #tpu.memory_space<vmem>>, vector<8x16x128xbf16>
    %58 = tpu.concatenate %55, %56, %57 in 2 : vector<8x16x128xbf16>, vector<8x16x128xbf16>, vector<8x16x128xbf16> -> vector<8x16x384xbf16>
    %59 = vector.shape_cast %58 : vector<8x16x384xbf16> to vector<128x384xbf16>
    %c768 = arith.constant 768 : index
    %c0_63 = arith.constant 0 : index
    %60 = vector.load %arg5[%c768, %c0_63] : memref<1152x128xbf16, #tpu.memory_space<vmem>>, vector<384x128xbf16>
    %cst_64 = arith.constant dense<0.000000e+00> : vector<128x128xf32>
    %61 = tpu.matmul %59, %60, %cst_64 {dimension_numbers = #tpu.dot_dimension_numbers<[1], [0], [0], [1], [0, 0, 1, 1], [], []>} : vector<128x384xbf16>, vector<384x128xbf16>, vector<128x128xf32> -> vector<128x128xf32>
    %62 = arith.addf %54, %61 : vector<128x128xf32>
    %c0_65 = arith.constant 0 : index
    %c0_66 = arith.constant 0 : index
    %63 = vector.load %arg8[%c0_65, %c0_66] : memref<1x128xf32, #tpu.memory_space<vmem>>, vector<1x128xf32>
    %64 = vector.broadcast %63 : vector<1x128xf32> to vector<128x128xf32>
    %65 = arith.addf %62, %64 : vector<128x128xf32>
    %cst_67 = arith.constant 0.000000e+00 : f32
    %66 = vector.broadcast %cst_67 : f32 to vector<128x128xf32>
    %67 = arith.maximumf %65, %66 : vector<128x128xf32>
    %68 = arith.truncf %67 : vector<128x128xf32> to vector<128x128xbf16>
    %c0_68 = arith.constant 0 : index
    %c0_69 = arith.constant 0 : index
    %69 = vector.load %arg6[%c0_68, %c0_69] : memref<128x16xbf16, #tpu.memory_space<vmem>>, vector<128x16xbf16>
    %cst_70 = arith.constant dense<0.000000e+00> : vector<128x16xf32>
    %70 = tpu.matmul %68, %69, %cst_70 {dimension_numbers = #tpu.dot_dimension_numbers<[1], [0], [0], [1], [0, 0, 1, 1], [], []>} : vector<128x128xbf16>, vector<128x16xbf16>, vector<128x16xf32> -> vector<128x16xf32>
    %c0_71 = arith.constant 0 : index
    %c0_72 = arith.constant 0 : index
    %71 = vector.load %arg9[%c0_71, %c0_72] : memref<1x16xf32, #tpu.memory_space<vmem>>, vector<1x16xf32>
    %72 = vector.broadcast %71 : vector<1x16xf32> to vector<128x16xf32>
    %73 = arith.addf %70, %72 : vector<128x16xf32>
    %74 = arith.extf %2 : vector<128x16xbf16> to vector<128x16xf32>
    %75 = arith.addf %73, %74 : vector<128x16xf32>
    %cst_73 = arith.constant 0.000000e+00 : f32
    %76 = vector.broadcast %cst_73 : f32 to vector<128x16xf32>
    %77 = arith.maximumf %75, %76 : vector<128x16xf32>
    %78 = vector.shape_cast %77 : vector<128x16xf32> to vector<8x16x16xf32>
    %79 = arith.truncf %78 : vector<8x16x16xf32> to vector<8x16x16xbf16>
    %c0_74 = arith.constant 0 : index
    %c0_75 = arith.constant 0 : index
    %c0_76 = arith.constant 0 : index
    %c0_77 = arith.constant 0 : index
    %80 = vector.load %arg10[%c0_74, %c0_75, %c0_76, %c0_77] : memref<1x8x16x16xbf16, #tpu.memory_space<vmem>>, vector<1x8x16x16xbf16>
    %81 = vector.shape_cast %80 : vector<1x8x16x16xbf16> to vector<8x16x16xbf16>
    %82 = vector.shape_cast %79 : vector<8x16x16xbf16> to vector<1x8x16x16xbf16>
    tpu.vector_store %arg10[%c0_74, %c0_75, %c0_76, %c0_77], %82 {strides = array<i32>} : memref<1x8x16x16xbf16, #tpu.memory_space<vmem>>, vector<1x8x16x16xbf16>,
    return
  }
  func.func @transform_0(%arg0: i32, %arg1: i32) -> (i32, i32, i32, i32) {
    %c0_i32 = arith.constant 0 : i32
    %c0_i32_0 = arith.constant 0 : i32
    %c0_i32_1 = arith.constant 0 : i32
    return %arg0, %arg1, %c0_i32, %c0_i32_0 : i32, i32, i32, i32
  }
  func.func @transform_1(%arg0: i32, %arg1: i32) -> (i32, i32, i32, i32) {
    %c0_i32 = arith.constant 0 : i32
    %c0_i32_0 = arith.constant 0 : i32
    %c0_i32_1 = arith.constant 0 : i32
    return %arg0, %arg1, %c0_i32, %c0_i32_0 : i32, i32, i32, i32
  }
  func.func @transform_2(%arg0: i32, %arg1: i32) -> (i32, i32) {
    %c0_i32 = arith.constant 0 : i32
    %c0_i32_0 = arith.constant 0 : i32
    %c0_i32_1 = arith.constant 0 : i32
    return %c0_i32, %c0_i32_0 : i32, i32
  }
  func.func @transform_3(%arg0: i32, %arg1: i32) -> (i32, i32) {
    %c0_i32 = arith.constant 0 : i32
    %c0_i32_0 = arith.constant 0 : i32
    %c0_i32_1 = arith.constant 0 : i32
    return %c0_i32, %c0_i32_0 : i32, i32
  }
  func.func @transform_4(%arg0: i32, %arg1: i32) -> (i32, i32) {
    %c0_i32 = arith.constant 0 : i32
    %c0_i32_0 = arith.constant 0 : i32
    %c0_i32_1 = arith.constant 0 : i32
    return %c0_i32, %c0_i32_0 : i32, i32
  }
  func.func @transform_5(%arg0: i32, %arg1: i32) -> (i32, i32) {
    %c0_i32 = arith.constant 0 : i32
    %c0_i32_0 = arith.constant 0 : i32
    %c0_i32_1 = arith.constant 0 : i32
    return %c0_i32, %c0_i32_0 : i32, i32
  }
  func.func @transform_6(%arg0: i32, %arg1: i32) -> (i32, i32) {
    %c0_i32 = arith.constant 0 : i32
    %c0_i32_0 = arith.constant 0 : i32
    %c0_i32_1 = arith.constant 0 : i32
    return %c0_i32, %c0_i32_0 : i32, i32
  }
  func.func @transform_7(%arg0: i32, %arg1: i32) -> (i32, i32) {
    %c0_i32 = arith.constant 0 : i32
    %c0_i32_0 = arith.constant 0 : i32
    %c0_i32_1 = arith.constant 0 : i32
    return %c0_i32, %c0_i32_0 : i32, i32
  }
  func.func @transform_8(%arg0: i32, %arg1: i32) -> (i32, i32, i32, i32) {
    %c0_i32 = arith.constant 0 : i32
    %c0_i32_0 = arith.constant 0 : i32
    %c0_i32_1 = arith.constant 0 : i32
    return %arg0, %arg1, %c0_i32, %c0_i32_0 : i32, i32, i32, i32
  }
}

module attributes {stable_mosaic.version = 11 : i64} {
  func.func @bottleneck_kernel(%arg0: i32, %arg1: i32, %arg2: memref<1x8x16x16xbf16, #tpu.memory_space<vmem>>, %arg3: memref<1x2x16x16xbf16, #tpu.memory_space<vmem>>, %arg4: memref<16x128xbf16, #tpu.memory_space<vmem>>, %arg5: memref<1152x128xbf16, #tpu.memory_space<vmem>>, %arg6: memref<128x16xbf16, #tpu.memory_space<vmem>>, %arg7: memref<1x128xf32, #tpu.memory_space<vmem>>, %arg8: memref<1x128xf32, #tpu.memory_space<vmem>>, %arg9: memref<1x16xf32, #tpu.memory_space<vmem>>, %arg10: memref<1x8x16x16xbf16, #tpu.memory_space<vmem>>, %arg11: memref<10x32x128xbf16, #tpu.memory_space<vmem>>) attributes {dimension_semantics = [#tpu.dimension_semantics<parallel>, #tpu.dimension_semantics<parallel>], iteration_bounds = array<i64: 2, 2>, scalar_prefetch = 0 : i64, scratch_operands = 1 : i64, tpu.core_type = #tpu.core_type<tc>, window_params = [{transform_indices = @transform_0, window_bounds = array<i64: 1, 8, 16, 16>}, {transform_indices = @transform_1, window_bounds = array<i64: 1, 2, 16, 16>}, {pipeline_mode = #tpu.pipeline_mode<synchronous>, transform_indices = @transform_2, window_bounds = array<i64: 16, 128>}, {pipeline_mode = #tpu.pipeline_mode<synchronous>, transform_indices = @transform_3, window_bounds = array<i64: 1152, 128>}, {pipeline_mode = #tpu.pipeline_mode<synchronous>, transform_indices = @transform_4, window_bounds = array<i64: 128, 16>}, {pipeline_mode = #tpu.pipeline_mode<synchronous>, transform_indices = @transform_5, window_bounds = array<i64: 1, 128>}, {pipeline_mode = #tpu.pipeline_mode<synchronous>, transform_indices = @transform_6, window_bounds = array<i64: 1, 128>}, {pipeline_mode = #tpu.pipeline_mode<synchronous>, transform_indices = @transform_7, window_bounds = array<i64: 1, 16>}, {transform_indices = @transform_8, window_bounds = array<i64: 1, 8, 16, 16>}]} {
    %c0 = arith.constant 0 : index
    %c0_0 = arith.constant 0 : index
    %c0_1 = arith.constant 0 : index
    %c0_2 = arith.constant 0 : index
    %0 = vector.load %arg2[%c0, %c0_0, %c0_1, %c0_2] : memref<1x8x16x16xbf16, #tpu.memory_space<vmem>>, vector<1x8x16x16xbf16>
    %1 = vector.shape_cast %0 : vector<1x8x16x16xbf16> to vector<8x16x16xbf16>
    %2 = vector.shape_cast %1 : vector<8x16x16xbf16> to vector<128x16xbf16>
    %c0_3 = arith.constant 0 : index
    %c0_4 = arith.constant 0 : index
    %3 = vector.load %arg4[%c0_3, %c0_4] : memref<16x128xbf16, #tpu.memory_space<vmem>>, vector<16x128xbf16>
    %cst = arith.constant dense<0.000000e+00> : vector<128x128xf32>
    %4 = tpu.matmul %2, %3, %cst {dimension_numbers = #tpu.dot_dimension_numbers<[1], [0], [0], [1], [0, 0, 1, 1], [], []>} : vector<128x16xbf16>, vector<16x128xbf16>, vector<128x128xf32> -> vector<128x128xf32>
    %c0_5 = arith.constant 0 : index
    %c0_6 = arith.constant 0 : index
    %5 = vector.load %arg7[%c0_5, %c0_6] : memref<1x128xf32, #tpu.memory_space<vmem>>, vector<1x128xf32>
    %6 = vector.broadcast %5 : vector<1x128xf32> to vector<128x128xf32>
    %7 = arith.addf %4, %6 : vector<128x128xf32>
    %cst_7 = arith.constant 0.000000e+00 : f32
    %8 = vector.broadcast %cst_7 : f32 to vector<128x128xf32>
    %9 = arith.maximumf %7, %8 : vector<128x128xf32>
    %c0_8 = arith.constant 0 : index
    %c0_9 = arith.constant 0 : index
    %c0_10 = arith.constant 0 : index
    %c0_11 = arith.constant 0 : index
    %10 = vector.load %arg3[%c0_8, %c0_9, %c0_10, %c0_11] : memref<1x2x16x16xbf16, #tpu.memory_space<vmem>>, vector<1x2x16x16xbf16>
    %11 = vector.shape_cast %10 : vector<1x2x16x16xbf16> to vector<2x16x16xbf16>
    %12 = vector.shape_cast %11 : vector<2x16x16xbf16> to vector<32x16xbf16>
    %c0_12 = arith.constant 0 : index
    %c0_13 = arith.constant 0 : index
    %13 = vector.load %arg4[%c0_12, %c0_13] : memref<16x128xbf16, #tpu.memory_space<vmem>>, vector<16x128xbf16>
    %cst_14 = arith.constant dense<0.000000e+00> : vector<32x128xf32>
    %14 = tpu.matmul %12, %13, %cst_14 {dimension_numbers = #tpu.dot_dimension_numbers<[1], [0], [0], [1], [0, 0, 1, 1], [], []>} : vector<32x16xbf16>, vector<16x128xbf16>, vector<32x128xf32> -> vector<32x128xf32>
    %c0_15 = arith.constant 0 : index
    %c0_16 = arith.constant 0 : index
    %15 = vector.load %arg7[%c0_15, %c0_16] : memref<1x128xf32, #tpu.memory_space<vmem>>, vector<1x128xf32>
    %16 = vector.broadcast %15 : vector<1x128xf32> to vector<32x128xf32>
    %17 = arith.addf %14, %16 : vector<32x128xf32>
    %cst_17 = arith.constant 0.000000e+00 : f32
    %18 = vector.broadcast %cst_17 : f32 to vector<32x128xf32>
    %19 = arith.maximumf %17, %18 : vector<32x128xf32>
    %20 = vector.shape_cast %19 : vector<32x128xf32> to vector<2x16x128xf32>
    %c0_i32 = arith.constant 0 : i32
    %21 = arith.cmpi sgt, %arg1, %c0_i32 : i32
    %22 = vector.extract_strided_slice %20 {offsets = [0, 0, 0], sizes = [1, 16, 128], strides = [1, 1, 1]} : vector<2x16x128xf32> to vector<1x16x128xf32>
    %cst_18 = arith.constant 0.000000e+00 : f32
    %23 = vector.broadcast %cst_18 : f32 to vector<1x16x128xf32>
    %24 = arith.select %21, %22, %23 : vector<1x16x128xf32>
    %c1_i32 = arith.constant 1 : i32
    %25 = arith.cmpi slt, %arg1, %c1_i32 : i32
    %26 = vector.extract_strided_slice %20 {offsets = [1, 0, 0], sizes = [1, 16, 128], strides = [1, 1, 1]} : vector<2x16x128xf32> to vector<1x16x128xf32>
    %cst_19 = arith.constant 0.000000e+00 : f32
    %27 = vector.broadcast %cst_19 : f32 to vector<1x16x128xf32>
    %28 = arith.select %25, %26, %27 : vector<1x16x128xf32>
    %29 = vector.shape_cast %9 : vector<128x128xf32> to vector<8x16x128xf32>
    %30 = arith.truncf %29 : vector<8x16x128xf32> to vector<8x16x128xbf16>
    %c1 = arith.constant 1 : index
    %c8 = arith.constant 8 : index
    %c0_20 = arith.constant 0 : index
    %31 = vector.load %arg11[%c1, %c8, %c0_20] : memref<10x32x128xbf16, #tpu.memory_space<vmem>>, vector<8x16x128xbf16>
    tpu.vector_store %arg11[%c1, %c8, %c0_20], %30 {strides = array<i32>} : memref<10x32x128xbf16, #tpu.memory_space<vmem>>, vector<8x16x128xbf16>,
    %32 = arith.truncf %24 : vector<1x16x128xf32> to vector<1x16x128xbf16>
    %c0_21 = arith.constant 0 : index
    %c8_22 = arith.constant 8 : index
    %c0_23 = arith.constant 0 : index
    %33 = vector.load %arg11[%c0_21, %c8_22, %c0_23] : memref<10x32x128xbf16, #tpu.memory_space<vmem>>, vector<1x16x128xbf16>
    tpu.vector_store %arg11[%c0_21, %c8_22, %c0_23], %32 {strides = array<i32>} : memref<10x32x128xbf16, #tpu.memory_space<vmem>>, vector<1x16x128xbf16>,
    %34 = arith.truncf %28 : vector<1x16x128xf32> to vector<1x16x128xbf16>
    %c9 = arith.constant 9 : index
    %c8_24 = arith.constant 8 : index
    %c0_25 = arith.constant 0 : index
    %35 = vector.load %arg11[%c9, %c8_24, %c0_25] : memref<10x32x128xbf16, #tpu.memory_space<vmem>>, vector<1x16x128xbf16>
    tpu.vector_store %arg11[%c9, %c8_24, %c0_25], %34 {strides = array<i32>} : memref<10x32x128xbf16, #tpu.memory_space<vmem>>, vector<1x16x128xbf16>,
    %cst_26 = arith.constant 0.000000e+00 : bf16
    %36 = vector.broadcast %cst_26 : bf16 to vector<10x1x128xbf16>
    %c0_27 = arith.constant 0 : index
    %c7 = arith.constant 7 : index
    %c0_28 = arith.constant 0 : index
    %37 = vector.load %arg11[%c0_27, %c7, %c0_28] : memref<10x32x128xbf16, #tpu.memory_space<vmem>>, vector<10x1x128xbf16>
    tpu.vector_store %arg11[%c0_27, %c7, %c0_28], %36 {strides = array<i32>} : memref<10x32x128xbf16, #tpu.memory_space<vmem>>, vector<10x1x128xbf16>,
    %cst_29 = arith.constant 0.000000e+00 : bf16
    %38 = vector.broadcast %cst_29 : bf16 to vector<10x1x128xbf16>
    %c0_30 = arith.constant 0 : index
    %c24 = arith.constant 24 : index
    %c0_31 = arith.constant 0 : index
    %39 = vector.load %arg11[%c0_30, %c24, %c0_31] : memref<10x32x128xbf16, #tpu.memory_space<vmem>>, vector<10x1x128xbf16>
    tpu.vector_store %arg11[%c0_30, %c24, %c0_31], %38 {strides = array<i32>} : memref<10x32x128xbf16, #tpu.memory_space<vmem>>, vector<10x1x128xbf16>,
    %c0_32 = arith.constant 0 : index
    %c7_33 = arith.constant 7 : index
    %c0_34 = arith.constant 0 : index
    %40 = vector.load %arg11[%c0_32, %c7_33, %c0_34] : memref<10x32x128xbf16, #tpu.memory_space<vmem>>, vector<8x16x128xbf16>
    %c0_35 = arith.constant 0 : index
    %c8_36 = arith.constant 8 : index
    %c0_37 = arith.constant 0 : index
    %41 = vector.load %arg11[%c0_35, %c8_36, %c0_37] : memref<10x32x128xbf16, #tpu.memory_space<vmem>>, vector<8x16x128xbf16>
    %c0_38 = arith.constant 0 : index
    %c9_39 = arith.constant 9 : index
    %c0_40 = arith.constant 0 : index
    %42 = vector.load %arg11[%c0_38, %c9_39, %c0_40] : memref<10x32x128xbf16, #tpu.memory_space<vmem>>, vector<8x16x128xbf16>
    %43 = tpu.concatenate %40, %41, %42 in 2 : vector<8x16x128xbf16>, vector<8x16x128xbf16>, vector<8x16x128xbf16> -> vector<8x16x384xbf16>
    %44 = vector.shape_cast %43 : vector<8x16x384xbf16> to vector<128x384xbf16>
    %c0_41 = arith.constant 0 : index
    %c0_42 = arith.constant 0 : index
    %45 = vector.load %arg5[%c0_41, %c0_42] : memref<1152x128xbf16, #tpu.memory_space<vmem>>, vector<384x128xbf16>
    %cst_43 = arith.constant dense<0.000000e+00> : vector<128x128xf32>
    %46 = tpu.matmul %44, %45, %cst_43 {dimension_numbers = #tpu.dot_dimension_numbers<[1], [0], [0], [1], [0, 0, 1, 1], [], []>} : vector<128x384xbf16>, vector<384x128xbf16>, vector<128x128xf32> -> vector<128x128xf32>
    %c1_44 = arith.constant 1 : index
    %c7_45 = arith.constant 7 : index
    %c0_46 = arith.constant 0 : index
    %47 = vector.load %arg11[%c1_44, %c7_45, %c0_46] : memref<10x32x128xbf16, #tpu.memory_space<vmem>>, vector<8x16x128xbf16>
    %c1_47 = arith.constant 1 : index
    %c8_48 = arith.constant 8 : index
    %c0_49 = arith.constant 0 : index
    %48 = vector.load %arg11[%c1_47, %c8_48, %c0_49] : memref<10x32x128xbf16, #tpu.memory_space<vmem>>, vector<8x16x128xbf16>
    %c1_50 = arith.constant 1 : index
    %c9_51 = arith.constant 9 : index
    %c0_52 = arith.constant 0 : index
    %49 = vector.load %arg11[%c1_50, %c9_51, %c0_52] : memref<10x32x128xbf16, #tpu.memory_space<vmem>>, vector<8x16x128xbf16>
    %50 = tpu.concatenate %47, %48, %49 in 2 : vector<8x16x128xbf16>, vector<8x16x128xbf16>, vector<8x16x128xbf16> -> vector<8x16x384xbf16>
    %51 = vector.shape_cast %50 : vector<8x16x384xbf16> to vector<128x384xbf16>
    %c384 = arith.constant 384 : index
    %c0_53 = arith.constant 0 : index
    %52 = vector.load %arg5[%c384, %c0_53] : memref<1152x128xbf16, #tpu.memory_space<vmem>>, vector<384x128xbf16>
    %cst_54 = arith.constant dense<0.000000e+00> : vector<128x128xf32>
    %53 = tpu.matmul %51, %52, %cst_54 {dimension_numbers = #tpu.dot_dimension_numbers<[1], [0], [0], [1], [0, 0, 1, 1], [], []>} : vector<128x384xbf16>, vector<384x128xbf16>, vector<128x128xf32> -> vector<128x128xf32>
    %54 = arith.addf %46, %53 : vector<128x128xf32>
    %c2 = arith.constant 2 : index
    %c7_55 = arith.constant 7 : index
    %c0_56 = arith.constant 0 : index
    %55 = vector.load %arg11[%c2, %c7_55, %c0_56] : memref<10x32x128xbf16, #tpu.memory_space<vmem>>, vector<8x16x128xbf16>
    %c2_57 = arith.constant 2 : index
    %c8_58 = arith.constant 8 : index
    %c0_59 = arith.constant 0 : index
    %56 = vector.load %arg11[%c2_57, %c8_58, %c0_59] : memref<10x32x128xbf16, #tpu.memory_space<vmem>>, vector<8x16x128xbf16>
    %c2_60 = arith.constant 2 : index
    %c9_61 = arith.constant 9 : index
    %c0_62 = arith.constant 0 : index
    %57 = vector.load %arg11[%c2_60, %c9_61, %c0_62] : memref<10x32x128xbf16, #tpu.memory_space<vmem>>, vector<8x16x128xbf16>
    %58 = tpu.concatenate %55, %56, %57 in 2 : vector<8x16x128xbf16>, vector<8x16x128xbf16>, vector<8x16x128xbf16> -> vector<8x16x384xbf16>
    %59 = vector.shape_cast %58 : vector<8x16x384xbf16> to vector<128x384xbf16>
    %c768 = arith.constant 768 : index
    %c0_63 = arith.constant 0 : index
    %60 = vector.load %arg5[%c768, %c0_63] : memref<1152x128xbf16, #tpu.memory_space<vmem>>, vector<384x128xbf16>
    %cst_64 = arith.constant dense<0.000000e+00> : vector<128x128xf32>
    %61 = tpu.matmul %59, %60, %cst_64 {dimension_numbers = #tpu.dot_dimension_numbers<[1], [0], [0], [1], [0, 0, 1, 1], [], []>} : vector<128x384xbf16>, vector<384x128xbf16>, vector<128x128xf32> -> vector<128x128xf32>
    %62 = arith.addf %54, %61 : vector<128x128xf32>
    %c0_65 = arith.constant 0 : index
    %c0_66 = arith.constant 0 : index
    %63 = vector.load %arg8[%c0_65, %c0_66] : memref<1x128xf32, #tpu.memory_space<vmem>>, vector<1x128xf32>
    %64 = vector.broadcast %63 : vector<1x128xf32> to vector<128x128xf32>
    %65 = arith.addf %62, %64 : vector<128x128xf32>
    %cst_67 = arith.constant 0.000000e+00 : f32
    %66 = vector.broadcast %cst_67 : f32 to vector<128x128xf32>
    %67 = arith.maximumf %65, %66 : vector<128x128xf32>
    %68 = arith.truncf %67 : vector<128x128xf32> to vector<128x128xbf16>
    %c0_68 = arith.constant 0 : index
    %c0_69 = arith.constant 0 : index
    %69 = vector.load %arg6[%c0_68, %c0_69] : memref<128x16xbf16, #tpu.memory_space<vmem>>, vector<128x16xbf16>
    %cst_70 = arith.constant dense<0.000000e+00> : vector<128x16xf32>
    %70 = tpu.matmul %68, %69, %cst_70 {dimension_numbers = #tpu.dot_dimension_numbers<[1], [0], [0], [1], [0, 0, 1, 1], [], []>} : vector<128x128xbf16>, vector<128x16xbf16>, vector<128x16xf32> -> vector<128x16xf32>
    %c0_71 = arith.constant 0 : index
    %c0_72 = arith.constant 0 : index
    %71 = vector.load %arg9[%c0_71, %c0_72] : memref<1x16xf32, #tpu.memory_space<vmem>>, vector<1x16xf32>
    %72 = vector.broadcast %71 : vector<1x16xf32> to vector<128x16xf32>
    %73 = arith.addf %70, %72 : vector<128x16xf32>
    %74 = arith.extf %2 : vector<128x16xbf16> to vector<128x16xf32>
    %75 = arith.addf %73, %74 : vector<128x16xf32>
    %cst_73 = arith.constant 0.000000e+00 : f32
    %76 = vector.broadcast %cst_73 : f32 to vector<128x16xf32>
    %77 = arith.maximumf %75, %76 : vector<128x16xf32>
    %78 = vector.shape_cast %77 : vector<128x16xf32> to vector<8x16x16xf32>
    %79 = arith.truncf %78 : vector<8x16x16xf32> to vector<8x16x16xbf16>
    %c0_74 = arith.constant 0 : index
    %c0_75 = arith.constant 0 : index
    %c0_76 = arith.constant 0 : index
    %c0_77 = arith.constant 0 : index
    %80 = vector.load %arg10[%c0_74, %c0_75, %c0_76, %c0_77] : memref<1x8x16x16xbf16, #tpu.memory_space<vmem>>, vector<1x8x16x16xbf16>
    %81 = vector.shape_cast %80 : vector<1x8x16x16xbf16> to vector<8x16x16xbf16>
    %82 = vector.shape_cast %79 : vector<8x16x16xbf16> to vector<1x8x16x16xbf16>
    tpu.vector_store %arg10[%c0_74, %c0_75, %c0_76, %c0_77], %82 {strides = array<i32>} : memref<1x8x16x16xbf16, #tpu.memory_space<vmem>>, vector<1x8x16x16xbf16>,
    return
  }
  func.func @transform_0(%arg0: i32, %arg1: i32) -> (i32, i32, i32, i32) {
    %c0_i32 = arith.constant 0 : i32
    %c0_i32_0 = arith.constant 0 : i32
    %c0_i32_1 = arith.constant 0 : i32
    return %arg0, %arg1, %c0_i32, %c0_i32_0 : i32, i32, i32, i32
  }
  func.func @transform_1(%arg0: i32, %arg1: i32) -> (i32, i32, i32, i32) {
    %c0_i32 = arith.constant 0 : i32
    %c0_i32_0 = arith.constant 0 : i32
    %c0_i32_1 = arith.constant 0 : i32
    return %arg0, %arg1, %c0_i32, %c0_i32_0 : i32, i32, i32, i32
  }
  func.func @transform_2(%arg0: i32, %arg1: i32) -> (i32, i32) {
    %c0_i32 = arith.constant 0 : i32
    %c0_i32_0 = arith.constant 0 : i32
    %c0_i32_1 = arith.constant 0 : i32
    return %c0_i32, %c0_i32_0 : i32, i32
  }
  func.func @transform_3(%arg0: i32, %arg1: i32) -> (i32, i32) {
    %c0_i32 = arith.constant 0 : i32
    %c0_i32_0 = arith.constant 0 : i32
    %c0_i32_1 = arith.constant 0 : i32
    return %c0_i32, %c0_i32_0 : i32, i32
  }
  func.func @transform_4(%arg0: i32, %arg1: i32) -> (i32, i32) {
    %c0_i32 = arith.constant 0 : i32
    %c0_i32_0 = arith.constant 0 : i32
    %c0_i32_1 = arith.constant 0 : i32
    return %c0_i32, %c0_i32_0 : i32, i32
  }
  func.func @transform_5(%arg0: i32, %arg1: i32) -> (i32, i32) {
    %c0_i32 = arith.constant 0 : i32
    %c0_i32_0 = arith.constant 0 : i32
    %c0_i32_1 = arith.constant 0 : i32
    return %c0_i32, %c0_i32_0 : i32, i32
  }
  func.func @transform_6(%arg0: i32, %arg1: i32) -> (i32, i32) {
    %c0_i32 = arith.constant 0 : i32
    %c0_i32_0 = arith.constant 0 : i32
    %c0_i32_1 = arith.constant 0 : i32
    return %c0_i32, %c0_i32_0 : i32, i32
  }
  func.func @transform_7(%arg0: i32, %arg1: i32) -> (i32, i32) {
    %c0_i32 = arith.constant 0 : i32
    %c0_i32_0 = arith.constant 0 : i32
    %c0_i32_1 = arith.constant 0 : i32
    return %c0_i32, %c0_i32_0 : i32, i32
  }
  func.func @transform_8(%arg0: i32, %arg1: i32) -> (i32, i32, i32, i32) {
    %c0_i32 = arith.constant 0 : i32
    %c0_i32_0 = arith.constant 0 : i32
    %c0_i32_1 = arith.constant 0 : i32
    return %arg0, %arg1, %c0_i32, %c0_i32_0 : i32, i32, i32, i32
  }
}

</mosaic_0001>

<bundles_post_ra>
// kernel: tpu_custom_call.1
= control target key start
LH: loop header
LB: loop body
LE: loop exit
PB: predicated region body
PF: predicated region fallthrough
CT: control target
= control target key end

     0   :  { %s6269_s0 = inlined_call_operand.hbm [shape: bf16[2,16,16,16], index: 0, kind: input, shape index: {}]   ;;  %s6270_s1 = inlined_call_operand.vmem [shape: bf16[2,4,16,16], index: 1, kind: input, shape index: {}]   ;;  %s6271_s2 = inlined_call_operand.vmem [shape: bf16[16,128], index: 2, kind: input, shape index: {}]   ;;  %s6272_s3 = inlined_call_operand.hbm [shape: bf16[1152,128], index: 3, kind: input, shape index: {}]   ;;  %s6273_s4 = inlined_call_operand.vmem [shape: bf16[128,16], index: 4, kind: input, shape index: {}]   ;;  %s6274_s5 = inlined_call_operand.vmem [shape: f32[1,128], index: 5, kind: input, shape index: {}]   ;;  %s6275_s6 = inlined_call_operand.vmem [shape: f32[1,128], index: 6, kind: input, shape index: {}]   ;;  %s6276_s7 = inlined_call_operand.vmem [shape: f32[1,16], index: 7, kind: input, shape index: {}]   ;;  %s6277_s8 = inlined_call_operand.hbm [shape: bf16[2,16,16,16], index: 8, kind: output, shape index: {}]  }
   0x1   :  { %6292 = sst [smem:[#allocation18_spill]] %s6272_s3 }
   0x2   :  { %6293 = sst [smem:[#allocation19_spill]] %s6275_s6 }
   0x3   :  { %6294 = sst [smem:[#allocation20_spill]] %s6276_s7 }
   0x4   :  { %6295 = sst [smem:[#allocation21_spill]] %s6277_s8 }
   0x5   :  { %13 = vsyncpa [#allocation4], 0 }
   0x6   :  { %15 = vsyncpa [#allocation4 + $0x1], 0 }
   0x7   :  { %16 = vsyncpa [#allocation7], 0 }
   0x8   :  { %17 = vsyncpa [#allocation5], 0 }
   0x9   :  { %19 = vsyncpa [#allocation5 + $0x1], 0  ;;  %s5314_s27 = smov 0   ;;  %s5316_s28 = smov 0  }
   0xa   :  { %s5318_s29 = smov 0   ;;  %s5320_s30 = smov 0  }
   0xb   :  { %s5322_s9 = smov 0   ;;  %s5324_s10 = smov 0  }
   0xc   :  { %s5326_s11 = smov 0   ;;  %s5328_s12 = smov 0  }
   0xd LB: > { %6296 = sst [smem:[#allocation12_spill]] %s5232_s27  ;;  %s4233_s13 = sadd.s32 4294967295, %s5260_s12   ;;  %s5260_s12 = sphi %s5328_s12, %s25_s12   ;;  %s5256_s11 = sphi %s5326_s11, %s6340_s11   ;;  %s5252_s10 = sphi %s5324_s10, %s6334_s10   ;;  %s5248_s9 = sphi %s5322_s9, %s6339_s9   ;;  %s5244_s30 = sphi %s5320_s30, %s6333_s30   ;;  %s5240_s29 = sphi %s5318_s29, %s6338_s29   ;;  %s5236_s28 = sphi %s5316_s28, %s6337_s28   ;;  %s5232_s27 = sphi %s5314_s27, %s6336_s27  }
   0xe   : > { %6297 = sst [smem:[#allocation13_spill]] %s5252_s10  ;;  %s4234_s14 = sadd.s32 4294967294, %s5260_s12  }
   0xf   : > { %p59_p0 = scmp.ne.s32.totalorder %s5236_s28, %s5232_s27  ;;  %p5358_p1 = scmp.eq.s32.totalorder %s4233_s13, 0 }
  0x10   : > { %p5362_p2 = scmp.eq.s32.totalorder %s4233_s13, 3  ;;  %p245_p3 = scmp.eq.s32.totalorder %s4234_s14, 3 }
  0x11   : > { %s6298_s15 = scalar_select %p5358_p1, 1, 0 }
  0x12   : > { %s6299_s16 = scalar_select %p5362_p2, 1, 0 }
  0x13   : > { %p5368_p4 = por %p5358_p1, %p59_p0  ;;  %p4235_p5 = scmp.ge.s32.totalorder %s5260_s12, 1 }
  0x14   : > { %p5373_p6 = por %p245_p3, %p59_p0  ;;  %p252_p7 = scmp.lt.s32.totalorder %s5260_s12, 5 }
  0x15   : > { %s6300_s17 = scalar_select %p5368_p4, 1, 0 }
  0x16   : > { %s6301_s18 = scalar_select %p5373_p6, 1, 0 }
  0x17   : > { %p5378_p8 = pnand %p4235_p5, %p252_p7  ;;  %s5262_s20 = smov [#allocation6]  }
  0x18   : > { %6302 = sst [smem:[#allocation14_spill]] %s6301_s18  ;;  %s267_s21 = sshll.u32 %s5262_s20, 4  ;;  %s268_s21 = int_to_ptr.vmem [resolvable:$true] %s267_s21 }
  0x19   : > { %s6303_s19 = scalar_select %p5378_p8, 1, 0 }
  0x1a   : > { %p4904_p9 = pneg %p5378_p8  ;;  %s6305_s3 = sld [smem:[#allocation18_spill]] }
  0x1c   : > { %p5386_p10 = pnand %p4904_p9, %p5358_p1 }
  0x1e   : > { %p5102_p12 = pneg %p5386_p10 }
  0x20   : > { %s5100_s25 = scalar_lea.hbm %s6305_s3, 9216 }
  0x21   : > { %p5101_p11 = scmp.ne.s32.totalorder %s6305_s3, %s5100_s25  ;;  %p5107_p3 = scmp.lt.u32.totalorder %s5100_s25, %s6305_s3 }
  0x23   : > { %p5103_p13 = pnand %p5102_p12, %p5101_p11 }
  0x25   : > { %p5104_p0 = pneg %p5103_p13 }
  0x27   : > { %p5109_p5 = pnand %p5107_p3, %p5104_p0 }
  0x29   : > { %5112 = shalt.err (!%p5109_p5)
}
  0x2a   : > { %s5113_s18 = scalar_lea.vmem %s268_s21, 9216  ;;  %p5121_p1 = scmp.lt.s32.totalorder %s268_s21, %s268_s21 }
  0x2b   : > { %p5114_p7 = scmp.ne.s32.totalorder %s268_s21, %s5113_s18  ;;  %p5122_p4 = scmp.lt.s32.totalorder %s5113_s18, %s5113_s18 }
  0x2d   : > { %p5116_p9 = pnand %p5114_p7, %p5102_p12  ;;  %p5123_p8 = por %p5122_p4, %p5121_p1 }
  0x2f   : > { %p5117_p6 = pneg %p5116_p9 }
  0x31   : > { %p5124_p2 = pnand %p5123_p8, %p5117_p6 }
  0x33   : > { %5127 = shalt.err (!%p5124_p2)
}
  0x34   : > { %s6283_s23 = smov 64   ;;  %s6284_s24 = smov 4  }
  0x35   : > { %4907 = dma.hbm_to_vmem [thread:$0]  (!%p5386_p10), %s6305_s3, 9216, %s268_s21, [#allocation7], %s6283_s23, %s6283_s23, %s6284_s24  }
  0x36   : > { %s34_s26 = sadd.s32 1, %s5252_s10  ;;  %s37_s13 = sadd.s32 1, %s5256_s11 }
  0x37   : > { %p35_p1 = scmp.ge.s32.totalorder %s34_s26, 2  ;;  %s46_s14 = sadd.s32 1, %s5240_s29 }
  0x38   : > { %p53_p2 = scmp.ne.s32.totalorder %s5240_s29, %s5236_s28  ;;  %p54_p4 = scmp.eq.s32.totalorder %s5260_s12, 0 }
  0x39   : > { %s6342_s26 = smov (%p35_p1, %s34_s26), 0  ;;  %s6344_s13 = smov (!%p35_p1, %s37_s13), %s5256_s11 }
  0x3a   : > { %6306 = sst [smem:[#allocation15_spill]] %s6342_s26  ;;  %s42_s22 = ssub.s32 %s5252_s10, %s6342_s26 }
  0x3b   : > { %p39_p6 = scmp.ge.s32.totalorder %s6344_s13, 2  ;;  %p6307_p8 = scmp.ne.s32.totalorder %s6299_s16, 0 }
  0x3c   : > { %p5426_p10 = por %p54_p4, %p53_p2  ;;  %p4917_p12 = scmp.lt.s32.totalorder %s5260_s12, 4 }
  0x3d   : > { %p5422_p11 = por %p6307_p8, %p53_p2  ;;  %s6346_s13 = smov (%p39_p6, %s6344_s13), 0 }
  0x3e   : > { %6311 = sst [smem:[#allocation17_spill]] %s6346_s13  ;;  %s293_s18 = sand.u32 1, %s5240_s29  }
  0x3f   : > { %s6308_s20 = scalar_select %p5422_p11, 1, 0 }
  0x40   : > { %s4378_s25 = sshll.u32 %s5252_s10, 4  ;;  %s41_s23 = ssub.s32 %s5256_s11, %s6346_s13 }
  0x41   : > { %6309 = sst [smem:[#allocation16_spill]] %s6308_s20  ;;  %s43_s24 = sor.u32 %s42_s22, %s41_s23 }
  0x42   : > { %s4238_s3 = sshll.u32 %s293_s18, 6  ;;  %p44_p13 = scmp.eq.s32.totalorder %s43_s24, 0 }
  0x43   : > { %s4241_s16 = sshll.u32 %s5256_s11, 5  ;;  %s297_s26 = scalar_lea.vmem [#allocation3], %s4238_s3 }
  0x44   : > { %s307_s27 = sshll.u32 %s297_s26, 4  ;;  %s304_s20 = sadd.s32 %s4378_s25, %s4241_s16  ;;  %s5441_s27 = int_to_ptr.vmem [resolvable:$true] %s307_s27 }
  0x45   : > { %s5439_s8 = scalar_select %p44_p13, %s5240_s29, %s46_s14  }
  0x46   : > { %s4242_s7 = sshll.u32 %s304_s20, 6  ;;  %p5447_p0 = pnand %p4917_p12, %p5426_p10 }
  0x47   : > { %s5454_s23 = scalar_lea.hbm %s6269_s0, %s4242_s7  ;;  %s5456_s3 = scalar_lea.sflag [#allocation4], %s293_s18 }
  0x48   : > { %s5128_s24 = scalar_lea.hbm %s5454_s23, 1024  ;;  %p5130_p5 = pneg %p5447_p0 }
  0x49   : > { %p5129_p3 = scmp.ne.s32.totalorder %s5454_s23, %s5128_s24  ;;  %s5133_s13 = scalar_lea.hbm %s6269_s0, 4096 }
  0x4a   : > { %p5134_p1 = scmp.lt.u32.totalorder %s5454_s23, %s6269_s0  ;;  %p5135_p2 = scmp.lt.u32.totalorder %s5133_s13, %s5128_s24 }
  0x4b   : > { %p5131_p7 = pnand %p5130_p5, %p5129_p3  ;;  %p5137_p6 = scmp.lt.u32.totalorder %s5128_s24, %s5454_s23 }
  0x4c   : > { %p5136_p4 = por %p5135_p2, %p5134_p1 }
  0x4d   : > { %p5132_p9 = pneg %p5131_p7 }
  0x4e   : > { %p5138_p8 = por %p5137_p6, %p5136_p4 }
  0x50   : > { %p5139_p10 = pnand %p5138_p8, %p5132_p9 }
  0x52   : > { %5142 = shalt.err (!%p5139_p10)
}
  0x53   : > { %s5143_s22 = scalar_lea.vmem %s5441_s27, 1024  ;;  %s5265_s20 = smov [#allocation3]  }
  0x54   : > { %p5144_p12 = scmp.ne.s32.totalorder %s5441_s27, %s5143_s22  ;;  %s5148_s21 = sshll.u32 %s5265_s20, 4  ;;  %s5149_s21 = int_to_ptr.vmem [resolvable:$false] %s5148_s21 }
  0x55   : > { %s5150_s18 = scalar_lea.vmem %s5149_s21, 2048  ;;  %p5151_p7 = scmp.lt.s32.totalorder %s5441_s27, %s5149_s21 }
  0x56   : > { %p5146_p13 = pnand %p5144_p12, %p5130_p5  ;;  %p5152_p1 = scmp.lt.s32.totalorder %s5150_s18, %s5143_s22 }
  0x58   : > { %p5147_p3 = pneg %p5146_p13  ;;  %p5153_p2 = por %p5152_p1, %p5151_p7 }
  0x5a   : > { %p5154_p4 = pnand %p5153_p2, %p5147_p3 }
  0x5c   : > { %5157 = shalt.err (!%p5154_p4)
}
  0x5d   : > { %s6313_s25 = smov 4   ;;  %s6314_s16 = smov 64  }
  0x5e   : > { %4911 = dma.hbm_to_vmem [thread:$0]  (!%p5447_p0), %s5454_s23, 1024, %s5441_s27, %s5456_s3, %s6314_s16, %s6314_s16, %s6313_s25  }
  0x5f   : > { %p6315_p5 = scmp.ne.s32.totalorder %s6303_s19, 0 }
  0x60   : > { %s5490_s24 = sand.u32 (!%p6315_p5), 1, %s5236_s28   ;;  %p6316_p9 = scmp.ne.s32.totalorder (!%p6315_p5), %s6300_s17, 0 }
  0x61   : > { %333 = sbr.rel (%p6315_p5) target bundleno = 1081 (0x439), region = 52  ;;  %s4244_s26 = sshll.u32 (!%p6315_p5), %s5490_s24, 6 }
  0x62   : > { %s336_s10 = scalar_lea.sflag (!%p6315_p5), [#allocation4], %s5490_s24  ;;  %s5496_s6 = scalar_lea.vmem (!%p6315_p5), [#allocation3], %s4244_s26 }
  0x68   : > { %5219 = dma.done.wait (%p6316_p9), %s336_s10, 1024  }
  0x69   : > { %5221 = vsyncadd (%p6316_p9), %s336_s10, 4294966272  ;;  %p6317_p0 = scmp.ne.s32.totalorder %s6298_s15, 0 }
  0x6b   : > { %5223 = dma.done.wait (%p6317_p0), [#allocation7], 9216  }
  0x6c   : > { %5225 = vsyncadd (%p6317_p0), [#allocation7], 4294958080  ;;  %s4247_s27 = sshll.u32 %s5244_s30, 1  ;;  %p388_p6 = scmp.lt.s32.totalorder %s5248_s9, 1  ;;  %v4989_v0 = vld [vmem:[%s6271_s2] sm:$0xff]   ;;  %vm471_vm0 = vcmask 130048  }
  0x6d   : > { %p390_p8 = scmp.lt.s32.totalorder %s4247_s27, 3  ;;  %v400_v1 = vld [vmem:[%s5496_s6] sm:$0xff]   ;;  %v402_v2 = vld [vmem:[%s5496_s6 + $0x8] sm:$0xff]   ;;  %v404_v3 = vld [vmem:[%s5496_s6 + $0x10] sm:$0xff]   ;;  %4664 = vmatprep.subr.bf16.mxu0 %v4989_v0  ;;  %4682 = vmatprep.subr.bf16.mxu1 %v4989_v0  ;;  %vm789_vm1 = vcmask 1044484   ;;  %vm756_vm4 = vcmask 1043459  }
  0x6e   : > { %s389_s19 = scalar_select %p388_p6, %s5248_s9, 1  ;;  %4665 = vmatpush3.bf16.msra.mxu0 %v4989_v0  ;;  %4683 = vmatpush3.bf16.msra.mxu1 %v4989_v0  ;;  %v406_v6 = vld [vmem:[%s5496_s6 + $0x18] sm:$0xff]   ;;  %v408_v7 = vld [vmem:[%s5496_s6 + $0x20] sm:$0xff]   ;;  %v410_v9 = vld [vmem:[%s5496_s6 + $0x28] sm:$0xff]   ;;  %vm790_vm2 = vsmask.f32 4352 }
  0x6f   : > { %s6348_s27 = smov (!%p390_p8, %s4247_s27), 3  ;;  %4666 = vmatprep.mubr.msk.bf16.mxu0 %vm471_vm0, %v400_v1  ;;  %v5000_v8 = vld [vmem:[#allocation6 + $0x140] sm:$0xff]   ;;  %v412_v10 = vld [vmem:[%s5496_s6 + $0x30] sm:$0xff]   ;;  %v414_v11 = vld [vmem:[%s5496_s6 + $0x38] sm:$0xff]   ;;  %vm757_vm5 = vsmask.f32 7950 }
  0x70   : > { %s4249_s23 = sshll.u32 %s389_s19, 3  ;;  %s4248_s17 = sshll.u32 %s6348_s27, 1  ;;  %4688 = vmatprep.subr.bf16.mxu1 %v5000_v8  ;;  %v5001_v12 = vld [vmem:[#allocation6 + $0x148] sm:$0xff]   ;;  %v5002_v13 = vld [vmem:[#allocation6 + $0x100] sm:$0xff]   ;;  %v5004_v15 = vld [vmem:[#allocation6 + $0x150] sm:$0xff]   ;;  %vm991_vm9 = vcmask 1046528  }
  0x71   : > { %s394_s3 = sadd.s32 %s4249_s23, %s4248_s17  ;;  %4667 = vmatmul.mubr.msk.bf16.vlgmr.msra.gmra.mrb[0].mxu0 %vm471_vm0, %v402_v2  ;;  %v5003_v14 = vld [vmem:[#allocation6 + $0xc0] sm:$0xff]   ;;  %4408 = vmatprep.subr.bf16.mxu0 %v5002_v13  ;;  %v5005_v16 = vld [vmem:[#allocation6 + $0x108] sm:$0xff]   ;;  %v5007_v18 = vld [vmem:[#allocation6 + $0x158] sm:$0xff]   ;;  %p688_p10 = scmp.lt.s32.totalorder %s5244_s30, 1  ;;  %vm854_vm10 = vsmask.f32 7424 }
  0x72   : > { %s4250_s15 = sshll.u32 %s394_s3, 2  ;;  %4670 = vmatprep.mubr.msk.bf16.mxu0 %vm471_vm0, %v404_v3  ;;  %4409 = vmatpush3.bf16.msra.mxu0 %v5003_v14  ;;  %v5006_v17 = vld [vmem:[#allocation6 + $0xc8] sm:$0xff]   ;;  %v5008_v19 = vld [vmem:[#allocation6 + $0x110] sm:$0xff]   ;;  %vm5534_vm3 = vmand %vm789_vm1, %vm790_vm2  ;;  %p682_p12 = scmp.gt.s32.totalorder %s5244_s30, 0  ;;  %vm4078_vm11 = vcmask 125952  }
  0x73   : > { %s396_s20 = scalar_lea.vmem %s6270_s1, %s4250_s15  ;;  %4410 = vmatprep.subr.bf16.mxu0 %v5005_v16  ;;  %v5009_v21 = vld [vmem:[#allocation6 + $0xd0] sm:$0xff]   ;;  %v795_v22 = vld [vmem:[#allocation2 + $0x18] sm:$0x10]  ;;  %v798_v23 = vld [vmem:[#allocation2 + $0x28] sm:$0x10]  ;;  %s6326_s19 = sld [smem:[#allocation19_spill]] }
  0x74   : > { %v4996_v4 = vld [vmem:[%s396_s20] sm:$0xff]   ;;  %v4997_v5 = vld [vmem:[%s396_s20 + $0x8] sm:$0xff]   ;;  %v796_v24 = vsel %vm5534_vm3, 0, %v795_v22  ;;  %v799_v25 = vsel %vm5534_vm3, 0, %v798_v23  ;;  %v5011_v27 = vld [vmem:[#allocation6 + $0x118] sm:$0xff]   ;;  %s6327_s3 = sld [smem:[#allocation20_spill]] }
  0x75   : > { %4684 = vmatprep.mubr.msk.bf16.mxu1 %vm471_vm0, %v4996_v4  ;;  %797 = vst [vmem:[#allocation2 + $0x18] sm:$0x10] %v796_v24  ;;  %800 = vst [vmem:[#allocation2 + $0x28] sm:$0x10] %v799_v25  ;;  %v5010_v26 = vld [vmem:[#allocation6 + $0x160] sm:$0xff]   ;;  %v5012_v28 = vld [vmem:[#allocation6 + $0xd8] sm:$0xff]  }
  0x76   : > { %4685 = vmatmul.mubr.msk.bf16.vlgmr.msra.gmra.mrb[0].mxu1 %vm471_vm0, %v4997_v5  ;;  %4411 = vmatpush3.bf16.msra.mxu0 %v5006_v17  ;;  %v5013_v29 = vld [vmem:[#allocation6 + $0x168] sm:$0xff]   ;;  %v5014_v30 = vld [vmem:[#allocation6 + $0x120] sm:$0xff]   ;;  %vm5542_vm6 = vmand %vm756_vm4, %vm757_vm5  ;;  %s689_s21 = scalar_select %p688_p10, 1, 0 }
  0x77   : > { %4689 = vmatpush3.bf16.msra.mxu1 %v5000_v8  ;;  %4412 = vmatprep.subr.bf16.mxu0 %v5008_v19  ;;  %v5015_v31 = vld [vmem:[#allocation6 + $0xe0] sm:$0xff]   ;;  %v5016_v33 = vld [vmem:[#allocation6 + $0x170] sm:$0xff]   ;;  %v5017_v34 = vld [vmem:[#allocation6 + $0x128] sm:$0xff]   ;;  %s683_s18 = scalar_select %p682_p12, 1, 0 }
  0x78   : > { %4690 = vmatprep.subr.bf16.mxu1 %v5001_v12  ;;  %v762_v35 = vld [vmem:[#allocation2 + $0x10] sm:$0x8]  ;;  %v5018_v36 = vld [vmem:[#allocation6 + $0xe8] sm:$0xff]   ;;  %v5019_v38 = vld [vmem:[#allocation6 + $0x178] sm:$0xff]   ;;  %s6157_s13 = scalar_lea.vmem [#allocation8], %s4244_s26  ;;  %s4395_s26 = sshll.u32 %s5244_s30, 4 }
  0x79   : > { %4671 = vmatmul.mubr.msk.bf16.gmra.mrb[4].mxu0 %vm471_vm0, %v406_v6  ;;  %v763_v37 = vsel %vm5542_vm6, 0, %v762_v35  ;;  %v5020_v39 = vld [vmem:[#allocation6 + $0x130] sm:$0xff]   ;;  %v5022_v41 = vld [vmem:[#allocation6 + $0x40] sm:$0xff]   ;;  %v5023_v42 = vld [vmem:[#allocation6 + $0x138] sm:$0xff]   ;;  %v690_v6 = vstv %s689_s21  ;;  %s4374_s7 = sshll.u32 %s5248_s9, 5  ;;  %s4112_s30 = sshll.u32 %s6157_s13, 4  ;;  %s6204_s30 = int_to_ptr.vmem [resolvable:$true] %s4112_s30 }
  0x7a   : > { %4674 = vmatprep.mubr.msk.bf16.mxu0 %vm471_vm0, %v408_v7  ;;  %4413 = vmatpush3.bf16.msra.mxu0 %v5009_v21  ;;  %764 = vst [vmem:[#allocation2 + $0x10] sm:$0x8] %v763_v37  ;;  %v5021_v40 = vld [vmem:[#allocation6 + $0xf0] sm:$0xff]   ;;  %v765_v43 = vld [vmem:[#allocation2 + $0x20] sm:$0x8]  ;;  %v5025_v45 = vld [vmem:[#allocation6 + $0xf8] sm:$0xff]  }
  0x7b   : > { %4691 = vmatpush3.bf16.msra.mxu1 %v5001_v12  ;;  %4414 = vmatprep.subr.bf16.mxu0 %v5011_v27  ;;  %v766_v44 = vsel %vm5542_vm6, 0, %v765_v43  ;;  %v804_v46 = vld [vmem:[#allocation2 + $0x48] sm:$0x10]  ;;  %v801_v47 = vld [vmem:[#allocation2 + $0x38] sm:$0x10]  ;;  %v5040_v0 = vld [vmem:[#allocation6 + $0x1c0] sm:$0xff]  }
  0x7c   : > { %4692 = vmatprep.subr.bf16.mxu1 %v5004_v15  ;;  %767 = vst [vmem:[#allocation2 + $0x20] sm:$0x8] %v766_v44  ;;  %v805_v48 = vsel %vm5534_vm3, 0, %v804_v46  ;;  %v802_v49 = vsel %vm5534_vm3, 0, %v801_v47  ;;  %v768_v50 = vld [vmem:[#allocation2 + $0x30] sm:$0x8] }
  0x7d   : > { %806 = vst [vmem:[#allocation2 + $0x48] sm:$0x10] %v805_v48  ;;  %803 = vst [vmem:[#allocation2 + $0x38] sm:$0x10] %v802_v49  ;;  %v769_v51 = vsel %vm5542_vm6, 0, %v768_v50  ;;  %vm5582_vm7 = vcmp.eq.s32.totalorder %v690_v6, 1 }
  0x7e   : > { %4415 = vmatpush3.bf16.msra.mxu0 %v5012_v28  ;;  %770 = vst [vmem:[#allocation2 + $0x30] sm:$0x8] %v769_v51  ;;  %v810_v52 = vld [vmem:[#allocation2 + $0x68] sm:$0x10]  ;;  %v807_v53 = vld [vmem:[#allocation2 + $0x58] sm:$0x10] }
  0x7f   : > { %4693 = vmatpush3.bf16.msra.mxu1 %v5004_v15  ;;  %4416 = vmatprep.subr.bf16.mxu0 %v5014_v30  ;;  %v811_v54 = vsel %vm5534_vm3, 0, %v810_v52  ;;  %v771_v55 = vld [vmem:[#allocation2 + $0x40] sm:$0x8]  ;;  %v808_v56 = vsel %vm5534_vm3, 0, %v807_v53  ;;  %v816_v58 = vld [vmem:[#allocation2 + $0x88] sm:$0x10] }
  0x80   : > { %4694 = vmatprep.subr.bf16.mxu1 %v5007_v18  ;;  %812 = vst [vmem:[#allocation2 + $0x68] sm:$0x10] %v811_v54  ;;  %v772_v57 = vsel %vm5542_vm6, 0, %v771_v55  ;;  %809 = vst [vmem:[#allocation2 + $0x58] sm:$0x10] %v808_v56  ;;  %v817_v60 = vsel %vm5534_vm3, 0, %v816_v58 }
  0x81   : > { %4675 = vmatmul.mubr.msk.bf16.gmra.mrb[8].mxu0 %vm471_vm0, %v410_v9  ;;  %773 = vst [vmem:[#allocation2 + $0x40] sm:$0x8] %v772_v57  ;;  %v813_v59 = vld [vmem:[#allocation2 + $0x78] sm:$0x10]  ;;  %818 = vst [vmem:[#allocation2 + $0x88] sm:$0x10] %v817_v60  ;;  %v684_v9 = vstv %s683_s18 }
  0x82   : > { %4678 = vmatprep.mubr.msk.bf16.mxu0 %vm471_vm0, %v412_v10  ;;  %4417 = vmatpush3.bf16.msra.mxu0 %v5015_v31  ;;  %v814_v61 = vsel %vm5534_vm3, 0, %v813_v59  ;;  %v759_v62 = vld [vmem:[#allocation2] sm:$0x8]  ;;  %v774_v1 = vld [vmem:[#allocation2 + $0x50] sm:$0x8]  ;;  %vm5588_vm8 = vcmp.eq.s32.totalorder %v684_v9, 1 }
  0x83   : > { %4695 = vmatpush3.bf16.msra.mxu1 %v5007_v18  ;;  %4418 = vmatprep.subr.bf16.mxu0 %v5017_v34  ;;  %815 = vst [vmem:[#allocation2 + $0x78] sm:$0x10] %v814_v61  ;;  %v760_v63 = vsel %vm5542_vm6, 0, %v759_v62  ;;  %v775_v2 = vsel %vm5542_vm6, 0, %v774_v1  ;;  %v777_v3 = vld [vmem:[#allocation2 + $0x60] sm:$0x8] }
  0x84   : > { %4696 = vmatprep.subr.bf16.mxu1 %v5010_v26  ;;  %761 = vst [vmem:[#allocation2] sm:$0x8] %v760_v63  ;;  %776 = vst [vmem:[#allocation2 + $0x50] sm:$0x8] %v775_v2  ;;  %v778_v4 = vsel %vm5542_vm6, 0, %v777_v3  ;;  %s6329_s20 = sld [smem:[#allocation21_spill]] }
  0x85   : > { %779 = vst [vmem:[#allocation2 + $0x60] sm:$0x8] %v778_v4  ;;  %v5577_v5 = vld [vmem:[%s6274_s5] ss:$0 sm:$0xff]  ;;  %v780_v35 = vld [vmem:[#allocation2 + $0x70] sm:$0x8] }
  0x86   : > { %4419 = vmatpush3.bf16.msra.mxu0 %v5018_v36  ;;  %v783_v63 = vld [vmem:[#allocation2 + $0x80] sm:$0x8]  ;;  %s4096_s18 = scalar_lea.sflag [#allocation5], %s5490_s24  ;;  %s5158_s25 = scalar_lea.vmem %s6204_s30, 1024 }
  0x87   : > { %4697 = vmatpush3.bf16.msra.mxu1 %v5010_v26  ;;  %4420 = vmatprep.subr.bf16.mxu0 %v5020_v39  ;;  %v781_v39 = vsel %vm5542_vm6, 0, %v780_v35  ;;  %v784_v2 = vsel %vm5542_vm6, 0, %v783_v63  ;;  %p5159_p13 = scmp.ne.s32.totalorder %s6204_s30, %s5158_s25  ;;  %s5266_s16 = smov [#allocation8]  }
  0x88   : > { %4698 = vmatprep.subr.bf16.mxu1 %v5013_v29  ;;  %782 = vst [vmem:[#allocation2 + $0x70] sm:$0x8] %v781_v39  ;;  %785 = vst [vmem:[#allocation2 + $0x80] sm:$0x8] %v784_v2  ;;  %s5162_s10 = sshll.u32 %s5266_s16, 4  ;;  %s5163_s10 = int_to_ptr.vmem [resolvable:$false] %s5162_s10 }
  0x89   : > { %4679 = vmatmul.mubr.msk.bf16.gmra.mrb[12].mxu0 %vm471_vm0, %v414_v11  ;;  %p5160_p3 = pnand %p5159_p13, %p5422_p11  ;;  %s5164_s27 = scalar_lea.vmem %s5163_s10, 2048 }
  0x8a   : > { %4421 = vmatpush3.bf16.msra.mxu0 %v5021_v40  ;;  %p5165_p1 = scmp.lt.s32.totalorder %s6204_s30, %s5163_s10  ;;  %p5166_p2 = scmp.lt.s32.totalorder %s5164_s27, %s5158_s25 }
  0x8b   : > { %4699 = vmatpush3.bf16.msra.mxu1 %v5013_v29  ;;  %4422 = vmatprep.subr.bf16.mxu0 %v5023_v42  ;;  %p5161_p7 = pneg %p5160_p3 }
  0x8c   : > { %4700 = vmatprep.subr.bf16.mxu1 %v5016_v33  ;;  %p5167_p4 = por %p5166_p2, %p5165_p1 }
  0x8e   : > { %4423 = vmatpush3.bf16.msra.mxu0 %v5025_v45  ;;  %p5168_p5 = pnand %p5167_p4, %p5161_p7 }
  0x8f   : > { %4701 = vmatpush3.bf16.msra.mxu1 %v5016_v33  ;;  %4568 = vmatprep.subr.bf16.mxu0 %v5040_v0 }
  0x90   : > { %4702 = vmatprep.subr.bf16.mxu1 %v5019_v38 }
  0x93   : > { %4703 = vmatpush3.bf16.msra.mxu1 %v5019_v38 }
  0x94   : > { %4488 = vmatprep.subr.bf16.mxu1 %v5022_v41 }
 0x144   : > { %v4668_v7 = vpop.f32.mrb[0].mxu0 }
 0x145   : > { %v539_v10 = vadd.f32 %v4668_v7, %v5577_v5  ;;  %v530_v11 = vpop.f32.mrb[1].mxu0 }
 0x146   : > { %v531_v14 = vadd.f32 %v5577_v5, %v530_v11  ;;  %v4669_v15 = vpop.f32.mrb[2].mxu0 }
 0x147   : > { %v542_v19 = vadd.f32 %v4669_v15, %v5577_v5  ;;  %v533_v21 = vpop.f32.mrb[3].mxu0  ;;  %v595_v26 = vmax.f32 %v539_v10, 0.0 }
 0x148   : > { %v534_v27 = vadd.f32 %v5577_v5, %v533_v21  ;;  %v593_v30 = vmax.f32 %v531_v14, 0.0 }
 0x149   : > { %v4686_v8 = vpop.f32.mrb[0].mxu1  ;;  %v596_v31 = vmax.f32 %v542_v19, 0.0 }
 0x14a   : > { %v672_v12 = vadd.f32 %v4686_v8, %v5577_v5  ;;  %v663_v13 = vpop.f32.mrb[1].mxu1  ;;  %v594_v36 = vmax.f32 %v534_v27, 0.0 }
 0x14b   : > { %v664_v17 = vadd.f32 %v5577_v5, %v663_v13  ;;  %v4687_v18 = vpop.f32.mrb[2].mxu1  ;;  %v695_v40 = vpack.c.bf16 %v596_v31, %v595_v26 }
 0x14c   : > { %v680_v22 = vmax.f32 %v672_v12, 0.0  ;;  %v675_v24 = vadd.f32 %v4687_v18, %v5577_v5  ;;  %v666_v25 = vpop.f32.mrb[3].mxu1  ;;  %v694_v42 = vpack.c.bf16 %v594_v36, %v593_v30  ;;  %v4672_v43 = vpop.f32.mrb[4].mxu0 }
 0x14d   : > { %v678_v28 = vmax.f32 %v664_v17, 0.0  ;;  %v667_v29 = vadd.f32 %v5577_v5, %v666_v25  ;;  %v711_v46 = vrot.slane %v695_v40, 4  ;;  %v555_v47 = vadd.f32 %v4672_v43, %v5577_v5  ;;  %v546_v48 = vpop.f32.mrb[5].mxu0 }
 0x14e   : > { %v692_v33 = vsel %vm5582_vm7, %v680_v22, 0.0  ;;  %v681_v34 = vmax.f32 %v675_v24, 0.0  ;;  %v710_v50 = vrot.slane %v694_v42, 4  ;;  %v547_v51 = vadd.f32 %v5577_v5, %v546_v48  ;;  %v4673_v52 = vpop.f32.mrb[6].mxu0 }
 0x14f   : > { %v686_v37 = vsel %vm5588_vm8, %v678_v28, 0.0  ;;  %v679_v38 = vmax.f32 %v667_v29, 0.0  ;;  %729 = vst [vmem:[#allocation2 + $0x28] ss:$-4 sps:$4 sm:$0xff] %v711_v46   ;;  %v558_v54 = vadd.f32 %v4673_v52, %v5577_v5  ;;  %v549_v55 = vpop.f32.mrb[7].mxu0  ;;  %v599_v58 = vmax.f32 %v555_v47, 0.0 }
 0x150   : > { %v693_v41 = vsel %vm5582_vm7, %v681_v34, 0.0  ;;  %727 = vst [vmem:[#allocation2 + $0x18] ss:$-4 sps:$4 sm:$0xff] %v710_v50   ;;  %v550_v57 = vadd.f32 %v5577_v5, %v549_v55  ;;  %v597_v60 = vmax.f32 %v547_v51, 0.0 }
 0x151   : > { %v749_v44 = vpack.c.bf16 %v693_v41, %v692_v33  ;;  %v687_v45 = vsel %vm5588_vm8, %v679_v38, 0.0  ;;  %v600_v59 = vmax.f32 %v558_v54, 0.0 }
 0x152   : > { %v743_v49 = vpack.c.bf16 %v687_v45, %v686_v37  ;;  %v598_v61 = vmax.f32 %v550_v57, 0.0 }
 0x153   : > { %v751_v53 = vrot.slane %v749_v44, 4  ;;  %v697_v62 = vpack.c.bf16 %v600_v59, %v599_v58 }
 0x154   : > { %v745_v56 = vrot.slane %v743_v49, 4  ;;  %v696_v0 = vpack.c.bf16 %v598_v61, %v597_v60  ;;  %v4676_v1 = vpop.f32.mrb[8].mxu0 }
 0x155   : > { %754 = vst [vmem:[#allocation2 + $0x98] ss:$-4 sps:$4 sm:$0xff] %v751_v53   ;;  %v713_v3 = vrot.slane %v697_v62, 4  ;;  %v571_v4 = vadd.f32 %v4676_v1, %v5577_v5  ;;  %v562_v6 = vpop.f32.mrb[9].mxu0 }
 0x156   : > { %747 = vst [vmem:[#allocation2 + $0x8] ss:$-4 sps:$4 sm:$0xff] %v745_v56   ;;  %v712_v7 = vrot.slane %v696_v0, 4  ;;  %v563_v8 = vadd.f32 %v5577_v5, %v562_v6  ;;  %v4677_v9 = vpop.f32.mrb[10].mxu0  ;;  %v5613_v10 = vld [vmem:[#allocation2 + $0x20] sm:$0xf0] }
 0x157   : > { %v1481_v11 = vld [vmem:[#allocation2 + $0x28] sm:$0x1f]  ;;  %733 = vst [vmem:[#allocation2 + $0x48] ss:$-4 sps:$4 sm:$0xff] %v713_v3   ;;  %v603_v12 = vmax.f32 %v571_v4, 0.0  ;;  %v574_v13 = vadd.f32 %v4677_v9, %v5577_v5  ;;  %v565_v14 = vpop.f32.mrb[11].mxu0 }
 0x158   : > { %v5616_v15 = vld [vmem:[#allocation2 + $0x10] sm:$0xf0]  ;;  %v1480_v16 = vld [vmem:[#allocation2 + $0x18] sm:$0x1f]  ;;  %731 = vst [vmem:[#allocation2 + $0x38] ss:$-4 sps:$4 sm:$0xff] %v712_v7   ;;  %v566_v18 = vadd.f32 %v5577_v5, %v565_v14 }
 0x159   : > { %v601_v17 = vmax.f32 %v563_v8, 0.0  ;;  %v1624_v19 = vrot.slane %v5616_v15, 1  ;;  %v1625_v21 = vrot.slane %v1480_v16, 1  ;;  %v604_v22 = vmax.f32 %v574_v13, 0.0  ;;  %v1457_v55 = vld [vmem:[#allocation2 + $0x18] sm:$0xf] }
 0x15a   : > { %v1627_v23 = vrot.slane %v5613_v10, 1  ;;  %v1628_v24 = vrot.slane %v1481_v11, 1  ;;  %v1489_v25 = vshrl.u32 %v5616_v15, 16  ;;  %v602_v26 = vmax.f32 %v566_v18, 0.0  ;;  %v1456_v0 = vld [vmem:[#allocation2 + $0x10] sm:$0xf8] }
 0x15b   : > { %v1626_v27 = vsel %vm991_vm9, %v1624_v19, %v1625_v21  ;;  %v1686_v28 = vshrl.u32 %v1625_v21, 16  ;;  %v1689_v29 = vshll.u32 %v1625_v21, 16  ;;  %v699_v30 = vpack.c.bf16 %v604_v22, %v603_v12  ;;  %v5024_v12 = vld [vmem:[#allocation6] sm:$0xff]   ;;  %v5026_v18 = vld [vmem:[#allocation6 + $0x48] sm:$0xff]  }
 0x15c   : > { %v1678_v31 = vshrl.u32 %v1626_v27, 16  ;;  %v1681_v33 = vshll.u32 %v1626_v27, 16  ;;  %v1629_v34 = vsel %vm991_vm9, %v1627_v23, %v1628_v24  ;;  %v698_v35 = vpack.c.bf16 %v602_v26, %v601_v17  ;;  %v4680_v36 = vpop.f32.mrb[12].mxu0  ;;  %v5631_v26 = vld [vmem:[#allocation2 + $0x28] sm:$0xf] }
 0x15d   : > { %v1688_v37 = vrot.slane %v1686_v28, 3  ;;  %v1691_v38 = vrot.slane %v1689_v29, 4  ;;  %v1724_v39 = vshrl.u32 %v1629_v34, 16  ;;  %v715_v40 = vrot.slane %v699_v30, 4  ;;  %v578_v42 = vpop.f32.mrb[13].mxu0  ;;  %v5027_v30 = vld [vmem:[#allocation6 + $0x8] sm:$0xff]  }
 0x15e   : > { %v587_v41 = vadd.f32 %v4680_v36, %v5577_v5  ;;  %v1680_v43 = vrot.slane %v1678_v31, 3  ;;  %v1683_v44 = vrot.slane %v1681_v33, 4  ;;  %v714_v45 = vrot.slane %v698_v35, 4  ;;  %v4681_v47 = vpop.f32.mrb[14].mxu0 }
 0x15f   : > { %v579_v46 = vadd.f32 %v5577_v5, %v578_v42  ;;  %v1692_v48 = vor.u32 %v1691_v38, %v1688_v37  ;;  %v1726_v49 = vrot.slane %v1724_v39, 3  ;;  %737 = vst [vmem:[#allocation2 + $0x68] ss:$-4 sps:$4 sm:$0xff] %v715_v40   ;;  %v590_v51 = vadd.f32 %v4681_v47, %v5577_v5  ;;  %v581_v52 = vpop.f32.mrb[15].mxu0  ;;  %v5635_v37 = vld [vmem:[#allocation2 + $0x40] sm:$0xf0] }
 0x160   : > { %v607_v50 = vmax.f32 %v587_v41, 0.0  ;;  %v1684_v53 = vor.u32 %v1683_v44, %v1680_v43  ;;  %v1727_v54 = vshll.u32 %v1629_v34, 16  ;;  %735 = vst [vmem:[#allocation2 + $0x58] ss:$-4 sps:$4 sm:$0xff] %v714_v45   ;;  %v582_v57 = vadd.f32 %v5577_v5, %v581_v52  ;;  %v5639_v42 = vld [vmem:[#allocation2 + $0x30] sm:$0xf0] }
 0x161   : > { %v605_v56 = vmax.f32 %v579_v46, 0.0  ;;  %v1732_v58 = vshrl.u32 %v1628_v24, 16  ;;  %v1735_v59 = vshll.u32 %v1628_v24, 16  ;;  %v608_v60 = vmax.f32 %v590_v51, 0.0  ;;  %v1482_v43 = vld [vmem:[#allocation2 + $0x38] sm:$0x1f] }
 0x162   : > { %v1693_v61 = vsel %vm790_vm2, %v1684_v53, %v1692_v48  ;;  %v1729_v62 = vrot.slane %v1727_v54, 4  ;;  %v1491_v63 = vshll.u32 %v5616_v15, 16  ;;  %v606_v1 = vmax.f32 %v582_v57, 0.0  ;;  %v1483_v48 = vld [vmem:[#allocation2 + $0x48] sm:$0x1f] }
 0x163   : > { %4704 = vmatprep.mubr.bf16.mxu1 %v1693_v61  ;;  %v1734_v2 = vrot.slane %v1732_v58, 3  ;;  %v1737_v3 = vrot.slane %v1735_v59, 4  ;;  %v1496_v4 = vshll.u32 %v1457_v55, 16  ;;  %v701_v6 = vpack.c.bf16 %v608_v60, %v607_v50  ;;  %v5030_v61 = vld [vmem:[#allocation6 + $0x58] sm:$0xff]  }
 0x164   : > { %v1730_v7 = vor.u32 %v1729_v62, %v1726_v49  ;;  %v1493_v8 = vrot.slane %v1491_v63, 1  ;;  %v1500_v9 = vshrl.u32 %v1457_v55, 16  ;;  %v700_v11 = vpack.c.bf16 %v606_v1, %v605_v56  ;;  %v5029_v56 = vld [vmem:[#allocation6 + $0x10] sm:$0xff]   ;;  %v5041_v62 = vld [vmem:[#allocation6 + $0x180] sm:$0xff]  }
 0x165   : > { %v1738_v5 = vor.u32 %v1737_v3, %v1734_v2  ;;  %v1498_v13 = vrot.slane %v1496_v4, 1  ;;  %v1649_v14 = vshrl.u32 %v1456_v0, 16  ;;  %v717_v16 = vrot.slane %v701_v6, 4  ;;  %v5043_v3 = vld [vmem:[#allocation6 + $0x1c8] sm:$0xff]  }
 0x166   : > { %v1494_v17 = vor.u32 %v1493_v8, %v1489_v25  ;;  %v1652_v19 = vshll.u32 %v1456_v0, 16  ;;  %v1656_v15 = vrot.slane %v1500_v9, 3  ;;  %v716_v21 = vrot.slane %v700_v11, 4  ;;  %v5028_v25 = vld [vmem:[#allocation6 + $0x50] sm:$0xff]  }
 0x167   : > { %v1739_v22 = vsel %vm790_vm2, %v1730_v7, %v1738_v5  ;;  %v1502_v23 = vor.u32 %v1500_v9, %v1498_v13  ;;  %v1651_v24 = vrot.slane %v1649_v14, 3  ;;  %741 = vst [vmem:[#allocation2 + $0x88] ss:$-4 sps:$4 sm:$0xff] %v717_v16   ;;  %v1657_v29 = vrot.slane %v1496_v4, 4 }
 0x168   : > { %4705 = vmatmul.mubr.bf16.vlgmr.msra.gmra.mrb[4].mxu1 %v1739_v22  ;;  %v1499_v27 = vsel %vm854_vm10, %v1494_v17, %v1498_v13  ;;  %v1654_v28 = vrot.slane %v1652_v19, 4  ;;  %v1504_v31 = vshrl.u32 %v5613_v10, 16  ;;  %739 = vst [vmem:[#allocation2 + $0x78] ss:$-4 sps:$4 sm:$0xff] %v716_v21   ;;  %v1506_v40 = vshll.u32 %v5613_v10, 16  ;;  %v5031_v13 = vld [vmem:[#allocation6 + $0x18] sm:$0xff]  }
 0x169   : > { %4489 = vmatpush3.bf16.msra.mxu1 %v5024_v12  ;;  %v1661_v33 = vshrl.u32 %v1499_v27, 16  ;;  %v1664_v34 = vshll.u32 %v1499_v27, 16  ;;  %v1669_v35 = vshrl.u32 %v1502_v23, 16  ;;  %v1672_v36 = vshll.u32 %v1502_v23, 16  ;;  %v5032_v19 = vld [vmem:[#allocation6 + $0x60] sm:$0xff]  }
 0x16a   : > { %4490 = vmatprep.subr.bf16.mxu1 %v5026_v18  ;;  %v1655_v38 = vor.u32 %v1654_v28, %v1651_v24  ;;  %v1658_v39 = vor.u32 %v1657_v29, %v1656_v15  ;;  %v1511_v41 = vshll.u32 %v5631_v26, 16  ;;  %v1508_v50 = vrot.slane %v1506_v40, 1  ;;  %v5044_v15 = vld [vmem:[#allocation6 + $0x188] sm:$0xff]   ;;  %v1458_v27 = vld [vmem:[#allocation2 + $0x20] sm:$0xf8]  ;;  %v5046_v28 = vld [vmem:[#allocation6 + $0x1d0] sm:$0xff]  }
 0x16b   : > { %v1663_v44 = vrot.slane %v1661_v33, 3  ;;  %v1666_v45 = vrot.slane %v1664_v34, 4  ;;  %v1671_v46 = vrot.slane %v1669_v35, 3  ;;  %v1674_v47 = vrot.slane %v1672_v36, 4  ;;  %v5033_v33 = vld [vmem:[#allocation6 + $0x20] sm:$0xff]   ;;  %v5047_v40 = vld [vmem:[#allocation6 + $0x190] sm:$0xff]  }
 0x16c   : > { %v1659_v49 = vsel %vm790_vm2, %v1655_v38, %v1658_v39  ;;  %v1513_v51 = vrot.slane %v1511_v41, 1  ;;  %v1515_v52 = vshrl.u32 %v5631_v26, 16  ;;  %v1630_v54 = vrot.slane %v5639_v42, 1  ;;  %v5034_v39 = vld [vmem:[#allocation6 + $0x68] sm:$0xff]  }
 0x16d   : > { %v1667_v53 = vor.u32 %v1666_v45, %v1663_v44  ;;  %v1675_v10 = vor.u32 %v1674_v47, %v1671_v46  ;;  %4491 = vmatpush3.bf16.msra.mxu1 %v5027_v30  ;;  %v1631_v55 = vrot.slane %v1482_v43, 1  ;;  %v1509_v57 = vor.u32 %v1508_v50, %v1504_v31  ;;  %v5049_v43 = vld [vmem:[#allocation6 + $0x1d8] sm:$0xff]  }
 0x16e   : > { %v1517_v58 = vor.u32 %v1515_v52, %v1513_v51  ;;  %4492 = vmatprep.subr.bf16.mxu1 %v5028_v25  ;;  %v1633_v59 = vrot.slane %v5635_v37, 1  ;;  %v1634_v60 = vrot.slane %v1483_v48, 1  ;;  %v1695_v46 = vshrl.u32 %v1458_v27, 16  ;;  %v5653_v48 = vld [vmem:[#allocation2 + $0x38] sm:$0xf] }
 0x16f   : > { %v1676_v63 = vsel %vm790_vm2, %v1667_v53, %v1675_v10  ;;  %v1632_v0 = vsel %vm991_vm9, %v1630_v54, %v1631_v55  ;;  %v1778_v1 = vshrl.u32 %v1631_v55, 16  ;;  %v1781_v2 = vshll.u32 %v1631_v55, 16  ;;  %v5657_v10 = vld [vmem:[#allocation2 + $0x50] sm:$0xf0]  ;;  %v5659_v54 = vld [vmem:[#allocation2 + $0x60] sm:$0xf0] }
 0x170   : > { %2264 = vmatprep.mubr.bf16.mxu0 %v1676_v63  ;;  %v1514_v4 = vsel %vm854_vm10, %v1509_v57, %v1513_v51  ;;  %v1715_v6 = vshrl.u32 %v1517_v58, 16  ;;  %v1718_v7 = vshll.u32 %v1517_v58, 16  ;;  %v1770_v8 = vshrl.u32 %v1632_v0, 16  ;;  %v5661_v55 = vld [vmem:[#allocation2 + $0x30] sm:$0xf8] }
 0x171   : > { %2265 = vmatmul.mubr.bf16.vlgmr.msra.gmra.mrb[16].mxu0 %v1659_v49  ;;  %v1707_v9 = vshrl.u32 %v1514_v4, 16  ;;  %v1710_v11 = vshll.u32 %v1514_v4, 16  ;;  %v1773_v5 = vshll.u32 %v1632_v0, 16  ;;  %v1780_v12 = vrot.slane %v1778_v1, 3  ;;  %4493 = vmatpush3.bf16.msra.mxu1 %v5029_v56  ;;  %v1485_v1 = vld [vmem:[#allocation2 + $0x68] sm:$0x1f] }
 0x172   : > { %v1717_v14 = vrot.slane %v1715_v6, 3  ;;  %v1720_v16 = vrot.slane %v1718_v7, 4  ;;  %v1772_v17 = vrot.slane %v1770_v8, 3  ;;  %v1783_v18 = vrot.slane %v1781_v2, 4  ;;  %4494 = vmatprep.subr.bf16.mxu1 %v5030_v61  ;;  %4569 = vmatpush3.bf16.msra.mxu0 %v5041_v62  ;;  %v5035_v2 = vld [vmem:[#allocation6 + $0x28] sm:$0xff]  }
 0x173   : > { %v1709_v21 = vrot.slane %v1707_v9, 3  ;;  %v1712_v22 = vrot.slane %v1710_v11, 4  ;;  %v1775_v23 = vrot.slane %v1773_v5, 4  ;;  %v1635_v24 = vsel %vm991_vm9, %v1633_v59, %v1634_v60  ;;  %4570 = vmatprep.subr.bf16.mxu0 %v5043_v3 }
 0x174   : > { %v1721_v29 = vor.u32 %v1720_v16, %v1717_v14  ;;  %v1784_v30 = vor.u32 %v1783_v18, %v1780_v12  ;;  %v1816_v31 = vshrl.u32 %v1635_v24, 16  ;;  %v1819_v25 = vshll.u32 %v1635_v24, 16  ;;  %v5051_v14 = vld [vmem:[#allocation6 + $0x1e0] sm:$0xff]  }
 0x175   : > { %v1713_v34 = vor.u32 %v1712_v22, %v1709_v21  ;;  %v1776_v35 = vor.u32 %v1775_v23, %v1772_v17  ;;  %v1824_v36 = vshrl.u32 %v1634_v60, 16  ;;  %v1827_v38 = vshll.u32 %v1634_v60, 16  ;;  %4495 = vmatpush3.bf16.msra.mxu1 %v5031_v13  ;;  %v1484_v60 = vld [vmem:[#allocation2 + $0x58] sm:$0x1f] }
 0x176   : > { %v1818_v44 = vrot.slane %v1816_v31, 3  ;;  %v1821_v45 = vrot.slane %v1819_v25, 4  ;;  %v1698_v47 = vshll.u32 %v1458_v27, 16  ;;  %4496 = vmatprep.subr.bf16.mxu1 %v5032_v19  ;;  %4571 = vmatpush3.bf16.msra.mxu0 %v5044_v15  ;;  %v1697_v57 = vrot.slane %v1695_v46, 3  ;;  %v5037_v15 = vld [vmem:[#allocation6 + $0x30] sm:$0xff]   ;;  %v5038_v27 = vld [vmem:[#allocation6 + $0x78] sm:$0xff]  }
 0x177   : > { %v1722_v49 = vsel %vm790_vm2, %v1713_v34, %v1721_v29  ;;  %v1785_v50 = vsel %vm790_vm2, %v1776_v35, %v1784_v30  ;;  %v1826_v51 = vrot.slane %v1824_v36, 3  ;;  %v1829_v53 = vrot.slane %v1827_v38, 4  ;;  %4572 = vmatprep.subr.bf16.mxu0 %v5046_v28  ;;  %v5052_v25 = vld [vmem:[#allocation6 + $0x1a0] sm:$0xff]   ;;  %v5054_v38 = vld [vmem:[#allocation6 + $0x1e8] sm:$0xff]  }
 0x178   : > { %2272 = vmatprep.mubr.bf16.mxu0 %v1722_v49  ;;  %4708 = vmatprep.mubr.bf16.mxu1 %v1785_v50  ;;  %v1822_v56 = vor.u32 %v1821_v45, %v1818_v44  ;;  %v1700_v58 = vrot.slane %v1698_v47, 4  ;;  %v1702_v59 = vrot.slane %v1515_v52, 3  ;;  %v1703_v62 = vrot.slane %v1511_v41, 4  ;;  %v5036_v52 = vld [vmem:[#allocation6 + $0x70] sm:$0xff]   ;;  %v5039_v45 = vld [vmem:[#allocation6 + $0x38] sm:$0xff]  }
 0x179   : > { %v1830_v61 = vor.u32 %v1829_v53, %v1826_v51  ;;  %v1519_v63 = vshrl.u32 %v5639_v42, 16  ;;  %v1521_v0 = vshll.u32 %v5639_v42, 16  ;;  %4497 = vmatpush3.bf16.msra.mxu1 %v5033_v33  ;;  %v1526_v4 = vshll.u32 %v5653_v48, 16  ;;  %v5050_v42 = vld [vmem:[#allocation6 + $0x198] sm:$0xff]   ;;  %v5683_v51 = vld [vmem:[#allocation6 + $0x80] sm:$0xff]  }
 0x17a   : > { %v1701_v3 = vor.u32 %v1700_v58, %v1697_v57  ;;  %v1530_v6 = vshrl.u32 %v5653_v48, 16  ;;  %v1636_v7 = vrot.slane %v5657_v10, 1  ;;  %4498 = vmatprep.subr.bf16.mxu1 %v5034_v39  ;;  %4573 = vmatpush3.bf16.msra.mxu0 %v5047_v40  ;;  %v1704_v41 = vor.u32 %v1703_v62, %v1702_v59  ;;  %v5055_v59 = vld [vmem:[#allocation6 + $0x1a8] sm:$0xff]  }
 0x17b   : > { %v1831_v26 = vsel %vm790_vm2, %v1822_v56, %v1830_v61  ;;  %v1523_v8 = vrot.slane %v1521_v0, 1  ;;  %v1637_v9 = vrot.slane %v1484_v60, 1  ;;  %4574 = vmatprep.subr.bf16.mxu0 %v5049_v43  ;;  %v1528_v11 = vrot.slane %v1526_v4, 1  ;;  %v5685_v0 = vld [vmem:[#allocation2 + $0x48] sm:$0xf] }
 0x17c   : > { %4709 = vmatmul.mubr.bf16.gmra.mrb[8].mxu1 %v1831_v26  ;;  %v1639_v5 = vrot.slane %v5659_v54, 1  ;;  %v1640_v12 = vrot.slane %v1485_v1, 1  ;;  %v1741_v13 = vshrl.u32 %v5661_v55, 16  ;;  %v1705_v16 = vsel %vm790_vm2, %v1701_v3, %v1704_v41  ;;  %v5056_v1 = vld [vmem:[#allocation6 + $0x1f0] sm:$0xff]   ;;  %v5691_v41 = vld [vmem:[#allocation2 + $0x80] sm:$0xf0] }
 0x17d   : > { %v1524_v17 = vor.u32 %v1523_v8, %v1519_v63  ;;  %v1638_v18 = vsel %vm991_vm9, %v1636_v7, %v1637_v9  ;;  %v1870_v19 = vshrl.u32 %v1637_v9, 16  ;;  %4499 = vmatpush3.bf16.msra.mxu1 %v5035_v2  ;;  %2273 = vmatmul.mubr.bf16.gmra.mrb[20].mxu0 %v1705_v16  ;;  %v1532_v21 = vor.u32 %v1530_v6, %v1528_v11  ;;  %v5689_v26 = vld [vmem:[#allocation2 + $0x70] sm:$0xf0]  ;;  %v1487_v16 = vld [vmem:[#allocation2 + $0x88] sm:$0x1f] }
 0x17e   : > { %v1862_v22 = vshrl.u32 %v1638_v18, 16  ;;  %v1865_v23 = vshll.u32 %v1638_v18, 16  ;;  %v1873_v24 = vshll.u32 %v1637_v9, 16  ;;  %4500 = vmatprep.subr.bf16.mxu1 %v5036_v52  ;;  %v1641_v30 = vsel %vm991_vm9, %v1639_v5, %v1640_v12  ;;  %4575 = vmatpush3.bf16.msra.mxu0 %v5050_v42  ;;  %v1486_v5 = vld [vmem:[#allocation2 + $0x78] sm:$0x1f] }
 0x17f   : > { %v1529_v28 = vsel %vm854_vm10, %v1524_v17, %v1528_v11  ;;  %v1872_v29 = vrot.slane %v1870_v19, 3  ;;  %v1916_v31 = vshrl.u32 %v1640_v12, 16  ;;  %v1761_v35 = vshrl.u32 %v1532_v21, 16  ;;  %4576 = vmatprep.subr.bf16.mxu0 %v5051_v14  ;;  %v5057_v17 = vld [vmem:[#allocation6 + $0x1b0] sm:$0xff]  }
 0x180   : > { %v1753_v33 = vshrl.u32 %v1529_v28, 16  ;;  %v1756_v34 = vshll.u32 %v1529_v28, 16  ;;  %v1764_v36 = vshll.u32 %v1532_v21, 16  ;;  %v1864_v39 = vrot.slane %v1862_v22, 3 }
 0x181   : > { %v1867_v40 = vrot.slane %v1865_v23, 4  ;;  %v1875_v43 = vrot.slane %v1873_v24, 4  ;;  %v1908_v44 = vshrl.u32 %v1641_v30, 16  ;;  %4501 = vmatpush3.bf16.msra.mxu1 %v5037_v15  ;;  %v1763_v49 = vrot.slane %v1761_v35, 3 }
 0x182   : > { %v1755_v46 = vrot.slane %v1753_v33, 3  ;;  %v1758_v47 = vrot.slane %v1756_v34, 4  ;;  %v1766_v50 = vrot.slane %v1764_v36, 4  ;;  %4502 = vmatprep.subr.bf16.mxu1 %v5038_v27  ;;  %v1911_v58 = vshll.u32 %v1641_v30, 16  ;;  %4577 = vmatpush3.bf16.msra.mxu0 %v5052_v25  ;;  %v5060_v33 = vld [vmem:[#allocation6 + $0x1b8] sm:$0xff]  }
 0x183   : > { %v1868_v53 = vor.u32 %v1867_v40, %v1864_v39  ;;  %v1876_v56 = vor.u32 %v1875_v43, %v1872_v29  ;;  %v1910_v57 = vrot.slane %v1908_v44, 3  ;;  %v1918_v62 = vrot.slane %v1916_v31, 3  ;;  %4578 = vmatprep.subr.bf16.mxu0 %v5054_v38 }
 0x184   : > { %v1759_v60 = vor.u32 %v1758_v47, %v1755_v46  ;;  %v1767_v61 = vor.u32 %v1766_v50, %v1763_v49  ;;  %v1919_v63 = vshll.u32 %v1640_v12, 16  ;;  %v1913_v3 = vrot.slane %v1911_v58, 4 }
 0x185   : > { %v1877_v2 = vsel %vm790_vm2, %v1868_v53, %v1876_v56  ;;  %v1743_v7 = vrot.slane %v1741_v13, 3  ;;  %v1744_v52 = vshll.u32 %v5661_v55, 16  ;;  %4503 = vmatpush3.bf16.msra.mxu1 %v5039_v45  ;;  %v1748_v42 = vrot.slane %v1530_v6, 3 }
 0x186   : > { %v1768_v8 = vsel %vm790_vm2, %v1759_v60, %v1767_v61  ;;  %4712 = vmatprep.mubr.bf16.mxu1 %v1877_v2  ;;  %v1921_v9 = vrot.slane %v1919_v63, 4  ;;  %v1749_v11 = vrot.slane %v1526_v4, 4  ;;  %4720 = vmatprep.subr.bf16.mxu1 %v5683_v51  ;;  %v1914_v55 = vor.u32 %v1913_v3, %v1910_v57  ;;  %v5059_v4 = vld [vmem:[#allocation6 + $0x1f8] sm:$0xff]  }
 0x187   : > { %2280 = vmatprep.mubr.bf16.mxu0 %v1768_v8  ;;  %v1746_v12 = vrot.slane %v1744_v52, 4  ;;  %v1534_v13 = vshrl.u32 %v5635_v37, 16  ;;  %v1536_v14 = vshll.u32 %v5635_v37, 16  ;;  %4579 = vmatpush3.bf16.msra.mxu0 %v5055_v59  ;;  %v1541_v6 = vshll.u32 %v5685_v0, 16 }
 0x188   : > { %v1922_v18 = vor.u32 %v1921_v9, %v1918_v62  ;;  %v1750_v19 = vor.u32 %v1749_v11, %v1748_v42  ;;  %v1545_v48 = vshrl.u32 %v5685_v0, 16  ;;  %4580 = vmatprep.subr.bf16.mxu0 %v5056_v1  ;;  %v1642_v22 = vrot.slane %v5689_v26, 1  ;;  %v838_v62 = vld [vmem:[#allocation2] sm:$0xf0] }
 0x189   : > { %v1747_v15 = vor.u32 %v1746_v12, %v1743_v7  ;;  %v1538_v21 = vrot.slane %v1536_v14, 1  ;;  %v1643_v23 = vrot.slane %v1486_v5, 1  ;;  %v1543_v37 = vrot.slane %v1541_v6, 1  ;;  %v823_v7 = vld [vmem:[#allocation2 + $0x8] sm:$0xf] }
 0x18a   : > { %v1923_v24 = vsel %vm790_vm2, %v1914_v55, %v1922_v18  ;;  %v1645_v27 = vrot.slane %v5691_v41, 1  ;;  %v1646_v28 = vrot.slane %v1487_v16, 1  ;;  %v1462_v11 = vld [vmem:[#allocation2 + $0x40] sm:$0xf8]  ;;  %v856_v12 = vshrl.u32 %v838_v62, 16 }
 0x18b   : > { %4713 = vmatmul.mubr.bf16.gmra.mrb[12].mxu1 %v1923_v24  ;;  %v1751_v29 = vsel %vm790_vm2, %v1747_v15, %v1750_v19  ;;  %v1539_v30 = vor.u32 %v1538_v21, %v1534_v13  ;;  %v1644_v31 = vsel %vm991_vm9, %v1642_v22, %v1643_v23  ;;  %v1962_v25 = vshrl.u32 %v1643_v23, 16  ;;  %4581 = vmatpush3.bf16.msra.mxu0 %v5057_v17 }
 0x18c   : > { %2281 = vmatmul.mubr.bf16.gmra.mrb[24].mxu0 %v1751_v29  ;;  %v1547_v34 = vor.u32 %v1545_v48, %v1543_v37  ;;  %v1954_v35 = vshrl.u32 %v1644_v31, 16  ;;  %v1957_v36 = vshll.u32 %v1644_v31, 16  ;;  %v1965_v38 = vshll.u32 %v1643_v23, 16  ;;  %4582 = vmatprep.subr.bf16.mxu0 %v5059_v4 }
 0x18d   : > { %v1544_v39 = vsel %vm854_vm10, %v1539_v30, %v1543_v37  ;;  %v1964_v40 = vrot.slane %v1962_v25, 3  ;;  %v1647_v43 = vsel %vm991_vm9, %v1645_v27, %v1646_v28  ;;  %v2008_v44 = vshrl.u32 %v1646_v28, 16  ;;  %v5720_v27 = vld [vmem:[#allocation2 + $0x58] sm:$0xf] }
 0x18e   : > { %v1799_v45 = vshrl.u32 %v1544_v39, 16  ;;  %v1802_v46 = vshll.u32 %v1544_v39, 16  ;;  %v1807_v47 = vshrl.u32 %v1547_v34, 16  ;;  %v1810_v49 = vshll.u32 %v1547_v34, 16 }
 0x18f   : > { %v1956_v50 = vrot.slane %v1954_v35, 3  ;;  %v1959_v53 = vrot.slane %v1957_v36, 4  ;;  %v1967_v56 = vrot.slane %v1965_v38, 4  ;;  %v2000_v57 = vshrl.u32 %v1647_v43, 16  ;;  %4583 = vmatpush3.bf16.msra.mxu0 %v5060_v33  ;;  %v822_v36 = vld [vmem:[#allocation2] sm:$0xf8] }
 0x190   : > { %v1801_v58 = vrot.slane %v1799_v45, 3  ;;  %v1804_v59 = vrot.slane %v1802_v46, 4  ;;  %v1809_v60 = vrot.slane %v1807_v47, 3  ;;  %v1812_v61 = vrot.slane %v1810_v49, 4 }
 0x191   : > { %v1960_v63 = vor.u32 %v1959_v53, %v1956_v50  ;;  %v1968_v1 = vor.u32 %v1967_v56, %v1964_v40  ;;  %v2002_v2 = vrot.slane %v2000_v57, 3  ;;  %v2003_v3 = vshll.u32 %v1647_v43, 16 }
 0x192   : > { %v1805_v52 = vor.u32 %v1804_v59, %v1801_v58  ;;  %v1813_v8 = vor.u32 %v1812_v61, %v1809_v60  ;;  %v2010_v9 = vrot.slane %v2008_v44, 3  ;;  %v2011_v42 = vshll.u32 %v1646_v28, 16 }
 0x193   : > { %v1969_v5 = vsel %vm790_vm2, %v1960_v63, %v1968_v1  ;;  %v2005_v55 = vrot.slane %v2003_v3, 4  ;;  %v858_v13 = vshll.u32 %v838_v62, 16  ;;  %v863_v17 = vshll.u32 %v823_v7, 16 }
 0x194   : > { %v1814_v14 = vsel %vm790_vm2, %v1805_v52, %v1813_v8  ;;  %4716 = vmatprep.mubr.bf16.mxu1 %v1969_v5  ;;  %v2013_v16 = vrot.slane %v2011_v42, 4  ;;  %v867_v18 = vshrl.u32 %v823_v7, 16  ;;  %v1787_v15 = vshrl.u32 %v1462_v11, 16 }
 0x195   : > { %2288 = vmatprep.mubr.bf16.mxu0 %v1814_v14  ;;  %v2006_v19 = vor.u32 %v2005_v55, %v2002_v2  ;;  %v860_v4 = vrot.slane %v858_v13, 1  ;;  %v1790_v21 = vshll.u32 %v1462_v11, 16  ;;  %v865_v23 = vrot.slane %v863_v17, 1  ;;  %v839_v2 = vld [vmem:[#allocation2 + $0x10] sm:$0xf0] }
 0x196   : > { %v2014_v22 = vor.u32 %v2013_v16, %v2010_v9  ;;  %v1794_v24 = vrot.slane %v1545_v48, 3  ;;  %v1795_v37 = vrot.slane %v1541_v6, 4  ;;  %v1789_v29 = vrot.slane %v1787_v15, 3  ;;  %v5730_v9 = vld [vmem:[#allocation2 + $0x18] sm:$0xf] }
 0x197   : > { %v861_v28 = vor.u32 %v860_v4, %v856_v12  ;;  %v1792_v30 = vrot.slane %v1790_v21, 4  ;;  %v1549_v31 = vshrl.u32 %v5657_v10, 16  ;;  %v869_v33 = vor.u32 %v867_v18, %v865_v23  ;;  %v1464_v12 = vld [vmem:[#allocation2 + $0x50] sm:$0xf8]  ;;  %v5045_v21 = vld [vmem:[#allocation6 + $0x88] sm:$0xff]  }
 0x198   : > { %v2015_v25 = vsel %vm790_vm2, %v2006_v19, %v2014_v22  ;;  %v1796_v34 = vor.u32 %v1795_v37, %v1794_v24  ;;  %v1551_v35 = vshll.u32 %v5657_v10, 16  ;;  %v1556_v0 = vshll.u32 %v5720_v27, 16 }
 0x199   : > { %4717 = vmatmul.mubr.bf16.gmra.mrb[16].mxu1 %v2015_v25  ;;  %v866_v48 = vsel %vm854_vm10, %v861_v28, %v865_v23  ;;  %v1793_v38 = vor.u32 %v1792_v30, %v1789_v29  ;;  %v1560_v6 = vshrl.u32 %v5720_v27, 16  ;;  %v1037_v43 = vshrl.u32 %v869_v33, 16 }
 0x19a   : > { %v1029_v39 = vshrl.u32 %v866_v48, 16  ;;  %v1032_v40 = vshll.u32 %v866_v48, 16  ;;  %v1040_v44 = vshll.u32 %v869_v33, 16  ;;  %v1553_v46 = vrot.slane %v1551_v35, 1 }
 0x19b   : > { %v1797_v45 = vsel %vm790_vm2, %v1793_v38, %v1796_v34  ;;  %v1558_v47 = vrot.slane %v1556_v0, 1  ;;  %v1017_v49 = vshrl.u32 %v822_v36, 16  ;;  %v1039_v53 = vrot.slane %v1037_v43, 3 }
 0x19c   : > { %v1031_v50 = vrot.slane %v1029_v39, 3  ;;  %v1034_v10 = vrot.slane %v1032_v40, 4  ;;  %v1042_v56 = vrot.slane %v1040_v44, 4  ;;  %2289 = vmatmul.mubr.bf16.gmra.mrb[28].mxu0 %v1797_v45  ;;  %v1554_v57 = vor.u32 %v1553_v46, %v1549_v31  ;;  %v5736_v31 = vld [vmem:[#allocation2 + $0x68] sm:$0xf]  ;;  %v5048_v40 = vld [vmem:[#allocation6 + $0x90] sm:$0xff]  }
 0x19d   : > { %v1562_v58 = vor.u32 %v1560_v6, %v1558_v47  ;;  %v1019_v59 = vrot.slane %v1017_v49, 3  ;;  %v1020_v60 = vshll.u32 %v822_v36, 16  ;;  %v1024_v63 = vrot.slane %v867_v18, 3  ;;  %v824_v46 = vld [vmem:[#allocation2 + $0x10] sm:$0xf8] }
 0x19e   : > { %v1035_v61 = vor.u32 %v1034_v10, %v1031_v50  ;;  %v1043_v62 = vor.u32 %v1042_v56, %v1039_v53  ;;  %v1025_v1 = vrot.slane %v863_v17, 4  ;;  %v1559_v3 = vsel %vm854_vm10, %v1554_v57, %v1558_v47 }
 0x19f   : > { %v1853_v7 = vshrl.u32 %v1562_v58, 16  ;;  %v1856_v52 = vshll.u32 %v1562_v58, 16  ;;  %v1022_v8 = vrot.slane %v1020_v60, 4  ;;  %v1845_v11 = vshrl.u32 %v1559_v3, 16  ;;  %v5053_v60 = vld [vmem:[#allocation6 + $0x98] sm:$0xff]  }
 0x1a0   : > { %v1044_v42 = vsel %vm790_vm2, %v1035_v61, %v1043_v62  ;;  %v1848_v5 = vshll.u32 %v1559_v3, 16  ;;  %v1026_v55 = vor.u32 %v1025_v1, %v1024_v63  ;;  %v871_v18 = vshrl.u32 %v839_v2, 16 }
 0x1a1   : > { %2602 = vmatprep.mubr.bf16.mxu1 %v1044_v42  ;;  %v1855_v13 = vrot.slane %v1853_v7, 3  ;;  %v1858_v14 = vrot.slane %v1856_v52, 4  ;;  %v1023_v16 = vor.u32 %v1022_v8, %v1019_v59  ;;  %v1847_v17 = vrot.slane %v1845_v11, 3  ;;  %v5750_v8 = vld [vmem:[#allocation2 + $0x20] sm:$0xf0] }
 0x1a2   : > { %v1850_v19 = vrot.slane %v1848_v5, 4  ;;  %v873_v4 = vshll.u32 %v839_v2, 16  ;;  %v878_v15 = vshll.u32 %v5730_v9, 16  ;;  %v882_v24 = vshrl.u32 %v5730_v9, 16 }
 0x1a3   : > { %v1859_v22 = vor.u32 %v1858_v14, %v1855_v13  ;;  %v1027_v23 = vsel %vm790_vm2, %v1023_v16, %v1026_v55  ;;  %v1833_v37 = vshrl.u32 %v1464_v12, 16  ;;  %v1836_v30 = vshll.u32 %v1464_v12, 16  ;;  %v5058_v55 = vld [vmem:[#allocation6 + $0xa0] sm:$0xff]  }
 0x1a4   : > { %v1851_v27 = vor.u32 %v1850_v19, %v1847_v17  ;;  %2603 = vmatmul.mubr.bf16.vlgmr.msra.gmra.mrb[20].mxu1 %v1027_v23  ;;  %v875_v28 = vrot.slane %v873_v4, 1  ;;  %v880_v29 = vrot.slane %v878_v15, 1  ;;  %v1840_v33 = vrot.slane %v1560_v6, 3 }
 0x1a5   : > { %4721 = vmatpush3.bf16.msra.mxu1 %v5683_v51  ;;  %v1835_v25 = vrot.slane %v1833_v37, 3  ;;  %v1841_v34 = vrot.slane %v1556_v0, 4  ;;  %v1564_v35 = vshrl.u32 %v5659_v54, 16  ;;  %v1838_v39 = vrot.slane %v1836_v30, 4 }
 0x1a6   : > { %v1860_v36 = vsel %vm790_vm2, %v1851_v27, %v1859_v22  ;;  %v876_v48 = vor.u32 %v875_v28, %v871_v18  ;;  %v884_v38 = vor.u32 %v882_v24, %v880_v29  ;;  %4722 = vmatprep.subr.bf16.mxu1 %v5045_v21  ;;  %v1566_v44 = vshll.u32 %v5659_v54, 16  ;;  %v5753_v18 = vld [vmem:[#allocation2 + $0x28] sm:$0xf]  ;;  %v1466_v22 = vld [vmem:[#allocation2 + $0x60] sm:$0xf8] }
 0x1a7   : > { %2296 = vmatprep.mubr.bf16.mxu0 %v1860_v36  ;;  %v1842_v43 = vor.u32 %v1841_v34, %v1840_v33  ;;  %v1571_v45 = vshll.u32 %v5736_v31, 16  ;;  %v1575_v51 = vshrl.u32 %v5736_v31, 16  ;;  %v1839_v49 = vor.u32 %v1838_v39, %v1835_v25  ;;  %v826_v36 = vld [vmem:[#allocation2 + $0x20] sm:$0xf8] }
 0x1a8   : > { %v881_v0 = vsel %vm854_vm10, %v876_v48, %v880_v29  ;;  %v1083_v6 = vshrl.u32 %v884_v38, 16  ;;  %v1086_v47 = vshll.u32 %v884_v38, 16  ;;  %v1568_v53 = vrot.slane %v1566_v44, 1  ;;  %v5061_v48 = vld [vmem:[#allocation6 + $0xa8] sm:$0xff]   ;;  %v5765_v44 = vld [vmem:[#allocation2 + $0x78] sm:$0xf] }
 0x1a9   : > { %v1075_v50 = vshrl.u32 %v881_v0, 16  ;;  %v1078_v10 = vshll.u32 %v881_v0, 16  ;;  %v1573_v56 = vrot.slane %v1571_v45, 1  ;;  %4723 = vmatpush3.bf16.msra.mxu1 %v5045_v21  ;;  %v1843_v54 = vsel %vm790_vm2, %v1839_v49, %v1842_v43 }
 0x1aa   : > { %v1085_v57 = vrot.slane %v1083_v6, 3  ;;  %v1088_v58 = vrot.slane %v1086_v47, 4  ;;  %v1063_v59 = vshrl.u32 %v824_v46, 16  ;;  %4724 = vmatprep.subr.bf16.mxu1 %v5048_v40  ;;  %2297 = vmatmul.mubr.bf16.gmra.mrb[32].mxu0 %v1843_v54  ;;  %v1569_v63 = vor.u32 %v1568_v53, %v1564_v35 }
 0x1ab   : > { %v1077_v61 = vrot.slane %v1075_v50, 3  ;;  %v1080_v62 = vrot.slane %v1078_v10, 4  ;;  %v1577_v1 = vor.u32 %v1575_v51, %v1573_v56  ;;  %v1066_v7 = vshll.u32 %v824_v46, 16 }
 0x1ac   : > { %v1089_v2 = vor.u32 %v1088_v58, %v1085_v57  ;;  %v1065_v3 = vrot.slane %v1063_v59, 3  ;;  %v1070_v52 = vrot.slane %v882_v24, 3  ;;  %v1574_v42 = vsel %vm854_vm10, %v1569_v63, %v1573_v56  ;;  %v5062_v57 = vld [vmem:[#allocation6 + $0xb0] sm:$0xff]  }
 0x1ad   : > { %v1081_v9 = vor.u32 %v1080_v62, %v1077_v61  ;;  %v1899_v11 = vshrl.u32 %v1577_v1, 16  ;;  %v1902_v5 = vshll.u32 %v1577_v1, 16  ;;  %4725 = vmatpush3.bf16.msra.mxu1 %v5048_v40  ;;  %v1891_v12 = vshrl.u32 %v1574_v42, 16 }
 0x1ae   : > { %v1894_v13 = vshll.u32 %v1574_v42, 16  ;;  %v1068_v14 = vrot.slane %v1066_v7, 4  ;;  %v1071_v16 = vrot.slane %v878_v15, 4  ;;  %4726 = vmatprep.subr.bf16.mxu1 %v5053_v60  ;;  %v886_v21 = vshrl.u32 %v5750_v8, 16 }
 0x1af   : > { %v1090_v17 = vsel %vm790_vm2, %v1081_v9, %v1089_v2  ;;  %v1901_v19 = vrot.slane %v1899_v11, 3  ;;  %v1904_v4 = vrot.slane %v1902_v5, 4  ;;  %v1893_v23 = vrot.slane %v1891_v12, 3  ;;  %v5778_v5 = vld [vmem:[#allocation2 + $0x30] sm:$0xf0] }
 0x1b0   : > { %2610 = vmatprep.mubr.bf16.mxu1 %v1090_v17  ;;  %v1896_v24 = vrot.slane %v1894_v13, 4  ;;  %v1069_v37 = vor.u32 %v1068_v14, %v1065_v3  ;;  %v1072_v27 = vor.u32 %v1071_v16, %v1070_v52  ;;  %v888_v29 = vshll.u32 %v5750_v8, 16 }
 0x1b1   : > { %v1905_v28 = vor.u32 %v1904_v4, %v1901_v19  ;;  %v893_v15 = vshll.u32 %v5753_v18, 16  ;;  %v897_v30 = vshrl.u32 %v5753_v18, 16  ;;  %4727 = vmatpush3.bf16.msra.mxu1 %v5053_v60  ;;  %v1879_v34 = vshrl.u32 %v1466_v22, 16 }
 0x1b2   : > { %v1897_v25 = vor.u32 %v1896_v24, %v1893_v23  ;;  %v1073_v33 = vsel %vm790_vm2, %v1069_v37, %v1072_v27  ;;  %v1882_v35 = vshll.u32 %v1466_v22, 16  ;;  %4728 = vmatprep.subr.bf16.mxu1 %v5058_v55  ;;  %v890_v38 = vrot.slane %v888_v29, 1  ;;  %v1468_v27 = vld [vmem:[#allocation2 + $0x70] sm:$0xf8] }
 0x1b3   : > { %2611 = vmatmul.mubr.bf16.gmra.mrb[24].mxu1 %v1073_v33  ;;  %v895_v39 = vrot.slane %v893_v15, 1  ;;  %v1886_v40 = vrot.slane %v1575_v51, 3  ;;  %v1887_v43 = vrot.slane %v1571_v45, 4  ;;  %v1881_v0 = vrot.slane %v1879_v34, 3 }
 0x1b4   : > { %v1906_v46 = vsel %vm790_vm2, %v1897_v25, %v1905_v28  ;;  %v1884_v6 = vrot.slane %v1882_v35, 4  ;;  %v1579_v47 = vshrl.u32 %v5689_v26, 16  ;;  %v891_v49 = vor.u32 %v890_v38, %v886_v21  ;;  %v5781_v21 = vld [vmem:[#allocation2 + $0x38] sm:$0xf] }
 0x1b5   : > { %2304 = vmatprep.mubr.bf16.mxu0 %v1906_v46  ;;  %v899_v50 = vor.u32 %v897_v30, %v895_v39  ;;  %v1888_v10 = vor.u32 %v1887_v43, %v1886_v40  ;;  %v1581_v53 = vshll.u32 %v5689_v26, 16  ;;  %4729 = vmatpush3.bf16.msra.mxu1 %v5058_v55  ;;  %v1586_v51 = vshll.u32 %v5765_v44, 16  ;;  %v5063_v55 = vld [vmem:[#allocation6 + $0xb8] sm:$0xff]  }
 0x1b6   : > { %v1885_v56 = vor.u32 %v1884_v6, %v1881_v0  ;;  %v1590_v31 = vshrl.u32 %v5765_v44, 16  ;;  %v1109_v45 = vshrl.u32 %v826_v36, 16  ;;  %4730 = vmatprep.subr.bf16.mxu1 %v5061_v48  ;;  %v896_v58 = vsel %vm854_vm10, %v891_v49, %v895_v39 }
 0x1b7   : > { %v1129_v54 = vshrl.u32 %v899_v50, 16  ;;  %v1132_v59 = vshll.u32 %v899_v50, 16  ;;  %v1583_v60 = vrot.slane %v1581_v53, 1  ;;  %v1121_v61 = vshrl.u32 %v896_v58, 16 }
 0x1b8   : > { %v1124_v62 = vshll.u32 %v896_v58, 16  ;;  %v1889_v63 = vsel %vm790_vm2, %v1885_v56, %v1888_v10  ;;  %v1588_v26 = vrot.slane %v1586_v51, 1  ;;  %v1111_v7 = vrot.slane %v1109_v45, 3 }
 0x1b9   : > { %v1131_v1 = vrot.slane %v1129_v54, 3  ;;  %v1134_v2 = vrot.slane %v1132_v59, 4  ;;  %2305 = vmatmul.mubr.bf16.gmra.mrb[36].mxu0 %v1889_v63  ;;  %v1584_v3 = vor.u32 %v1583_v60, %v1579_v47  ;;  %4731 = vmatpush3.bf16.msra.mxu1 %v5061_v48  ;;  %v1123_v52 = vrot.slane %v1121_v61, 3  ;;  %v5791_v47 = vld [vmem:[#allocation2 + $0x88] sm:$0xf] }
 0x1ba   : > { %v1126_v9 = vrot.slane %v1124_v62, 4  ;;  %v1592_v42 = vor.u32 %v1590_v31, %v1588_v26  ;;  %v1112_v11 = vshll.u32 %v826_v36, 16  ;;  %4732 = vmatprep.subr.bf16.mxu1 %v5062_v57  ;;  %v1116_v14 = vrot.slane %v897_v30, 3  ;;  %v828_v62 = vld [vmem:[#allocation2 + $0x30] sm:$0xf8] }
 0x1bb   : > { %v1135_v12 = vor.u32 %v1134_v2, %v1131_v1  ;;  %v1589_v13 = vsel %vm854_vm10, %v1584_v3, %v1588_v26  ;;  %v1117_v16 = vrot.slane %v893_v15, 4  ;;  %v901_v37 = vshrl.u32 %v5778_v5, 16  ;;  %v5785_v15 = vld [vmem:[#allocation6 + $0x200] sm:$0xff]  }
 0x1bc   : > { %v1127_v18 = vor.u32 %v1126_v9, %v1123_v52  ;;  %v1937_v17 = vshrl.u32 %v1589_v13, 16  ;;  %v1940_v19 = vshll.u32 %v1589_v13, 16  ;;  %v1945_v4 = vshrl.u32 %v1592_v42, 16 }
 0x1bd   : > { %v1948_v22 = vshll.u32 %v1592_v42, 16  ;;  %v1114_v23 = vrot.slane %v1112_v11, 4  ;;  %v1118_v24 = vor.u32 %v1117_v16, %v1116_v14  ;;  %4733 = vmatpush3.bf16.msra.mxu1 %v5062_v57  ;;  %v903_v35 = vshll.u32 %v5778_v5, 16 }
 0x1be   : > { %v1136_v28 = vsel %vm790_vm2, %v1127_v18, %v1135_v12  ;;  %v1939_v29 = vrot.slane %v1937_v17, 3  ;;  %v1942_v25 = vrot.slane %v1940_v19, 4  ;;  %v1947_v33 = vrot.slane %v1945_v4, 3  ;;  %4734 = vmatprep.subr.bf16.mxu1 %v5063_v55  ;;  %v5805_v17 = vld [vmem:[#allocation2 + $0x40] sm:$0xf0] }
 0x1bf   : > { %2618 = vmatprep.mubr.bf16.mxu1 %v1136_v28  ;;  %v1950_v30 = vrot.slane %v1948_v22, 4  ;;  %v1115_v34 = vor.u32 %v1114_v23, %v1111_v7  ;;  %v908_v36 = vshll.u32 %v5781_v21, 16  ;;  %v912_v38 = vshrl.u32 %v5781_v21, 16  ;;  %v831_v28 = vld [vmem:[#allocation2 + $0x48] sm:$0xf] }
 0x1c0   : > { %v1943_v48 = vor.u32 %v1942_v25, %v1939_v29  ;;  %v1925_v39 = vshrl.u32 %v1468_v27, 16  ;;  %v1928_v40 = vshll.u32 %v1468_v27, 16  ;;  %v905_v0 = vrot.slane %v903_v35, 1 }
 0x1c1   : > { %v1951_v43 = vor.u32 %v1950_v30, %v1947_v33  ;;  %v1119_v46 = vsel %vm790_vm2, %v1115_v34, %v1118_v24  ;;  %v910_v6 = vrot.slane %v908_v36, 1  ;;  %4735 = vmatpush3.bf16.msra.mxu1 %v5063_v55  ;;  %v1932_v10 = vrot.slane %v1590_v31, 3  ;;  %v1470_v34 = vld [vmem:[#allocation2 + $0x80] sm:$0xf8] }
 0x1c2   : > { %2619 = vmatmul.mubr.bf16.gmra.mrb[28].mxu1 %v1119_v46  ;;  %v1927_v49 = vrot.slane %v1925_v39, 3  ;;  %v1930_v50 = vrot.slane %v1928_v40, 4  ;;  %v1933_v53 = vrot.slane %v1586_v51, 4  ;;  %4752 = vmatprep.subr.bf16.mxu1 %v5785_v15  ;;  %v906_v45 = vor.u32 %v905_v0, %v901_v37  ;;  %v2781_v0 = vld [vmem:[#allocation2 + $0x20] sm:$0xf0] }
 0x1c3   : > { %v1952_v56 = vsel %vm790_vm2, %v1943_v48, %v1951_v43  ;;  %v914_v57 = vor.u32 %v912_v38, %v910_v6  ;;  %v1594_v58 = vshrl.u32 %v5691_v41, 16  ;;  %v1596_v60 = vshll.u32 %v5691_v41, 16 }
 0x1c4   : > { %2312 = vmatprep.mubr.bf16.mxu0 %v1952_v56  ;;  %v1931_v54 = vor.u32 %v1930_v50, %v1927_v49  ;;  %v1934_v59 = vor.u32 %v1933_v53, %v1932_v10  ;;  %v1601_v61 = vshll.u32 %v5791_v47, 16  ;;  %v911_v31 = vsel %vm854_vm10, %v906_v45, %v910_v6  ;;  %v5812_v10 = vld [vmem:[#allocation2 + $0x28] sm:$0xf] }
 0x1c5   : > { %v1175_v44 = vshrl.u32 %v914_v57, 16  ;;  %v1178_v51 = vshll.u32 %v914_v57, 16  ;;  %v1605_v63 = vshrl.u32 %v5791_v47, 16  ;;  %v1167_v26 = vshrl.u32 %v911_v31, 16 }
 0x1c6   : > { %v1170_v1 = vshll.u32 %v911_v31, 16  ;;  %v1935_v2 = vsel %vm790_vm2, %v1931_v54, %v1934_v59  ;;  %v1598_v3 = vrot.slane %v1596_v60, 1  ;;  %v1603_v9 = vrot.slane %v1601_v61, 1 }
 0x1c7   : > { %v1177_v7 = vrot.slane %v1175_v44, 3  ;;  %v1180_v52 = vrot.slane %v1178_v51, 4  ;;  %2313 = vmatmul.mubr.bf16.gmra.mrb[40].mxu0 %v1935_v2  ;;  %v1155_v42 = vshrl.u32 %v828_v62, 16  ;;  %v1169_v41 = vrot.slane %v1167_v26, 3 }
 0x1c8   : > { %v1172_v11 = vrot.slane %v1170_v1, 4  ;;  %v1599_v55 = vor.u32 %v1598_v3, %v1594_v58  ;;  %v1158_v12 = vshll.u32 %v828_v62, 16  ;;  %v1607_v14 = vor.u32 %v1605_v63, %v1603_v9  ;;  %v830_v58 = vld [vmem:[#allocation2 + $0x40] sm:$0xf8] }
 0x1c9   : > { %v1181_v13 = vor.u32 %v1180_v52, %v1177_v7  ;;  %v1157_v16 = vrot.slane %v1155_v42, 3  ;;  %v1162_v18 = vrot.slane %v912_v38, 3  ;;  %v1163_v22 = vrot.slane %v908_v36, 4 }
 0x1ca   : > { %v1173_v19 = vor.u32 %v1172_v11, %v1169_v41  ;;  %v1604_v4 = vsel %vm854_vm10, %v1599_v55, %v1603_v9  ;;  %v1160_v21 = vrot.slane %v1158_v12, 4  ;;  %v1991_v37 = vshrl.u32 %v1607_v14, 16 }
 0x1cb   : > { %v1983_v23 = vshrl.u32 %v1604_v4, 16  ;;  %v1986_v24 = vshll.u32 %v1604_v4, 16  ;;  %v1994_v27 = vshll.u32 %v1607_v14, 16  ;;  %v1164_v33 = vor.u32 %v1163_v22, %v1162_v18  ;;  %v5819_v22 = vld [vmem:[#allocation2 + $0x50] sm:$0xf0] }
 0x1cc   : > { %v1182_v29 = vsel %vm790_vm2, %v1173_v19, %v1181_v13  ;;  %v1161_v25 = vor.u32 %v1160_v21, %v1157_v16  ;;  %v916_v30 = vshrl.u32 %v5805_v17, 16  ;;  %v1993_v38 = vrot.slane %v1991_v37, 3 }
 0x1cd   : > { %2626 = vmatprep.mubr.bf16.mxu1 %v1182_v29  ;;  %v1985_v35 = vrot.slane %v1983_v23, 3  ;;  %v1988_v48 = vrot.slane %v1986_v24, 4  ;;  %v1996_v39 = vrot.slane %v1994_v27, 4  ;;  %v918_v36 = vshll.u32 %v5805_v17, 16 }
 0x1ce   : > { %v1165_v40 = vsel %vm790_vm2, %v1161_v25, %v1164_v33  ;;  %v923_v43 = vshll.u32 %v831_v28, 16  ;;  %v927_v46 = vshrl.u32 %v831_v28, 16  ;;  %v1971_v49 = vshrl.u32 %v1470_v34, 16 }
 0x1cf   : > { %v1989_v6 = vor.u32 %v1988_v48, %v1985_v35  ;;  %v1997_v47 = vor.u32 %v1996_v39, %v1993_v38  ;;  %2627 = vmatmul.mubr.bf16.gmra.mrb[32].mxu1 %v1165_v40  ;;  %v1974_v50 = vshll.u32 %v1470_v34, 16  ;;  %v920_v53 = vrot.slane %v918_v36, 1  ;;  %v2765_v39 = vld [vmem:[#allocation2 + $0x20] sm:$0xf8] }
 0x1d0   : > { %v925_v56 = vrot.slane %v923_v43, 1  ;;  %v1978_v45 = vrot.slane %v1605_v63, 3  ;;  %v1979_v57 = vrot.slane %v1601_v61, 4  ;;  %v1973_v59 = vrot.slane %v1971_v49, 3 }
 0x1d1   : > { %v1998_v54 = vsel %vm790_vm2, %v1989_v6, %v1997_v47  ;;  %v1976_v60 = vrot.slane %v1974_v50, 4  ;;  %v2798_v62 = vshrl.u32 %v2781_v0, 16  ;;  %v921_v31 = vor.u32 %v920_v53, %v916_v30  ;;  %v5822_v30 = vld [vmem:[#allocation2 + $0x58] sm:$0xf] }
 0x1d2   : > { %2320 = vmatprep.mubr.bf16.mxu0 %v1998_v54  ;;  %v929_v44 = vor.u32 %v927_v46, %v925_v56  ;;  %v1980_v51 = vor.u32 %v1979_v57, %v1978_v45  ;;  %v2800_v26 = vshll.u32 %v2781_v0, 16  ;;  %v2805_v2 = vshll.u32 %v5812_v10, 16  ;;  %v2782_v45 = vld [vmem:[#allocation2 + $0x30] sm:$0xf0] }
 0x1d3   : > { %v1977_v1 = vor.u32 %v1976_v60, %v1973_v59  ;;  %v2809_v3 = vshrl.u32 %v5812_v10, 16  ;;  %v1201_v7 = vshrl.u32 %v830_v58, 16  ;;  %v926_v63 = vsel %vm854_vm10, %v921_v31, %v925_v56  ;;  %v5830_v60 = vld [vmem:[#allocation2 + $0x38] sm:$0xf] }
 0x1d4   : > { %v1221_v61 = vshrl.u32 %v929_v44, 16  ;;  %v1224_v52 = vshll.u32 %v929_v44, 16  ;;  %v2802_v9 = vrot.slane %v2800_v26, 1  ;;  %v1213_v42 = vshrl.u32 %v926_v63, 16 }
 0x1d5   : > { %v1216_v41 = vshll.u32 %v926_v63, 16  ;;  %v1981_v11 = vsel %vm790_vm2, %v1977_v1, %v1980_v51  ;;  %v2807_v55 = vrot.slane %v2805_v2, 1  ;;  %v1203_v16 = vrot.slane %v1201_v7, 3 }
 0x1d6   : > { %v1223_v12 = vrot.slane %v1221_v61, 3  ;;  %v1226_v13 = vrot.slane %v1224_v52, 4  ;;  %2321 = vmatmul.mubr.bf16.gmra.mrb[44].mxu0 %v1981_v11  ;;  %v2803_v14 = vor.u32 %v2802_v9, %v2798_v62  ;;  %v1215_v18 = vrot.slane %v1213_v42, 3 }
 0x1d7   : > { %v1218_v19 = vrot.slane %v1216_v41, 4  ;;  %v2811_v4 = vor.u32 %v2809_v3, %v2807_v55  ;;  %v1204_v21 = vshll.u32 %v830_v58, 16  ;;  %v1208_v37 = vrot.slane %v927_v46, 3  ;;  %v832_v41 = vld [vmem:[#allocation2 + $0x50] sm:$0xf8] }
 0x1d8   : > { %v1227_v23 = vor.u32 %v1226_v13, %v1223_v12  ;;  %v2808_v24 = vsel %vm854_vm10, %v2803_v14, %v2807_v55  ;;  %v1209_v27 = vrot.slane %v923_v43, 4  ;;  %v931_v38 = vshrl.u32 %v5819_v22, 16 }
 0x1d9   : > { %v1219_v28 = vor.u32 %v1218_v19, %v1215_v18  ;;  %v2970_v29 = vshrl.u32 %v2808_v24, 16  ;;  %v2973_v25 = vshll.u32 %v2808_v24, 16  ;;  %v2978_v33 = vshrl.u32 %v2811_v4, 16 }
 0x1da   : > { %v2981_v34 = vshll.u32 %v2811_v4, 16  ;;  %v1206_v35 = vrot.slane %v1204_v21, 4  ;;  %v1210_v48 = vor.u32 %v1209_v27, %v1208_v37  ;;  %v933_v47 = vshll.u32 %v5819_v22, 16 }
 0x1db   : > { %v1228_v40 = vsel %vm790_vm2, %v1219_v28, %v1227_v23  ;;  %v2972_v36 = vrot.slane %v2970_v29, 3  ;;  %v2975_v0 = vrot.slane %v2973_v25, 4  ;;  %v2980_v6 = vrot.slane %v2978_v33, 3 }
 0x1dc   : > { %2634 = vmatprep.mubr.bf16.mxu1 %v1228_v40  ;;  %v2983_v46 = vrot.slane %v2981_v34, 4  ;;  %v1207_v43 = vor.u32 %v1206_v35, %v1203_v16  ;;  %v938_v49 = vshll.u32 %v5822_v30, 16  ;;  %v942_v10 = vshrl.u32 %v5822_v30, 16  ;;  %v5837_v30 = vld [vmem:[#allocation2 + $0x60] sm:$0xf0] }
 0x1dd   : > { %v2976_v50 = vor.u32 %v2975_v0, %v2972_v36  ;;  %v2958_v53 = vshrl.u32 %v2765_v39, 16  ;;  %v2961_v56 = vshll.u32 %v2765_v39, 16  ;;  %v935_v54 = vrot.slane %v933_v47, 1 }
 0x1de   : > { %v2984_v57 = vor.u32 %v2983_v46, %v2980_v6  ;;  %v1211_v58 = vsel %vm790_vm2, %v1207_v43, %v1210_v48  ;;  %v940_v59 = vrot.slane %v938_v49, 1  ;;  %v2965_v44 = vrot.slane %v2809_v3, 3  ;;  %v835_v6 = vld [vmem:[#allocation2 + $0x68] sm:$0xf] }
 0x1df   : > { %2635 = vmatmul.mubr.bf16.gmra.mrb[36].mxu1 %v1211_v58  ;;  %v2960_v62 = vrot.slane %v2958_v53, 3  ;;  %v2963_v31 = vrot.slane %v2961_v56, 4  ;;  %v2966_v51 = vrot.slane %v2805_v2, 4  ;;  %v936_v1 = vor.u32 %v935_v54, %v931_v38  ;;  %v2767_v53 = vld [vmem:[#allocation2 + $0x30] sm:$0xf8] }
 0x1e0   : > { %v2985_v26 = vsel %vm790_vm2, %v2976_v50, %v2984_v57  ;;  %v944_v7 = vor.u32 %v942_v10, %v940_v59  ;;  %v2813_v63 = vshrl.u32 %v2782_v45, 16  ;;  %v2815_v9 = vshll.u32 %v2782_v45, 16 }
 0x1e1   : > { %3573 = vmatprep.mubr.bf16.mxu0 %v2985_v26  ;;  %v2964_v61 = vor.u32 %v2963_v31, %v2960_v62  ;;  %v2967_v52 = vor.u32 %v2966_v51, %v2965_v44  ;;  %v2820_v42 = vshll.u32 %v5830_v60, 16  ;;  %v941_v11 = vsel %vm854_vm10, %v936_v1, %v940_v59  ;;  %v5846_v26 = vld [vmem:[#allocation2 + $0x48] sm:$0xf] }
 0x1e2   : > { %v1267_v55 = vshrl.u32 %v944_v7, 16  ;;  %v1270_v12 = vshll.u32 %v944_v7, 16  ;;  %v2824_v13 = vshrl.u32 %v5830_v60, 16  ;;  %v1259_v3 = vshrl.u32 %v941_v11, 16  ;;  %v5844_v60 = vld [vmem:[#allocation2 + $0x40] sm:$0xf0] }
 0x1e3   : > { %v1262_v2 = vshll.u32 %v941_v11, 16  ;;  %v2968_v14 = vsel %vm790_vm2, %v2964_v61, %v2967_v52  ;;  %v2817_v16 = vrot.slane %v2815_v9, 1  ;;  %v2822_v4 = vrot.slane %v2820_v42, 1  ;;  %v834_v52 = vld [vmem:[#allocation2 + $0x60] sm:$0xf8] }
 0x1e4   : > { %v1269_v18 = vrot.slane %v1267_v55, 3  ;;  %v1272_v19 = vrot.slane %v1270_v12, 4  ;;  %3574 = vmatmul.mubr.bf16.vlgmr.msra.gmra.mrb[48].mxu0 %v2968_v14  ;;  %v1247_v21 = vshrl.u32 %v832_v41, 16  ;;  %v1261_v23 = vrot.slane %v1259_v3, 3 }
 0x1e5   : > { %v1264_v24 = vrot.slane %v1262_v2, 4  ;;  %v2818_v37 = vor.u32 %v2817_v16, %v2813_v63  ;;  %v1250_v27 = vshll.u32 %v832_v41, 16  ;;  %v2826_v29 = vor.u32 %v2824_v13, %v2822_v4 }
 0x1e6   : > { %v1273_v28 = vor.u32 %v1272_v19, %v1269_v18  ;;  %v1249_v25 = vrot.slane %v1247_v21, 3  ;;  %v1254_v33 = vrot.slane %v942_v10, 3  ;;  %v1255_v38 = vrot.slane %v938_v49, 4 }
 0x1e7   : > { %v1265_v34 = vor.u32 %v1264_v24, %v1261_v23  ;;  %v2823_v35 = vsel %vm854_vm10, %v2818_v37, %v2822_v4  ;;  %v1252_v48 = vrot.slane %v1250_v27, 4  ;;  %v3024_v36 = vshrl.u32 %v2826_v29, 16 }
 0x1e8   : > { %v3016_v39 = vshrl.u32 %v2823_v35, 16  ;;  %v3019_v40 = vshll.u32 %v2823_v35, 16  ;;  %v3027_v0 = vshll.u32 %v2826_v29, 16  ;;  %v1256_v47 = vor.u32 %v1255_v38, %v1254_v33 }
 0x1e9   : > { %v1274_v46 = vsel %vm790_vm2, %v1265_v34, %v1273_v28  ;;  %v1253_v43 = vor.u32 %v1252_v48, %v1249_v25  ;;  %v946_v50 = vshrl.u32 %v5837_v30, 16  ;;  %v3026_v45 = vrot.slane %v3024_v36, 3 }
 0x1ea   : > { %2642 = vmatprep.mubr.bf16.mxu1 %v1274_v46  ;;  %v3018_v10 = vrot.slane %v3016_v39, 3  ;;  %v3021_v56 = vrot.slane %v3019_v40, 4  ;;  %v3029_v57 = vrot.slane %v3027_v0, 4  ;;  %v948_v49 = vshll.u32 %v5837_v30, 16  ;;  %v5855_v40 = vld [vmem:[#allocation2 + $0x70] sm:$0xf0] }
 0x1eb   : > { %v1257_v58 = vsel %vm790_vm2, %v1253_v43, %v1256_v47  ;;  %v953_v54 = vshll.u32 %v835_v6, 16  ;;  %v957_v59 = vshrl.u32 %v835_v6, 16  ;;  %v3004_v44 = vshrl.u32 %v2767_v53, 16 }
 0x1ec   : > { %v3022_v62 = vor.u32 %v3021_v56, %v3018_v10  ;;  %v3030_v31 = vor.u32 %v3029_v57, %v3026_v45  ;;  %2643 = vmatmul.mubr.bf16.gmra.mrb[40].mxu1 %v1257_v58  ;;  %v3007_v51 = vshll.u32 %v2767_v53, 16  ;;  %v950_v1 = vrot.slane %v948_v49, 1  ;;  %v5858_v10 = vld [vmem:[#allocation2 + $0x78] sm:$0xf]  ;;  %v2769_v49 = vld [vmem:[#allocation2 + $0x40] sm:$0xf8] }
 0x1ed   : > { %v955_v7 = vrot.slane %v953_v54, 1  ;;  %v3011_v63 = vrot.slane %v2824_v13, 3  ;;  %v3012_v61 = vrot.slane %v2820_v42, 4  ;;  %v3006_v41 = vrot.slane %v3004_v44, 3 }
 0x1ee   : > { %v3031_v9 = vsel %vm790_vm2, %v3022_v62, %v3030_v31  ;;  %v3009_v11 = vrot.slane %v3007_v51, 4  ;;  %v2828_v55 = vshrl.u32 %v5844_v60, 16  ;;  %v951_v12 = vor.u32 %v950_v1, %v946_v50 }
 0x1ef   : > { %3581 = vmatprep.mubr.bf16.mxu0 %v3031_v9  ;;  %v959_v3 = vor.u32 %v957_v59, %v955_v7  ;;  %v3013_v2 = vor.u32 %v3012_v61, %v3011_v63  ;;  %v2830_v14 = vshll.u32 %v5844_v60, 16  ;;  %v2835_v18 = vshll.u32 %v5846_v26, 16  ;;  %v5865_v9 = vld [vmem:[#allocation2 + $0x50] sm:$0xf0] }
 0x1f0   : > { %v3010_v16 = vor.u32 %v3009_v11, %v3006_v41  ;;  %v2839_v19 = vshrl.u32 %v5846_v26, 16  ;;  %v1293_v13 = vshrl.u32 %v834_v52, 16  ;;  %v956_v42 = vsel %vm854_vm10, %v951_v12, %v955_v7 }
 0x1f1   : > { %v1313_v4 = vshrl.u32 %v959_v3, 16  ;;  %v1316_v21 = vshll.u32 %v959_v3, 16  ;;  %v2832_v23 = vrot.slane %v2830_v14, 1  ;;  %v1305_v24 = vshrl.u32 %v956_v42, 16  ;;  %v5868_v3 = vld [vmem:[#allocation2 + $0x58] sm:$0xf] }
 0x1f2   : > { %v1308_v37 = vshll.u32 %v956_v42, 16  ;;  %v3014_v27 = vsel %vm790_vm2, %v3010_v16, %v3013_v2  ;;  %v2837_v28 = vrot.slane %v2835_v18, 1  ;;  %v1295_v34 = vrot.slane %v1293_v13, 3 }
 0x1f3   : > { %v1315_v29 = vrot.slane %v1313_v4, 3  ;;  %v1318_v25 = vrot.slane %v1316_v21, 4  ;;  %3582 = vmatmul.mubr.bf16.gmra.mrb[52].mxu0 %v3014_v27  ;;  %v2833_v33 = vor.u32 %v2832_v23, %v2828_v55  ;;  %v1307_v35 = vrot.slane %v1305_v24, 3 }
 0x1f4   : > { %v1310_v48 = vrot.slane %v1308_v37, 4  ;;  %v2841_v38 = vor.u32 %v2839_v19, %v2837_v28  ;;  %v1296_v39 = vshll.u32 %v834_v52, 16  ;;  %v1300_v6 = vrot.slane %v957_v59, 3 }
 0x1f5   : > { %v1319_v36 = vor.u32 %v1318_v25, %v1315_v29  ;;  %v2838_v0 = vsel %vm854_vm10, %v2833_v33, %v2837_v28  ;;  %v1301_v46 = vrot.slane %v953_v54, 4  ;;  %v961_v58 = vshrl.u32 %v5855_v40, 16  ;;  %v836_v29 = vld [vmem:[#allocation2 + $0x70] sm:$0xf8] }
 0x1f6   : > { %v1311_v43 = vor.u32 %v1310_v48, %v1307_v35  ;;  %v3062_v47 = vshrl.u32 %v2838_v0, 16  ;;  %v3065_v50 = vshll.u32 %v2838_v0, 16  ;;  %v3070_v53 = vshrl.u32 %v2841_v38, 16 }
 0x1f7   : > { %v3073_v56 = vshll.u32 %v2841_v38, 16  ;;  %v1298_v45 = vrot.slane %v1296_v39, 4  ;;  %v1302_v57 = vor.u32 %v1301_v46, %v1300_v6  ;;  %v963_v26 = vshll.u32 %v5855_v40, 16 }
 0x1f8   : > { %v1320_v62 = vsel %vm790_vm2, %v1311_v43, %v1319_v36  ;;  %v3064_v31 = vrot.slane %v3062_v47, 3  ;;  %v3067_v44 = vrot.slane %v3065_v50, 4  ;;  %v3072_v51 = vrot.slane %v3070_v53, 3 }
 0x1f9   : > { %2650 = vmatprep.mubr.bf16.mxu1 %v1320_v62  ;;  %v3075_v59 = vrot.slane %v3073_v56, 4  ;;  %v1299_v54 = vor.u32 %v1298_v45, %v1295_v34  ;;  %v968_v1 = vshll.u32 %v5858_v10, 16  ;;  %v972_v63 = vshrl.u32 %v5858_v10, 16 }
 0x1fa   : > { %v3068_v7 = vor.u32 %v3067_v44, %v3064_v31  ;;  %v3050_v61 = vshrl.u32 %v2769_v49, 16  ;;  %v3053_v52 = vshll.u32 %v2769_v49, 16  ;;  %v965_v55 = vrot.slane %v963_v26, 1  ;;  %v2771_v26 = vld [vmem:[#allocation2 + $0x50] sm:$0xf8] }
 0x1fb   : > { %v3076_v41 = vor.u32 %v3075_v59, %v3072_v51  ;;  %v1303_v11 = vsel %vm790_vm2, %v1299_v54, %v1302_v57  ;;  %v970_v12 = vrot.slane %v968_v1, 1  ;;  %v3057_v16 = vrot.slane %v2839_v19, 3  ;;  %v792_v57 = vld [vmem:[#allocation2 + $0x8] sm:$0x10] }
 0x1fc   : > { %2651 = vmatmul.mubr.bf16.gmra.mrb[44].mxu1 %v1303_v11  ;;  %v3052_v2 = vrot.slane %v3050_v61, 3  ;;  %v3055_v14 = vrot.slane %v3053_v52, 4  ;;  %v3058_v13 = vrot.slane %v2835_v18, 4  ;;  %v966_v4 = vor.u32 %v965_v55, %v961_v58 }
 0x1fd   : > { %v3077_v42 = vsel %vm790_vm2, %v3068_v7, %v3076_v41  ;;  %v974_v21 = vor.u32 %v972_v63, %v970_v12  ;;  %v2843_v23 = vshrl.u32 %v5865_v9, 16  ;;  %v2845_v27 = vshll.u32 %v5865_v9, 16 }
 0x1fe   : > { %3589 = vmatprep.mubr.bf16.mxu0 %v3077_v42  ;;  %v3056_v24 = vor.u32 %v3055_v14, %v3052_v2  ;;  %v3059_v37 = vor.u32 %v3058_v13, %v3057_v16  ;;  %v2850_v28 = vshll.u32 %v5868_v3, 16  ;;  %v971_v25 = vsel %vm854_vm10, %v966_v4, %v970_v12  ;;  %v5088_v2 = vld [vmem:[#allocation2] sm:$0xf0]  ;;  %v5884_v42 = vld [vmem:[#allocation2 + $0x68] sm:$0xf] }
 0x1ff   : > { %v1359_v33 = vshrl.u32 %v974_v21, 16  ;;  %v1362_v34 = vshll.u32 %v974_v21, 16  ;;  %v2854_v18 = vshrl.u32 %v5868_v3, 16  ;;  %v1351_v19 = vshrl.u32 %v971_v25, 16  ;;  %v5881_v3 = vld [vmem:[#allocation2 + $0x60] sm:$0xf0] }
 0x200   : > { %v1354_v35 = vshll.u32 %v971_v25, 16  ;;  %v3060_v48 = vsel %vm790_vm2, %v3056_v24, %v3059_v37  ;;  %v2847_v38 = vrot.slane %v2845_v27, 1  ;;  %v2852_v0 = vrot.slane %v2850_v28, 1  ;;  %v847_v37 = vld [vmem:[#allocation2 + $0x18] sm:$0x1f] }
 0x201   : > { %v1361_v39 = vrot.slane %v1359_v33, 3  ;;  %v1364_v36 = vrot.slane %v1362_v34, 4  ;;  %3590 = vmatmul.mubr.bf16.gmra.mrb[56].mxu0 %v3060_v48  ;;  %v1339_v6 = vshrl.u32 %v836_v29, 16  ;;  %v1353_v46 = vrot.slane %v1351_v19, 3  ;;  %v848_v27 = vld [vmem:[#allocation2 + $0x28] sm:$0x1f] }
 0x202   : > { %v1356_v43 = vrot.slane %v1354_v35, 4  ;;  %v2848_v47 = vor.u32 %v2847_v38, %v2843_v23  ;;  %v1342_v50 = vshll.u32 %v836_v29, 16  ;;  %v2856_v10 = vor.u32 %v2854_v18, %v2852_v0  ;;  %v5888_v19 = vld [vmem:[#allocation2 + $0x60] sm:$0xf8] }
 0x203   : > { %v1365_v53 = vor.u32 %v1364_v36, %v1361_v39  ;;  %v1341_v56 = vrot.slane %v1339_v6, 3  ;;  %v1346_v45 = vrot.slane %v972_v63, 3  ;;  %v1347_v31 = vrot.slane %v968_v1, 4  ;;  %v5089_v36 = vld [vmem:[#allocation2 + $0x10] sm:$0xf0] }
 0x204   : > { %v1357_v58 = vor.u32 %v1356_v43, %v1353_v46  ;;  %v2853_v49 = vsel %vm854_vm10, %v2848_v47, %v2852_v0  ;;  %v1344_v62 = vrot.slane %v1342_v50, 4  ;;  %v3116_v59 = vshrl.u32 %v2856_v10, 16 }
 0x205   : > { %v3108_v44 = vshrl.u32 %v2853_v49, 16  ;;  %v3111_v51 = vshll.u32 %v2853_v49, 16  ;;  %v3119_v54 = vshll.u32 %v2856_v10, 16  ;;  %v1348_v52 = vor.u32 %v1347_v31, %v1346_v45 }
 0x206   : > { %v1366_v7 = vsel %vm790_vm2, %v1357_v58, %v1365_v53  ;;  %v1345_v61 = vor.u32 %v1344_v62, %v1341_v56  ;;  %v793_v41 = vsel %vm5534_vm3, 0, %v792_v57  ;;  %v3118_v55 = vrot.slane %v3116_v59, 3 }
 0x207   : > { %2658 = vmatprep.mubr.bf16.mxu1 %v1366_v7  ;;  %v3110_v63 = vrot.slane %v3108_v44, 3  ;;  %v3113_v11 = vrot.slane %v3111_v51, 4  ;;  %v3121_v12 = vrot.slane %v3119_v54, 4  ;;  %794 = vst [vmem:[#allocation2 + $0x8] sm:$0x10] %v793_v41  ;;  %v992_v14 = vrot.slane %v5088_v2, 1 }
 0x208   : > { %v1349_v1 = vsel %vm790_vm2, %v1345_v61, %v1348_v52  ;;  %v3096_v16 = vshrl.u32 %v2771_v26, 16  ;;  %v3099_v13 = vshll.u32 %v2771_v26, 16  ;;  %v3103_v23 = vrot.slane %v2854_v18, 3 }
 0x209   : > { %v3114_v4 = vor.u32 %v3113_v11, %v3110_v63  ;;  %v3122_v21 = vor.u32 %v3121_v12, %v3118_v55  ;;  %2659 = vmatmul.mubr.bf16.gmra.mrb[48].mxu1 %v1349_v1  ;;  %v3104_v24 = vrot.slane %v2850_v28, 4  ;;  %v2858_v33 = vshrl.u32 %v5881_v3, 16 }
 0x20a   : > { %v3098_v29 = vrot.slane %v3096_v16, 3  ;;  %v3101_v25 = vrot.slane %v3099_v13, 4  ;;  %v2860_v34 = vshll.u32 %v5881_v3, 16  ;;  %v2865_v38 = vshll.u32 %v5884_v42, 16 }
 0x20b   : > { %v3123_v35 = vsel %vm790_vm2, %v3114_v4, %v3122_v21  ;;  %v3105_v48 = vor.u32 %v3104_v24, %v3103_v23  ;;  %v2869_v39 = vshrl.u32 %v5884_v42, 16  ;;  %v995_v0 = vrot.slane %v5089_v36, 1 }
 0x20c   : > { %3597 = vmatprep.mubr.bf16.mxu0 %v3123_v35  ;;  %v3102_v18 = vor.u32 %v3101_v25, %v3098_v29  ;;  %v2862_v28 = vrot.slane %v2860_v34, 1  ;;  %v996_v6 = vrot.slane %v847_v37, 1  ;;  %v2867_v46 = vrot.slane %v2865_v38, 1 }
 0x20d   : > { %v998_v43 = vrot.slane %v5750_v8, 1  ;;  %v999_v47 = vrot.slane %v848_v27, 1  ;;  %v3142_v50 = vshrl.u32 %v5888_v19, 16 }
 0x20e   : > { %v846_v53 = vld [vmem:[#allocation2 + $0x8] sm:$0x1f]  ;;  %v3106_v10 = vsel %vm790_vm2, %v3102_v18, %v3105_v48  ;;  %v2863_v56 = vor.u32 %v2862_v28, %v2858_v33  ;;  %v997_v45 = vsel %vm991_vm9, %v995_v0, %v996_v6  ;;  %v1100_v57 = vshrl.u32 %v996_v6, 16 }
 0x20f   : > { %v993_v58 = vrot.slane %v846_v53, 1  ;;  %3598 = vmatmul.mubr.bf16.gmra.mrb[60].mxu0 %v3106_v10  ;;  %v2871_v49 = vor.u32 %v2869_v39, %v2867_v46  ;;  %v1092_v62 = vshrl.u32 %v997_v45, 16  ;;  %v1095_v31 = vshll.u32 %v997_v45, 16 }
 0x210   : > { %v2868_v44 = vsel %vm854_vm10, %v2863_v56, %v2867_v46  ;;  %v1102_v8 = vrot.slane %v1100_v57, 3  ;;  %v1103_v51 = vshll.u32 %v996_v6, 16  ;;  %v1000_v59 = vsel %vm991_vm9, %v998_v43, %v999_v47  ;;  %v5905_v46 = vld [vmem:[#allocation2 + $0x70] sm:$0xf0]  ;;  %v5065_v56 = vld [vmem:[#allocation6 + $0x208] sm:$0xff]  }
 0x211   : > { %v994_v54 = vsel %vm991_vm9, %v992_v14, %v993_v58  ;;  %v1054_v26 = vshrl.u32 %v993_v58, 16  ;;  %v1057_v7 = vshll.u32 %v993_v58, 16  ;;  %v3154_v61 = vshrl.u32 %v2868_v44, 16  ;;  %v5908_v57 = vld [vmem:[#allocation2 + $0x78] sm:$0xf] }
 0x212   : > { %v1046_v52 = vshrl.u32 %v994_v54, 16  ;;  %v1049_v41 = vshll.u32 %v994_v54, 16  ;;  %v3157_v63 = vshll.u32 %v2868_v44, 16  ;;  %v3162_v11 = vshrl.u32 %v2871_v49, 16 }
 0x213   : > { %v1056_v55 = vrot.slane %v1054_v26, 3  ;;  %v1059_v12 = vrot.slane %v1057_v7, 4  ;;  %v3156_v1 = vrot.slane %v3154_v61, 3  ;;  %v3165_v2 = vshll.u32 %v2871_v49, 16  ;;  %v5066_v61 = vld [vmem:[#allocation6 + $0x210] sm:$0xff]  }
 0x214   : > { %v1048_v16 = vrot.slane %v1046_v52, 3  ;;  %v1051_v13 = vrot.slane %v1049_v41, 4  ;;  %v3159_v4 = vrot.slane %v3157_v63, 4  ;;  %v3164_v21 = vrot.slane %v3162_v11, 3 }
 0x215   : > { %v1060_v23 = vor.u32 %v1059_v12, %v1056_v55  ;;  %v3167_v24 = vrot.slane %v3165_v2, 4  ;;  %v1094_v37 = vrot.slane %v1092_v62, 3  ;;  %v1097_v27 = vrot.slane %v1095_v31, 4  ;;  %v849_v31 = vld [vmem:[#allocation2 + $0x38] sm:$0x1f] }
 0x216   : > { %v1052_v14 = vor.u32 %v1051_v13, %v1048_v16  ;;  %v3160_v29 = vor.u32 %v3159_v4, %v3156_v1  ;;  %v1105_v25 = vrot.slane %v1103_v51, 4  ;;  %v1138_v33 = vshrl.u32 %v1000_v59, 16 }
 0x217   : > { %v3168_v34 = vor.u32 %v3167_v24, %v3164_v21  ;;  %v1098_v35 = vor.u32 %v1097_v27, %v1094_v37  ;;  %v1141_v48 = vshll.u32 %v1000_v59, 16  ;;  %v1146_v18 = vshrl.u32 %v999_v47, 16  ;;  %v5067_v37 = vld [vmem:[#allocation6 + $0x218] sm:$0xff]  }
 0x218   : > { %v1061_v28 = vsel %vm790_vm2, %v1052_v14, %v1060_v23  ;;  %v1106_v36 = vor.u32 %v1105_v25, %v1102_v8  ;;  %v1140_v0 = vrot.slane %v1138_v33, 3  ;;  %v1149_v6 = vshll.u32 %v999_v47, 16 }
 0x219   : > { %4736 = vmatprep.mubr.bf16.mxu1 %v1061_v28  ;;  %v3169_v43 = vsel %vm790_vm2, %v3160_v29, %v3168_v34  ;;  %v1143_v53 = vrot.slane %v1141_v48, 4  ;;  %v1148_v10 = vrot.slane %v1146_v18, 3  ;;  %v3144_v45 = vrot.slane %v3142_v50, 3  ;;  %v2775_v18 = vld [vmem:[#allocation2 + $0x70] sm:$0xf8] }
 0x21a   : > { %3605 = vmatprep.mubr.bf16.mxu0 %v3169_v43  ;;  %v1107_v58 = vsel %vm790_vm2, %v1098_v35, %v1106_v36  ;;  %v1151_v49 = vrot.slane %v1149_v6, 4  ;;  %v3145_v62 = vshll.u32 %v5888_v19, 16  ;;  %v3149_v47 = vrot.slane %v2869_v39, 3 }
 0x21b   : > { %4737 = vmatmul.mubr.bf16.vlgmr.msra.gmra.mrb[4].mxu1 %v1107_v58  ;;  %v1144_v44 = vor.u32 %v1143_v53, %v1140_v0  ;;  %v3150_v8 = vrot.slane %v2865_v38, 4  ;;  %v2873_v51 = vshrl.u32 %v5905_v46, 16  ;;  %v2875_v50 = vshll.u32 %v5905_v46, 16 }
 0x21c   : > { %4753 = vmatpush3.bf16.msra.mxu1 %v5785_v15  ;;  %v1152_v59 = vor.u32 %v1151_v49, %v1148_v10  ;;  %v3147_v54 = vrot.slane %v3145_v62, 4  ;;  %v2880_v26 = vshll.u32 %v5908_v57, 16  ;;  %v2884_v19 = vshrl.u32 %v5908_v57, 16  ;;  %v850_v15 = vld [vmem:[#allocation2 + $0x48] sm:$0x1f] }
 0x21d   : > { %4754 = vmatprep.subr.bf16.mxu1 %v5065_v56  ;;  %v3151_v39 = vor.u32 %v3150_v8, %v3149_v47  ;;  %v2877_v7 = vrot.slane %v2875_v50, 1  ;;  %v1001_v52 = vrot.slane %v5778_v5, 1  ;;  %v1002_v42 = vrot.slane %v849_v31, 1  ;;  %v5932_v47 = vld [vmem:[#allocation2 + $0x80] sm:$0xf0] }
 0x21e   : > { %v1153_v38 = vsel %vm790_vm2, %v1144_v44, %v1152_v59  ;;  %v3148_v41 = vor.u32 %v3147_v54, %v3144_v45  ;;  %v2882_v63 = vrot.slane %v2880_v26, 1  ;;  %v1004_v11 = vrot.slane %v5805_v17, 1  ;;  %v5068_v31 = vld [vmem:[#allocation6 + $0x220] sm:$0xff]   ;;  %v5935_v59 = vld [vmem:[#allocation2 + $0x88] sm:$0xf] }
 0x21f   : > { %4740 = vmatprep.mubr.bf16.mxu1 %v1153_v38  ;;  %v2878_v55 = vor.u32 %v2877_v7, %v2873_v51  ;;  %v1003_v12 = vsel %vm991_vm9, %v1001_v52, %v1002_v42  ;;  %v1192_v1 = vshrl.u32 %v1002_v42, 16  ;;  %v1195_v2 = vshll.u32 %v1002_v42, 16  ;;  %v851_v52 = vld [vmem:[#allocation2 + $0x58] sm:$0x1f] }
 0x220   : > { %v3152_v16 = vsel %vm790_vm2, %v3148_v41, %v3151_v39  ;;  %4755 = vmatpush3.bf16.msra.mxu1 %v5065_v56  ;;  %v2886_v5 = vor.u32 %v2884_v19, %v2882_v63  ;;  %v1184_v13 = vshrl.u32 %v1003_v12, 16  ;;  %v1187_v4 = vshll.u32 %v1003_v12, 16 }
 0x221   : > { %3606 = vmatmul.mubr.bf16.gmra.mrb[64].mxu0 %v3152_v16  ;;  %v2883_v21 = vsel %vm854_vm10, %v2878_v55, %v2882_v63  ;;  %4756 = vmatprep.subr.bf16.mxu1 %v5066_v61  ;;  %v1194_v23 = vrot.slane %v1192_v1, 3  ;;  %v1197_v17 = vrot.slane %v1195_v2, 4  ;;  %v1005_v24 = vrot.slane %v850_v15, 1  ;;  %v5069_v1 = vld [vmem:[#allocation6 + $0x228] sm:$0xff]  }
 0x222   : > { %v3200_v27 = vshrl.u32 %v2883_v21, 16  ;;  %v3203_v14 = vshll.u32 %v2883_v21, 16  ;;  %v3208_v29 = vshrl.u32 %v2886_v5, 16  ;;  %v3211_v25 = vshll.u32 %v2886_v5, 16  ;;  %v852_v21 = vld [vmem:[#allocation2 + $0x68] sm:$0x1f] }
 0x223   : > { %v1186_v33 = vrot.slane %v1184_v13, 3  ;;  %v1189_v34 = vrot.slane %v1187_v4, 4  ;;  %v1198_v35 = vor.u32 %v1197_v17, %v1194_v23  ;;  %v1006_v48 = vsel %vm991_vm9, %v1004_v11, %v1005_v24 }
 0x224   : > { %v3202_v28 = vrot.slane %v3200_v27, 3  ;;  %v3205_v36 = vrot.slane %v3203_v14, 4  ;;  %v3210_v0 = vrot.slane %v3208_v29, 3  ;;  %v3213_v6 = vrot.slane %v3211_v25, 4  ;;  %4757 = vmatpush3.bf16.msra.mxu1 %v5066_v61  ;;  %v5070_v25 = vld [vmem:[#allocation6 + $0x230] sm:$0xff]  }
 0x225   : > { %v1190_v43 = vor.u32 %v1189_v34, %v1186_v33  ;;  %v1230_v53 = vshrl.u32 %v1006_v48, 16  ;;  %v1233_v10 = vshll.u32 %v1006_v48, 16  ;;  %v1238_v56 = vshrl.u32 %v1005_v24, 16  ;;  %4758 = vmatprep.subr.bf16.mxu1 %v5067_v37 }
 0x226   : > { %v3206_v45 = vor.u32 %v3205_v36, %v3202_v28  ;;  %v3214_v58 = vor.u32 %v3213_v6, %v3210_v0  ;;  %v1241_v49 = vshll.u32 %v1005_v24, 16  ;;  %v3188_v62 = vshrl.u32 %v2775_v18, 16 }
 0x227   : > { %v1199_v44 = vsel %vm790_vm2, %v1190_v43, %v1198_v35  ;;  %v1232_v8 = vrot.slane %v1230_v53, 3  ;;  %v1235_v51 = vrot.slane %v1233_v10, 4  ;;  %v1240_v50 = vrot.slane %v1238_v56, 3 }
 0x228   : > { %v3215_v54 = vsel %vm790_vm2, %v3206_v45, %v3214_v58  ;;  %4741 = vmatmul.mubr.bf16.gmra.mrb[8].mxu1 %v1199_v44  ;;  %v1243_v39 = vrot.slane %v1241_v49, 4  ;;  %v3190_v7 = vrot.slane %v3188_v62, 3  ;;  %v3191_v61 = vshll.u32 %v2775_v18, 16  ;;  %v2777_v49 = vld [vmem:[#allocation2 + $0x80] sm:$0xf8]  ;;  %v5071_v62 = vld [vmem:[#allocation6 + $0x238] sm:$0xff]  }
 0x229   : > { %3613 = vmatprep.mubr.bf16.mxu0 %v3215_v54  ;;  %v1236_v42 = vor.u32 %v1235_v51, %v1232_v8  ;;  %v3195_v38 = vrot.slane %v2884_v19, 3  ;;  %v3196_v41 = vrot.slane %v2880_v26, 4  ;;  %4759 = vmatpush3.bf16.msra.mxu1 %v5067_v37  ;;  %v2888_v63 = vshrl.u32 %v5932_v47, 16 }
 0x22a   : > { %v1244_v15 = vor.u32 %v1243_v39, %v1240_v50  ;;  %v3193_v11 = vrot.slane %v3191_v61, 4  ;;  %v2890_v55 = vshll.u32 %v5932_v47, 16  ;;  %v2895_v12 = vshll.u32 %v5935_v59, 16  ;;  %4760 = vmatprep.subr.bf16.mxu1 %v5068_v31 }
 0x22b   : > { %v3197_v2 = vor.u32 %v3196_v41, %v3195_v38  ;;  %v2899_v16 = vshrl.u32 %v5935_v59, 16  ;;  %v1007_v5 = vrot.slane %v5819_v22, 1  ;;  %v1008_v19 = vrot.slane %v851_v52, 1  ;;  %v5956_v41 = vld [vmem:[#allocation2 + $0x90] sm:$0xf0] }
 0x22c   : > { %v1245_v57 = vsel %vm790_vm2, %v1236_v42, %v1244_v15  ;;  %v3194_v26 = vor.u32 %v3193_v11, %v3190_v7  ;;  %v2892_v13 = vrot.slane %v2890_v55, 1  ;;  %v2897_v4 = vrot.slane %v2895_v12, 1 }
 0x22d   : > { %4744 = vmatprep.mubr.bf16.mxu1 %v1245_v57  ;;  %v1009_v23 = vsel %vm991_vm9, %v1007_v5, %v1008_v19  ;;  %v1284_v17 = vshrl.u32 %v1008_v19, 16  ;;  %v1287_v24 = vshll.u32 %v1008_v19, 16  ;;  %4761 = vmatpush3.bf16.msra.mxu1 %v5068_v31  ;;  %v1010_v37 = vrot.slane %v5837_v30, 1 }
 0x22e   : > { %v3198_v27 = vsel %vm790_vm2, %v3194_v26, %v3197_v2  ;;  %v2893_v22 = vor.u32 %v2892_v13, %v2888_v63  ;;  %v2901_v14 = vor.u32 %v2899_v16, %v2897_v4  ;;  %v1276_v29 = vshrl.u32 %v1009_v23, 16  ;;  %4762 = vmatprep.subr.bf16.mxu1 %v5069_v1  ;;  %v853_v26 = vld [vmem:[#allocation2 + $0x78] sm:$0x1f] }
 0x22f   : > { %3614 = vmatmul.mubr.bf16.gmra.mrb[68].mxu0 %v3198_v27  ;;  %v1279_v33 = vshll.u32 %v1009_v23, 16  ;;  %v1286_v34 = vrot.slane %v1284_v17, 3  ;;  %v1289_v35 = vrot.slane %v1287_v24, 4  ;;  %v1011_v48 = vrot.slane %v852_v21, 1  ;;  %v2789_v17 = vld [vmem:[#allocation2 + $0x28] sm:$0x1f] }
 0x230   : > { %v2898_v18 = vsel %vm854_vm10, %v2893_v22, %v2897_v4  ;;  %v3254_v28 = vshrl.u32 %v2901_v14, 16  ;;  %v3257_v36 = vshll.u32 %v2901_v14, 16  ;;  %v1278_v0 = vrot.slane %v1276_v29, 3 }
 0x231   : > { %v3246_v6 = vshrl.u32 %v2898_v18, 16  ;;  %v3249_v43 = vshll.u32 %v2898_v18, 16  ;;  %v1281_v30 = vrot.slane %v1279_v33, 4  ;;  %v1290_v53 = vor.u32 %v1289_v35, %v1286_v34  ;;  %4763 = vmatpush3.bf16.msra.mxu1 %v5069_v1  ;;  %v5958_v1 = vld [vmem:[#allocation2 + $0x98] sm:$0xf] }
 0x232   : > { %v3256_v10 = vrot.slane %v3254_v28, 3  ;;  %v3259_v56 = vrot.slane %v3257_v36, 4  ;;  %v1012_v45 = vsel %vm991_vm9, %v1010_v37, %v1011_v48  ;;  %v1330_v58 = vshrl.u32 %v1011_v48, 16  ;;  %4764 = vmatprep.subr.bf16.mxu1 %v5070_v25  ;;  %v5090_v33 = vld [vmem:[#allocation2 + $0x20] sm:$0xf0] }
 0x233   : > { %v3248_v31 = vrot.slane %v3246_v6, 3  ;;  %v3251_v44 = vrot.slane %v3249_v43, 4  ;;  %v1282_v8 = vor.u32 %v1281_v30, %v1278_v0  ;;  %v1322_v51 = vshrl.u32 %v1012_v45, 16 }
 0x234   : > { %v3260_v50 = vor.u32 %v3259_v56, %v3256_v10  ;;  %v1325_v54 = vshll.u32 %v1012_v45, 16  ;;  %v1332_v39 = vrot.slane %v1330_v58, 3  ;;  %v1333_v7 = vshll.u32 %v1011_v48, 16 }
 0x235   : > { %v3252_v61 = vor.u32 %v3251_v44, %v3248_v31  ;;  %v1291_v52 = vsel %vm790_vm2, %v1282_v8, %v1290_v53  ;;  %v1324_v42 = vrot.slane %v1322_v51, 3  ;;  %v3234_v38 = vshrl.u32 %v2777_v49, 16  ;;  %4765 = vmatpush3.bf16.msra.mxu1 %v5070_v25 }
 0x236   : > { %4745 = vmatmul.mubr.bf16.gmra.mrb[12].mxu1 %v1291_v52  ;;  %v1327_v63 = vrot.slane %v1325_v54, 4  ;;  %v1335_v15 = vrot.slane %v1333_v7, 4  ;;  %v3237_v11 = vshll.u32 %v2777_v49, 16  ;;  %v3241_v55 = vrot.slane %v2899_v16, 3  ;;  %4766 = vmatprep.subr.bf16.mxu1 %v5071_v62  ;;  %v786_v16 = vld [vmem:[#allocation2 + $0x90] sm:$0x8] }
 0x237   : > { %v3261_v2 = vsel %vm790_vm2, %v3252_v61, %v3260_v50  ;;  %v3236_v5 = vrot.slane %v3234_v38, 3  ;;  %v3242_v19 = vrot.slane %v2895_v12, 4  ;;  %v2903_v57 = vshrl.u32 %v5956_v41, 16 }
 0x238   : > { %3621 = vmatprep.mubr.bf16.mxu0 %v3261_v2  ;;  %v1328_v13 = vor.u32 %v1327_v63, %v1324_v42  ;;  %v1336_v4 = vor.u32 %v1335_v15, %v1332_v39  ;;  %v3239_v21 = vrot.slane %v3237_v11, 4  ;;  %v2905_v23 = vshll.u32 %v5956_v41, 16  ;;  %v2791_v2 = vld [vmem:[#allocation2 + $0x48] sm:$0x1f] }
 0x239   : > { %v3243_v24 = vor.u32 %v3242_v19, %v3241_v55  ;;  %v2910_v37 = vshll.u32 %v5958_v1, 16  ;;  %v2914_v27 = vshrl.u32 %v5958_v1, 16  ;;  %v1013_v22 = vrot.slane %v5855_v40, 1  ;;  %4767 = vmatpush3.bf16.msra.mxu1 %v5071_v62 }
 0x23a   : > { %v1337_v59 = vsel %vm790_vm2, %v1328_v13, %v1336_v4  ;;  %v3240_v12 = vor.u32 %v3239_v21, %v3236_v5  ;;  %v2907_v14 = vrot.slane %v2905_v23, 1  ;;  %v1014_v29 = vrot.slane %v853_v26, 1  ;;  %v2790_v13 = vld [vmem:[#allocation2 + $0x38] sm:$0x1f] }
 0x23b   : > { %4748 = vmatprep.mubr.bf16.mxu1 %v1337_v59  ;;  %v2912_v25 = vrot.slane %v2910_v37, 1  ;;  %v2933_v34 = vrot.slane %v5090_v33, 1  ;;  %v2934_v35 = vrot.slane %v2789_v17, 1  ;;  %v787_v48 = vsel %vm5542_vm6, 0, %v786_v16 }
 0x23c   : > { %v3244_v18 = vsel %vm790_vm2, %v3240_v12, %v3243_v24  ;;  %v2908_v28 = vor.u32 %v2907_v14, %v2903_v57  ;;  %v1015_v36 = vsel %vm991_vm9, %v1013_v22, %v1014_v29  ;;  %v1376_v40 = vshrl.u32 %v1014_v29, 16  ;;  %788 = vst [vmem:[#allocation2 + $0x90] sm:$0x8] %v787_v48  ;;  %v2792_v24 = vld [vmem:[#allocation2 + $0x58] sm:$0x1f] }
 0x23d   : > { %3622 = vmatmul.mubr.bf16.gmra.mrb[72].mxu0 %v3244_v18  ;;  %v2916_v0 = vor.u32 %v2914_v27, %v2912_v25  ;;  %v1368_v6 = vshrl.u32 %v1015_v36, 16  ;;  %v1371_v43 = vshll.u32 %v1015_v36, 16  ;;  %v1379_v30 = vshll.u32 %v1014_v29, 16  ;;  %v5091_v29 = vld [vmem:[#allocation2 + $0x30] sm:$0xf0] }
 0x23e   : > { %v2913_v53 = vsel %vm854_vm10, %v2908_v28, %v2912_v25  ;;  %v1378_v10 = vrot.slane %v1376_v40, 3  ;;  %v2935_v56 = vsel %vm991_vm9, %v2933_v34, %v2934_v35  ;;  %v2995_v45 = vshrl.u32 %v2934_v35, 16  ;;  %v5072_v34 = vld [vmem:[%s6273_s4] sm:$0xff]  }
 0x23f   : > { %v3292_v32 = vshrl.u32 %v2913_v53, 16  ;;  %v3295_v58 = vshll.u32 %v2913_v53, 16  ;;  %v3300_v49 = vshrl.u32 %v2916_v0, 16  ;;  %v3303_v62 = vshll.u32 %v2916_v0, 16  ;;  %4784 = vmatprep.subr.bf16.mxu0 %v5072_v34 }
 0x240   : > { %v1370_v31 = vrot.slane %v1368_v6, 3  ;;  %v1373_v44 = vrot.slane %v1371_v43, 4  ;;  %v1381_v8 = vrot.slane %v1379_v30, 4  ;;  %v2987_v51 = vshrl.u32 %v2935_v56, 16  ;;  %4785 = vmatpush3.bf16.msra.mxu0 %v5072_v34 }
 0x241   : > { %v3294_v50 = vrot.slane %v3292_v32, 3  ;;  %v3297_v54 = vrot.slane %v3295_v58, 4  ;;  %v3302_v39 = vrot.slane %v3300_v49, 3  ;;  %v3305_v7 = vrot.slane %v3303_v62, 4 }
 0x242   : > { %v1374_v61 = vor.u32 %v1373_v44, %v1370_v31  ;;  %v1382_v52 = vor.u32 %v1381_v8, %v1378_v10  ;;  %v2989_v42 = vrot.slane %v2987_v51, 3  ;;  %v2990_v38 = vshll.u32 %v2935_v56, 16 }
 0x243   : > { %v3298_v63 = vor.u32 %v3297_v54, %v3294_v50  ;;  %v3306_v15 = vor.u32 %v3305_v7, %v3302_v39  ;;  %v2997_v11 = vrot.slane %v2995_v45, 3  ;;  %v2998_v55 = vshll.u32 %v2934_v35, 16  ;;  %v2779_v1 = vld [vmem:[#allocation2 + $0x90] sm:$0xf8] }
 0x244   : > { %v1383_v5 = vsel %vm790_vm2, %v1374_v61, %v1382_v52  ;;  %v2992_v19 = vrot.slane %v2990_v38, 4  ;;  %v3280_v57 = vshrl.u32 %v2779_v1, 16  ;;  %v3283_v26 = vshll.u32 %v2779_v1, 16  ;;  %v5976_v4 = vpop.f32.mrb[16].mxu0  ;;  %v2793_v38 = vld [vmem:[#allocation2 + $0x68] sm:$0x1f] }
 0x245   : > { %v3307_v21 = vsel %vm790_vm2, %v3298_v63, %v3306_v15  ;;  %4749 = vmatmul.mubr.bf16.gmra.mrb[16].mxu1 %v1383_v5  ;;  %v3000_v23 = vrot.slane %v2998_v55, 4  ;;  %v3287_v17 = vrot.slane %v2914_v27, 3  ;;  %v3288_v16 = vrot.slane %v2910_v37, 4  ;;  %v5979_v22 = vpop.f32.mrb[17].mxu0  ;;  %v2794_v1 = vld [vmem:[#allocation2 + $0x78] sm:$0x1f] }
 0x246   : > { %3629 = vmatprep.mubr.bf16.mxu0 %v3307_v21  ;;  %v2993_v59 = vor.u32 %v2992_v19, %v2989_v42  ;;  %v3282_v12 = vrot.slane %v3280_v57, 3  ;;  %v3285_v14 = vrot.slane %v3283_v26, 4  ;;  %v2936_v25 = vrot.slane %v5091_v29, 1  ;;  %v5981_v33 = vpop.f32.mrb[18].mxu0 }
 0x247   : > { %v3001_v35 = vor.u32 %v3000_v23, %v2997_v11  ;;  %v3289_v48 = vor.u32 %v3288_v16, %v3287_v17  ;;  %v2937_v18 = vrot.slane %v2790_v13, 1  ;;  %v2939_v37 = vrot.slane %v5844_v60, 1  ;;  %v5987_v27 = vpop.f32.mrb[19].mxu0 }
 0x248   : > { %v3286_v28 = vor.u32 %v3285_v14, %v3282_v12  ;;  %v2940_v36 = vrot.slane %v2791_v2, 1  ;;  %v2942_v40 = vrot.slane %v5865_v9, 1  ;;  %v2943_v0 = vrot.slane %v2792_v24, 1 }
 0x249   : > { %v3002_v6 = vsel %vm790_vm2, %v2993_v59, %v3001_v35  ;;  %v2938_v43 = vsel %vm991_vm9, %v2936_v25, %v2937_v18  ;;  %v3041_v30 = vshrl.u32 %v2937_v18, 16  ;;  %v3044_v53 = vshll.u32 %v2937_v18, 16 }
 0x24a   : > { %4768 = vmatprep.mubr.bf16.mxu1 %v3002_v6  ;;  %v3290_v10 = vsel %vm790_vm2, %v3286_v28, %v3289_v48  ;;  %v3033_v56 = vshrl.u32 %v2938_v43, 16  ;;  %v3036_v60 = vshll.u32 %v2938_v43, 16  ;;  %v2941_v45 = vsel %vm991_vm9, %v2939_v37, %v2940_v36  ;;  %v819_v43 = vld [vmem:[#allocation2 + $0x98] sm:$0x10] }
 0x24b   : > { %3630 = vmatmul.mubr.bf16.gmra.mrb[76].mxu0 %v3290_v10  ;;  %v3043_v32 = vrot.slane %v3041_v30, 3  ;;  %v3046_v58 = vrot.slane %v3044_v53, 4  ;;  %v3079_v9 = vshrl.u32 %v2941_v45, 16  ;;  %v3082_v49 = vshll.u32 %v2941_v45, 16  ;;  %v5073_v30 = vld [vmem:[%s6273_s4 + $0x8] sm:$0xff]  }
 0x24c   : > { %v3035_v62 = vrot.slane %v3033_v56, 3  ;;  %v3038_v31 = vrot.slane %v3036_v60, 4  ;;  %v3087_v44 = vshrl.u32 %v2940_v36, 16  ;;  %v3090_v8 = vshll.u32 %v2940_v36, 16  ;;  %v2795_v36 = vld [vmem:[#allocation2 + $0x88] sm:$0x1f]  ;;  %4786 = vmatprep.subr.bf16.mxu0 %v5073_v30 }
 0x24d   : > { %v3047_v51 = vor.u32 %v3046_v58, %v3043_v32  ;;  %v3081_v50 = vrot.slane %v3079_v9, 3  ;;  %v3084_v54 = vrot.slane %v3082_v49, 4  ;;  %v2944_v39 = vsel %vm991_vm9, %v2942_v40, %v2943_v0  ;;  %4787 = vmatpush3.bf16.msra.mxu0 %v5073_v30 }
 0x24e   : > { %v3039_v7 = vor.u32 %v3038_v31, %v3035_v62  ;;  %v3089_v61 = vrot.slane %v3087_v44, 3  ;;  %v3092_v52 = vrot.slane %v3090_v8, 4  ;;  %v3125_v42 = vshrl.u32 %v2944_v39, 16 }
 0x24f   : > { %v3085_v63 = vor.u32 %v3084_v54, %v3081_v50  ;;  %v3128_v15 = vshll.u32 %v2944_v39, 16  ;;  %v3133_v11 = vshrl.u32 %v2943_v0, 16  ;;  %v3136_v55 = vshll.u32 %v2943_v0, 16 }
 0x250   : > { %v3048_v2 = vsel %vm790_vm2, %v3039_v7, %v3047_v51  ;;  %v3093_v5 = vor.u32 %v3092_v52, %v3089_v61  ;;  %v3127_v19 = vrot.slane %v3125_v42, 3  ;;  %v2945_v57 = vrot.slane %v5881_v3, 1  ;;  %v4430_v17 = vpop.f32.mrb[20].mxu0 }
 0x251   : > { %4769 = vmatmul.mubr.bf16.vlgmr.msra.gmra.mrb[4].mxu1 %v3048_v2  ;;  %v3130_v26 = vrot.slane %v3128_v15, 4  ;;  %v3135_v13 = vrot.slane %v3133_v11, 3  ;;  %v3138_v21 = vrot.slane %v3136_v55, 4  ;;  %v2946_v23 = vrot.slane %v2793_v38, 1  ;;  %v4431_v14 = vpop.f32.mrb[21].mxu0 }
 0x252   : > { %v3094_v16 = vsel %vm790_vm2, %v3085_v63, %v3093_v5  ;;  %v2948_v24 = vrot.slane %v5905_v46, 1  ;;  %v2949_v59 = vrot.slane %v2794_v1, 1  ;;  %v2951_v12 = vrot.slane %v5932_v47, 1  ;;  %v4433_v35 = vpop.f32.mrb[22].mxu0 }
 0x253   : > { %4772 = vmatprep.mubr.bf16.mxu1 %v3094_v16  ;;  %v3131_v29 = vor.u32 %v3130_v26, %v3127_v19  ;;  %v3139_v25 = vor.u32 %v3138_v21, %v3135_v13  ;;  %v2947_v34 = vsel %vm991_vm9, %v2945_v57, %v2946_v23  ;;  %v3179_v3 = vshrl.u32 %v2946_v23, 16  ;;  %v4434_v40 = vpop.f32.mrb[23].mxu0 }
 0x254   : > { %v3171_v48 = vshrl.u32 %v2947_v34, 16  ;;  %v3174_v18 = vshll.u32 %v2947_v34, 16  ;;  %v3182_v37 = vshll.u32 %v2946_v23, 16  ;;  %v2950_v28 = vsel %vm991_vm9, %v2948_v24, %v2949_v59 }
 0x255   : > { %v3140_v46 = vsel %vm790_vm2, %v3131_v29, %v3139_v25  ;;  %v3181_v0 = vrot.slane %v3179_v3, 3  ;;  %v3217_v6 = vshrl.u32 %v2950_v28, 16  ;;  %v3220_v47 = vshll.u32 %v2950_v28, 16 }
 0x256   : > { %v3173_v53 = vrot.slane %v3171_v48, 3  ;;  %v3176_v10 = vrot.slane %v3174_v18, 4  ;;  %v3184_v56 = vrot.slane %v3182_v37, 4  ;;  %v3225_v60 = vshrl.u32 %v2949_v59, 16 }
 0x257   : > { %v3219_v45 = vrot.slane %v3217_v6, 3  ;;  %v3222_v32 = vrot.slane %v3220_v47, 4  ;;  %v3228_v58 = vshll.u32 %v2949_v59, 16  ;;  %v2952_v9 = vrot.slane %v2795_v36, 1  ;;  %v5075_v47 = vld [vmem:[%s6273_s4 + $0x18] sm:$0xff]  }
 0x258   : > { %v3177_v49 = vor.u32 %v3176_v10, %v3173_v53  ;;  %v3185_v62 = vor.u32 %v3184_v56, %v3181_v0  ;;  %v3227_v31 = vrot.slane %v3225_v60, 3  ;;  %v820_v44 = vsel %vm5534_vm3, 0, %v819_v43 }
 0x259   : > { %4773 = vmatmul.mubr.bf16.gmra.mrb[8].mxu1 %v3140_v46  ;;  %v3230_v8 = vrot.slane %v3228_v58, 4  ;;  %v2953_v51 = vsel %vm991_vm9, %v2951_v12, %v2952_v9  ;;  %v3271_v50 = vshrl.u32 %v2952_v9, 16  ;;  %821 = vst [vmem:[#allocation2 + $0x98] sm:$0x10] %v820_v44  ;;  %v3274_v61 = vshll.u32 %v2952_v9, 16 }
 0x25a   : > { %v3186_v54 = vsel %vm790_vm2, %v3177_v49, %v3185_v62  ;;  %v3263_v39 = vshrl.u32 %v2953_v51, 16  ;;  %v3266_v7 = vshll.u32 %v2953_v51, 16  ;;  %v3223_v52 = vor.u32 %v3222_v32, %v3219_v45 }
 0x25b   : > { %4776 = vmatprep.mubr.bf16.mxu1 %v3186_v54  ;;  %v3231_v42 = vor.u32 %v3230_v8, %v3227_v31  ;;  %v3273_v38 = vrot.slane %v3271_v50, 3  ;;  %v4426_v20 = vadd.f32 %v5979_v22, %v5976_v4  ;;  %v3276_v11 = vrot.slane %v3274_v61, 4  ;;  %v5076_v8 = vld [vmem:[%s6273_s4 + $0x20] sm:$0xff]  }
 0x25c   : > { %v3265_v63 = vrot.slane %v3263_v39, 3  ;;  %v3268_v15 = vrot.slane %v3266_v7, 4  ;;  %v4429_v55 = vadd.f32 %v5987_v27, %v5981_v33  ;;  %v6014_v1 = vadd.f32 %v4431_v14, %v4430_v17  ;;  %v5074_v17 = vld [vmem:[%s6273_s4 + $0x10] sm:$0xff]  }
 0x25d   : > { %v6016_v2 = vadd.f32 %v4434_v40, %v4433_v35  ;;  %v3277_v19 = vor.u32 %v3276_v11, %v3273_v38  ;;  %v2954_v57 = vrot.slane %v5956_v41, 1  ;;  %v3232_v13 = vsel %vm790_vm2, %v3223_v52, %v3231_v42  ;;  %4788 = vmatprep.subr.bf16.mxu0 %v5074_v17 }
 0x25e   : > { %v3269_v5 = vor.u32 %v3268_v15, %v3265_v63  ;;  %4789 = vmatpush3.bf16.msra.mxu0 %v5074_v17 }
 0x25f   : > { %v4436_v26 = vpop.f32.mrb[24].mxu0  ;;  %4790 = vmatprep.subr.bf16.mxu0 %v5075_v47 }
 0x260   : > { %v2796_v21 = vld [vmem:[#allocation2 + $0x98] sm:$0x1f]  ;;  %v4437_v23 = vpop.f32.mrb[25].mxu0  ;;  %v3278_v4 = vsel %vm790_vm2, %v3269_v5, %v3277_v19  ;;  %v5077_v5 = vld [vmem:[%s6273_s4 + $0x28] sm:$0xff]  }
 0x261   : > { %4777 = vmatmul.mubr.bf16.gmra.mrb[12].mxu1 %v3232_v13  ;;  %v2955_v22 = vrot.slane %v2796_v21, 1  ;;  %v6021_v16 = vadd.f32 %v4437_v23, %v4436_v26  ;;  %v4439_v33 = vpop.f32.mrb[26].mxu0 }
 0x262   : > { %4780 = vmatprep.mubr.bf16.mxu1 %v3278_v4  ;;  %v4440_v27 = vpop.f32.mrb[27].mxu0  ;;  %4791 = vmatpush3.bf16.msra.mxu0 %v5075_v47 }
 0x263   : > { %v2956_v41 = vsel %vm991_vm9, %v2954_v57, %v2955_v22  ;;  %v3317_v24 = vshrl.u32 %v2955_v22, 16  ;;  %v3320_v59 = vshll.u32 %v2955_v22, 16  ;;  %v6027_v12 = vadd.f32 %v4440_v27, %v4439_v33  ;;  %4792 = vmatprep.subr.bf16.mxu0 %v5076_v8 }
 0x264   : > { %v3309_v14 = vshrl.u32 %v2956_v41, 16  ;;  %v3312_v29 = vshll.u32 %v2956_v41, 16 }
 0x265   : > { %v3319_v25 = vrot.slane %v3317_v24, 3  ;;  %v3322_v34 = vrot.slane %v3320_v59, 4  ;;  %v5078_v24 = vld [vmem:[%s6273_s4 + $0x30] sm:$0xff]  }
 0x266   : > { %v3311_v3 = vrot.slane %v3309_v14, 3  ;;  %v3314_v35 = vrot.slane %v3312_v29, 4  ;;  %4793 = vmatpush3.bf16.msra.mxu0 %v5076_v8 }
 0x267   : > { %v3323_v48 = vor.u32 %v3322_v34, %v3319_v25  ;;  %4794 = vmatprep.subr.bf16.mxu0 %v5077_v5 }
 0x268   : > { %v3315_v18 = vor.u32 %v3314_v35, %v3311_v3 }
 0x26a   : > { %v3324_v37 = vsel %vm790_vm2, %v3315_v18, %v3323_v48  ;;  %4795 = vmatpush3.bf16.msra.mxu0 %v5077_v5 }
 0x26b   : > { %4781 = vmatmul.mubr.bf16.gmra.mrb[16].mxu1 %v3324_v37  ;;  %4796 = vmatprep.subr.bf16.mxu0 %v5078_v24 }
 0x26e   : > { %4797 = vmatpush3.bf16.msra.mxu0 %v5078_v24 }
 0x26f   : > { %v4442_v28 = vpop.f32.mrb[28].mxu0 }
 0x270   : > { %v4443_v36 = vpop.f32.mrb[29].mxu0 }
 0x271   : > { %v6030_v40 = vadd.f32 %v4443_v36, %v4442_v28  ;;  %v4445_v46 = vpop.f32.mrb[30].mxu0 }
 0x272   : > { %v4446_v0 = vpop.f32.mrb[31].mxu0 }
 0x273   : > { %v4447_v6 = vadd.f32 %v4446_v0, %v4445_v46  ;;  %v5079_v46 = vld [vmem:[%s6273_s4 + $0x38] sm:$0xff]  }
 0x274   : > { %4798 = vmatprep.subr.bf16.mxu0 %v5079_v46 }
 0x275   : > { %4799 = vmatpush3.bf16.msra.mxu0 %v5079_v46 }
 0x277   : > { %v4504_v43 = vpop.f32.mrb[20].mxu1 }
 0x278   : > { %v4505_v30 = vpop.f32.mrb[21].mxu1 }
 0x279   : > { %v4506_v53 = vadd.f32 %v4505_v30, %v4504_v43  ;;  %v4507_v10 = vpop.f32.mrb[22].mxu1 }
 0x27a   : > { %v4508_v56 = vpop.f32.mrb[23].mxu1 }
 0x27b   : > { %v6035_v60 = vadd.f32 %v4506_v53, %v4426_v20  ;;  %v4509_v45 = vadd.f32 %v4508_v56, %v4507_v10 }
 0x27d   : > { %v6037_v32 = vadd.f32 %v4509_v45, %v4429_v55  ;;  %v4448_v58 = vpop.f32.mrb[32].mxu0 }
 0x27e   : > { %v4449_v9 = vpop.f32.mrb[33].mxu0 }
 0x27f   : > { %v6039_v49 = vadd.f32 %v4449_v9, %v4448_v58  ;;  %v4451_v62 = vpop.f32.mrb[34].mxu0 }
 0x280   : > { %v4452_v31 = vpop.f32.mrb[35].mxu0 }
 0x281   : > { %v6041_v44 = vadd.f32 %v4452_v31, %v4451_v62 }
 0x286   : > { %v4510_v51 = vpop.f32.mrb[24].mxu1 }
 0x287   : > { %v4511_v50 = vpop.f32.mrb[25].mxu1 }
 0x288   : > { %v4512_v54 = vadd.f32 %v4511_v50, %v4510_v51  ;;  %v4513_v39 = vpop.f32.mrb[26].mxu1 }
 0x289   : > { %v4514_v7 = vpop.f32.mrb[27].mxu1 }
 0x28a   : > { %v6047_v61 = vadd.f32 %v4512_v54, %v6014_v1  ;;  %v4515_v52 = vadd.f32 %v4514_v7, %v4513_v39 }
 0x28c   : > { %v6050_v42 = vadd.f32 %v4515_v52, %v6016_v2  ;;  %v4454_v38 = vpop.f32.mrb[36].mxu0 }
 0x28d   : > { %v4455_v20 = vpop.f32.mrb[37].mxu0 }
 0x28e   : > { %v4456_v63 = vadd.f32 %v4455_v20, %v4454_v38  ;;  %v4457_v15 = vpop.f32.mrb[38].mxu0 }
 0x28f   : > { %v4458_v11 = vpop.f32.mrb[39].mxu0 }
 0x290   : > { %v4459_v55 = vadd.f32 %v4458_v11, %v4457_v15 }
 0x295   : > { %v4516_v19 = vpop.f32.mrb[28].mxu1 }
 0x296   : > { %v4517_v57 = vpop.f32.mrb[29].mxu1 }
 0x297   : > { %v4518_v1 = vadd.f32 %v4517_v57, %v4516_v19  ;;  %v4519_v26 = vpop.f32.mrb[30].mxu1 }
 0x298   : > { %v4520_v13 = vpop.f32.mrb[31].mxu1 }
 0x299   : > { %v6056_v2 = vadd.f32 %v4518_v1, %v6021_v16  ;;  %v4521_v21 = vadd.f32 %v4520_v13, %v4519_v26 }
 0x29a   : > { %v4460_v23 = vpop.f32.mrb[40].mxu0 }
 0x29b   : > { %v6059_v4 = vadd.f32 %v4521_v21, %v6027_v12  ;;  %v4461_v22 = vpop.f32.mrb[41].mxu0 }
 0x29c   : > { %v4462_v33 = vadd.f32 %v4461_v22, %v4460_v23  ;;  %v4463_v27 = vpop.f32.mrb[42].mxu0 }
 0x29d   : > { %v4464_v17 = vpop.f32.mrb[43].mxu0 }
 0x29e   : > { %v4465_v41 = vadd.f32 %v4464_v17, %v4463_v27 }
 0x2a2   : > { %v4522_v59 = vpop.f32.mrb[32].mxu1 }
 0x2a3   : > { %v4523_v14 = vpop.f32.mrb[33].mxu1 }
 0x2a4   : > { %v4524_v16 = vadd.f32 %v4523_v14, %v4522_v59  ;;  %v4525_v29 = vpop.f32.mrb[34].mxu1 }
 0x2a5   : > { %v4526_v25 = vpop.f32.mrb[35].mxu1 }
 0x2a6   : > { %v6065_v34 = vadd.f32 %v4524_v16, %v6030_v40  ;;  %v4527_v12 = vadd.f32 %v4526_v25, %v4525_v29 }
 0x2a8   : > { %v6067_v3 = vadd.f32 %v4527_v12, %v4447_v6 }
 0x2a9   : > { %v4466_v35 = vpop.f32.mrb[44].mxu0 }
 0x2aa   : > { %v4467_v48 = vpop.f32.mrb[45].mxu0 }
 0x2ab   : > { %v4468_v18 = vadd.f32 %v4467_v48, %v4466_v35  ;;  %v4469_v37 = vpop.f32.mrb[46].mxu0 }
 0x2ac   : > { %v4470_v28 = vpop.f32.mrb[47].mxu0 }
 0x2ad   : > { %v4471_v36 = vadd.f32 %v4470_v28, %v4469_v37 }
 0x2b2   : > { %v4528_v0 = vpop.f32.mrb[36].mxu1 }
 0x2b3   : > { %v4529_v47 = vpop.f32.mrb[37].mxu1 }
 0x2b4   : > { %v4530_v43 = vadd.f32 %v4529_v47, %v4528_v0  ;;  %v4531_v40 = vpop.f32.mrb[38].mxu1 }
 0x2b5   : > { %v4532_v30 = vpop.f32.mrb[39].mxu1 }
 0x2b6   : > { %v6073_v6 = vadd.f32 %v4530_v43, %v6039_v49  ;;  %v4533_v53 = vadd.f32 %v4532_v30, %v4531_v40 }
 0x2b7   : > { %v4584_v10 = vpop.f32.mrb[48].mxu0 }
 0x2b8   : > { %v6076_v56 = vadd.f32 %v4533_v53, %v6041_v44  ;;  %v4585_v45 = vpop.f32.mrb[49].mxu0 }
 0x2b9   : > { %v4586_v58 = vadd.f32 %v4585_v45, %v4584_v10  ;;  %v4587_v9 = vpop.f32.mrb[50].mxu0 }
 0x2ba   : > { %v4588_v62 = vpop.f32.mrb[51].mxu0 }
 0x2bb   : > { %v4589_v31 = vadd.f32 %v4588_v62, %v4587_v9  ;;  %v6079_v8 = vadd.f32 %v6035_v60, %v4586_v58 }
 0x2bd   : > { %v6082_v51 = vadd.f32 %v6037_v32, %v4589_v31 }
 0x2bf   : > { %v4534_v50 = vpop.f32.mrb[40].mxu1 }
 0x2c0   : > { %v4535_v54 = vpop.f32.mrb[41].mxu1 }
 0x2c1   : > { %v4536_v49 = vadd.f32 %v4535_v54, %v4534_v50  ;;  %v4537_v39 = vpop.f32.mrb[42].mxu1 }
 0x2c2   : > { %v4538_v7 = vpop.f32.mrb[43].mxu1 }
 0x2c3   : > { %v4840_v52 = vadd.f32 %v4536_v49, %v4456_v63  ;;  %v4539_v38 = vadd.f32 %v4538_v7, %v4537_v39 }
 0x2c5   : > { %v4846_v44 = vadd.f32 %v4539_v38, %v4459_v55 }
 0x2c6   : > { %v4590_v20 = vpop.f32.mrb[52].mxu0 }
 0x2c7   : > { %v4591_v15 = vpop.f32.mrb[53].mxu0 }
 0x2c8   : > { %v4592_v11 = vadd.f32 %v4591_v15, %v4590_v20  ;;  %v4593_v5 = vpop.f32.mrb[54].mxu0 }
 0x2c9   : > { %v4594_v19 = vpop.f32.mrb[55].mxu0 }
 0x2ca   : > { %v4595_v57 = vadd.f32 %v4594_v19, %v4593_v5  ;;  %v6085_v60 = vadd.f32 %v6047_v61, %v4592_v11 }
 0x2cc   : > { %v6088_v32 = vadd.f32 %v6050_v42, %v4595_v57 }
 0x2cf   : > { %v4540_v1 = vpop.f32.mrb[44].mxu1 }
 0x2d0   : > { %v4541_v26 = vpop.f32.mrb[45].mxu1 }
 0x2d1   : > { %v4542_v13 = vadd.f32 %v4541_v26, %v4540_v1  ;;  %v4543_v21 = vpop.f32.mrb[46].mxu1 }
 0x2d2   : > { %v4544_v23 = vpop.f32.mrb[47].mxu1 }
 0x2d3   : > { %v4855_v63 = vadd.f32 %v4542_v13, %v4462_v33  ;;  %v4545_v22 = vadd.f32 %v4544_v23, %v4543_v21 }
 0x2d4   : > { %v4596_v55 = vpop.f32.mrb[56].mxu0 }
 0x2d5   : > { %v4861_v27 = vadd.f32 %v4545_v22, %v4465_v41  ;;  %v4597_v17 = vpop.f32.mrb[57].mxu0 }
 0x2d6   : > { %v4598_v24 = vadd.f32 %v4597_v17, %v4596_v55  ;;  %v4599_v59 = vpop.f32.mrb[58].mxu0 }
 0x2d7   : > { %v4600_v14 = vpop.f32.mrb[59].mxu0 }
 0x2d8   : > { %v4601_v16 = vadd.f32 %v4600_v14, %v4599_v59  ;;  %v6091_v61 = vadd.f32 %v6056_v2, %v4598_v24 }
 0x2da   : > { %v6094_v42 = vadd.f32 %v6059_v4, %v4601_v16 }
 0x2dc   : > { %v4546_v29 = vpop.f32.mrb[48].mxu1 }
 0x2dd   : > { %v4547_v25 = vpop.f32.mrb[49].mxu1 }
 0x2de   : > { %v4548_v12 = vadd.f32 %v4547_v25, %v4546_v29  ;;  %v4549_v35 = vpop.f32.mrb[50].mxu1 }
 0x2df   : > { %v4550_v48 = vpop.f32.mrb[51].mxu1 }
 0x2e0   : > { %v4852_v33 = vadd.f32 %v4548_v12, %v4468_v18  ;;  %v4551_v37 = vadd.f32 %v4550_v48, %v4549_v35 }
 0x2e2   : > { %v4858_v28 = vadd.f32 %v4551_v37, %v4471_v36  ;;  %v4602_v41 = vpop.f32.mrb[60].mxu0 }
 0x2e3   : > { %v4603_v46 = vpop.f32.mrb[61].mxu0 }
 0x2e4   : > { %v4604_v0 = vadd.f32 %v4603_v46, %v4602_v41  ;;  %v4605_v47 = vpop.f32.mrb[62].mxu0 }
 0x2e5   : > { %v4606_v43 = vpop.f32.mrb[63].mxu0 }
 0x2e6   : > { %v4607_v40 = vadd.f32 %v4606_v43, %v4605_v47  ;;  %v4829_v2 = vadd.f32 %v6065_v34, %v4604_v0 }
 0x2e8   : > { %v4835_v30 = vadd.f32 %v6067_v3, %v4607_v40 }
 0x2f4   : > { %v4608_v4 = vpop.f32.mrb[64].mxu0 }
 0x2f5   : > { %v4609_v53 = vpop.f32.mrb[65].mxu0 }
 0x2f6   : > { %v4610_v10 = vadd.f32 %v4609_v53, %v4608_v4  ;;  %v4611_v45 = vpop.f32.mrb[66].mxu0 }
 0x2f7   : > { %v4612_v58 = vpop.f32.mrb[67].mxu0 }
 0x2f8   : > { %v4613_v9 = vadd.f32 %v4612_v58, %v4611_v45  ;;  %v6099_v18 = vadd.f32 %v6073_v6, %v4610_v10 }
 0x2fa   : > { %v6102_v36 = vadd.f32 %v6076_v56, %v4613_v9 }
 0x302   : > { %v4614_v62 = vpop.f32.mrb[68].mxu0 }
 0x303   : > { %v4615_v31 = vpop.f32.mrb[69].mxu0 }
 0x304   : > { %v4616_v50 = vadd.f32 %v4615_v31, %v4614_v62  ;;  %v4617_v54 = vpop.f32.mrb[70].mxu0 }
 0x305   : > { %v4618_v49 = vpop.f32.mrb[71].mxu0 }
 0x306   : > { %v4619_v34 = vadd.f32 %v4618_v49, %v4617_v54  ;;  %v4841_v39 = vadd.f32 %v4840_v52, %v4616_v50  ;;  %v6111_v52 = vld [vmem:[%s6326_s19] ss:$0 sm:$0xff] }
 0x308   : > { %v4847_v3 = vadd.f32 %v4846_v44, %v4619_v34 }
 0x310   : > { %v4620_v7 = vpop.f32.mrb[72].mxu0 }
 0x311   : > { %v4621_v38 = vpop.f32.mrb[73].mxu0 }
 0x312   : > { %v4622_v20 = vadd.f32 %v4621_v38, %v4620_v7  ;;  %v4623_v15 = vpop.f32.mrb[74].mxu0 }
 0x313   : > { %v4624_v11 = vpop.f32.mrb[75].mxu0 }
 0x314   : > { %v4625_v5 = vadd.f32 %v4624_v11, %v4623_v15  ;;  %v6104_v19 = vadd.f32 %v4855_v63, %v4622_v20 }
 0x316   : > { %v6106_v6 = vadd.f32 %v4861_v27, %v4625_v5 }
 0x31e   : > { %v4626_v56 = vpop.f32.mrb[76].mxu0 }
 0x31f   : > { %v4627_v57 = vpop.f32.mrb[77].mxu0 }
 0x320   : > { %v4628_v1 = vadd.f32 %v4627_v57, %v4626_v56  ;;  %v4629_v26 = vpop.f32.mrb[78].mxu0 }
 0x321   : > { %v4630_v13 = vpop.f32.mrb[79].mxu0 }
 0x322   : > { %v4631_v21 = vadd.f32 %v4630_v13, %v4629_v26  ;;  %v4853_v23 = vadd.f32 %v4852_v33, %v4628_v1 }
 0x324   : > { %v4770_v22 = vpop.f32.mrb[4].mxu1  ;;  %v6113_v44 = vadd.f32 %v4858_v28, %v4631_v21 }
 0x325   : > { %v4818_v63 = vadd.f32 %v6085_v60, %v4770_v22  ;;  %v3672_v55 = vpop.f32.mrb[5].mxu1 }
 0x326   : > { %v4821_v27 = vadd.f32 %v6079_v8, %v3672_v55  ;;  %v4771_v17 = vpop.f32.mrb[6].mxu1 }
 0x327   : > { %v3760_v24 = vadd.f32 %v4818_v63, %v6111_v52  ;;  %v4824_v59 = vadd.f32 %v6088_v32, %v4771_v17  ;;  %v3675_v14 = vpop.f32.mrb[7].mxu1 }
 0x328   : > { %v3758_v16 = vadd.f32 %v4821_v27, %v6111_v52  ;;  %v4827_v29 = vadd.f32 %v6082_v51, %v3675_v14 }
 0x329   : > { %v3761_v25 = vadd.f32 %v4824_v59, %v6111_v52  ;;  %v3776_v35 = vmax.f32 %v3760_v24, 0.0 }
 0x32a   : > { %v3759_v12 = vadd.f32 %v4827_v29, %v6111_v52  ;;  %v3774_v60 = vmax.f32 %v3758_v16, 0.0 }
 0x32b   : > { %v3777_v48 = vmax.f32 %v3761_v25, 0.0 }
 0x32c   : > { %v3775_v33 = vmax.f32 %v3759_v12, 0.0  ;;  %v4774_v37 = vpop.f32.mrb[8].mxu1  ;;  %v5092_v12 = vld [vmem:[%s5496_s6 + $0x8] sm:$0xff]  }
 0x32d   : > { %v3791_v8 = vpack.c.bf16 %v3777_v48, %v3776_v35  ;;  %v4830_v28 = vadd.f32 %v4829_v2, %v4774_v37  ;;  %v3688_v41 = vpop.f32.mrb[9].mxu1  ;;  %v3968_v35 = vunpack.c.l.bf16 %v5092_v12  ;;  %v3969_v37 = vunpack.c.h.bf16 %v5092_v12 }
 0x32e   : > { %v4833_v46 = vadd.f32 %v6091_v61, %v3688_v41  ;;  %v4775_v32 = vpop.f32.mrb[10].mxu1  ;;  %v3790_v0 = vpack.c.bf16 %v3775_v33, %v3774_v60 }
 0x32f   : > { %v3764_v47 = vadd.f32 %v4830_v28, %v6111_v52  ;;  %v4836_v43 = vadd.f32 %v4835_v30, %v4775_v32  ;;  %v3691_v51 = vpop.f32.mrb[11].mxu1 }
 0x330   : > { %v3762_v40 = vadd.f32 %v4833_v46, %v6111_v52  ;;  %v4839_v4 = vadd.f32 %v6094_v42, %v3691_v51  ;;  %4800 = vmatprep.mubr.bf16.mxu0 %v3790_v0 }
 0x331   : > { %v3765_v53 = vadd.f32 %v4836_v43, %v6111_v52  ;;  %4801 = vmatmul.mubr.bf16.vlgmr.msra.gmra.mrb[80].mxu0 %v3791_v8  ;;  %v3780_v2 = vmax.f32 %v3764_v47, 0.0 }
 0x332   : > { %v3763_v10 = vadd.f32 %v4839_v4, %v6111_v52  ;;  %v3778_v58 = vmax.f32 %v3762_v40, 0.0 }
 0x333   : > { %v3781_v45 = vmax.f32 %v3765_v53, 0.0 }
 0x334   : > { %v3779_v61 = vmax.f32 %v3763_v10, 0.0  ;;  %v4778_v9 = vpop.f32.mrb[12].mxu1 }
 0x335   : > { %v4842_v62 = vadd.f32 %v4841_v39, %v4778_v9  ;;  %v3704_v31 = vpop.f32.mrb[13].mxu1  ;;  %v3793_v50 = vpack.c.bf16 %v3781_v45, %v3780_v2  ;;  %v5094_v45 = vld [vmem:[%s5496_s6 + $0x18] sm:$0xff]  }
 0x336   : > { %v4845_v30 = vadd.f32 %v6099_v18, %v3704_v31  ;;  %v4779_v54 = vpop.f32.mrb[14].mxu1  ;;  %v3792_v49 = vpack.c.bf16 %v3779_v61, %v3778_v58  ;;  %v3972_v58 = vunpack.c.l.bf16 %v5094_v45  ;;  %v5095_v31 = vld [vmem:[%s5496_s6 + $0x10] sm:$0xff]  }
 0x337   : > { %v3768_v42 = vadd.f32 %v4842_v62, %v6111_v52  ;;  %v4848_v34 = vadd.f32 %v4847_v3, %v4779_v54  ;;  %v3707_v7 = vpop.f32.mrb[15].mxu1 }
 0x338   : > { %v3766_v38 = vadd.f32 %v4845_v30, %v6111_v52  ;;  %v4851_v20 = vadd.f32 %v6102_v36, %v3707_v7  ;;  %4804 = vmatprep.mubr.bf16.mxu0 %v3792_v49 }
 0x339   : > { %v3769_v15 = vadd.f32 %v4848_v34, %v6111_v52  ;;  %4805 = vmatmul.mubr.bf16.gmra.mrb[84].mxu0 %v3793_v50  ;;  %v3784_v11 = vmax.f32 %v3768_v42, 0.0  ;;  %v3970_v50 = vunpack.c.l.bf16 %v5095_v31  ;;  %v3973_v42 = vunpack.c.h.bf16 %v5094_v45 }
 0x33a   : > { %v3767_v39 = vadd.f32 %v4851_v20, %v6111_v52  ;;  %v3782_v56 = vmax.f32 %v3766_v38, 0.0  ;;  %v3971_v20 = vunpack.c.h.bf16 %v5095_v31 }
 0x33b   : > { %v3785_v5 = vmax.f32 %v3769_v15, 0.0 }
 0x33c   : > { %v3783_v18 = vmax.f32 %v3767_v39, 0.0 }
 0x33d   : > { %v3795_v57 = vpack.c.bf16 %v3785_v5, %v3784_v11 }
 0x33e   : > { %v4782_v1 = vpop.f32.mrb[16].mxu1  ;;  %v3794_v26 = vpack.c.bf16 %v3783_v18, %v3782_v56 }
 0x33f   : > { %v4854_v13 = vadd.f32 %v4853_v23, %v4782_v1  ;;  %v3720_v3 = vpop.f32.mrb[17].mxu1 }
 0x340   : > { %v4857_v21 = vadd.f32 %v6104_v19, %v3720_v3  ;;  %v4783_v22 = vpop.f32.mrb[18].mxu1  ;;  %4808 = vmatprep.mubr.bf16.mxu0 %v3794_v26 }
 0x341   : > { %v3772_v36 = vadd.f32 %v4854_v13, %v6111_v52  ;;  %v4860_v63 = vadd.f32 %v6113_v44, %v4783_v22  ;;  %v3723_v55 = vpop.f32.mrb[19].mxu1  ;;  %4809 = vmatmul.mubr.bf16.gmra.mrb[88].mxu0 %v3795_v57  ;;  %v6145_v44 = vld [vmem:[%s6327_s3] ss:$0 sm:$0xff] }
 0x342   : > { %v3770_v27 = vadd.f32 %v4857_v21, %v6111_v52  ;;  %v4863_v17 = vadd.f32 %v6106_v6, %v3723_v55  ;;  %v5093_v6 = vld [vmem:[%s5496_s6] sm:$0xff]   ;;  %v5096_v21 = vld [vmem:[%s5496_s6 + $0x28] sm:$0xff]  }
 0x343   : > { %v3773_v24 = vadd.f32 %v4860_v63, %v6111_v52  ;;  %v3788_v59 = vmax.f32 %v3772_v36, 0.0  ;;  %v3966_v48 = vunpack.c.l.bf16 %v5093_v6  ;;  %v3967_v8 = vunpack.c.h.bf16 %v5093_v6 }
 0x344   : > { %v3771_v23 = vadd.f32 %v4863_v17, %v6111_v52  ;;  %v3786_v14 = vmax.f32 %v3770_v27, 0.0  ;;  %v3976_v22 = vunpack.c.l.bf16 %v5096_v21  ;;  %v5097_v27 = vld [vmem:[%s5496_s6 + $0x20] sm:$0xff]  }
 0x345   : > { %v3789_v19 = vmax.f32 %v3773_v24, 0.0  ;;  %v3974_v17 = vunpack.c.l.bf16 %v5097_v27 }
 0x346   : > { %v3787_v16 = vmax.f32 %v3771_v23, 0.0 }
 0x347   : > { %v3797_v29 = vpack.c.bf16 %v3789_v19, %v3788_v59  ;;  %v3977_v19 = vunpack.c.h.bf16 %v5096_v21 }
 0x348   : > { %v3796_v25 = vpack.c.bf16 %v3787_v16, %v3786_v14 }
 0x34a   : > { %4812 = vmatprep.mubr.bf16.mxu0 %v3796_v25  ;;  %v3975_v25 = vunpack.c.h.bf16 %v5097_v27 }
 0x34b   : > { %4813 = vmatmul.mubr.bf16.gmra.mrb[92].mxu0 %v3797_v29 }
 0x404   : > { %v4802_v60 = vpop.f32.mrb[80].mxu0 }
 0x405   : > { %v3912_v52 = vadd.f32 %v4802_v60, %v6145_v44  ;;  %v3903_v33 = vpop.f32.mrb[81].mxu0 }
 0x406   : > { %v3904_v28 = vadd.f32 %v6145_v44, %v3903_v33  ;;  %v4803_v41 = vpop.f32.mrb[82].mxu0 }
 0x407   : > { %v3984_v46 = vadd.f32 %v3968_v35, %v3912_v52  ;;  %v3915_v32 = vadd.f32 %v4803_v41, %v6145_v44  ;;  %v3906_v0 = vpop.f32.mrb[83].mxu0 }
 0x408   : > { %v3982_v47 = vadd.f32 %v3966_v48, %v3904_v28  ;;  %v3907_v43 = vadd.f32 %v6145_v44, %v3906_v0 }
 0x409   : > { %v4000_v51 = vmax.f32 %v3984_v46, 0.0  ;;  %v3985_v40 = vadd.f32 %v3969_v37, %v3915_v32 }
 0x40a   : > { %v3998_v4 = vmax.f32 %v3982_v47, 0.0  ;;  %v3983_v53 = vadd.f32 %v3967_v8, %v3907_v43  ;;  %v5098_v47 = vld [vmem:[%s5496_s6 + $0x38] sm:$0xff]  }
 0x40b   : > { %v4381_v10 = vpack.c.bf16 %v4000_v51, %v4000_v51  ;;  %v4001_v2 = vmax.f32 %v3985_v40, 0.0  ;;  %v3980_v43 = vunpack.c.l.bf16 %v5098_v47  ;;  %v3981_v45 = vunpack.c.h.bf16 %v5098_v47 }
 0x40c   : > { %v4379_v61 = vpack.c.bf16 %v3998_v4, %v3998_v4  ;;  %v3999_v9 = vmax.f32 %v3983_v53, 0.0  ;;  %v4806_v62 = vpop.f32.mrb[84].mxu0  ;;  %v5099_v4 = vld [vmem:[%s5496_s6 + $0x30] sm:$0xff]   ;;  %s4109_s6 = sadd.s32 %s4395_s26, %s4374_s7 }
 0x40d   : > { %4081 = vst.msk [vmem:[%s6157_s13 + $0x8] sm:$0xf] %vm4078_vm11, %v4381_v10  ;;  %v4382_v30 = vpack.c.bf16 %v4001_v2, %v4001_v2  ;;  %v3928_v54 = vadd.f32 %v4806_v62, %v6145_v44  ;;  %v3919_v49 = vpop.f32.mrb[85].mxu0  ;;  %v3978_v53 = vunpack.c.l.bf16 %v5099_v4  ;;  %s4375_s15 = sshll.u32 %s4109_s6, 6 }
 0x40e   : > { %4079 = vst.msk [vmem:[%s6157_s13] sm:$0xf] %vm4078_vm11, %v4379_v61  ;;  %v4380_v34 = vpack.c.bf16 %v3999_v9, %v3999_v9  ;;  %v3920_v7 = vadd.f32 %v6145_v44, %v3919_v49  ;;  %v4807_v38 = vpop.f32.mrb[86].mxu0  ;;  %v3979_v9 = vunpack.c.h.bf16 %v5099_v4  ;;  %s6211_s21 = scalar_lea.hbm %s6329_s20, %s4375_s15 }
 0x40f   : > { %4082 = vst.msk [vmem:[%s6157_s13 + $0xc] sm:$0xf] %vm4078_vm11, %v4382_v30  ;;  %v3988_v15 = vadd.f32 %v3972_v58, %v3928_v54  ;;  %v3931_v39 = vadd.f32 %v4807_v38, %v6145_v44  ;;  %v3922_v11 = vpop.f32.mrb[87].mxu0 }
 0x410   : > { %4080 = vst.msk [vmem:[%s6157_s13 + $0x4] sm:$0xf] %vm4078_vm11, %v4380_v34  ;;  %v3986_v5 = vadd.f32 %v3970_v50, %v3920_v7  ;;  %v3923_v56 = vadd.f32 %v6145_v44, %v3922_v11 }
 0x411   : > { %v4004_v18 = vmax.f32 %v3988_v15, 0.0  ;;  %v3989_v57 = vadd.f32 %v3973_v42, %v3931_v39 }
 0x412   : > { %v4002_v1 = vmax.f32 %v3986_v5, 0.0  ;;  %v3987_v26 = vadd.f32 %v3971_v20, %v3923_v56 }
 0x413   : > { %v4385_v13 = vpack.c.bf16 %v4004_v18, %v4004_v18  ;;  %v4005_v3 = vmax.f32 %v3989_v57, 0.0 }
 0x414   : > { %v4383_v36 = vpack.c.bf16 %v4002_v1, %v4002_v1  ;;  %v4003_v63 = vmax.f32 %v3987_v26, 0.0  ;;  %v4810_v55 = vpop.f32.mrb[88].mxu0 }
 0x415   : > { %4085 = vst.msk [vmem:[%s6157_s13 + $0x18] sm:$0xf] %vm4078_vm11, %v4385_v13  ;;  %v4386_v24 = vpack.c.bf16 %v4005_v3, %v4005_v3  ;;  %v3944_v23 = vadd.f32 %v4810_v55, %v6145_v44  ;;  %v3935_v59 = vpop.f32.mrb[89].mxu0 }
 0x416   : > { %4083 = vst.msk [vmem:[%s6157_s13 + $0x10] sm:$0xf] %vm4078_vm11, %v4383_v36  ;;  %v4384_v14 = vpack.c.bf16 %v4003_v63, %v4003_v63  ;;  %v3936_v16 = vadd.f32 %v6145_v44, %v3935_v59  ;;  %v4811_v29 = vpop.f32.mrb[90].mxu0 }
 0x417   : > { %4086 = vst.msk [vmem:[%s6157_s13 + $0x1c] sm:$0xf] %vm4078_vm11, %v4386_v24  ;;  %v3992_v12 = vadd.f32 %v3976_v22, %v3944_v23  ;;  %v3947_v35 = vadd.f32 %v4811_v29, %v6145_v44  ;;  %v3938_v6 = vpop.f32.mrb[91].mxu0 }
 0x418   : > { %4084 = vst.msk [vmem:[%s6157_s13 + $0x14] sm:$0xf] %vm4078_vm11, %v4384_v14  ;;  %v3990_v48 = vadd.f32 %v3974_v17, %v3936_v16  ;;  %v3939_v60 = vadd.f32 %v6145_v44, %v3938_v6 }
 0x419   : > { %v4008_v52 = vmax.f32 %v3992_v12, 0.0  ;;  %v3993_v33 = vadd.f32 %v3977_v19, %v3947_v35 }
 0x41a   : > { %v4006_v37 = vmax.f32 %v3990_v48, 0.0  ;;  %v3991_v8 = vadd.f32 %v3975_v25, %v3939_v60 }
 0x41b   : > { %v4389_v28 = vpack.c.bf16 %v4008_v52, %v4008_v52  ;;  %v4009_v41 = vmax.f32 %v3993_v33, 0.0 }
 0x41c   : > { %v4387_v46 = vpack.c.bf16 %v4006_v37, %v4006_v37  ;;  %v4007_v32 = vmax.f32 %v3991_v8, 0.0 }
 0x41d   : > { %4089 = vst.msk [vmem:[%s6157_s13 + $0x28] sm:$0xf] %vm4078_vm11, %v4389_v28  ;;  %v4390_v0 = vpack.c.bf16 %v4009_v41, %v4009_v41 }
 0x41e   : > { %4087 = vst.msk [vmem:[%s6157_s13 + $0x20] sm:$0xf] %vm4078_vm11, %v4387_v46  ;;  %v4388_v51 = vpack.c.bf16 %v4007_v32, %v4007_v32  ;;  %v4814_v40 = vpop.f32.mrb[92].mxu0 }
 0x41f   : > { %4090 = vst.msk [vmem:[%s6157_s13 + $0x2c] sm:$0xf] %vm4078_vm11, %v4390_v0  ;;  %v3960_v10 = vadd.f32 %v4814_v40, %v6145_v44  ;;  %v3951_v2 = vpop.f32.mrb[93].mxu0 }
 0x420   : > { %4088 = vst.msk [vmem:[%s6157_s13 + $0x24] sm:$0xf] %vm4078_vm11, %v4388_v51  ;;  %v3952_v58 = vadd.f32 %v6145_v44, %v3951_v2  ;;  %v4815_v61 = vpop.f32.mrb[94].mxu0 }
 0x421   : > { %v3996_v62 = vadd.f32 %v3980_v43, %v3960_v10  ;;  %v3963_v31 = vadd.f32 %v4815_v61, %v6145_v44  ;;  %v3954_v50 = vpop.f32.mrb[95].mxu0 }
 0x422   : > { %v3994_v30 = vadd.f32 %v3978_v53, %v3952_v58  ;;  %v3955_v54 = vadd.f32 %v6145_v44, %v3954_v50 }
 0x423   : > { %v4012_v49 = vmax.f32 %v3996_v62, 0.0  ;;  %v3997_v42 = vadd.f32 %v3981_v45, %v3963_v31 }
 0x424   : > { %v4010_v34 = vmax.f32 %v3994_v30, 0.0  ;;  %v3995_v7 = vadd.f32 %v3979_v9, %v3955_v54 }
 0x425   : > { %v4393_v38 = vpack.c.bf16 %v4012_v49, %v4012_v49  ;;  %v4013_v20 = vmax.f32 %v3997_v42, 0.0 }
 0x426   : > { %v4391_v15 = vpack.c.bf16 %v4010_v34, %v4010_v34  ;;  %v4011_v39 = vmax.f32 %v3995_v7, 0.0 }
 0x427   : > { %4093 = vst.msk [vmem:[%s6157_s13 + $0x38] sm:$0xf] %vm4078_vm11, %v4393_v38  ;;  %v4394_v11 = vpack.c.bf16 %v4013_v20, %v4013_v20 }
 0x428   : > { %4091 = vst.msk [vmem:[%s6157_s13 + $0x30] sm:$0xf] %vm4078_vm11, %v4391_v15  ;;  %v4392_v44 = vpack.c.bf16 %v4011_v39, %v4011_v39 }
 0x429   : > { %4094 = vst.msk [vmem:[%s6157_s13 + $0x3c] sm:$0xf] %vm4078_vm11, %v4394_v11 }
 0x42a   : > { %4092 = vst.msk [vmem:[%s6157_s13 + $0x34] sm:$0xf] %vm4078_vm11, %v4392_v44 }
 0x42b   : > { %5171 = shalt.err (!%p5168_p5)
}
 0x42c   : > { %s5172_s19 = scalar_lea.hbm %s6211_s21, 1024  ;;  %s5176_s3 = scalar_lea.hbm %s6329_s20, 4096 }
 0x42d   : > { %p5173_p9 = scmp.ne.s32.totalorder %s6211_s21, %s5172_s19  ;;  %p5177_p8 = scmp.lt.u32.totalorder %s6211_s21, %s6329_s20 }
 0x42e   : > { %p5178_p10 = scmp.lt.u32.totalorder %s5176_s3, %s5172_s19  ;;  %p5180_p13 = scmp.lt.u32.totalorder %s5172_s19, %s6211_s21 }
 0x42f   : > { %p5174_p0 = pnand %p5173_p9, %p5422_p11 }
 0x430   : > { %p5179_p12 = por %p5178_p10, %p5177_p8 }
 0x431   : > { %p5175_p6 = pneg %p5174_p0 }
 0x432   : > { %p5181_p3 = por %p5180_p13, %p5179_p12 }
 0x434   : > { %p5182_p7 = pnand %p5181_p3, %p5175_p6 }
 0x436   : > { %5185 = shalt.err (!%p5182_p7)
}
 0x437   : > { %s5267_s7 = smov 64   ;;  %s5268_s6 = smov 4  }
 0x438   : > { %4902 = dma.vmem_to_hbm [thread:$0]  (%p5422_p11), %s6204_s30, 1024, %s6211_s21, %s4096_s18, %s5267_s7, %s5267_s7, %s5268_s6  }
 0x439 PF: > { %s6330_s15 = sld [smem:[#allocation12_spill]]  ;;  %s6331_s14 = sld [smem:[#allocation14_spill]] }
 0x43a   : > { %p4919_p1 = scmp.ge.s32.totalorder %s5260_s12, 2 }
 0x43f   : > { %s4127_s22 = sand.u32 1, %s6330_s15   ;;  %p6332_p2 = scmp.ne.s32.totalorder %s6331_s14, 0 }
 0x440   : > { %s4128_s25 = scalar_lea.sflag [#allocation5], %s4127_s22 }
 0x441   : > { %p4913_p4 = pnand %p4919_p1, %p6332_p2 }
 0x443   : > { %5227 = dma.done.wait (!%p4913_p4), %s4128_s25, 1024  }
 0x444   : > { %5229 = vsyncadd (!%p4913_p4), %s4128_s25, 4294966272  ;;  %s25_s12 = sadd.s32 1, %s5260_s12   ;;  %s6333_s30 = sld [smem:[#allocation13_spill]] }
 0x445   : > { %p22_p5 = scmp.ge.s32.totalorder %s25_s12, 6   ;;  %s6334_s10 = sld [smem:[#allocation15_spill]] }
 0x446   : > { %s6335_s24 = sld [smem:[#allocation17_spill]]  ;;  %s6336_s27 = smov %s5236_s28 }
 0x447   : > { %s6337_s28 = smov %s5240_s29  ;;  %s6338_s29 = smov %s5439_s8 }
 0x448   : > { %s6339_s9 = smov %s5256_s11  ;;  %24 = sbr.rel (!%p22_p5) target bundleno = 13 (0xd), region = 107 }
 0x44c   : > { %s6340_s11 = smov %s6335_s24 }
 0x44f   :  { %4133 = vsyncpa [#allocation4], 1 }
 0x450   :  { %4135 = vsyncpa [#allocation4 + $0x1], 1 }
 0x451   :  { %4136 = vsyncpa [#allocation7], 1 }
 0x452   :  { %4137 = vsyncpa [#allocation5], 1 }
 0x453   :  { %4139 = vsyncpa [#allocation5 + $0x1], 1 }

// kernel: tpu_custom_call.1
= control target key start
LH: loop header
LB: loop body
LE: loop exit
PB: predicated region body
PF: predicated region fallthrough
CT: control target
= control target key end

     0   :  { %s6269_s0 = inlined_call_operand.hbm [shape: bf16[2,16,16,16], index: 0, kind: input, shape index: {}]   ;;  %s6270_s1 = inlined_call_operand.vmem [shape: bf16[2,4,16,16], index: 1, kind: input, shape index: {}]   ;;  %s6271_s2 = inlined_call_operand.vmem [shape: bf16[16,128], index: 2, kind: input, shape index: {}]   ;;  %s6272_s3 = inlined_call_operand.hbm [shape: bf16[1152,128], index: 3, kind: input, shape index: {}]   ;;  %s6273_s4 = inlined_call_operand.vmem [shape: bf16[128,16], index: 4, kind: input, shape index: {}]   ;;  %s6274_s5 = inlined_call_operand.vmem [shape: f32[1,128], index: 5, kind: input, shape index: {}]   ;;  %s6275_s6 = inlined_call_operand.vmem [shape: f32[1,128], index: 6, kind: input, shape index: {}]   ;;  %s6276_s7 = inlined_call_operand.vmem [shape: f32[1,16], index: 7, kind: input, shape index: {}]   ;;  %s6277_s8 = inlined_call_operand.hbm [shape: bf16[2,16,16,16], index: 8, kind: output, shape index: {}]  }
   0x1   :  { %6292 = sst [smem:[#allocation18_spill]] %s6272_s3 }
   0x2   :  { %6293 = sst [smem:[#allocation19_spill]] %s6275_s6 }
   0x3   :  { %6294 = sst [smem:[#allocation20_spill]] %s6276_s7 }
   0x4   :  { %6295 = sst [smem:[#allocation21_spill]] %s6277_s8 }
   0x5   :  { %13 = vsyncpa [#allocation4], 0 }
   0x6   :  { %15 = vsyncpa [#allocation4 + $0x1], 0 }
   0x7   :  { %16 = vsyncpa [#allocation7], 0 }
   0x8   :  { %17 = vsyncpa [#allocation5], 0 }
   0x9   :  { %19 = vsyncpa [#allocation5 + $0x1], 0  ;;  %s5314_s27 = smov 0   ;;  %s5316_s28 = smov 0  }
   0xa   :  { %s5318_s29 = smov 0   ;;  %s5320_s30 = smov 0  }
   0xb   :  { %s5322_s9 = smov 0   ;;  %s5324_s10 = smov 0  }
   0xc   :  { %s5326_s11 = smov 0   ;;  %s5328_s12 = smov 0  }
   0xd LB: > { %6296 = sst [smem:[#allocation12_spill]] %s5232_s27  ;;  %s4233_s13 = sadd.s32 4294967295, %s5260_s12   ;;  %s5260_s12 = sphi %s5328_s12, %s25_s12   ;;  %s5256_s11 = sphi %s5326_s11, %s6340_s11   ;;  %s5252_s10 = sphi %s5324_s10, %s6334_s10   ;;  %s5248_s9 = sphi %s5322_s9, %s6339_s9   ;;  %s5244_s30 = sphi %s5320_s30, %s6333_s30   ;;  %s5240_s29 = sphi %s5318_s29, %s6338_s29   ;;  %s5236_s28 = sphi %s5316_s28, %s6337_s28   ;;  %s5232_s27 = sphi %s5314_s27, %s6336_s27  }
   0xe   : > { %6297 = sst [smem:[#allocation13_spill]] %s5252_s10  ;;  %s4234_s14 = sadd.s32 4294967294, %s5260_s12  }
   0xf   : > { %p59_p0 = scmp.ne.s32.totalorder %s5236_s28, %s5232_s27  ;;  %p5358_p1 = scmp.eq.s32.totalorder %s4233_s13, 0 }
  0x10   : > { %p5362_p2 = scmp.eq.s32.totalorder %s4233_s13, 3  ;;  %p245_p3 = scmp.eq.s32.totalorder %s4234_s14, 3 }
  0x11   : > { %s6298_s15 = scalar_select %p5358_p1, 1, 0 }
  0x12   : > { %s6299_s16 = scalar_select %p5362_p2, 1, 0 }
  0x13   : > { %p5368_p4 = por %p5358_p1, %p59_p0  ;;  %p4235_p5 = scmp.ge.s32.totalorder %s5260_s12, 1 }
  0x14   : > { %p5373_p6 = por %p245_p3, %p59_p0  ;;  %p252_p7 = scmp.lt.s32.totalorder %s5260_s12, 5 }
  0x15   : > { %s6300_s17 = scalar_select %p5368_p4, 1, 0 }
  0x16   : > { %s6301_s18 = scalar_select %p5373_p6, 1, 0 }
  0x17   : > { %p5378_p8 = pnand %p4235_p5, %p252_p7  ;;  %s5262_s20 = smov [#allocation6]  }
  0x18   : > { %6302 = sst [smem:[#allocation14_spill]] %s6301_s18  ;;  %s267_s21 = sshll.u32 %s5262_s20, 4  ;;  %s268_s21 = int_to_ptr.vmem [resolvable:$true] %s267_s21 }
  0x19   : > { %s6303_s19 = scalar_select %p5378_p8, 1, 0 }
  0x1a   : > { %p4904_p9 = pneg %p5378_p8  ;;  %s6305_s3 = sld [smem:[#allocation18_spill]] }
  0x1c   : > { %p5386_p10 = pnand %p4904_p9, %p5358_p1 }
  0x1e   : > { %p5102_p12 = pneg %p5386_p10 }
  0x20   : > { %s5100_s25 = scalar_lea.hbm %s6305_s3, 9216 }
  0x21   : > { %p5101_p11 = scmp.ne.s32.totalorder %s6305_s3, %s5100_s25  ;;  %p5107_p3 = scmp.lt.u32.totalorder %s5100_s25, %s6305_s3 }
  0x23   : > { %p5103_p13 = pnand %p5102_p12, %p5101_p11 }
  0x25   : > { %p5104_p0 = pneg %p5103_p13 }
  0x27   : > { %p5109_p5 = pnand %p5107_p3, %p5104_p0 }
  0x29   : > { %5112 = shalt.err (!%p5109_p5)
}
  0x2a   : > { %s5113_s18 = scalar_lea.vmem %s268_s21, 9216  ;;  %p5121_p1 = scmp.lt.s32.totalorder %s268_s21, %s268_s21 }
  0x2b   : > { %p5114_p7 = scmp.ne.s32.totalorder %s268_s21, %s5113_s18  ;;  %p5122_p4 = scmp.lt.s32.totalorder %s5113_s18, %s5113_s18 }
  0x2d   : > { %p5116_p9 = pnand %p5114_p7, %p5102_p12  ;;  %p5123_p8 = por %p5122_p4, %p5121_p1 }
  0x2f   : > { %p5117_p6 = pneg %p5116_p9 }
  0x31   : > { %p5124_p2 = pnand %p5123_p8, %p5117_p6 }
  0x33   : > { %5127 = shalt.err (!%p5124_p2)
}
  0x34   : > { %s6283_s23 = smov 64   ;;  %s6284_s24 = smov 4  }
  0x35   : > { %4907 = dma.hbm_to_vmem [thread:$0]  (!%p5386_p10), %s6305_s3, 9216, %s268_s21, [#allocation7], %s6283_s23, %s6283_s23, %s6284_s24  }
  0x36   : > { %s34_s26 = sadd.s32 1, %s5252_s10  ;;  %s37_s13 = sadd.s32 1, %s5256_s11 }
  0x37   : > { %p35_p1 = scmp.ge.s32.totalorder %s34_s26, 2  ;;  %s46_s14 = sadd.s32 1, %s5240_s29 }
  0x38   : > { %p53_p2 = scmp.ne.s32.totalorder %s5240_s29, %s5236_s28  ;;  %p54_p4 = scmp.eq.s32.totalorder %s5260_s12, 0 }
  0x39   : > { %s6342_s26 = smov (%p35_p1, %s34_s26), 0  ;;  %s6344_s13 = smov (!%p35_p1, %s37_s13), %s5256_s11 }
  0x3a   : > { %6306 = sst [smem:[#allocation15_spill]] %s6342_s26  ;;  %s42_s22 = ssub.s32 %s5252_s10, %s6342_s26 }
  0x3b   : > { %p39_p6 = scmp.ge.s32.totalorder %s6344_s13, 2  ;;  %p6307_p8 = scmp.ne.s32.totalorder %s6299_s16, 0 }
  0x3c   : > { %p5426_p10 = por %p54_p4, %p53_p2  ;;  %p4917_p12 = scmp.lt.s32.totalorder %s5260_s12, 4 }
  0x3d   : > { %p5422_p11 = por %p6307_p8, %p53_p2  ;;  %s6346_s13 = smov (%p39_p6, %s6344_s13), 0 }
  0x3e   : > { %6311 = sst [smem:[#allocation17_spill]] %s6346_s13  ;;  %s293_s18 = sand.u32 1, %s5240_s29  }
  0x3f   : > { %s6308_s20 = scalar_select %p5422_p11, 1, 0 }
  0x40   : > { %s4378_s25 = sshll.u32 %s5252_s10, 4  ;;  %s41_s23 = ssub.s32 %s5256_s11, %s6346_s13 }
  0x41   : > { %6309 = sst [smem:[#allocation16_spill]] %s6308_s20  ;;  %s43_s24 = sor.u32 %s42_s22, %s41_s23 }
  0x42   : > { %s4238_s3 = sshll.u32 %s293_s18, 6  ;;  %p44_p13 = scmp.eq.s32.totalorder %s43_s24, 0 }
  0x43   : > { %s4241_s16 = sshll.u32 %s5256_s11, 5  ;;  %s297_s26 = scalar_lea.vmem [#allocation3], %s4238_s3 }
  0x44   : > { %s307_s27 = sshll.u32 %s297_s26, 4  ;;  %s304_s20 = sadd.s32 %s4378_s25, %s4241_s16  ;;  %s5441_s27 = int_to_ptr.vmem [resolvable:$true] %s307_s27 }
  0x45   : > { %s5439_s8 = scalar_select %p44_p13, %s5240_s29, %s46_s14  }
  0x46   : > { %s4242_s7 = sshll.u32 %s304_s20, 6  ;;  %p5447_p0 = pnand %p4917_p12, %p5426_p10 }
  0x47   : > { %s5454_s23 = scalar_lea.hbm %s6269_s0, %s4242_s7  ;;  %s5456_s3 = scalar_lea.sflag [#allocation4], %s293_s18 }
  0x48   : > { %s5128_s24 = scalar_lea.hbm %s5454_s23, 1024  ;;  %p5130_p5 = pneg %p5447_p0 }
  0x49   : > { %p5129_p3 = scmp.ne.s32.totalorder %s5454_s23, %s5128_s24  ;;  %s5133_s13 = scalar_lea.hbm %s6269_s0, 4096 }
  0x4a   : > { %p5134_p1 = scmp.lt.u32.totalorder %s5454_s23, %s6269_s0  ;;  %p5135_p2 = scmp.lt.u32.totalorder %s5133_s13, %s5128_s24 }
  0x4b   : > { %p5131_p7 = pnand %p5130_p5, %p5129_p3  ;;  %p5137_p6 = scmp.lt.u32.totalorder %s5128_s24, %s5454_s23 }
  0x4c   : > { %p5136_p4 = por %p5135_p2, %p5134_p1 }
  0x4d   : > { %p5132_p9 = pneg %p5131_p7 }
  0x4e   : > { %p5138_p8 = por %p5137_p6, %p5136_p4 }
  0x50   : > { %p5139_p10 = pnand %p5138_p8, %p5132_p9 }
  0x52   : > { %5142 = shalt.err (!%p5139_p10)
}
  0x53   : > { %s5143_s22 = scalar_lea.vmem %s5441_s27, 1024  ;;  %s5265_s20 = smov [#allocation3]  }
  0x54   : > { %p5144_p12 = scmp.ne.s32.totalorder %s5441_s27, %s5143_s22  ;;  %s5148_s21 = sshll.u32 %s5265_s20, 4  ;;  %s5149_s21 = int_to_ptr.vmem [resolvable:$false] %s5148_s21 }
  0x55   : > { %s5150_s18 = scalar_lea.vmem %s5149_s21, 2048  ;;  %p5151_p7 = scmp.lt.s32.totalorder %s5441_s27, %s5149_s21 }
  0x56   : > { %p5146_p13 = pnand %p5144_p12, %p5130_p5  ;;  %p5152_p1 = scmp.lt.s32.totalorder %s5150_s18, %s5143_s22 }
  0x58   : > { %p5147_p3 = pneg %p5146_p13  ;;  %p5153_p2 = por %p5152_p1, %p5151_p7 }
  0x5a   : > { %p5154_p4 = pnand %p5153_p2, %p5147_p3 }
  0x5c   : > { %5157 = shalt.err (!%p5154_p4)
}
  0x5d   : > { %s6313_s25 = smov 4   ;;  %s6314_s16 = smov 64  }
  0x5e   : > { %4911 = dma.hbm_to_vmem [thread:$0]  (!%p5447_p0), %s5454_s23, 1024, %s5441_s27, %s5456_s3, %s6314_s16, %s6314_s16, %s6313_s25  }
  0x5f   : > { %p6315_p5 = scmp.ne.s32.totalorder %s6303_s19, 0 }
  0x60   : > { %s5490_s24 = sand.u32 (!%p6315_p5), 1, %s5236_s28   ;;  %p6316_p9 = scmp.ne.s32.totalorder (!%p6315_p5), %s6300_s17, 0 }
  0x61   : > { %333 = sbr.rel (%p6315_p5) target bundleno = 1081 (0x439), region = 52  ;;  %s4244_s26 = sshll.u32 (!%p6315_p5), %s5490_s24, 6 }
  0x62   : > { %s336_s10 = scalar_lea.sflag (!%p6315_p5), [#allocation4], %s5490_s24  ;;  %s5496_s6 = scalar_lea.vmem (!%p6315_p5), [#allocation3], %s4244_s26 }
  0x68   : > { %5219 = dma.done.wait (%p6316_p9), %s336_s10, 1024  }
  0x69   : > { %5221 = vsyncadd (%p6316_p9), %s336_s10, 4294966272  ;;  %p6317_p0 = scmp.ne.s32.totalorder %s6298_s15, 0 }
  0x6b   : > { %5223 = dma.done.wait (%p6317_p0), [#allocation7], 9216  }
  0x6c   : > { %5225 = vsyncadd (%p6317_p0), [#allocation7], 4294958080  ;;  %s4247_s27 = sshll.u32 %s5244_s30, 1  ;;  %p388_p6 = scmp.lt.s32.totalorder %s5248_s9, 1  ;;  %v4989_v0 = vld [vmem:[%s6271_s2] sm:$0xff]   ;;  %vm471_vm0 = vcmask 130048  }
  0x6d   : > { %p390_p8 = scmp.lt.s32.totalorder %s4247_s27, 3  ;;  %v400_v1 = vld [vmem:[%s5496_s6] sm:$0xff]   ;;  %v402_v2 = vld [vmem:[%s5496_s6 + $0x8] sm:$0xff]   ;;  %v404_v3 = vld [vmem:[%s5496_s6 + $0x10] sm:$0xff]   ;;  %4664 = vmatprep.subr.bf16.mxu0 %v4989_v0  ;;  %4682 = vmatprep.subr.bf16.mxu1 %v4989_v0  ;;  %vm789_vm1 = vcmask 1044484   ;;  %vm756_vm4 = vcmask 1043459  }
  0x6e   : > { %s389_s19 = scalar_select %p388_p6, %s5248_s9, 1  ;;  %4665 = vmatpush3.bf16.msra.mxu0 %v4989_v0  ;;  %4683 = vmatpush3.bf16.msra.mxu1 %v4989_v0  ;;  %v406_v6 = vld [vmem:[%s5496_s6 + $0x18] sm:$0xff]   ;;  %v408_v7 = vld [vmem:[%s5496_s6 + $0x20] sm:$0xff]   ;;  %v410_v9 = vld [vmem:[%s5496_s6 + $0x28] sm:$0xff]   ;;  %vm790_vm2 = vsmask.f32 4352 }
  0x6f   : > { %s6348_s27 = smov (!%p390_p8, %s4247_s27), 3  ;;  %4666 = vmatprep.mubr.msk.bf16.mxu0 %vm471_vm0, %v400_v1  ;;  %v5000_v8 = vld [vmem:[#allocation6 + $0x140] sm:$0xff]   ;;  %v412_v10 = vld [vmem:[%s5496_s6 + $0x30] sm:$0xff]   ;;  %v414_v11 = vld [vmem:[%s5496_s6 + $0x38] sm:$0xff]   ;;  %vm757_vm5 = vsmask.f32 7950 }
  0x70   : > { %s4249_s23 = sshll.u32 %s389_s19, 3  ;;  %s4248_s17 = sshll.u32 %s6348_s27, 1  ;;  %4688 = vmatprep.subr.bf16.mxu1 %v5000_v8  ;;  %v5001_v12 = vld [vmem:[#allocation6 + $0x148] sm:$0xff]   ;;  %v5002_v13 = vld [vmem:[#allocation6 + $0x100] sm:$0xff]   ;;  %v5004_v15 = vld [vmem:[#allocation6 + $0x150] sm:$0xff]   ;;  %vm991_vm9 = vcmask 1046528  }
  0x71   : > { %s394_s3 = sadd.s32 %s4249_s23, %s4248_s17  ;;  %4667 = vmatmul.mubr.msk.bf16.vlgmr.msra.gmra.mrb[0].mxu0 %vm471_vm0, %v402_v2  ;;  %v5003_v14 = vld [vmem:[#allocation6 + $0xc0] sm:$0xff]   ;;  %4408 = vmatprep.subr.bf16.mxu0 %v5002_v13  ;;  %v5005_v16 = vld [vmem:[#allocation6 + $0x108] sm:$0xff]   ;;  %v5007_v18 = vld [vmem:[#allocation6 + $0x158] sm:$0xff]   ;;  %p688_p10 = scmp.lt.s32.totalorder %s5244_s30, 1  ;;  %vm854_vm10 = vsmask.f32 7424 }
  0x72   : > { %s4250_s15 = sshll.u32 %s394_s3, 2  ;;  %4670 = vmatprep.mubr.msk.bf16.mxu0 %vm471_vm0, %v404_v3  ;;  %4409 = vmatpush3.bf16.msra.mxu0 %v5003_v14  ;;  %v5006_v17 = vld [vmem:[#allocation6 + $0xc8] sm:$0xff]   ;;  %v5008_v19 = vld [vmem:[#allocation6 + $0x110] sm:$0xff]   ;;  %vm5534_vm3 = vmand %vm789_vm1, %vm790_vm2  ;;  %p682_p12 = scmp.gt.s32.totalorder %s5244_s30, 0  ;;  %vm4078_vm11 = vcmask 125952  }
  0x73   : > { %s396_s20 = scalar_lea.vmem %s6270_s1, %s4250_s15  ;;  %4410 = vmatprep.subr.bf16.mxu0 %v5005_v16  ;;  %v5009_v21 = vld [vmem:[#allocation6 + $0xd0] sm:$0xff]   ;;  %v795_v22 = vld [vmem:[#allocation2 + $0x18] sm:$0x10]  ;;  %v798_v23 = vld [vmem:[#allocation2 + $0x28] sm:$0x10]  ;;  %s6326_s19 = sld [smem:[#allocation19_spill]] }
  0x74   : > { %v4996_v4 = vld [vmem:[%s396_s20] sm:$0xff]   ;;  %v4997_v5 = vld [vmem:[%s396_s20 + $0x8] sm:$0xff]   ;;  %v796_v24 = vsel %vm5534_vm3, 0, %v795_v22  ;;  %v799_v25 = vsel %vm5534_vm3, 0, %v798_v23  ;;  %v5011_v27 = vld [vmem:[#allocation6 + $0x118] sm:$0xff]   ;;  %s6327_s3 = sld [smem:[#allocation20_spill]] }
  0x75   : > { %4684 = vmatprep.mubr.msk.bf16.mxu1 %vm471_vm0, %v4996_v4  ;;  %797 = vst [vmem:[#allocation2 + $0x18] sm:$0x10] %v796_v24  ;;  %800 = vst [vmem:[#allocation2 + $0x28] sm:$0x10] %v799_v25  ;;  %v5010_v26 = vld [vmem:[#allocation6 + $0x160] sm:$0xff]   ;;  %v5012_v28 = vld [vmem:[#allocation6 + $0xd8] sm:$0xff]  }
  0x76   : > { %4685 = vmatmul.mubr.msk.bf16.vlgmr.msra.gmra.mrb[0].mxu1 %vm471_vm0, %v4997_v5  ;;  %4411 = vmatpush3.bf16.msra.mxu0 %v5006_v17  ;;  %v5013_v29 = vld [vmem:[#allocation6 + $0x168] sm:$0xff]   ;;  %v5014_v30 = vld [vmem:[#allocation6 + $0x120] sm:$0xff]   ;;  %vm5542_vm6 = vmand %vm756_vm4, %vm757_vm5  ;;  %s689_s21 = scalar_select %p688_p10, 1, 0 }
  0x77   : > { %4689 = vmatpush3.bf16.msra.mxu1 %v5000_v8  ;;  %4412 = vmatprep.subr.bf16.mxu0 %v5008_v19  ;;  %v5015_v31 = vld [vmem:[#allocation6 + $0xe0] sm:$0xff]   ;;  %v5016_v33 = vld [vmem:[#allocation6 + $0x170] sm:$0xff]   ;;  %v5017_v34 = vld [vmem:[#allocation6 + $0x128] sm:$0xff]   ;;  %s683_s18 = scalar_select %p682_p12, 1, 0 }
  0x78   : > { %4690 = vmatprep.subr.bf16.mxu1 %v5001_v12  ;;  %v762_v35 = vld [vmem:[#allocation2 + $0x10] sm:$0x8]  ;;  %v5018_v36 = vld [vmem:[#allocation6 + $0xe8] sm:$0xff]   ;;  %v5019_v38 = vld [vmem:[#allocation6 + $0x178] sm:$0xff]   ;;  %s6157_s13 = scalar_lea.vmem [#allocation8], %s4244_s26  ;;  %s4395_s26 = sshll.u32 %s5244_s30, 4 }
  0x79   : > { %4671 = vmatmul.mubr.msk.bf16.gmra.mrb[4].mxu0 %vm471_vm0, %v406_v6  ;;  %v763_v37 = vsel %vm5542_vm6, 0, %v762_v35  ;;  %v5020_v39 = vld [vmem:[#allocation6 + $0x130] sm:$0xff]   ;;  %v5022_v41 = vld [vmem:[#allocation6 + $0x40] sm:$0xff]   ;;  %v5023_v42 = vld [vmem:[#allocation6 + $0x138] sm:$0xff]   ;;  %v690_v6 = vstv %s689_s21  ;;  %s4374_s7 = sshll.u32 %s5248_s9, 5  ;;  %s4112_s30 = sshll.u32 %s6157_s13, 4  ;;  %s6204_s30 = int_to_ptr.vmem [resolvable:$true] %s4112_s30 }
  0x7a   : > { %4674 = vmatprep.mubr.msk.bf16.mxu0 %vm471_vm0, %v408_v7  ;;  %4413 = vmatpush3.bf16.msra.mxu0 %v5009_v21  ;;  %764 = vst [vmem:[#allocation2 + $0x10] sm:$0x8] %v763_v37  ;;  %v5021_v40 = vld [vmem:[#allocation6 + $0xf0] sm:$0xff]   ;;  %v765_v43 = vld [vmem:[#allocation2 + $0x20] sm:$0x8]  ;;  %v5025_v45 = vld [vmem:[#allocation6 + $0xf8] sm:$0xff]  }
  0x7b   : > { %4691 = vmatpush3.bf16.msra.mxu1 %v5001_v12  ;;  %4414 = vmatprep.subr.bf16.mxu0 %v5011_v27  ;;  %v766_v44 = vsel %vm5542_vm6, 0, %v765_v43  ;;  %v804_v46 = vld [vmem:[#allocation2 + $0x48] sm:$0x10]  ;;  %v801_v47 = vld [vmem:[#allocation2 + $0x38] sm:$0x10]  ;;  %v5040_v0 = vld [vmem:[#allocation6 + $0x1c0] sm:$0xff]  }
  0x7c   : > { %4692 = vmatprep.subr.bf16.mxu1 %v5004_v15  ;;  %767 = vst [vmem:[#allocation2 + $0x20] sm:$0x8] %v766_v44  ;;  %v805_v48 = vsel %vm5534_vm3, 0, %v804_v46  ;;  %v802_v49 = vsel %vm5534_vm3, 0, %v801_v47  ;;  %v768_v50 = vld [vmem:[#allocation2 + $0x30] sm:$0x8] }
  0x7d   : > { %806 = vst [vmem:[#allocation2 + $0x48] sm:$0x10] %v805_v48  ;;  %803 = vst [vmem:[#allocation2 + $0x38] sm:$0x10] %v802_v49  ;;  %v769_v51 = vsel %vm5542_vm6, 0, %v768_v50  ;;  %vm5582_vm7 = vcmp.eq.s32.totalorder %v690_v6, 1 }
  0x7e   : > { %4415 = vmatpush3.bf16.msra.mxu0 %v5012_v28  ;;  %770 = vst [vmem:[#allocation2 + $0x30] sm:$0x8] %v769_v51  ;;  %v810_v52 = vld [vmem:[#allocation2 + $0x68] sm:$0x10]  ;;  %v807_v53 = vld [vmem:[#allocation2 + $0x58] sm:$0x10] }
  0x7f   : > { %4693 = vmatpush3.bf16.msra.mxu1 %v5004_v15  ;;  %4416 = vmatprep.subr.bf16.mxu0 %v5014_v30  ;;  %v811_v54 = vsel %vm5534_vm3, 0, %v810_v52  ;;  %v771_v55 = vld [vmem:[#allocation2 + $0x40] sm:$0x8]  ;;  %v808_v56 = vsel %vm5534_vm3, 0, %v807_v53  ;;  %v816_v58 = vld [vmem:[#allocation2 + $0x88] sm:$0x10] }
  0x80   : > { %4694 = vmatprep.subr.bf16.mxu1 %v5007_v18  ;;  %812 = vst [vmem:[#allocation2 + $0x68] sm:$0x10] %v811_v54  ;;  %v772_v57 = vsel %vm5542_vm6, 0, %v771_v55  ;;  %809 = vst [vmem:[#allocation2 + $0x58] sm:$0x10] %v808_v56  ;;  %v817_v60 = vsel %vm5534_vm3, 0, %v816_v58 }
  0x81   : > { %4675 = vmatmul.mubr.msk.bf16.gmra.mrb[8].mxu0 %vm471_vm0, %v410_v9  ;;  %773 = vst [vmem:[#allocation2 + $0x40] sm:$0x8] %v772_v57  ;;  %v813_v59 = vld [vmem:[#allocation2 + $0x78] sm:$0x10]  ;;  %818 = vst [vmem:[#allocation2 + $0x88] sm:$0x10] %v817_v60  ;;  %v684_v9 = vstv %s683_s18 }
  0x82   : > { %4678 = vmatprep.mubr.msk.bf16.mxu0 %vm471_vm0, %v412_v10  ;;  %4417 = vmatpush3.bf16.msra.mxu0 %v5015_v31  ;;  %v814_v61 = vsel %vm5534_vm3, 0, %v813_v59  ;;  %v759_v62 = vld [vmem:[#allocation2] sm:$0x8]  ;;  %v774_v1 = vld [vmem:[#allocation2 + $0x50] sm:$0x8]  ;;  %vm5588_vm8 = vcmp.eq.s32.totalorder %v684_v9, 1 }
  0x83   : > { %4695 = vmatpush3.bf16.msra.mxu1 %v5007_v18  ;;  %4418 = vmatprep.subr.bf16.mxu0 %v5017_v34  ;;  %815 = vst [vmem:[#allocation2 + $0x78] sm:$0x10] %v814_v61  ;;  %v760_v63 = vsel %vm5542_vm6, 0, %v759_v62  ;;  %v775_v2 = vsel %vm5542_vm6, 0, %v774_v1  ;;  %v777_v3 = vld [vmem:[#allocation2 + $0x60] sm:$0x8] }
  0x84   : > { %4696 = vmatprep.subr.bf16.mxu1 %v5010_v26  ;;  %761 = vst [vmem:[#allocation2] sm:$0x8] %v760_v63  ;;  %776 = vst [vmem:[#allocation2 + $0x50] sm:$0x8] %v775_v2  ;;  %v778_v4 = vsel %vm5542_vm6, 0, %v777_v3  ;;  %s6329_s20 = sld [smem:[#allocation21_spill]] }
  0x85   : > { %779 = vst [vmem:[#allocation2 + $0x60] sm:$0x8] %v778_v4  ;;  %v5577_v5 = vld [vmem:[%s6274_s5] ss:$0 sm:$0xff]  ;;  %v780_v35 = vld [vmem:[#allocation2 + $0x70] sm:$0x8] }
  0x86   : > { %4419 = vmatpush3.bf16.msra.mxu0 %v5018_v36  ;;  %v783_v63 = vld [vmem:[#allocation2 + $0x80] sm:$0x8]  ;;  %s4096_s18 = scalar_lea.sflag [#allocation5], %s5490_s24  ;;  %s5158_s25 = scalar_lea.vmem %s6204_s30, 1024 }
  0x87   : > { %4697 = vmatpush3.bf16.msra.mxu1 %v5010_v26  ;;  %4420 = vmatprep.subr.bf16.mxu0 %v5020_v39  ;;  %v781_v39 = vsel %vm5542_vm6, 0, %v780_v35  ;;  %v784_v2 = vsel %vm5542_vm6, 0, %v783_v63  ;;  %p5159_p13 = scmp.ne.s32.totalorder %s6204_s30, %s5158_s25  ;;  %s5266_s16 = smov [#allocation8]  }
  0x88   : > { %4698 = vmatprep.subr.bf16.mxu1 %v5013_v29  ;;  %782 = vst [vmem:[#allocation2 + $0x70] sm:$0x8] %v781_v39  ;;  %785 = vst [vmem:[#allocation2 + $0x80] sm:$0x8] %v784_v2  ;;  %s5162_s10 = sshll.u32 %s5266_s16, 4  ;;  %s5163_s10 = int_to_ptr.vmem [resolvable:$false] %s5162_s10 }
  0x89   : > { %4679 = vmatmul.mubr.msk.bf16.gmra.mrb[12].mxu0 %vm471_vm0, %v414_v11  ;;  %p5160_p3 = pnand %p5159_p13, %p5422_p11  ;;  %s5164_s27 = scalar_lea.vmem %s5163_s10, 2048 }
  0x8a   : > { %4421 = vmatpush3.bf16.msra.mxu0 %v5021_v40  ;;  %p5165_p1 = scmp.lt.s32.totalorder %s6204_s30, %s5163_s10  ;;  %p5166_p2 = scmp.lt.s32.totalorder %s5164_s27, %s5158_s25 }
  0x8b   : > { %4699 = vmatpush3.bf16.msra.mxu1 %v5013_v29  ;;  %4422 = vmatprep.subr.bf16.mxu0 %v5023_v42  ;;  %p5161_p7 = pneg %p5160_p3 }
  0x8c   : > { %4700 = vmatprep.subr.bf16.mxu1 %v5016_v33  ;;  %p5167_p4 = por %p5166_p2, %p5165_p1 }
  0x8e   : > { %4423 = vmatpush3.bf16.msra.mxu0 %v5025_v45  ;;  %p5168_p5 = pnand %p5167_p4, %p5161_p7 }
  0x8f   : > { %4701 = vmatpush3.bf16.msra.mxu1 %v5016_v33  ;;  %4568 = vmatprep.subr.bf16.mxu0 %v5040_v0 }
  0x90   : > { %4702 = vmatprep.subr.bf16.mxu1 %v5019_v38 }
  0x93   : > { %4703 = vmatpush3.bf16.msra.mxu1 %v5019_v38 }
  0x94   : > { %4488 = vmatprep.subr.bf16.mxu1 %v5022_v41 }
 0x144   : > { %v4668_v7 = vpop.f32.mrb[0].mxu0 }
 0x145   : > { %v539_v10 = vadd.f32 %v4668_v7, %v5577_v5  ;;  %v530_v11 = vpop.f32.mrb[1].mxu0 }
 0x146   : > { %v531_v14 = vadd.f32 %v5577_v5, %v530_v11  ;;  %v4669_v15 = vpop.f32.mrb[2].mxu0 }
 0x147   : > { %v542_v19 = vadd.f32 %v4669_v15, %v5577_v5  ;;  %v533_v21 = vpop.f32.mrb[3].mxu0  ;;  %v595_v26 = vmax.f32 %v539_v10, 0.0 }
 0x148   : > { %v534_v27 = vadd.f32 %v5577_v5, %v533_v21  ;;  %v593_v30 = vmax.f32 %v531_v14, 0.0 }
 0x149   : > { %v4686_v8 = vpop.f32.mrb[0].mxu1  ;;  %v596_v31 = vmax.f32 %v542_v19, 0.0 }
 0x14a   : > { %v672_v12 = vadd.f32 %v4686_v8, %v5577_v5  ;;  %v663_v13 = vpop.f32.mrb[1].mxu1  ;;  %v594_v36 = vmax.f32 %v534_v27, 0.0 }
 0x14b   : > { %v664_v17 = vadd.f32 %v5577_v5, %v663_v13  ;;  %v4687_v18 = vpop.f32.mrb[2].mxu1  ;;  %v695_v40 = vpack.c.bf16 %v596_v31, %v595_v26 }
 0x14c   : > { %v680_v22 = vmax.f32 %v672_v12, 0.0  ;;  %v675_v24 = vadd.f32 %v4687_v18, %v5577_v5  ;;  %v666_v25 = vpop.f32.mrb[3].mxu1  ;;  %v694_v42 = vpack.c.bf16 %v594_v36, %v593_v30  ;;  %v4672_v43 = vpop.f32.mrb[4].mxu0 }
 0x14d   : > { %v678_v28 = vmax.f32 %v664_v17, 0.0  ;;  %v667_v29 = vadd.f32 %v5577_v5, %v666_v25  ;;  %v711_v46 = vrot.slane %v695_v40, 4  ;;  %v555_v47 = vadd.f32 %v4672_v43, %v5577_v5  ;;  %v546_v48 = vpop.f32.mrb[5].mxu0 }
 0x14e   : > { %v692_v33 = vsel %vm5582_vm7, %v680_v22, 0.0  ;;  %v681_v34 = vmax.f32 %v675_v24, 0.0  ;;  %v710_v50 = vrot.slane %v694_v42, 4  ;;  %v547_v51 = vadd.f32 %v5577_v5, %v546_v48  ;;  %v4673_v52 = vpop.f32.mrb[6].mxu0 }
 0x14f   : > { %v686_v37 = vsel %vm5588_vm8, %v678_v28, 0.0  ;;  %v679_v38 = vmax.f32 %v667_v29, 0.0  ;;  %729 = vst [vmem:[#allocation2 + $0x28] ss:$-4 sps:$4 sm:$0xff] %v711_v46   ;;  %v558_v54 = vadd.f32 %v4673_v52, %v5577_v5  ;;  %v549_v55 = vpop.f32.mrb[7].mxu0  ;;  %v599_v58 = vmax.f32 %v555_v47, 0.0 }
 0x150   : > { %v693_v41 = vsel %vm5582_vm7, %v681_v34, 0.0  ;;  %727 = vst [vmem:[#allocation2 + $0x18] ss:$-4 sps:$4 sm:$0xff] %v710_v50   ;;  %v550_v57 = vadd.f32 %v5577_v5, %v549_v55  ;;  %v597_v60 = vmax.f32 %v547_v51, 0.0 }
 0x151   : > { %v749_v44 = vpack.c.bf16 %v693_v41, %v692_v33  ;;  %v687_v45 = vsel %vm5588_vm8, %v679_v38, 0.0  ;;  %v600_v59 = vmax.f32 %v558_v54, 0.0 }
 0x152   : > { %v743_v49 = vpack.c.bf16 %v687_v45, %v686_v37  ;;  %v598_v61 = vmax.f32 %v550_v57, 0.0 }
 0x153   : > { %v751_v53 = vrot.slane %v749_v44, 4  ;;  %v697_v62 = vpack.c.bf16 %v600_v59, %v599_v58 }
 0x154   : > { %v745_v56 = vrot.slane %v743_v49, 4  ;;  %v696_v0 = vpack.c.bf16 %v598_v61, %v597_v60  ;;  %v4676_v1 = vpop.f32.mrb[8].mxu0 }
 0x155   : > { %754 = vst [vmem:[#allocation2 + $0x98] ss:$-4 sps:$4 sm:$0xff] %v751_v53   ;;  %v713_v3 = vrot.slane %v697_v62, 4  ;;  %v571_v4 = vadd.f32 %v4676_v1, %v5577_v5  ;;  %v562_v6 = vpop.f32.mrb[9].mxu0 }
 0x156   : > { %747 = vst [vmem:[#allocation2 + $0x8] ss:$-4 sps:$4 sm:$0xff] %v745_v56   ;;  %v712_v7 = vrot.slane %v696_v0, 4  ;;  %v563_v8 = vadd.f32 %v5577_v5, %v562_v6  ;;  %v4677_v9 = vpop.f32.mrb[10].mxu0  ;;  %v5613_v10 = vld [vmem:[#allocation2 + $0x20] sm:$0xf0] }
 0x157   : > { %v1481_v11 = vld [vmem:[#allocation2 + $0x28] sm:$0x1f]  ;;  %733 = vst [vmem:[#allocation2 + $0x48] ss:$-4 sps:$4 sm:$0xff] %v713_v3   ;;  %v603_v12 = vmax.f32 %v571_v4, 0.0  ;;  %v574_v13 = vadd.f32 %v4677_v9, %v5577_v5  ;;  %v565_v14 = vpop.f32.mrb[11].mxu0 }
 0x158   : > { %v5616_v15 = vld [vmem:[#allocation2 + $0x10] sm:$0xf0]  ;;  %v1480_v16 = vld [vmem:[#allocation2 + $0x18] sm:$0x1f]  ;;  %731 = vst [vmem:[#allocation2 + $0x38] ss:$-4 sps:$4 sm:$0xff] %v712_v7   ;;  %v566_v18 = vadd.f32 %v5577_v5, %v565_v14 }
 0x159   : > { %v601_v17 = vmax.f32 %v563_v8, 0.0  ;;  %v1624_v19 = vrot.slane %v5616_v15, 1  ;;  %v1625_v21 = vrot.slane %v1480_v16, 1  ;;  %v604_v22 = vmax.f32 %v574_v13, 0.0  ;;  %v1457_v55 = vld [vmem:[#allocation2 + $0x18] sm:$0xf] }
 0x15a   : > { %v1627_v23 = vrot.slane %v5613_v10, 1  ;;  %v1628_v24 = vrot.slane %v1481_v11, 1  ;;  %v1489_v25 = vshrl.u32 %v5616_v15, 16  ;;  %v602_v26 = vmax.f32 %v566_v18, 0.0  ;;  %v1456_v0 = vld [vmem:[#allocation2 + $0x10] sm:$0xf8] }
 0x15b   : > { %v1626_v27 = vsel %vm991_vm9, %v1624_v19, %v1625_v21  ;;  %v1686_v28 = vshrl.u32 %v1625_v21, 16  ;;  %v1689_v29 = vshll.u32 %v1625_v21, 16  ;;  %v699_v30 = vpack.c.bf16 %v604_v22, %v603_v12  ;;  %v5024_v12 = vld [vmem:[#allocation6] sm:$0xff]   ;;  %v5026_v18 = vld [vmem:[#allocation6 + $0x48] sm:$0xff]  }
 0x15c   : > { %v1678_v31 = vshrl.u32 %v1626_v27, 16  ;;  %v1681_v33 = vshll.u32 %v1626_v27, 16  ;;  %v1629_v34 = vsel %vm991_vm9, %v1627_v23, %v1628_v24  ;;  %v698_v35 = vpack.c.bf16 %v602_v26, %v601_v17  ;;  %v4680_v36 = vpop.f32.mrb[12].mxu0  ;;  %v5631_v26 = vld [vmem:[#allocation2 + $0x28] sm:$0xf] }
 0x15d   : > { %v1688_v37 = vrot.slane %v1686_v28, 3  ;;  %v1691_v38 = vrot.slane %v1689_v29, 4  ;;  %v1724_v39 = vshrl.u32 %v1629_v34, 16  ;;  %v715_v40 = vrot.slane %v699_v30, 4  ;;  %v578_v42 = vpop.f32.mrb[13].mxu0  ;;  %v5027_v30 = vld [vmem:[#allocation6 + $0x8] sm:$0xff]  }
 0x15e   : > { %v587_v41 = vadd.f32 %v4680_v36, %v5577_v5  ;;  %v1680_v43 = vrot.slane %v1678_v31, 3  ;;  %v1683_v44 = vrot.slane %v1681_v33, 4  ;;  %v714_v45 = vrot.slane %v698_v35, 4  ;;  %v4681_v47 = vpop.f32.mrb[14].mxu0 }
 0x15f   : > { %v579_v46 = vadd.f32 %v5577_v5, %v578_v42  ;;  %v1692_v48 = vor.u32 %v1691_v38, %v1688_v37  ;;  %v1726_v49 = vrot.slane %v1724_v39, 3  ;;  %737 = vst [vmem:[#allocation2 + $0x68] ss:$-4 sps:$4 sm:$0xff] %v715_v40   ;;  %v590_v51 = vadd.f32 %v4681_v47, %v5577_v5  ;;  %v581_v52 = vpop.f32.mrb[15].mxu0  ;;  %v5635_v37 = vld [vmem:[#allocation2 + $0x40] sm:$0xf0] }
 0x160   : > { %v607_v50 = vmax.f32 %v587_v41, 0.0  ;;  %v1684_v53 = vor.u32 %v1683_v44, %v1680_v43  ;;  %v1727_v54 = vshll.u32 %v1629_v34, 16  ;;  %735 = vst [vmem:[#allocation2 + $0x58] ss:$-4 sps:$4 sm:$0xff] %v714_v45   ;;  %v582_v57 = vadd.f32 %v5577_v5, %v581_v52  ;;  %v5639_v42 = vld [vmem:[#allocation2 + $0x30] sm:$0xf0] }
 0x161   : > { %v605_v56 = vmax.f32 %v579_v46, 0.0  ;;  %v1732_v58 = vshrl.u32 %v1628_v24, 16  ;;  %v1735_v59 = vshll.u32 %v1628_v24, 16  ;;  %v608_v60 = vmax.f32 %v590_v51, 0.0  ;;  %v1482_v43 = vld [vmem:[#allocation2 + $0x38] sm:$0x1f] }
 0x162   : > { %v1693_v61 = vsel %vm790_vm2, %v1684_v53, %v1692_v48  ;;  %v1729_v62 = vrot.slane %v1727_v54, 4  ;;  %v1491_v63 = vshll.u32 %v5616_v15, 16  ;;  %v606_v1 = vmax.f32 %v582_v57, 0.0  ;;  %v1483_v48 = vld [vmem:[#allocation2 + $0x48] sm:$0x1f] }
 0x163   : > { %4704 = vmatprep.mubr.bf16.mxu1 %v1693_v61  ;;  %v1734_v2 = vrot.slane %v1732_v58, 3  ;;  %v1737_v3 = vrot.slane %v1735_v59, 4  ;;  %v1496_v4 = vshll.u32 %v1457_v55, 16  ;;  %v701_v6 = vpack.c.bf16 %v608_v60, %v607_v50  ;;  %v5030_v61 = vld [vmem:[#allocation6 + $0x58] sm:$0xff]  }
 0x164   : > { %v1730_v7 = vor.u32 %v1729_v62, %v1726_v49  ;;  %v1493_v8 = vrot.slane %v1491_v63, 1  ;;  %v1500_v9 = vshrl.u32 %v1457_v55, 16  ;;  %v700_v11 = vpack.c.bf16 %v606_v1, %v605_v56  ;;  %v5029_v56 = vld [vmem:[#allocation6 + $0x10] sm:$0xff]   ;;  %v5041_v62 = vld [vmem:[#allocation6 + $0x180] sm:$0xff]  }
 0x165   : > { %v1738_v5 = vor.u32 %v1737_v3, %v1734_v2  ;;  %v1498_v13 = vrot.slane %v1496_v4, 1  ;;  %v1649_v14 = vshrl.u32 %v1456_v0, 16  ;;  %v717_v16 = vrot.slane %v701_v6, 4  ;;  %v5043_v3 = vld [vmem:[#allocation6 + $0x1c8] sm:$0xff]  }
 0x166   : > { %v1494_v17 = vor.u32 %v1493_v8, %v1489_v25  ;;  %v1652_v19 = vshll.u32 %v1456_v0, 16  ;;  %v1656_v15 = vrot.slane %v1500_v9, 3  ;;  %v716_v21 = vrot.slane %v700_v11, 4  ;;  %v5028_v25 = vld [vmem:[#allocation6 + $0x50] sm:$0xff]  }
 0x167   : > { %v1739_v22 = vsel %vm790_vm2, %v1730_v7, %v1738_v5  ;;  %v1502_v23 = vor.u32 %v1500_v9, %v1498_v13  ;;  %v1651_v24 = vrot.slane %v1649_v14, 3  ;;  %741 = vst [vmem:[#allocation2 + $0x88] ss:$-4 sps:$4 sm:$0xff] %v717_v16   ;;  %v1657_v29 = vrot.slane %v1496_v4, 4 }
 0x168   : > { %4705 = vmatmul.mubr.bf16.vlgmr.msra.gmra.mrb[4].mxu1 %v1739_v22  ;;  %v1499_v27 = vsel %vm854_vm10, %v1494_v17, %v1498_v13  ;;  %v1654_v28 = vrot.slane %v1652_v19, 4  ;;  %v1504_v31 = vshrl.u32 %v5613_v10, 16  ;;  %739 = vst [vmem:[#allocation2 + $0x78] ss:$-4 sps:$4 sm:$0xff] %v716_v21   ;;  %v1506_v40 = vshll.u32 %v5613_v10, 16  ;;  %v5031_v13 = vld [vmem:[#allocation6 + $0x18] sm:$0xff]  }
 0x169   : > { %4489 = vmatpush3.bf16.msra.mxu1 %v5024_v12  ;;  %v1661_v33 = vshrl.u32 %v1499_v27, 16  ;;  %v1664_v34 = vshll.u32 %v1499_v27, 16  ;;  %v1669_v35 = vshrl.u32 %v1502_v23, 16  ;;  %v1672_v36 = vshll.u32 %v1502_v23, 16  ;;  %v5032_v19 = vld [vmem:[#allocation6 + $0x60] sm:$0xff]  }
 0x16a   : > { %4490 = vmatprep.subr.bf16.mxu1 %v5026_v18  ;;  %v1655_v38 = vor.u32 %v1654_v28, %v1651_v24  ;;  %v1658_v39 = vor.u32 %v1657_v29, %v1656_v15  ;;  %v1511_v41 = vshll.u32 %v5631_v26, 16  ;;  %v1508_v50 = vrot.slane %v1506_v40, 1  ;;  %v5044_v15 = vld [vmem:[#allocation6 + $0x188] sm:$0xff]   ;;  %v1458_v27 = vld [vmem:[#allocation2 + $0x20] sm:$0xf8]  ;;  %v5046_v28 = vld [vmem:[#allocation6 + $0x1d0] sm:$0xff]  }
 0x16b   : > { %v1663_v44 = vrot.slane %v1661_v33, 3  ;;  %v1666_v45 = vrot.slane %v1664_v34, 4  ;;  %v1671_v46 = vrot.slane %v1669_v35, 3  ;;  %v1674_v47 = vrot.slane %v1672_v36, 4  ;;  %v5033_v33 = vld [vmem:[#allocation6 + $0x20] sm:$0xff]   ;;  %v5047_v40 = vld [vmem:[#allocation6 + $0x190] sm:$0xff]  }
 0x16c   : > { %v1659_v49 = vsel %vm790_vm2, %v1655_v38, %v1658_v39  ;;  %v1513_v51 = vrot.slane %v1511_v41, 1  ;;  %v1515_v52 = vshrl.u32 %v5631_v26, 16  ;;  %v1630_v54 = vrot.slane %v5639_v42, 1  ;;  %v5034_v39 = vld [vmem:[#allocation6 + $0x68] sm:$0xff]  }
 0x16d   : > { %v1667_v53 = vor.u32 %v1666_v45, %v1663_v44  ;;  %v1675_v10 = vor.u32 %v1674_v47, %v1671_v46  ;;  %4491 = vmatpush3.bf16.msra.mxu1 %v5027_v30  ;;  %v1631_v55 = vrot.slane %v1482_v43, 1  ;;  %v1509_v57 = vor.u32 %v1508_v50, %v1504_v31  ;;  %v5049_v43 = vld [vmem:[#allocation6 + $0x1d8] sm:$0xff]  }
 0x16e   : > { %v1517_v58 = vor.u32 %v1515_v52, %v1513_v51  ;;  %4492 = vmatprep.subr.bf16.mxu1 %v5028_v25  ;;  %v1633_v59 = vrot.slane %v5635_v37, 1  ;;  %v1634_v60 = vrot.slane %v1483_v48, 1  ;;  %v1695_v46 = vshrl.u32 %v1458_v27, 16  ;;  %v5653_v48 = vld [vmem:[#allocation2 + $0x38] sm:$0xf] }
 0x16f   : > { %v1676_v63 = vsel %vm790_vm2, %v1667_v53, %v1675_v10  ;;  %v1632_v0 = vsel %vm991_vm9, %v1630_v54, %v1631_v55  ;;  %v1778_v1 = vshrl.u32 %v1631_v55, 16  ;;  %v1781_v2 = vshll.u32 %v1631_v55, 16  ;;  %v5657_v10 = vld [vmem:[#allocation2 + $0x50] sm:$0xf0]  ;;  %v5659_v54 = vld [vmem:[#allocation2 + $0x60] sm:$0xf0] }
 0x170   : > { %2264 = vmatprep.mubr.bf16.mxu0 %v1676_v63  ;;  %v1514_v4 = vsel %vm854_vm10, %v1509_v57, %v1513_v51  ;;  %v1715_v6 = vshrl.u32 %v1517_v58, 16  ;;  %v1718_v7 = vshll.u32 %v1517_v58, 16  ;;  %v1770_v8 = vshrl.u32 %v1632_v0, 16  ;;  %v5661_v55 = vld [vmem:[#allocation2 + $0x30] sm:$0xf8] }
 0x171   : > { %2265 = vmatmul.mubr.bf16.vlgmr.msra.gmra.mrb[16].mxu0 %v1659_v49  ;;  %v1707_v9 = vshrl.u32 %v1514_v4, 16  ;;  %v1710_v11 = vshll.u32 %v1514_v4, 16  ;;  %v1773_v5 = vshll.u32 %v1632_v0, 16  ;;  %v1780_v12 = vrot.slane %v1778_v1, 3  ;;  %4493 = vmatpush3.bf16.msra.mxu1 %v5029_v56  ;;  %v1485_v1 = vld [vmem:[#allocation2 + $0x68] sm:$0x1f] }
 0x172   : > { %v1717_v14 = vrot.slane %v1715_v6, 3  ;;  %v1720_v16 = vrot.slane %v1718_v7, 4  ;;  %v1772_v17 = vrot.slane %v1770_v8, 3  ;;  %v1783_v18 = vrot.slane %v1781_v2, 4  ;;  %4494 = vmatprep.subr.bf16.mxu1 %v5030_v61  ;;  %4569 = vmatpush3.bf16.msra.mxu0 %v5041_v62  ;;  %v5035_v2 = vld [vmem:[#allocation6 + $0x28] sm:$0xff]  }
 0x173   : > { %v1709_v21 = vrot.slane %v1707_v9, 3  ;;  %v1712_v22 = vrot.slane %v1710_v11, 4  ;;  %v1775_v23 = vrot.slane %v1773_v5, 4  ;;  %v1635_v24 = vsel %vm991_vm9, %v1633_v59, %v1634_v60  ;;  %4570 = vmatprep.subr.bf16.mxu0 %v5043_v3 }
 0x174   : > { %v1721_v29 = vor.u32 %v1720_v16, %v1717_v14  ;;  %v1784_v30 = vor.u32 %v1783_v18, %v1780_v12  ;;  %v1816_v31 = vshrl.u32 %v1635_v24, 16  ;;  %v1819_v25 = vshll.u32 %v1635_v24, 16  ;;  %v5051_v14 = vld [vmem:[#allocation6 + $0x1e0] sm:$0xff]  }
 0x175   : > { %v1713_v34 = vor.u32 %v1712_v22, %v1709_v21  ;;  %v1776_v35 = vor.u32 %v1775_v23, %v1772_v17  ;;  %v1824_v36 = vshrl.u32 %v1634_v60, 16  ;;  %v1827_v38 = vshll.u32 %v1634_v60, 16  ;;  %4495 = vmatpush3.bf16.msra.mxu1 %v5031_v13  ;;  %v1484_v60 = vld [vmem:[#allocation2 + $0x58] sm:$0x1f] }
 0x176   : > { %v1818_v44 = vrot.slane %v1816_v31, 3  ;;  %v1821_v45 = vrot.slane %v1819_v25, 4  ;;  %v1698_v47 = vshll.u32 %v1458_v27, 16  ;;  %4496 = vmatprep.subr.bf16.mxu1 %v5032_v19  ;;  %4571 = vmatpush3.bf16.msra.mxu0 %v5044_v15  ;;  %v1697_v57 = vrot.slane %v1695_v46, 3  ;;  %v5037_v15 = vld [vmem:[#allocation6 + $0x30] sm:$0xff]   ;;  %v5038_v27 = vld [vmem:[#allocation6 + $0x78] sm:$0xff]  }
 0x177   : > { %v1722_v49 = vsel %vm790_vm2, %v1713_v34, %v1721_v29  ;;  %v1785_v50 = vsel %vm790_vm2, %v1776_v35, %v1784_v30  ;;  %v1826_v51 = vrot.slane %v1824_v36, 3  ;;  %v1829_v53 = vrot.slane %v1827_v38, 4  ;;  %4572 = vmatprep.subr.bf16.mxu0 %v5046_v28  ;;  %v5052_v25 = vld [vmem:[#allocation6 + $0x1a0] sm:$0xff]   ;;  %v5054_v38 = vld [vmem:[#allocation6 + $0x1e8] sm:$0xff]  }
 0x178   : > { %2272 = vmatprep.mubr.bf16.mxu0 %v1722_v49  ;;  %4708 = vmatprep.mubr.bf16.mxu1 %v1785_v50  ;;  %v1822_v56 = vor.u32 %v1821_v45, %v1818_v44  ;;  %v1700_v58 = vrot.slane %v1698_v47, 4  ;;  %v1702_v59 = vrot.slane %v1515_v52, 3  ;;  %v1703_v62 = vrot.slane %v1511_v41, 4  ;;  %v5036_v52 = vld [vmem:[#allocation6 + $0x70] sm:$0xff]   ;;  %v5039_v45 = vld [vmem:[#allocation6 + $0x38] sm:$0xff]  }
 0x179   : > { %v1830_v61 = vor.u32 %v1829_v53, %v1826_v51  ;;  %v1519_v63 = vshrl.u32 %v5639_v42, 16  ;;  %v1521_v0 = vshll.u32 %v5639_v42, 16  ;;  %4497 = vmatpush3.bf16.msra.mxu1 %v5033_v33  ;;  %v1526_v4 = vshll.u32 %v5653_v48, 16  ;;  %v5050_v42 = vld [vmem:[#allocation6 + $0x198] sm:$0xff]   ;;  %v5683_v51 = vld [vmem:[#allocation6 + $0x80] sm:$0xff]  }
 0x17a   : > { %v1701_v3 = vor.u32 %v1700_v58, %v1697_v57  ;;  %v1530_v6 = vshrl.u32 %v5653_v48, 16  ;;  %v1636_v7 = vrot.slane %v5657_v10, 1  ;;  %4498 = vmatprep.subr.bf16.mxu1 %v5034_v39  ;;  %4573 = vmatpush3.bf16.msra.mxu0 %v5047_v40  ;;  %v1704_v41 = vor.u32 %v1703_v62, %v1702_v59  ;;  %v5055_v59 = vld [vmem:[#allocation6 + $0x1a8] sm:$0xff]  }
 0x17b   : > { %v1831_v26 = vsel %vm790_vm2, %v1822_v56, %v1830_v61  ;;  %v1523_v8 = vrot.slane %v1521_v0, 1  ;;  %v1637_v9 = vrot.slane %v1484_v60, 1  ;;  %4574 = vmatprep.subr.bf16.mxu0 %v5049_v43  ;;  %v1528_v11 = vrot.slane %v1526_v4, 1  ;;  %v5685_v0 = vld [vmem:[#allocation2 + $0x48] sm:$0xf] }
 0x17c   : > { %4709 = vmatmul.mubr.bf16.gmra.mrb[8].mxu1 %v1831_v26  ;;  %v1639_v5 = vrot.slane %v5659_v54, 1  ;;  %v1640_v12 = vrot.slane %v1485_v1, 1  ;;  %v1741_v13 = vshrl.u32 %v5661_v55, 16  ;;  %v1705_v16 = vsel %vm790_vm2, %v1701_v3, %v1704_v41  ;;  %v5056_v1 = vld [vmem:[#allocation6 + $0x1f0] sm:$0xff]   ;;  %v5691_v41 = vld [vmem:[#allocation2 + $0x80] sm:$0xf0] }
 0x17d   : > { %v1524_v17 = vor.u32 %v1523_v8, %v1519_v63  ;;  %v1638_v18 = vsel %vm991_vm9, %v1636_v7, %v1637_v9  ;;  %v1870_v19 = vshrl.u32 %v1637_v9, 16  ;;  %4499 = vmatpush3.bf16.msra.mxu1 %v5035_v2  ;;  %2273 = vmatmul.mubr.bf16.gmra.mrb[20].mxu0 %v1705_v16  ;;  %v1532_v21 = vor.u32 %v1530_v6, %v1528_v11  ;;  %v5689_v26 = vld [vmem:[#allocation2 + $0x70] sm:$0xf0]  ;;  %v1487_v16 = vld [vmem:[#allocation2 + $0x88] sm:$0x1f] }
 0x17e   : > { %v1862_v22 = vshrl.u32 %v1638_v18, 16  ;;  %v1865_v23 = vshll.u32 %v1638_v18, 16  ;;  %v1873_v24 = vshll.u32 %v1637_v9, 16  ;;  %4500 = vmatprep.subr.bf16.mxu1 %v5036_v52  ;;  %v1641_v30 = vsel %vm991_vm9, %v1639_v5, %v1640_v12  ;;  %4575 = vmatpush3.bf16.msra.mxu0 %v5050_v42  ;;  %v1486_v5 = vld [vmem:[#allocation2 + $0x78] sm:$0x1f] }
 0x17f   : > { %v1529_v28 = vsel %vm854_vm10, %v1524_v17, %v1528_v11  ;;  %v1872_v29 = vrot.slane %v1870_v19, 3  ;;  %v1916_v31 = vshrl.u32 %v1640_v12, 16  ;;  %v1761_v35 = vshrl.u32 %v1532_v21, 16  ;;  %4576 = vmatprep.subr.bf16.mxu0 %v5051_v14  ;;  %v5057_v17 = vld [vmem:[#allocation6 + $0x1b0] sm:$0xff]  }
 0x180   : > { %v1753_v33 = vshrl.u32 %v1529_v28, 16  ;;  %v1756_v34 = vshll.u32 %v1529_v28, 16  ;;  %v1764_v36 = vshll.u32 %v1532_v21, 16  ;;  %v1864_v39 = vrot.slane %v1862_v22, 3 }
 0x181   : > { %v1867_v40 = vrot.slane %v1865_v23, 4  ;;  %v1875_v43 = vrot.slane %v1873_v24, 4  ;;  %v1908_v44 = vshrl.u32 %v1641_v30, 16  ;;  %4501 = vmatpush3.bf16.msra.mxu1 %v5037_v15  ;;  %v1763_v49 = vrot.slane %v1761_v35, 3 }
 0x182   : > { %v1755_v46 = vrot.slane %v1753_v33, 3  ;;  %v1758_v47 = vrot.slane %v1756_v34, 4  ;;  %v1766_v50 = vrot.slane %v1764_v36, 4  ;;  %4502 = vmatprep.subr.bf16.mxu1 %v5038_v27  ;;  %v1911_v58 = vshll.u32 %v1641_v30, 16  ;;  %4577 = vmatpush3.bf16.msra.mxu0 %v5052_v25  ;;  %v5060_v33 = vld [vmem:[#allocation6 + $0x1b8] sm:$0xff]  }
 0x183   : > { %v1868_v53 = vor.u32 %v1867_v40, %v1864_v39  ;;  %v1876_v56 = vor.u32 %v1875_v43, %v1872_v29  ;;  %v1910_v57 = vrot.slane %v1908_v44, 3  ;;  %v1918_v62 = vrot.slane %v1916_v31, 3  ;;  %4578 = vmatprep.subr.bf16.mxu0 %v5054_v38 }
 0x184   : > { %v1759_v60 = vor.u32 %v1758_v47, %v1755_v46  ;;  %v1767_v61 = vor.u32 %v1766_v50, %v1763_v49  ;;  %v1919_v63 = vshll.u32 %v1640_v12, 16  ;;  %v1913_v3 = vrot.slane %v1911_v58, 4 }
 0x185   : > { %v1877_v2 = vsel %vm790_vm2, %v1868_v53, %v1876_v56  ;;  %v1743_v7 = vrot.slane %v1741_v13, 3  ;;  %v1744_v52 = vshll.u32 %v5661_v55, 16  ;;  %4503 = vmatpush3.bf16.msra.mxu1 %v5039_v45  ;;  %v1748_v42 = vrot.slane %v1530_v6, 3 }
 0x186   : > { %v1768_v8 = vsel %vm790_vm2, %v1759_v60, %v1767_v61  ;;  %4712 = vmatprep.mubr.bf16.mxu1 %v1877_v2  ;;  %v1921_v9 = vrot.slane %v1919_v63, 4  ;;  %v1749_v11 = vrot.slane %v1526_v4, 4  ;;  %4720 = vmatprep.subr.bf16.mxu1 %v5683_v51  ;;  %v1914_v55 = vor.u32 %v1913_v3, %v1910_v57  ;;  %v5059_v4 = vld [vmem:[#allocation6 + $0x1f8] sm:$0xff]  }
 0x187   : > { %2280 = vmatprep.mubr.bf16.mxu0 %v1768_v8  ;;  %v1746_v12 = vrot.slane %v1744_v52, 4  ;;  %v1534_v13 = vshrl.u32 %v5635_v37, 16  ;;  %v1536_v14 = vshll.u32 %v5635_v37, 16  ;;  %4579 = vmatpush3.bf16.msra.mxu0 %v5055_v59  ;;  %v1541_v6 = vshll.u32 %v5685_v0, 16 }
 0x188   : > { %v1922_v18 = vor.u32 %v1921_v9, %v1918_v62  ;;  %v1750_v19 = vor.u32 %v1749_v11, %v1748_v42  ;;  %v1545_v48 = vshrl.u32 %v5685_v0, 16  ;;  %4580 = vmatprep.subr.bf16.mxu0 %v5056_v1  ;;  %v1642_v22 = vrot.slane %v5689_v26, 1  ;;  %v838_v62 = vld [vmem:[#allocation2] sm:$0xf0] }
 0x189   : > { %v1747_v15 = vor.u32 %v1746_v12, %v1743_v7  ;;  %v1538_v21 = vrot.slane %v1536_v14, 1  ;;  %v1643_v23 = vrot.slane %v1486_v5, 1  ;;  %v1543_v37 = vrot.slane %v1541_v6, 1  ;;  %v823_v7 = vld [vmem:[#allocation2 + $0x8] sm:$0xf] }
 0x18a   : > { %v1923_v24 = vsel %vm790_vm2, %v1914_v55, %v1922_v18  ;;  %v1645_v27 = vrot.slane %v5691_v41, 1  ;;  %v1646_v28 = vrot.slane %v1487_v16, 1  ;;  %v1462_v11 = vld [vmem:[#allocation2 + $0x40] sm:$0xf8]  ;;  %v856_v12 = vshrl.u32 %v838_v62, 16 }
 0x18b   : > { %4713 = vmatmul.mubr.bf16.gmra.mrb[12].mxu1 %v1923_v24  ;;  %v1751_v29 = vsel %vm790_vm2, %v1747_v15, %v1750_v19  ;;  %v1539_v30 = vor.u32 %v1538_v21, %v1534_v13  ;;  %v1644_v31 = vsel %vm991_vm9, %v1642_v22, %v1643_v23  ;;  %v1962_v25 = vshrl.u32 %v1643_v23, 16  ;;  %4581 = vmatpush3.bf16.msra.mxu0 %v5057_v17 }
 0x18c   : > { %2281 = vmatmul.mubr.bf16.gmra.mrb[24].mxu0 %v1751_v29  ;;  %v1547_v34 = vor.u32 %v1545_v48, %v1543_v37  ;;  %v1954_v35 = vshrl.u32 %v1644_v31, 16  ;;  %v1957_v36 = vshll.u32 %v1644_v31, 16  ;;  %v1965_v38 = vshll.u32 %v1643_v23, 16  ;;  %4582 = vmatprep.subr.bf16.mxu0 %v5059_v4 }
 0x18d   : > { %v1544_v39 = vsel %vm854_vm10, %v1539_v30, %v1543_v37  ;;  %v1964_v40 = vrot.slane %v1962_v25, 3  ;;  %v1647_v43 = vsel %vm991_vm9, %v1645_v27, %v1646_v28  ;;  %v2008_v44 = vshrl.u32 %v1646_v28, 16  ;;  %v5720_v27 = vld [vmem:[#allocation2 + $0x58] sm:$0xf] }
 0x18e   : > { %v1799_v45 = vshrl.u32 %v1544_v39, 16  ;;  %v1802_v46 = vshll.u32 %v1544_v39, 16  ;;  %v1807_v47 = vshrl.u32 %v1547_v34, 16  ;;  %v1810_v49 = vshll.u32 %v1547_v34, 16 }
 0x18f   : > { %v1956_v50 = vrot.slane %v1954_v35, 3  ;;  %v1959_v53 = vrot.slane %v1957_v36, 4  ;;  %v1967_v56 = vrot.slane %v1965_v38, 4  ;;  %v2000_v57 = vshrl.u32 %v1647_v43, 16  ;;  %4583 = vmatpush3.bf16.msra.mxu0 %v5060_v33  ;;  %v822_v36 = vld [vmem:[#allocation2] sm:$0xf8] }
 0x190   : > { %v1801_v58 = vrot.slane %v1799_v45, 3  ;;  %v1804_v59 = vrot.slane %v1802_v46, 4  ;;  %v1809_v60 = vrot.slane %v1807_v47, 3  ;;  %v1812_v61 = vrot.slane %v1810_v49, 4 }
 0x191   : > { %v1960_v63 = vor.u32 %v1959_v53, %v1956_v50  ;;  %v1968_v1 = vor.u32 %v1967_v56, %v1964_v40  ;;  %v2002_v2 = vrot.slane %v2000_v57, 3  ;;  %v2003_v3 = vshll.u32 %v1647_v43, 16 }
 0x192   : > { %v1805_v52 = vor.u32 %v1804_v59, %v1801_v58  ;;  %v1813_v8 = vor.u32 %v1812_v61, %v1809_v60  ;;  %v2010_v9 = vrot.slane %v2008_v44, 3  ;;  %v2011_v42 = vshll.u32 %v1646_v28, 16 }
 0x193   : > { %v1969_v5 = vsel %vm790_vm2, %v1960_v63, %v1968_v1  ;;  %v2005_v55 = vrot.slane %v2003_v3, 4  ;;  %v858_v13 = vshll.u32 %v838_v62, 16  ;;  %v863_v17 = vshll.u32 %v823_v7, 16 }
 0x194   : > { %v1814_v14 = vsel %vm790_vm2, %v1805_v52, %v1813_v8  ;;  %4716 = vmatprep.mubr.bf16.mxu1 %v1969_v5  ;;  %v2013_v16 = vrot.slane %v2011_v42, 4  ;;  %v867_v18 = vshrl.u32 %v823_v7, 16  ;;  %v1787_v15 = vshrl.u32 %v1462_v11, 16 }
 0x195   : > { %2288 = vmatprep.mubr.bf16.mxu0 %v1814_v14  ;;  %v2006_v19 = vor.u32 %v2005_v55, %v2002_v2  ;;  %v860_v4 = vrot.slane %v858_v13, 1  ;;  %v1790_v21 = vshll.u32 %v1462_v11, 16  ;;  %v865_v23 = vrot.slane %v863_v17, 1  ;;  %v839_v2 = vld [vmem:[#allocation2 + $0x10] sm:$0xf0] }
 0x196   : > { %v2014_v22 = vor.u32 %v2013_v16, %v2010_v9  ;;  %v1794_v24 = vrot.slane %v1545_v48, 3  ;;  %v1795_v37 = vrot.slane %v1541_v6, 4  ;;  %v1789_v29 = vrot.slane %v1787_v15, 3  ;;  %v5730_v9 = vld [vmem:[#allocation2 + $0x18] sm:$0xf] }
 0x197   : > { %v861_v28 = vor.u32 %v860_v4, %v856_v12  ;;  %v1792_v30 = vrot.slane %v1790_v21, 4  ;;  %v1549_v31 = vshrl.u32 %v5657_v10, 16  ;;  %v869_v33 = vor.u32 %v867_v18, %v865_v23  ;;  %v1464_v12 = vld [vmem:[#allocation2 + $0x50] sm:$0xf8]  ;;  %v5045_v21 = vld [vmem:[#allocation6 + $0x88] sm:$0xff]  }
 0x198   : > { %v2015_v25 = vsel %vm790_vm2, %v2006_v19, %v2014_v22  ;;  %v1796_v34 = vor.u32 %v1795_v37, %v1794_v24  ;;  %v1551_v35 = vshll.u32 %v5657_v10, 16  ;;  %v1556_v0 = vshll.u32 %v5720_v27, 16 }
 0x199   : > { %4717 = vmatmul.mubr.bf16.gmra.mrb[16].mxu1 %v2015_v25  ;;  %v866_v48 = vsel %vm854_vm10, %v861_v28, %v865_v23  ;;  %v1793_v38 = vor.u32 %v1792_v30, %v1789_v29  ;;  %v1560_v6 = vshrl.u32 %v5720_v27, 16  ;;  %v1037_v43 = vshrl.u32 %v869_v33, 16 }
 0x19a   : > { %v1029_v39 = vshrl.u32 %v866_v48, 16  ;;  %v1032_v40 = vshll.u32 %v866_v48, 16  ;;  %v1040_v44 = vshll.u32 %v869_v33, 16  ;;  %v1553_v46 = vrot.slane %v1551_v35, 1 }
 0x19b   : > { %v1797_v45 = vsel %vm790_vm2, %v1793_v38, %v1796_v34  ;;  %v1558_v47 = vrot.slane %v1556_v0, 1  ;;  %v1017_v49 = vshrl.u32 %v822_v36, 16  ;;  %v1039_v53 = vrot.slane %v1037_v43, 3 }
 0x19c   : > { %v1031_v50 = vrot.slane %v1029_v39, 3  ;;  %v1034_v10 = vrot.slane %v1032_v40, 4  ;;  %v1042_v56 = vrot.slane %v1040_v44, 4  ;;  %2289 = vmatmul.mubr.bf16.gmra.mrb[28].mxu0 %v1797_v45  ;;  %v1554_v57 = vor.u32 %v1553_v46, %v1549_v31  ;;  %v5736_v31 = vld [vmem:[#allocation2 + $0x68] sm:$0xf]  ;;  %v5048_v40 = vld [vmem:[#allocation6 + $0x90] sm:$0xff]  }
 0x19d   : > { %v1562_v58 = vor.u32 %v1560_v6, %v1558_v47  ;;  %v1019_v59 = vrot.slane %v1017_v49, 3  ;;  %v1020_v60 = vshll.u32 %v822_v36, 16  ;;  %v1024_v63 = vrot.slane %v867_v18, 3  ;;  %v824_v46 = vld [vmem:[#allocation2 + $0x10] sm:$0xf8] }
 0x19e   : > { %v1035_v61 = vor.u32 %v1034_v10, %v1031_v50  ;;  %v1043_v62 = vor.u32 %v1042_v56, %v1039_v53  ;;  %v1025_v1 = vrot.slane %v863_v17, 4  ;;  %v1559_v3 = vsel %vm854_vm10, %v1554_v57, %v1558_v47 }
 0x19f   : > { %v1853_v7 = vshrl.u32 %v1562_v58, 16  ;;  %v1856_v52 = vshll.u32 %v1562_v58, 16  ;;  %v1022_v8 = vrot.slane %v1020_v60, 4  ;;  %v1845_v11 = vshrl.u32 %v1559_v3, 16  ;;  %v5053_v60 = vld [vmem:[#allocation6 + $0x98] sm:$0xff]  }
 0x1a0   : > { %v1044_v42 = vsel %vm790_vm2, %v1035_v61, %v1043_v62  ;;  %v1848_v5 = vshll.u32 %v1559_v3, 16  ;;  %v1026_v55 = vor.u32 %v1025_v1, %v1024_v63  ;;  %v871_v18 = vshrl.u32 %v839_v2, 16 }
 0x1a1   : > { %2602 = vmatprep.mubr.bf16.mxu1 %v1044_v42  ;;  %v1855_v13 = vrot.slane %v1853_v7, 3  ;;  %v1858_v14 = vrot.slane %v1856_v52, 4  ;;  %v1023_v16 = vor.u32 %v1022_v8, %v1019_v59  ;;  %v1847_v17 = vrot.slane %v1845_v11, 3  ;;  %v5750_v8 = vld [vmem:[#allocation2 + $0x20] sm:$0xf0] }
 0x1a2   : > { %v1850_v19 = vrot.slane %v1848_v5, 4  ;;  %v873_v4 = vshll.u32 %v839_v2, 16  ;;  %v878_v15 = vshll.u32 %v5730_v9, 16  ;;  %v882_v24 = vshrl.u32 %v5730_v9, 16 }
 0x1a3   : > { %v1859_v22 = vor.u32 %v1858_v14, %v1855_v13  ;;  %v1027_v23 = vsel %vm790_vm2, %v1023_v16, %v1026_v55  ;;  %v1833_v37 = vshrl.u32 %v1464_v12, 16  ;;  %v1836_v30 = vshll.u32 %v1464_v12, 16  ;;  %v5058_v55 = vld [vmem:[#allocation6 + $0xa0] sm:$0xff]  }
 0x1a4   : > { %v1851_v27 = vor.u32 %v1850_v19, %v1847_v17  ;;  %2603 = vmatmul.mubr.bf16.vlgmr.msra.gmra.mrb[20].mxu1 %v1027_v23  ;;  %v875_v28 = vrot.slane %v873_v4, 1  ;;  %v880_v29 = vrot.slane %v878_v15, 1  ;;  %v1840_v33 = vrot.slane %v1560_v6, 3 }
 0x1a5   : > { %4721 = vmatpush3.bf16.msra.mxu1 %v5683_v51  ;;  %v1835_v25 = vrot.slane %v1833_v37, 3  ;;  %v1841_v34 = vrot.slane %v1556_v0, 4  ;;  %v1564_v35 = vshrl.u32 %v5659_v54, 16  ;;  %v1838_v39 = vrot.slane %v1836_v30, 4 }
 0x1a6   : > { %v1860_v36 = vsel %vm790_vm2, %v1851_v27, %v1859_v22  ;;  %v876_v48 = vor.u32 %v875_v28, %v871_v18  ;;  %v884_v38 = vor.u32 %v882_v24, %v880_v29  ;;  %4722 = vmatprep.subr.bf16.mxu1 %v5045_v21  ;;  %v1566_v44 = vshll.u32 %v5659_v54, 16  ;;  %v5753_v18 = vld [vmem:[#allocation2 + $0x28] sm:$0xf]  ;;  %v1466_v22 = vld [vmem:[#allocation2 + $0x60] sm:$0xf8] }
 0x1a7   : > { %2296 = vmatprep.mubr.bf16.mxu0 %v1860_v36  ;;  %v1842_v43 = vor.u32 %v1841_v34, %v1840_v33  ;;  %v1571_v45 = vshll.u32 %v5736_v31, 16  ;;  %v1575_v51 = vshrl.u32 %v5736_v31, 16  ;;  %v1839_v49 = vor.u32 %v1838_v39, %v1835_v25  ;;  %v826_v36 = vld [vmem:[#allocation2 + $0x20] sm:$0xf8] }
 0x1a8   : > { %v881_v0 = vsel %vm854_vm10, %v876_v48, %v880_v29  ;;  %v1083_v6 = vshrl.u32 %v884_v38, 16  ;;  %v1086_v47 = vshll.u32 %v884_v38, 16  ;;  %v1568_v53 = vrot.slane %v1566_v44, 1  ;;  %v5061_v48 = vld [vmem:[#allocation6 + $0xa8] sm:$0xff]   ;;  %v5765_v44 = vld [vmem:[#allocation2 + $0x78] sm:$0xf] }
 0x1a9   : > { %v1075_v50 = vshrl.u32 %v881_v0, 16  ;;  %v1078_v10 = vshll.u32 %v881_v0, 16  ;;  %v1573_v56 = vrot.slane %v1571_v45, 1  ;;  %4723 = vmatpush3.bf16.msra.mxu1 %v5045_v21  ;;  %v1843_v54 = vsel %vm790_vm2, %v1839_v49, %v1842_v43 }
 0x1aa   : > { %v1085_v57 = vrot.slane %v1083_v6, 3  ;;  %v1088_v58 = vrot.slane %v1086_v47, 4  ;;  %v1063_v59 = vshrl.u32 %v824_v46, 16  ;;  %4724 = vmatprep.subr.bf16.mxu1 %v5048_v40  ;;  %2297 = vmatmul.mubr.bf16.gmra.mrb[32].mxu0 %v1843_v54  ;;  %v1569_v63 = vor.u32 %v1568_v53, %v1564_v35 }
 0x1ab   : > { %v1077_v61 = vrot.slane %v1075_v50, 3  ;;  %v1080_v62 = vrot.slane %v1078_v10, 4  ;;  %v1577_v1 = vor.u32 %v1575_v51, %v1573_v56  ;;  %v1066_v7 = vshll.u32 %v824_v46, 16 }
 0x1ac   : > { %v1089_v2 = vor.u32 %v1088_v58, %v1085_v57  ;;  %v1065_v3 = vrot.slane %v1063_v59, 3  ;;  %v1070_v52 = vrot.slane %v882_v24, 3  ;;  %v1574_v42 = vsel %vm854_vm10, %v1569_v63, %v1573_v56  ;;  %v5062_v57 = vld [vmem:[#allocation6 + $0xb0] sm:$0xff]  }
 0x1ad   : > { %v1081_v9 = vor.u32 %v1080_v62, %v1077_v61  ;;  %v1899_v11 = vshrl.u32 %v1577_v1, 16  ;;  %v1902_v5 = vshll.u32 %v1577_v1, 16  ;;  %4725 = vmatpush3.bf16.msra.mxu1 %v5048_v40  ;;  %v1891_v12 = vshrl.u32 %v1574_v42, 16 }
 0x1ae   : > { %v1894_v13 = vshll.u32 %v1574_v42, 16  ;;  %v1068_v14 = vrot.slane %v1066_v7, 4  ;;  %v1071_v16 = vrot.slane %v878_v15, 4  ;;  %4726 = vmatprep.subr.bf16.mxu1 %v5053_v60  ;;  %v886_v21 = vshrl.u32 %v5750_v8, 16 }
 0x1af   : > { %v1090_v17 = vsel %vm790_vm2, %v1081_v9, %v1089_v2  ;;  %v1901_v19 = vrot.slane %v1899_v11, 3  ;;  %v1904_v4 = vrot.slane %v1902_v5, 4  ;;  %v1893_v23 = vrot.slane %v1891_v12, 3  ;;  %v5778_v5 = vld [vmem:[#allocation2 + $0x30] sm:$0xf0] }
 0x1b0   : > { %2610 = vmatprep.mubr.bf16.mxu1 %v1090_v17  ;;  %v1896_v24 = vrot.slane %v1894_v13, 4  ;;  %v1069_v37 = vor.u32 %v1068_v14, %v1065_v3  ;;  %v1072_v27 = vor.u32 %v1071_v16, %v1070_v52  ;;  %v888_v29 = vshll.u32 %v5750_v8, 16 }
 0x1b1   : > { %v1905_v28 = vor.u32 %v1904_v4, %v1901_v19  ;;  %v893_v15 = vshll.u32 %v5753_v18, 16  ;;  %v897_v30 = vshrl.u32 %v5753_v18, 16  ;;  %4727 = vmatpush3.bf16.msra.mxu1 %v5053_v60  ;;  %v1879_v34 = vshrl.u32 %v1466_v22, 16 }
 0x1b2   : > { %v1897_v25 = vor.u32 %v1896_v24, %v1893_v23  ;;  %v1073_v33 = vsel %vm790_vm2, %v1069_v37, %v1072_v27  ;;  %v1882_v35 = vshll.u32 %v1466_v22, 16  ;;  %4728 = vmatprep.subr.bf16.mxu1 %v5058_v55  ;;  %v890_v38 = vrot.slane %v888_v29, 1  ;;  %v1468_v27 = vld [vmem:[#allocation2 + $0x70] sm:$0xf8] }
 0x1b3   : > { %2611 = vmatmul.mubr.bf16.gmra.mrb[24].mxu1 %v1073_v33  ;;  %v895_v39 = vrot.slane %v893_v15, 1  ;;  %v1886_v40 = vrot.slane %v1575_v51, 3  ;;  %v1887_v43 = vrot.slane %v1571_v45, 4  ;;  %v1881_v0 = vrot.slane %v1879_v34, 3 }
 0x1b4   : > { %v1906_v46 = vsel %vm790_vm2, %v1897_v25, %v1905_v28  ;;  %v1884_v6 = vrot.slane %v1882_v35, 4  ;;  %v1579_v47 = vshrl.u32 %v5689_v26, 16  ;;  %v891_v49 = vor.u32 %v890_v38, %v886_v21  ;;  %v5781_v21 = vld [vmem:[#allocation2 + $0x38] sm:$0xf] }
 0x1b5   : > { %2304 = vmatprep.mubr.bf16.mxu0 %v1906_v46  ;;  %v899_v50 = vor.u32 %v897_v30, %v895_v39  ;;  %v1888_v10 = vor.u32 %v1887_v43, %v1886_v40  ;;  %v1581_v53 = vshll.u32 %v5689_v26, 16  ;;  %4729 = vmatpush3.bf16.msra.mxu1 %v5058_v55  ;;  %v1586_v51 = vshll.u32 %v5765_v44, 16  ;;  %v5063_v55 = vld [vmem:[#allocation6 + $0xb8] sm:$0xff]  }
 0x1b6   : > { %v1885_v56 = vor.u32 %v1884_v6, %v1881_v0  ;;  %v1590_v31 = vshrl.u32 %v5765_v44, 16  ;;  %v1109_v45 = vshrl.u32 %v826_v36, 16  ;;  %4730 = vmatprep.subr.bf16.mxu1 %v5061_v48  ;;  %v896_v58 = vsel %vm854_vm10, %v891_v49, %v895_v39 }
 0x1b7   : > { %v1129_v54 = vshrl.u32 %v899_v50, 16  ;;  %v1132_v59 = vshll.u32 %v899_v50, 16  ;;  %v1583_v60 = vrot.slane %v1581_v53, 1  ;;  %v1121_v61 = vshrl.u32 %v896_v58, 16 }
 0x1b8   : > { %v1124_v62 = vshll.u32 %v896_v58, 16  ;;  %v1889_v63 = vsel %vm790_vm2, %v1885_v56, %v1888_v10  ;;  %v1588_v26 = vrot.slane %v1586_v51, 1  ;;  %v1111_v7 = vrot.slane %v1109_v45, 3 }
 0x1b9   : > { %v1131_v1 = vrot.slane %v1129_v54, 3  ;;  %v1134_v2 = vrot.slane %v1132_v59, 4  ;;  %2305 = vmatmul.mubr.bf16.gmra.mrb[36].mxu0 %v1889_v63  ;;  %v1584_v3 = vor.u32 %v1583_v60, %v1579_v47  ;;  %4731 = vmatpush3.bf16.msra.mxu1 %v5061_v48  ;;  %v1123_v52 = vrot.slane %v1121_v61, 3  ;;  %v5791_v47 = vld [vmem:[#allocation2 + $0x88] sm:$0xf] }
 0x1ba   : > { %v1126_v9 = vrot.slane %v1124_v62, 4  ;;  %v1592_v42 = vor.u32 %v1590_v31, %v1588_v26  ;;  %v1112_v11 = vshll.u32 %v826_v36, 16  ;;  %4732 = vmatprep.subr.bf16.mxu1 %v5062_v57  ;;  %v1116_v14 = vrot.slane %v897_v30, 3  ;;  %v828_v62 = vld [vmem:[#allocation2 + $0x30] sm:$0xf8] }
 0x1bb   : > { %v1135_v12 = vor.u32 %v1134_v2, %v1131_v1  ;;  %v1589_v13 = vsel %vm854_vm10, %v1584_v3, %v1588_v26  ;;  %v1117_v16 = vrot.slane %v893_v15, 4  ;;  %v901_v37 = vshrl.u32 %v5778_v5, 16  ;;  %v5785_v15 = vld [vmem:[#allocation6 + $0x200] sm:$0xff]  }
 0x1bc   : > { %v1127_v18 = vor.u32 %v1126_v9, %v1123_v52  ;;  %v1937_v17 = vshrl.u32 %v1589_v13, 16  ;;  %v1940_v19 = vshll.u32 %v1589_v13, 16  ;;  %v1945_v4 = vshrl.u32 %v1592_v42, 16 }
 0x1bd   : > { %v1948_v22 = vshll.u32 %v1592_v42, 16  ;;  %v1114_v23 = vrot.slane %v1112_v11, 4  ;;  %v1118_v24 = vor.u32 %v1117_v16, %v1116_v14  ;;  %4733 = vmatpush3.bf16.msra.mxu1 %v5062_v57  ;;  %v903_v35 = vshll.u32 %v5778_v5, 16 }
 0x1be   : > { %v1136_v28 = vsel %vm790_vm2, %v1127_v18, %v1135_v12  ;;  %v1939_v29 = vrot.slane %v1937_v17, 3  ;;  %v1942_v25 = vrot.slane %v1940_v19, 4  ;;  %v1947_v33 = vrot.slane %v1945_v4, 3  ;;  %4734 = vmatprep.subr.bf16.mxu1 %v5063_v55  ;;  %v5805_v17 = vld [vmem:[#allocation2 + $0x40] sm:$0xf0] }
 0x1bf   : > { %2618 = vmatprep.mubr.bf16.mxu1 %v1136_v28  ;;  %v1950_v30 = vrot.slane %v1948_v22, 4  ;;  %v1115_v34 = vor.u32 %v1114_v23, %v1111_v7  ;;  %v908_v36 = vshll.u32 %v5781_v21, 16  ;;  %v912_v38 = vshrl.u32 %v5781_v21, 16  ;;  %v831_v28 = vld [vmem:[#allocation2 + $0x48] sm:$0xf] }
 0x1c0   : > { %v1943_v48 = vor.u32 %v1942_v25, %v1939_v29  ;;  %v1925_v39 = vshrl.u32 %v1468_v27, 16  ;;  %v1928_v40 = vshll.u32 %v1468_v27, 16  ;;  %v905_v0 = vrot.slane %v903_v35, 1 }
 0x1c1   : > { %v1951_v43 = vor.u32 %v1950_v30, %v1947_v33  ;;  %v1119_v46 = vsel %vm790_vm2, %v1115_v34, %v1118_v24  ;;  %v910_v6 = vrot.slane %v908_v36, 1  ;;  %4735 = vmatpush3.bf16.msra.mxu1 %v5063_v55  ;;  %v1932_v10 = vrot.slane %v1590_v31, 3  ;;  %v1470_v34 = vld [vmem:[#allocation2 + $0x80] sm:$0xf8] }
 0x1c2   : > { %2619 = vmatmul.mubr.bf16.gmra.mrb[28].mxu1 %v1119_v46  ;;  %v1927_v49 = vrot.slane %v1925_v39, 3  ;;  %v1930_v50 = vrot.slane %v1928_v40, 4  ;;  %v1933_v53 = vrot.slane %v1586_v51, 4  ;;  %4752 = vmatprep.subr.bf16.mxu1 %v5785_v15  ;;  %v906_v45 = vor.u32 %v905_v0, %v901_v37  ;;  %v2781_v0 = vld [vmem:[#allocation2 + $0x20] sm:$0xf0] }
 0x1c3   : > { %v1952_v56 = vsel %vm790_vm2, %v1943_v48, %v1951_v43  ;;  %v914_v57 = vor.u32 %v912_v38, %v910_v6  ;;  %v1594_v58 = vshrl.u32 %v5691_v41, 16  ;;  %v1596_v60 = vshll.u32 %v5691_v41, 16 }
 0x1c4   : > { %2312 = vmatprep.mubr.bf16.mxu0 %v1952_v56  ;;  %v1931_v54 = vor.u32 %v1930_v50, %v1927_v49  ;;  %v1934_v59 = vor.u32 %v1933_v53, %v1932_v10  ;;  %v1601_v61 = vshll.u32 %v5791_v47, 16  ;;  %v911_v31 = vsel %vm854_vm10, %v906_v45, %v910_v6  ;;  %v5812_v10 = vld [vmem:[#allocation2 + $0x28] sm:$0xf] }
 0x1c5   : > { %v1175_v44 = vshrl.u32 %v914_v57, 16  ;;  %v1178_v51 = vshll.u32 %v914_v57, 16  ;;  %v1605_v63 = vshrl.u32 %v5791_v47, 16  ;;  %v1167_v26 = vshrl.u32 %v911_v31, 16 }
 0x1c6   : > { %v1170_v1 = vshll.u32 %v911_v31, 16  ;;  %v1935_v2 = vsel %vm790_vm2, %v1931_v54, %v1934_v59  ;;  %v1598_v3 = vrot.slane %v1596_v60, 1  ;;  %v1603_v9 = vrot.slane %v1601_v61, 1 }
 0x1c7   : > { %v1177_v7 = vrot.slane %v1175_v44, 3  ;;  %v1180_v52 = vrot.slane %v1178_v51, 4  ;;  %2313 = vmatmul.mubr.bf16.gmra.mrb[40].mxu0 %v1935_v2  ;;  %v1155_v42 = vshrl.u32 %v828_v62, 16  ;;  %v1169_v41 = vrot.slane %v1167_v26, 3 }
 0x1c8   : > { %v1172_v11 = vrot.slane %v1170_v1, 4  ;;  %v1599_v55 = vor.u32 %v1598_v3, %v1594_v58  ;;  %v1158_v12 = vshll.u32 %v828_v62, 16  ;;  %v1607_v14 = vor.u32 %v1605_v63, %v1603_v9  ;;  %v830_v58 = vld [vmem:[#allocation2 + $0x40] sm:$0xf8] }
 0x1c9   : > { %v1181_v13 = vor.u32 %v1180_v52, %v1177_v7  ;;  %v1157_v16 = vrot.slane %v1155_v42, 3  ;;  %v1162_v18 = vrot.slane %v912_v38, 3  ;;  %v1163_v22 = vrot.slane %v908_v36, 4 }
 0x1ca   : > { %v1173_v19 = vor.u32 %v1172_v11, %v1169_v41  ;;  %v1604_v4 = vsel %vm854_vm10, %v1599_v55, %v1603_v9  ;;  %v1160_v21 = vrot.slane %v1158_v12, 4  ;;  %v1991_v37 = vshrl.u32 %v1607_v14, 16 }
 0x1cb   : > { %v1983_v23 = vshrl.u32 %v1604_v4, 16  ;;  %v1986_v24 = vshll.u32 %v1604_v4, 16  ;;  %v1994_v27 = vshll.u32 %v1607_v14, 16  ;;  %v1164_v33 = vor.u32 %v1163_v22, %v1162_v18  ;;  %v5819_v22 = vld [vmem:[#allocation2 + $0x50] sm:$0xf0] }
 0x1cc   : > { %v1182_v29 = vsel %vm790_vm2, %v1173_v19, %v1181_v13  ;;  %v1161_v25 = vor.u32 %v1160_v21, %v1157_v16  ;;  %v916_v30 = vshrl.u32 %v5805_v17, 16  ;;  %v1993_v38 = vrot.slane %v1991_v37, 3 }
 0x1cd   : > { %2626 = vmatprep.mubr.bf16.mxu1 %v1182_v29  ;;  %v1985_v35 = vrot.slane %v1983_v23, 3  ;;  %v1988_v48 = vrot.slane %v1986_v24, 4  ;;  %v1996_v39 = vrot.slane %v1994_v27, 4  ;;  %v918_v36 = vshll.u32 %v5805_v17, 16 }
 0x1ce   : > { %v1165_v40 = vsel %vm790_vm2, %v1161_v25, %v1164_v33  ;;  %v923_v43 = vshll.u32 %v831_v28, 16  ;;  %v927_v46 = vshrl.u32 %v831_v28, 16  ;;  %v1971_v49 = vshrl.u32 %v1470_v34, 16 }
 0x1cf   : > { %v1989_v6 = vor.u32 %v1988_v48, %v1985_v35  ;;  %v1997_v47 = vor.u32 %v1996_v39, %v1993_v38  ;;  %2627 = vmatmul.mubr.bf16.gmra.mrb[32].mxu1 %v1165_v40  ;;  %v1974_v50 = vshll.u32 %v1470_v34, 16  ;;  %v920_v53 = vrot.slane %v918_v36, 1  ;;  %v2765_v39 = vld [vmem:[#allocation2 + $0x20] sm:$0xf8] }
 0x1d0   : > { %v925_v56 = vrot.slane %v923_v43, 1  ;;  %v1978_v45 = vrot.slane %v1605_v63, 3  ;;  %v1979_v57 = vrot.slane %v1601_v61, 4  ;;  %v1973_v59 = vrot.slane %v1971_v49, 3 }
 0x1d1   : > { %v1998_v54 = vsel %vm790_vm2, %v1989_v6, %v1997_v47  ;;  %v1976_v60 = vrot.slane %v1974_v50, 4  ;;  %v2798_v62 = vshrl.u32 %v2781_v0, 16  ;;  %v921_v31 = vor.u32 %v920_v53, %v916_v30  ;;  %v5822_v30 = vld [vmem:[#allocation2 + $0x58] sm:$0xf] }
 0x1d2   : > { %2320 = vmatprep.mubr.bf16.mxu0 %v1998_v54  ;;  %v929_v44 = vor.u32 %v927_v46, %v925_v56  ;;  %v1980_v51 = vor.u32 %v1979_v57, %v1978_v45  ;;  %v2800_v26 = vshll.u32 %v2781_v0, 16  ;;  %v2805_v2 = vshll.u32 %v5812_v10, 16  ;;  %v2782_v45 = vld [vmem:[#allocation2 + $0x30] sm:$0xf0] }
 0x1d3   : > { %v1977_v1 = vor.u32 %v1976_v60, %v1973_v59  ;;  %v2809_v3 = vshrl.u32 %v5812_v10, 16  ;;  %v1201_v7 = vshrl.u32 %v830_v58, 16  ;;  %v926_v63 = vsel %vm854_vm10, %v921_v31, %v925_v56  ;;  %v5830_v60 = vld [vmem:[#allocation2 + $0x38] sm:$0xf] }
 0x1d4   : > { %v1221_v61 = vshrl.u32 %v929_v44, 16  ;;  %v1224_v52 = vshll.u32 %v929_v44, 16  ;;  %v2802_v9 = vrot.slane %v2800_v26, 1  ;;  %v1213_v42 = vshrl.u32 %v926_v63, 16 }
 0x1d5   : > { %v1216_v41 = vshll.u32 %v926_v63, 16  ;;  %v1981_v11 = vsel %vm790_vm2, %v1977_v1, %v1980_v51  ;;  %v2807_v55 = vrot.slane %v2805_v2, 1  ;;  %v1203_v16 = vrot.slane %v1201_v7, 3 }
 0x1d6   : > { %v1223_v12 = vrot.slane %v1221_v61, 3  ;;  %v1226_v13 = vrot.slane %v1224_v52, 4  ;;  %2321 = vmatmul.mubr.bf16.gmra.mrb[44].mxu0 %v1981_v11  ;;  %v2803_v14 = vor.u32 %v2802_v9, %v2798_v62  ;;  %v1215_v18 = vrot.slane %v1213_v42, 3 }
 0x1d7   : > { %v1218_v19 = vrot.slane %v1216_v41, 4  ;;  %v2811_v4 = vor.u32 %v2809_v3, %v2807_v55  ;;  %v1204_v21 = vshll.u32 %v830_v58, 16  ;;  %v1208_v37 = vrot.slane %v927_v46, 3  ;;  %v832_v41 = vld [vmem:[#allocation2 + $0x50] sm:$0xf8] }
 0x1d8   : > { %v1227_v23 = vor.u32 %v1226_v13, %v1223_v12  ;;  %v2808_v24 = vsel %vm854_vm10, %v2803_v14, %v2807_v55  ;;  %v1209_v27 = vrot.slane %v923_v43, 4  ;;  %v931_v38 = vshrl.u32 %v5819_v22, 16 }
 0x1d9   : > { %v1219_v28 = vor.u32 %v1218_v19, %v1215_v18  ;;  %v2970_v29 = vshrl.u32 %v2808_v24, 16  ;;  %v2973_v25 = vshll.u32 %v2808_v24, 16  ;;  %v2978_v33 = vshrl.u32 %v2811_v4, 16 }
 0x1da   : > { %v2981_v34 = vshll.u32 %v2811_v4, 16  ;;  %v1206_v35 = vrot.slane %v1204_v21, 4  ;;  %v1210_v48 = vor.u32 %v1209_v27, %v1208_v37  ;;  %v933_v47 = vshll.u32 %v5819_v22, 16 }
 0x1db   : > { %v1228_v40 = vsel %vm790_vm2, %v1219_v28, %v1227_v23  ;;  %v2972_v36 = vrot.slane %v2970_v29, 3  ;;  %v2975_v0 = vrot.slane %v2973_v25, 4  ;;  %v2980_v6 = vrot.slane %v2978_v33, 3 }
 0x1dc   : > { %2634 = vmatprep.mubr.bf16.mxu1 %v1228_v40  ;;  %v2983_v46 = vrot.slane %v2981_v34, 4  ;;  %v1207_v43 = vor.u32 %v1206_v35, %v1203_v16  ;;  %v938_v49 = vshll.u32 %v5822_v30, 16  ;;  %v942_v10 = vshrl.u32 %v5822_v30, 16  ;;  %v5837_v30 = vld [vmem:[#allocation2 + $0x60] sm:$0xf0] }
 0x1dd   : > { %v2976_v50 = vor.u32 %v2975_v0, %v2972_v36  ;;  %v2958_v53 = vshrl.u32 %v2765_v39, 16  ;;  %v2961_v56 = vshll.u32 %v2765_v39, 16  ;;  %v935_v54 = vrot.slane %v933_v47, 1 }
 0x1de   : > { %v2984_v57 = vor.u32 %v2983_v46, %v2980_v6  ;;  %v1211_v58 = vsel %vm790_vm2, %v1207_v43, %v1210_v48  ;;  %v940_v59 = vrot.slane %v938_v49, 1  ;;  %v2965_v44 = vrot.slane %v2809_v3, 3  ;;  %v835_v6 = vld [vmem:[#allocation2 + $0x68] sm:$0xf] }
 0x1df   : > { %2635 = vmatmul.mubr.bf16.gmra.mrb[36].mxu1 %v1211_v58  ;;  %v2960_v62 = vrot.slane %v2958_v53, 3  ;;  %v2963_v31 = vrot.slane %v2961_v56, 4  ;;  %v2966_v51 = vrot.slane %v2805_v2, 4  ;;  %v936_v1 = vor.u32 %v935_v54, %v931_v38  ;;  %v2767_v53 = vld [vmem:[#allocation2 + $0x30] sm:$0xf8] }
 0x1e0   : > { %v2985_v26 = vsel %vm790_vm2, %v2976_v50, %v2984_v57  ;;  %v944_v7 = vor.u32 %v942_v10, %v940_v59  ;;  %v2813_v63 = vshrl.u32 %v2782_v45, 16  ;;  %v2815_v9 = vshll.u32 %v2782_v45, 16 }
 0x1e1   : > { %3573 = vmatprep.mubr.bf16.mxu0 %v2985_v26  ;;  %v2964_v61 = vor.u32 %v2963_v31, %v2960_v62  ;;  %v2967_v52 = vor.u32 %v2966_v51, %v2965_v44  ;;  %v2820_v42 = vshll.u32 %v5830_v60, 16  ;;  %v941_v11 = vsel %vm854_vm10, %v936_v1, %v940_v59  ;;  %v5846_v26 = vld [vmem:[#allocation2 + $0x48] sm:$0xf] }
 0x1e2   : > { %v1267_v55 = vshrl.u32 %v944_v7, 16  ;;  %v1270_v12 = vshll.u32 %v944_v7, 16  ;;  %v2824_v13 = vshrl.u32 %v5830_v60, 16  ;;  %v1259_v3 = vshrl.u32 %v941_v11, 16  ;;  %v5844_v60 = vld [vmem:[#allocation2 + $0x40] sm:$0xf0] }
 0x1e3   : > { %v1262_v2 = vshll.u32 %v941_v11, 16  ;;  %v2968_v14 = vsel %vm790_vm2, %v2964_v61, %v2967_v52  ;;  %v2817_v16 = vrot.slane %v2815_v9, 1  ;;  %v2822_v4 = vrot.slane %v2820_v42, 1  ;;  %v834_v52 = vld [vmem:[#allocation2 + $0x60] sm:$0xf8] }
 0x1e4   : > { %v1269_v18 = vrot.slane %v1267_v55, 3  ;;  %v1272_v19 = vrot.slane %v1270_v12, 4  ;;  %3574 = vmatmul.mubr.bf16.vlgmr.msra.gmra.mrb[48].mxu0 %v2968_v14  ;;  %v1247_v21 = vshrl.u32 %v832_v41, 16  ;;  %v1261_v23 = vrot.slane %v1259_v3, 3 }
 0x1e5   : > { %v1264_v24 = vrot.slane %v1262_v2, 4  ;;  %v2818_v37 = vor.u32 %v2817_v16, %v2813_v63  ;;  %v1250_v27 = vshll.u32 %v832_v41, 16  ;;  %v2826_v29 = vor.u32 %v2824_v13, %v2822_v4 }
 0x1e6   : > { %v1273_v28 = vor.u32 %v1272_v19, %v1269_v18  ;;  %v1249_v25 = vrot.slane %v1247_v21, 3  ;;  %v1254_v33 = vrot.slane %v942_v10, 3  ;;  %v1255_v38 = vrot.slane %v938_v49, 4 }
 0x1e7   : > { %v1265_v34 = vor.u32 %v1264_v24, %v1261_v23  ;;  %v2823_v35 = vsel %vm854_vm10, %v2818_v37, %v2822_v4  ;;  %v1252_v48 = vrot.slane %v1250_v27, 4  ;;  %v3024_v36 = vshrl.u32 %v2826_v29, 16 }
 0x1e8   : > { %v3016_v39 = vshrl.u32 %v2823_v35, 16  ;;  %v3019_v40 = vshll.u32 %v2823_v35, 16  ;;  %v3027_v0 = vshll.u32 %v2826_v29, 16  ;;  %v1256_v47 = vor.u32 %v1255_v38, %v1254_v33 }
 0x1e9   : > { %v1274_v46 = vsel %vm790_vm2, %v1265_v34, %v1273_v28  ;;  %v1253_v43 = vor.u32 %v1252_v48, %v1249_v25  ;;  %v946_v50 = vshrl.u32 %v5837_v30, 16  ;;  %v3026_v45 = vrot.slane %v3024_v36, 3 }
 0x1ea   : > { %2642 = vmatprep.mubr.bf16.mxu1 %v1274_v46  ;;  %v3018_v10 = vrot.slane %v3016_v39, 3  ;;  %v3021_v56 = vrot.slane %v3019_v40, 4  ;;  %v3029_v57 = vrot.slane %v3027_v0, 4  ;;  %v948_v49 = vshll.u32 %v5837_v30, 16  ;;  %v5855_v40 = vld [vmem:[#allocation2 + $0x70] sm:$0xf0] }
 0x1eb   : > { %v1257_v58 = vsel %vm790_vm2, %v1253_v43, %v1256_v47  ;;  %v953_v54 = vshll.u32 %v835_v6, 16  ;;  %v957_v59 = vshrl.u32 %v835_v6, 16  ;;  %v3004_v44 = vshrl.u32 %v2767_v53, 16 }
 0x1ec   : > { %v3022_v62 = vor.u32 %v3021_v56, %v3018_v10  ;;  %v3030_v31 = vor.u32 %v3029_v57, %v3026_v45  ;;  %2643 = vmatmul.mubr.bf16.gmra.mrb[40].mxu1 %v1257_v58  ;;  %v3007_v51 = vshll.u32 %v2767_v53, 16  ;;  %v950_v1 = vrot.slane %v948_v49, 1  ;;  %v5858_v10 = vld [vmem:[#allocation2 + $0x78] sm:$0xf]  ;;  %v2769_v49 = vld [vmem:[#allocation2 + $0x40] sm:$0xf8] }
 0x1ed   : > { %v955_v7 = vrot.slane %v953_v54, 1  ;;  %v3011_v63 = vrot.slane %v2824_v13, 3  ;;  %v3012_v61 = vrot.slane %v2820_v42, 4  ;;  %v3006_v41 = vrot.slane %v3004_v44, 3 }
 0x1ee   : > { %v3031_v9 = vsel %vm790_vm2, %v3022_v62, %v3030_v31  ;;  %v3009_v11 = vrot.slane %v3007_v51, 4  ;;  %v2828_v55 = vshrl.u32 %v5844_v60, 16  ;;  %v951_v12 = vor.u32 %v950_v1, %v946_v50 }
 0x1ef   : > { %3581 = vmatprep.mubr.bf16.mxu0 %v3031_v9  ;;  %v959_v3 = vor.u32 %v957_v59, %v955_v7  ;;  %v3013_v2 = vor.u32 %v3012_v61, %v3011_v63  ;;  %v2830_v14 = vshll.u32 %v5844_v60, 16  ;;  %v2835_v18 = vshll.u32 %v5846_v26, 16  ;;  %v5865_v9 = vld [vmem:[#allocation2 + $0x50] sm:$0xf0] }
 0x1f0   : > { %v3010_v16 = vor.u32 %v3009_v11, %v3006_v41  ;;  %v2839_v19 = vshrl.u32 %v5846_v26, 16  ;;  %v1293_v13 = vshrl.u32 %v834_v52, 16  ;;  %v956_v42 = vsel %vm854_vm10, %v951_v12, %v955_v7 }
 0x1f1   : > { %v1313_v4 = vshrl.u32 %v959_v3, 16  ;;  %v1316_v21 = vshll.u32 %v959_v3, 16  ;;  %v2832_v23 = vrot.slane %v2830_v14, 1  ;;  %v1305_v24 = vshrl.u32 %v956_v42, 16  ;;  %v5868_v3 = vld [vmem:[#allocation2 + $0x58] sm:$0xf] }
 0x1f2   : > { %v1308_v37 = vshll.u32 %v956_v42, 16  ;;  %v3014_v27 = vsel %vm790_vm2, %v3010_v16, %v3013_v2  ;;  %v2837_v28 = vrot.slane %v2835_v18, 1  ;;  %v1295_v34 = vrot.slane %v1293_v13, 3 }
 0x1f3   : > { %v1315_v29 = vrot.slane %v1313_v4, 3  ;;  %v1318_v25 = vrot.slane %v1316_v21, 4  ;;  %3582 = vmatmul.mubr.bf16.gmra.mrb[52].mxu0 %v3014_v27  ;;  %v2833_v33 = vor.u32 %v2832_v23, %v2828_v55  ;;  %v1307_v35 = vrot.slane %v1305_v24, 3 }
 0x1f4   : > { %v1310_v48 = vrot.slane %v1308_v37, 4  ;;  %v2841_v38 = vor.u32 %v2839_v19, %v2837_v28  ;;  %v1296_v39 = vshll.u32 %v834_v52, 16  ;;  %v1300_v6 = vrot.slane %v957_v59, 3 }
 0x1f5   : > { %v1319_v36 = vor.u32 %v1318_v25, %v1315_v29  ;;  %v2838_v0 = vsel %vm854_vm10, %v2833_v33, %v2837_v28  ;;  %v1301_v46 = vrot.slane %v953_v54, 4  ;;  %v961_v58 = vshrl.u32 %v5855_v40, 16  ;;  %v836_v29 = vld [vmem:[#allocation2 + $0x70] sm:$0xf8] }
 0x1f6   : > { %v1311_v43 = vor.u32 %v1310_v48, %v1307_v35  ;;  %v3062_v47 = vshrl.u32 %v2838_v0, 16  ;;  %v3065_v50 = vshll.u32 %v2838_v0, 16  ;;  %v3070_v53 = vshrl.u32 %v2841_v38, 16 }
 0x1f7   : > { %v3073_v56 = vshll.u32 %v2841_v38, 16  ;;  %v1298_v45 = vrot.slane %v1296_v39, 4  ;;  %v1302_v57 = vor.u32 %v1301_v46, %v1300_v6  ;;  %v963_v26 = vshll.u32 %v5855_v40, 16 }
 0x1f8   : > { %v1320_v62 = vsel %vm790_vm2, %v1311_v43, %v1319_v36  ;;  %v3064_v31 = vrot.slane %v3062_v47, 3  ;;  %v3067_v44 = vrot.slane %v3065_v50, 4  ;;  %v3072_v51 = vrot.slane %v3070_v53, 3 }
 0x1f9   : > { %2650 = vmatprep.mubr.bf16.mxu1 %v1320_v62  ;;  %v3075_v59 = vrot.slane %v3073_v56, 4  ;;  %v1299_v54 = vor.u32 %v1298_v45, %v1295_v34  ;;  %v968_v1 = vshll.u32 %v5858_v10, 16  ;;  %v972_v63 = vshrl.u32 %v5858_v10, 16 }
 0x1fa   : > { %v3068_v7 = vor.u32 %v3067_v44, %v3064_v31  ;;  %v3050_v61 = vshrl.u32 %v2769_v49, 16  ;;  %v3053_v52 = vshll.u32 %v2769_v49, 16  ;;  %v965_v55 = vrot.slane %v963_v26, 1  ;;  %v2771_v26 = vld [vmem:[#allocation2 + $0x50] sm:$0xf8] }
 0x1fb   : > { %v3076_v41 = vor.u32 %v3075_v59, %v3072_v51  ;;  %v1303_v11 = vsel %vm790_vm2, %v1299_v54, %v1302_v57  ;;  %v970_v12 = vrot.slane %v968_v1, 1  ;;  %v3057_v16 = vrot.slane %v2839_v19, 3  ;;  %v792_v57 = vld [vmem:[#allocation2 + $0x8] sm:$0x10] }
 0x1fc   : > { %2651 = vmatmul.mubr.bf16.gmra.mrb[44].mxu1 %v1303_v11  ;;  %v3052_v2 = vrot.slane %v3050_v61, 3  ;;  %v3055_v14 = vrot.slane %v3053_v52, 4  ;;  %v3058_v13 = vrot.slane %v2835_v18, 4  ;;  %v966_v4 = vor.u32 %v965_v55, %v961_v58 }
 0x1fd   : > { %v3077_v42 = vsel %vm790_vm2, %v3068_v7, %v3076_v41  ;;  %v974_v21 = vor.u32 %v972_v63, %v970_v12  ;;  %v2843_v23 = vshrl.u32 %v5865_v9, 16  ;;  %v2845_v27 = vshll.u32 %v5865_v9, 16 }
 0x1fe   : > { %3589 = vmatprep.mubr.bf16.mxu0 %v3077_v42  ;;  %v3056_v24 = vor.u32 %v3055_v14, %v3052_v2  ;;  %v3059_v37 = vor.u32 %v3058_v13, %v3057_v16  ;;  %v2850_v28 = vshll.u32 %v5868_v3, 16  ;;  %v971_v25 = vsel %vm854_vm10, %v966_v4, %v970_v12  ;;  %v5088_v2 = vld [vmem:[#allocation2] sm:$0xf0]  ;;  %v5884_v42 = vld [vmem:[#allocation2 + $0x68] sm:$0xf] }
 0x1ff   : > { %v1359_v33 = vshrl.u32 %v974_v21, 16  ;;  %v1362_v34 = vshll.u32 %v974_v21, 16  ;;  %v2854_v18 = vshrl.u32 %v5868_v3, 16  ;;  %v1351_v19 = vshrl.u32 %v971_v25, 16  ;;  %v5881_v3 = vld [vmem:[#allocation2 + $0x60] sm:$0xf0] }
 0x200   : > { %v1354_v35 = vshll.u32 %v971_v25, 16  ;;  %v3060_v48 = vsel %vm790_vm2, %v3056_v24, %v3059_v37  ;;  %v2847_v38 = vrot.slane %v2845_v27, 1  ;;  %v2852_v0 = vrot.slane %v2850_v28, 1  ;;  %v847_v37 = vld [vmem:[#allocation2 + $0x18] sm:$0x1f] }
 0x201   : > { %v1361_v39 = vrot.slane %v1359_v33, 3  ;;  %v1364_v36 = vrot.slane %v1362_v34, 4  ;;  %3590 = vmatmul.mubr.bf16.gmra.mrb[56].mxu0 %v3060_v48  ;;  %v1339_v6 = vshrl.u32 %v836_v29, 16  ;;  %v1353_v46 = vrot.slane %v1351_v19, 3  ;;  %v848_v27 = vld [vmem:[#allocation2 + $0x28] sm:$0x1f] }
 0x202   : > { %v1356_v43 = vrot.slane %v1354_v35, 4  ;;  %v2848_v47 = vor.u32 %v2847_v38, %v2843_v23  ;;  %v1342_v50 = vshll.u32 %v836_v29, 16  ;;  %v2856_v10 = vor.u32 %v2854_v18, %v2852_v0  ;;  %v5888_v19 = vld [vmem:[#allocation2 + $0x60] sm:$0xf8] }
 0x203   : > { %v1365_v53 = vor.u32 %v1364_v36, %v1361_v39  ;;  %v1341_v56 = vrot.slane %v1339_v6, 3  ;;  %v1346_v45 = vrot.slane %v972_v63, 3  ;;  %v1347_v31 = vrot.slane %v968_v1, 4  ;;  %v5089_v36 = vld [vmem:[#allocation2 + $0x10] sm:$0xf0] }
 0x204   : > { %v1357_v58 = vor.u32 %v1356_v43, %v1353_v46  ;;  %v2853_v49 = vsel %vm854_vm10, %v2848_v47, %v2852_v0  ;;  %v1344_v62 = vrot.slane %v1342_v50, 4  ;;  %v3116_v59 = vshrl.u32 %v2856_v10, 16 }
 0x205   : > { %v3108_v44 = vshrl.u32 %v2853_v49, 16  ;;  %v3111_v51 = vshll.u32 %v2853_v49, 16  ;;  %v3119_v54 = vshll.u32 %v2856_v10, 16  ;;  %v1348_v52 = vor.u32 %v1347_v31, %v1346_v45 }
 0x206   : > { %v1366_v7 = vsel %vm790_vm2, %v1357_v58, %v1365_v53  ;;  %v1345_v61 = vor.u32 %v1344_v62, %v1341_v56  ;;  %v793_v41 = vsel %vm5534_vm3, 0, %v792_v57  ;;  %v3118_v55 = vrot.slane %v3116_v59, 3 }
 0x207   : > { %2658 = vmatprep.mubr.bf16.mxu1 %v1366_v7  ;;  %v3110_v63 = vrot.slane %v3108_v44, 3  ;;  %v3113_v11 = vrot.slane %v3111_v51, 4  ;;  %v3121_v12 = vrot.slane %v3119_v54, 4  ;;  %794 = vst [vmem:[#allocation2 + $0x8] sm:$0x10] %v793_v41  ;;  %v992_v14 = vrot.slane %v5088_v2, 1 }
 0x208   : > { %v1349_v1 = vsel %vm790_vm2, %v1345_v61, %v1348_v52  ;;  %v3096_v16 = vshrl.u32 %v2771_v26, 16  ;;  %v3099_v13 = vshll.u32 %v2771_v26, 16  ;;  %v3103_v23 = vrot.slane %v2854_v18, 3 }
 0x209   : > { %v3114_v4 = vor.u32 %v3113_v11, %v3110_v63  ;;  %v3122_v21 = vor.u32 %v3121_v12, %v3118_v55  ;;  %2659 = vmatmul.mubr.bf16.gmra.mrb[48].mxu1 %v1349_v1  ;;  %v3104_v24 = vrot.slane %v2850_v28, 4  ;;  %v2858_v33 = vshrl.u32 %v5881_v3, 16 }
 0x20a   : > { %v3098_v29 = vrot.slane %v3096_v16, 3  ;;  %v3101_v25 = vrot.slane %v3099_v13, 4  ;;  %v2860_v34 = vshll.u32 %v5881_v3, 16  ;;  %v2865_v38 = vshll.u32 %v5884_v42, 16 }
 0x20b   : > { %v3123_v35 = vsel %vm790_vm2, %v3114_v4, %v3122_v21  ;;  %v3105_v48 = vor.u32 %v3104_v24, %v3103_v23  ;;  %v2869_v39 = vshrl.u32 %v5884_v42, 16  ;;  %v995_v0 = vrot.slane %v5089_v36, 1 }
 0x20c   : > { %3597 = vmatprep.mubr.bf16.mxu0 %v3123_v35  ;;  %v3102_v18 = vor.u32 %v3101_v25, %v3098_v29  ;;  %v2862_v28 = vrot.slane %v2860_v34, 1  ;;  %v996_v6 = vrot.slane %v847_v37, 1  ;;  %v2867_v46 = vrot.slane %v2865_v38, 1 }
 0x20d   : > { %v998_v43 = vrot.slane %v5750_v8, 1  ;;  %v999_v47 = vrot.slane %v848_v27, 1  ;;  %v3142_v50 = vshrl.u32 %v5888_v19, 16 }
 0x20e   : > { %v846_v53 = vld [vmem:[#allocation2 + $0x8] sm:$0x1f]  ;;  %v3106_v10 = vsel %vm790_vm2, %v3102_v18, %v3105_v48  ;;  %v2863_v56 = vor.u32 %v2862_v28, %v2858_v33  ;;  %v997_v45 = vsel %vm991_vm9, %v995_v0, %v996_v6  ;;  %v1100_v57 = vshrl.u32 %v996_v6, 16 }
 0x20f   : > { %v993_v58 = vrot.slane %v846_v53, 1  ;;  %3598 = vmatmul.mubr.bf16.gmra.mrb[60].mxu0 %v3106_v10  ;;  %v2871_v49 = vor.u32 %v2869_v39, %v2867_v46  ;;  %v1092_v62 = vshrl.u32 %v997_v45, 16  ;;  %v1095_v31 = vshll.u32 %v997_v45, 16 }
 0x210   : > { %v2868_v44 = vsel %vm854_vm10, %v2863_v56, %v2867_v46  ;;  %v1102_v8 = vrot.slane %v1100_v57, 3  ;;  %v1103_v51 = vshll.u32 %v996_v6, 16  ;;  %v1000_v59 = vsel %vm991_vm9, %v998_v43, %v999_v47  ;;  %v5905_v46 = vld [vmem:[#allocation2 + $0x70] sm:$0xf0]  ;;  %v5065_v56 = vld [vmem:[#allocation6 + $0x208] sm:$0xff]  }
 0x211   : > { %v994_v54 = vsel %vm991_vm9, %v992_v14, %v993_v58  ;;  %v1054_v26 = vshrl.u32 %v993_v58, 16  ;;  %v1057_v7 = vshll.u32 %v993_v58, 16  ;;  %v3154_v61 = vshrl.u32 %v2868_v44, 16  ;;  %v5908_v57 = vld [vmem:[#allocation2 + $0x78] sm:$0xf] }
 0x212   : > { %v1046_v52 = vshrl.u32 %v994_v54, 16  ;;  %v1049_v41 = vshll.u32 %v994_v54, 16  ;;  %v3157_v63 = vshll.u32 %v2868_v44, 16  ;;  %v3162_v11 = vshrl.u32 %v2871_v49, 16 }
 0x213   : > { %v1056_v55 = vrot.slane %v1054_v26, 3  ;;  %v1059_v12 = vrot.slane %v1057_v7, 4  ;;  %v3156_v1 = vrot.slane %v3154_v61, 3  ;;  %v3165_v2 = vshll.u32 %v2871_v49, 16  ;;  %v5066_v61 = vld [vmem:[#allocation6 + $0x210] sm:$0xff]  }
 0x214   : > { %v1048_v16 = vrot.slane %v1046_v52, 3  ;;  %v1051_v13 = vrot.slane %v1049_v41, 4  ;;  %v3159_v4 = vrot.slane %v3157_v63, 4  ;;  %v3164_v21 = vrot.slane %v3162_v11, 3 }
 0x215   : > { %v1060_v23 = vor.u32 %v1059_v12, %v1056_v55  ;;  %v3167_v24 = vrot.slane %v3165_v2, 4  ;;  %v1094_v37 = vrot.slane %v1092_v62, 3  ;;  %v1097_v27 = vrot.slane %v1095_v31, 4  ;;  %v849_v31 = vld [vmem:[#allocation2 + $0x38] sm:$0x1f] }
 0x216   : > { %v1052_v14 = vor.u32 %v1051_v13, %v1048_v16  ;;  %v3160_v29 = vor.u32 %v3159_v4, %v3156_v1  ;;  %v1105_v25 = vrot.slane %v1103_v51, 4  ;;  %v1138_v33 = vshrl.u32 %v1000_v59, 16 }
 0x217   : > { %v3168_v34 = vor.u32 %v3167_v24, %v3164_v21  ;;  %v1098_v35 = vor.u32 %v1097_v27, %v1094_v37  ;;  %v1141_v48 = vshll.u32 %v1000_v59, 16  ;;  %v1146_v18 = vshrl.u32 %v999_v47, 16  ;;  %v5067_v37 = vld [vmem:[#allocation6 + $0x218] sm:$0xff]  }
 0x218   : > { %v1061_v28 = vsel %vm790_vm2, %v1052_v14, %v1060_v23  ;;  %v1106_v36 = vor.u32 %v1105_v25, %v1102_v8  ;;  %v1140_v0 = vrot.slane %v1138_v33, 3  ;;  %v1149_v6 = vshll.u32 %v999_v47, 16 }
 0x219   : > { %4736 = vmatprep.mubr.bf16.mxu1 %v1061_v28  ;;  %v3169_v43 = vsel %vm790_vm2, %v3160_v29, %v3168_v34  ;;  %v1143_v53 = vrot.slane %v1141_v48, 4  ;;  %v1148_v10 = vrot.slane %v1146_v18, 3  ;;  %v3144_v45 = vrot.slane %v3142_v50, 3  ;;  %v2775_v18 = vld [vmem:[#allocation2 + $0x70] sm:$0xf8] }
 0x21a   : > { %3605 = vmatprep.mubr.bf16.mxu0 %v3169_v43  ;;  %v1107_v58 = vsel %vm790_vm2, %v1098_v35, %v1106_v36  ;;  %v1151_v49 = vrot.slane %v1149_v6, 4  ;;  %v3145_v62 = vshll.u32 %v5888_v19, 16  ;;  %v3149_v47 = vrot.slane %v2869_v39, 3 }
 0x21b   : > { %4737 = vmatmul.mubr.bf16.vlgmr.msra.gmra.mrb[4].mxu1 %v1107_v58  ;;  %v1144_v44 = vor.u32 %v1143_v53, %v1140_v0  ;;  %v3150_v8 = vrot.slane %v2865_v38, 4  ;;  %v2873_v51 = vshrl.u32 %v5905_v46, 16  ;;  %v2875_v50 = vshll.u32 %v5905_v46, 16 }
 0x21c   : > { %4753 = vmatpush3.bf16.msra.mxu1 %v5785_v15  ;;  %v1152_v59 = vor.u32 %v1151_v49, %v1148_v10  ;;  %v3147_v54 = vrot.slane %v3145_v62, 4  ;;  %v2880_v26 = vshll.u32 %v5908_v57, 16  ;;  %v2884_v19 = vshrl.u32 %v5908_v57, 16  ;;  %v850_v15 = vld [vmem:[#allocation2 + $0x48] sm:$0x1f] }
 0x21d   : > { %4754 = vmatprep.subr.bf16.mxu1 %v5065_v56  ;;  %v3151_v39 = vor.u32 %v3150_v8, %v3149_v47  ;;  %v2877_v7 = vrot.slane %v2875_v50, 1  ;;  %v1001_v52 = vrot.slane %v5778_v5, 1  ;;  %v1002_v42 = vrot.slane %v849_v31, 1  ;;  %v5932_v47 = vld [vmem:[#allocation2 + $0x80] sm:$0xf0] }
 0x21e   : > { %v1153_v38 = vsel %vm790_vm2, %v1144_v44, %v1152_v59  ;;  %v3148_v41 = vor.u32 %v3147_v54, %v3144_v45  ;;  %v2882_v63 = vrot.slane %v2880_v26, 1  ;;  %v1004_v11 = vrot.slane %v5805_v17, 1  ;;  %v5068_v31 = vld [vmem:[#allocation6 + $0x220] sm:$0xff]   ;;  %v5935_v59 = vld [vmem:[#allocation2 + $0x88] sm:$0xf] }
 0x21f   : > { %4740 = vmatprep.mubr.bf16.mxu1 %v1153_v38  ;;  %v2878_v55 = vor.u32 %v2877_v7, %v2873_v51  ;;  %v1003_v12 = vsel %vm991_vm9, %v1001_v52, %v1002_v42  ;;  %v1192_v1 = vshrl.u32 %v1002_v42, 16  ;;  %v1195_v2 = vshll.u32 %v1002_v42, 16  ;;  %v851_v52 = vld [vmem:[#allocation2 + $0x58] sm:$0x1f] }
 0x220   : > { %v3152_v16 = vsel %vm790_vm2, %v3148_v41, %v3151_v39  ;;  %4755 = vmatpush3.bf16.msra.mxu1 %v5065_v56  ;;  %v2886_v5 = vor.u32 %v2884_v19, %v2882_v63  ;;  %v1184_v13 = vshrl.u32 %v1003_v12, 16  ;;  %v1187_v4 = vshll.u32 %v1003_v12, 16 }
 0x221   : > { %3606 = vmatmul.mubr.bf16.gmra.mrb[64].mxu0 %v3152_v16  ;;  %v2883_v21 = vsel %vm854_vm10, %v2878_v55, %v2882_v63  ;;  %4756 = vmatprep.subr.bf16.mxu1 %v5066_v61  ;;  %v1194_v23 = vrot.slane %v1192_v1, 3  ;;  %v1197_v17 = vrot.slane %v1195_v2, 4  ;;  %v1005_v24 = vrot.slane %v850_v15, 1  ;;  %v5069_v1 = vld [vmem:[#allocation6 + $0x228] sm:$0xff]  }
 0x222   : > { %v3200_v27 = vshrl.u32 %v2883_v21, 16  ;;  %v3203_v14 = vshll.u32 %v2883_v21, 16  ;;  %v3208_v29 = vshrl.u32 %v2886_v5, 16  ;;  %v3211_v25 = vshll.u32 %v2886_v5, 16  ;;  %v852_v21 = vld [vmem:[#allocation2 + $0x68] sm:$0x1f] }
 0x223   : > { %v1186_v33 = vrot.slane %v1184_v13, 3  ;;  %v1189_v34 = vrot.slane %v1187_v4, 4  ;;  %v1198_v35 = vor.u32 %v1197_v17, %v1194_v23  ;;  %v1006_v48 = vsel %vm991_vm9, %v1004_v11, %v1005_v24 }
 0x224   : > { %v3202_v28 = vrot.slane %v3200_v27, 3  ;;  %v3205_v36 = vrot.slane %v3203_v14, 4  ;;  %v3210_v0 = vrot.slane %v3208_v29, 3  ;;  %v3213_v6 = vrot.slane %v3211_v25, 4  ;;  %4757 = vmatpush3.bf16.msra.mxu1 %v5066_v61  ;;  %v5070_v25 = vld [vmem:[#allocation6 + $0x230] sm:$0xff]  }
 0x225   : > { %v1190_v43 = vor.u32 %v1189_v34, %v1186_v33  ;;  %v1230_v53 = vshrl.u32 %v1006_v48, 16  ;;  %v1233_v10 = vshll.u32 %v1006_v48, 16  ;;  %v1238_v56 = vshrl.u32 %v1005_v24, 16  ;;  %4758 = vmatprep.subr.bf16.mxu1 %v5067_v37 }
 0x226   : > { %v3206_v45 = vor.u32 %v3205_v36, %v3202_v28  ;;  %v3214_v58 = vor.u32 %v3213_v6, %v3210_v0  ;;  %v1241_v49 = vshll.u32 %v1005_v24, 16  ;;  %v3188_v62 = vshrl.u32 %v2775_v18, 16 }
 0x227   : > { %v1199_v44 = vsel %vm790_vm2, %v1190_v43, %v1198_v35  ;;  %v1232_v8 = vrot.slane %v1230_v53, 3  ;;  %v1235_v51 = vrot.slane %v1233_v10, 4  ;;  %v1240_v50 = vrot.slane %v1238_v56, 3 }
 0x228   : > { %v3215_v54 = vsel %vm790_vm2, %v3206_v45, %v3214_v58  ;;  %4741 = vmatmul.mubr.bf16.gmra.mrb[8].mxu1 %v1199_v44  ;;  %v1243_v39 = vrot.slane %v1241_v49, 4  ;;  %v3190_v7 = vrot.slane %v3188_v62, 3  ;;  %v3191_v61 = vshll.u32 %v2775_v18, 16  ;;  %v2777_v49 = vld [vmem:[#allocation2 + $0x80] sm:$0xf8]  ;;  %v5071_v62 = vld [vmem:[#allocation6 + $0x238] sm:$0xff]  }
 0x229   : > { %3613 = vmatprep.mubr.bf16.mxu0 %v3215_v54  ;;  %v1236_v42 = vor.u32 %v1235_v51, %v1232_v8  ;;  %v3195_v38 = vrot.slane %v2884_v19, 3  ;;  %v3196_v41 = vrot.slane %v2880_v26, 4  ;;  %4759 = vmatpush3.bf16.msra.mxu1 %v5067_v37  ;;  %v2888_v63 = vshrl.u32 %v5932_v47, 16 }
 0x22a   : > { %v1244_v15 = vor.u32 %v1243_v39, %v1240_v50  ;;  %v3193_v11 = vrot.slane %v3191_v61, 4  ;;  %v2890_v55 = vshll.u32 %v5932_v47, 16  ;;  %v2895_v12 = vshll.u32 %v5935_v59, 16  ;;  %4760 = vmatprep.subr.bf16.mxu1 %v5068_v31 }
 0x22b   : > { %v3197_v2 = vor.u32 %v3196_v41, %v3195_v38  ;;  %v2899_v16 = vshrl.u32 %v5935_v59, 16  ;;  %v1007_v5 = vrot.slane %v5819_v22, 1  ;;  %v1008_v19 = vrot.slane %v851_v52, 1  ;;  %v5956_v41 = vld [vmem:[#allocation2 + $0x90] sm:$0xf0] }
 0x22c   : > { %v1245_v57 = vsel %vm790_vm2, %v1236_v42, %v1244_v15  ;;  %v3194_v26 = vor.u32 %v3193_v11, %v3190_v7  ;;  %v2892_v13 = vrot.slane %v2890_v55, 1  ;;  %v2897_v4 = vrot.slane %v2895_v12, 1 }
 0x22d   : > { %4744 = vmatprep.mubr.bf16.mxu1 %v1245_v57  ;;  %v1009_v23 = vsel %vm991_vm9, %v1007_v5, %v1008_v19  ;;  %v1284_v17 = vshrl.u32 %v1008_v19, 16  ;;  %v1287_v24 = vshll.u32 %v1008_v19, 16  ;;  %4761 = vmatpush3.bf16.msra.mxu1 %v5068_v31  ;;  %v1010_v37 = vrot.slane %v5837_v30, 1 }
 0x22e   : > { %v3198_v27 = vsel %vm790_vm2, %v3194_v26, %v3197_v2  ;;  %v2893_v22 = vor.u32 %v2892_v13, %v2888_v63  ;;  %v2901_v14 = vor.u32 %v2899_v16, %v2897_v4  ;;  %v1276_v29 = vshrl.u32 %v1009_v23, 16  ;;  %4762 = vmatprep.subr.bf16.mxu1 %v5069_v1  ;;  %v853_v26 = vld [vmem:[#allocation2 + $0x78] sm:$0x1f] }
 0x22f   : > { %3614 = vmatmul.mubr.bf16.gmra.mrb[68].mxu0 %v3198_v27  ;;  %v1279_v33 = vshll.u32 %v1009_v23, 16  ;;  %v1286_v34 = vrot.slane %v1284_v17, 3  ;;  %v1289_v35 = vrot.slane %v1287_v24, 4  ;;  %v1011_v48 = vrot.slane %v852_v21, 1  ;;  %v2789_v17 = vld [vmem:[#allocation2 + $0x28] sm:$0x1f] }
 0x230   : > { %v2898_v18 = vsel %vm854_vm10, %v2893_v22, %v2897_v4  ;;  %v3254_v28 = vshrl.u32 %v2901_v14, 16  ;;  %v3257_v36 = vshll.u32 %v2901_v14, 16  ;;  %v1278_v0 = vrot.slane %v1276_v29, 3 }
 0x231   : > { %v3246_v6 = vshrl.u32 %v2898_v18, 16  ;;  %v3249_v43 = vshll.u32 %v2898_v18, 16  ;;  %v1281_v30 = vrot.slane %v1279_v33, 4  ;;  %v1290_v53 = vor.u32 %v1289_v35, %v1286_v34  ;;  %4763 = vmatpush3.bf16.msra.mxu1 %v5069_v1  ;;  %v5958_v1 = vld [vmem:[#allocation2 + $0x98] sm:$0xf] }
 0x232   : > { %v3256_v10 = vrot.slane %v3254_v28, 3  ;;  %v3259_v56 = vrot.slane %v3257_v36, 4  ;;  %v1012_v45 = vsel %vm991_vm9, %v1010_v37, %v1011_v48  ;;  %v1330_v58 = vshrl.u32 %v1011_v48, 16  ;;  %4764 = vmatprep.subr.bf16.mxu1 %v5070_v25  ;;  %v5090_v33 = vld [vmem:[#allocation2 + $0x20] sm:$0xf0] }
 0x233   : > { %v3248_v31 = vrot.slane %v3246_v6, 3  ;;  %v3251_v44 = vrot.slane %v3249_v43, 4  ;;  %v1282_v8 = vor.u32 %v1281_v30, %v1278_v0  ;;  %v1322_v51 = vshrl.u32 %v1012_v45, 16 }
 0x234   : > { %v3260_v50 = vor.u32 %v3259_v56, %v3256_v10  ;;  %v1325_v54 = vshll.u32 %v1012_v45, 16  ;;  %v1332_v39 = vrot.slane %v1330_v58, 3  ;;  %v1333_v7 = vshll.u32 %v1011_v48, 16 }
 0x235   : > { %v3252_v61 = vor.u32 %v3251_v44, %v3248_v31  ;;  %v1291_v52 = vsel %vm790_vm2, %v1282_v8, %v1290_v53  ;;  %v1324_v42 = vrot.slane %v1322_v51, 3  ;;  %v3234_v38 = vshrl.u32 %v2777_v49, 16  ;;  %4765 = vmatpush3.bf16.msra.mxu1 %v5070_v25 }
 0x236   : > { %4745 = vmatmul.mubr.bf16.gmra.mrb[12].mxu1 %v1291_v52  ;;  %v1327_v63 = vrot.slane %v1325_v54, 4  ;;  %v1335_v15 = vrot.slane %v1333_v7, 4  ;;  %v3237_v11 = vshll.u32 %v2777_v49, 16  ;;  %v3241_v55 = vrot.slane %v2899_v16, 3  ;;  %4766 = vmatprep.subr.bf16.mxu1 %v5071_v62  ;;  %v786_v16 = vld [vmem:[#allocation2 + $0x90] sm:$0x8] }
 0x237   : > { %v3261_v2 = vsel %vm790_vm2, %v3252_v61, %v3260_v50  ;;  %v3236_v5 = vrot.slane %v3234_v38, 3  ;;  %v3242_v19 = vrot.slane %v2895_v12, 4  ;;  %v2903_v57 = vshrl.u32 %v5956_v41, 16 }
 0x238   : > { %3621 = vmatprep.mubr.bf16.mxu0 %v3261_v2  ;;  %v1328_v13 = vor.u32 %v1327_v63, %v1324_v42  ;;  %v1336_v4 = vor.u32 %v1335_v15, %v1332_v39  ;;  %v3239_v21 = vrot.slane %v3237_v11, 4  ;;  %v2905_v23 = vshll.u32 %v5956_v41, 16  ;;  %v2791_v2 = vld [vmem:[#allocation2 + $0x48] sm:$0x1f] }
 0x239   : > { %v3243_v24 = vor.u32 %v3242_v19, %v3241_v55  ;;  %v2910_v37 = vshll.u32 %v5958_v1, 16  ;;  %v2914_v27 = vshrl.u32 %v5958_v1, 16  ;;  %v1013_v22 = vrot.slane %v5855_v40, 1  ;;  %4767 = vmatpush3.bf16.msra.mxu1 %v5071_v62 }
 0x23a   : > { %v1337_v59 = vsel %vm790_vm2, %v1328_v13, %v1336_v4  ;;  %v3240_v12 = vor.u32 %v3239_v21, %v3236_v5  ;;  %v2907_v14 = vrot.slane %v2905_v23, 1  ;;  %v1014_v29 = vrot.slane %v853_v26, 1  ;;  %v2790_v13 = vld [vmem:[#allocation2 + $0x38] sm:$0x1f] }
 0x23b   : > { %4748 = vmatprep.mubr.bf16.mxu1 %v1337_v59  ;;  %v2912_v25 = vrot.slane %v2910_v37, 1  ;;  %v2933_v34 = vrot.slane %v5090_v33, 1  ;;  %v2934_v35 = vrot.slane %v2789_v17, 1  ;;  %v787_v48 = vsel %vm5542_vm6, 0, %v786_v16 }
 0x23c   : > { %v3244_v18 = vsel %vm790_vm2, %v3240_v12, %v3243_v24  ;;  %v2908_v28 = vor.u32 %v2907_v14, %v2903_v57  ;;  %v1015_v36 = vsel %vm991_vm9, %v1013_v22, %v1014_v29  ;;  %v1376_v40 = vshrl.u32 %v1014_v29, 16  ;;  %788 = vst [vmem:[#allocation2 + $0x90] sm:$0x8] %v787_v48  ;;  %v2792_v24 = vld [vmem:[#allocation2 + $0x58] sm:$0x1f] }
 0x23d   : > { %3622 = vmatmul.mubr.bf16.gmra.mrb[72].mxu0 %v3244_v18  ;;  %v2916_v0 = vor.u32 %v2914_v27, %v2912_v25  ;;  %v1368_v6 = vshrl.u32 %v1015_v36, 16  ;;  %v1371_v43 = vshll.u32 %v1015_v36, 16  ;;  %v1379_v30 = vshll.u32 %v1014_v29, 16  ;;  %v5091_v29 = vld [vmem:[#allocation2 + $0x30] sm:$0xf0] }
 0x23e   : > { %v2913_v53 = vsel %vm854_vm10, %v2908_v28, %v2912_v25  ;;  %v1378_v10 = vrot.slane %v1376_v40, 3  ;;  %v2935_v56 = vsel %vm991_vm9, %v2933_v34, %v2934_v35  ;;  %v2995_v45 = vshrl.u32 %v2934_v35, 16  ;;  %v5072_v34 = vld [vmem:[%s6273_s4] sm:$0xff]  }
 0x23f   : > { %v3292_v32 = vshrl.u32 %v2913_v53, 16  ;;  %v3295_v58 = vshll.u32 %v2913_v53, 16  ;;  %v3300_v49 = vshrl.u32 %v2916_v0, 16  ;;  %v3303_v62 = vshll.u32 %v2916_v0, 16  ;;  %4784 = vmatprep.subr.bf16.mxu0 %v5072_v34 }
 0x240   : > { %v1370_v31 = vrot.slane %v1368_v6, 3  ;;  %v1373_v44 = vrot.slane %v1371_v43, 4  ;;  %v1381_v8 = vrot.slane %v1379_v30, 4  ;;  %v2987_v51 = vshrl.u32 %v2935_v56, 16  ;;  %4785 = vmatpush3.bf16.msra.mxu0 %v5072_v34 }
 0x241   : > { %v3294_v50 = vrot.slane %v3292_v32, 3  ;;  %v3297_v54 = vrot.slane %v3295_v58, 4  ;;  %v3302_v39 = vrot.slane %v3300_v49, 3  ;;  %v3305_v7 = vrot.slane %v3303_v62, 4 }
 0x242   : > { %v1374_v61 = vor.u32 %v1373_v44, %v1370_v31  ;;  %v1382_v52 = vor.u32 %v1381_v8, %v1378_v10  ;;  %v2989_v42 = vrot.slane %v2987_v51, 3  ;;  %v2990_v38 = vshll.u32 %v2935_v56, 16 }
 0x243   : > { %v3298_v63 = vor.u32 %v3297_v54, %v3294_v50  ;;  %v3306_v15 = vor.u32 %v3305_v7, %v3302_v39  ;;  %v2997_v11 = vrot.slane %v2995_v45, 3  ;;  %v2998_v55 = vshll.u32 %v2934_v35, 16  ;;  %v2779_v1 = vld [vmem:[#allocation2 + $0x90] sm:$0xf8] }
 0x244   : > { %v1383_v5 = vsel %vm790_vm2, %v1374_v61, %v1382_v52  ;;  %v2992_v19 = vrot.slane %v2990_v38, 4  ;;  %v3280_v57 = vshrl.u32 %v2779_v1, 16  ;;  %v3283_v26 = vshll.u32 %v2779_v1, 16  ;;  %v5976_v4 = vpop.f32.mrb[16].mxu0  ;;  %v2793_v38 = vld [vmem:[#allocation2 + $0x68] sm:$0x1f] }
 0x245   : > { %v3307_v21 = vsel %vm790_vm2, %v3298_v63, %v3306_v15  ;;  %4749 = vmatmul.mubr.bf16.gmra.mrb[16].mxu1 %v1383_v5  ;;  %v3000_v23 = vrot.slane %v2998_v55, 4  ;;  %v3287_v17 = vrot.slane %v2914_v27, 3  ;;  %v3288_v16 = vrot.slane %v2910_v37, 4  ;;  %v5979_v22 = vpop.f32.mrb[17].mxu0  ;;  %v2794_v1 = vld [vmem:[#allocation2 + $0x78] sm:$0x1f] }
 0x246   : > { %3629 = vmatprep.mubr.bf16.mxu0 %v3307_v21  ;;  %v2993_v59 = vor.u32 %v2992_v19, %v2989_v42  ;;  %v3282_v12 = vrot.slane %v3280_v57, 3  ;;  %v3285_v14 = vrot.slane %v3283_v26, 4  ;;  %v2936_v25 = vrot.slane %v5091_v29, 1  ;;  %v5981_v33 = vpop.f32.mrb[18].mxu0 }
 0x247   : > { %v3001_v35 = vor.u32 %v3000_v23, %v2997_v11  ;;  %v3289_v48 = vor.u32 %v3288_v16, %v3287_v17  ;;  %v2937_v18 = vrot.slane %v2790_v13, 1  ;;  %v2939_v37 = vrot.slane %v5844_v60, 1  ;;  %v5987_v27 = vpop.f32.mrb[19].mxu0 }
 0x248   : > { %v3286_v28 = vor.u32 %v3285_v14, %v3282_v12  ;;  %v2940_v36 = vrot.slane %v2791_v2, 1  ;;  %v2942_v40 = vrot.slane %v5865_v9, 1  ;;  %v2943_v0 = vrot.slane %v2792_v24, 1 }
 0x249   : > { %v3002_v6 = vsel %vm790_vm2, %v2993_v59, %v3001_v35  ;;  %v2938_v43 = vsel %vm991_vm9, %v2936_v25, %v2937_v18  ;;  %v3041_v30 = vshrl.u32 %v2937_v18, 16  ;;  %v3044_v53 = vshll.u32 %v2937_v18, 16 }
 0x24a   : > { %4768 = vmatprep.mubr.bf16.mxu1 %v3002_v6  ;;  %v3290_v10 = vsel %vm790_vm2, %v3286_v28, %v3289_v48  ;;  %v3033_v56 = vshrl.u32 %v2938_v43, 16  ;;  %v3036_v60 = vshll.u32 %v2938_v43, 16  ;;  %v2941_v45 = vsel %vm991_vm9, %v2939_v37, %v2940_v36  ;;  %v819_v43 = vld [vmem:[#allocation2 + $0x98] sm:$0x10] }
 0x24b   : > { %3630 = vmatmul.mubr.bf16.gmra.mrb[76].mxu0 %v3290_v10  ;;  %v3043_v32 = vrot.slane %v3041_v30, 3  ;;  %v3046_v58 = vrot.slane %v3044_v53, 4  ;;  %v3079_v9 = vshrl.u32 %v2941_v45, 16  ;;  %v3082_v49 = vshll.u32 %v2941_v45, 16  ;;  %v5073_v30 = vld [vmem:[%s6273_s4 + $0x8] sm:$0xff]  }
 0x24c   : > { %v3035_v62 = vrot.slane %v3033_v56, 3  ;;  %v3038_v31 = vrot.slane %v3036_v60, 4  ;;  %v3087_v44 = vshrl.u32 %v2940_v36, 16  ;;  %v3090_v8 = vshll.u32 %v2940_v36, 16  ;;  %v2795_v36 = vld [vmem:[#allocation2 + $0x88] sm:$0x1f]  ;;  %4786 = vmatprep.subr.bf16.mxu0 %v5073_v30 }
 0x24d   : > { %v3047_v51 = vor.u32 %v3046_v58, %v3043_v32  ;;  %v3081_v50 = vrot.slane %v3079_v9, 3  ;;  %v3084_v54 = vrot.slane %v3082_v49, 4  ;;  %v2944_v39 = vsel %vm991_vm9, %v2942_v40, %v2943_v0  ;;  %4787 = vmatpush3.bf16.msra.mxu0 %v5073_v30 }
 0x24e   : > { %v3039_v7 = vor.u32 %v3038_v31, %v3035_v62  ;;  %v3089_v61 = vrot.slane %v3087_v44, 3  ;;  %v3092_v52 = vrot.slane %v3090_v8, 4  ;;  %v3125_v42 = vshrl.u32 %v2944_v39, 16 }
 0x24f   : > { %v3085_v63 = vor.u32 %v3084_v54, %v3081_v50  ;;  %v3128_v15 = vshll.u32 %v2944_v39, 16  ;;  %v3133_v11 = vshrl.u32 %v2943_v0, 16  ;;  %v3136_v55 = vshll.u32 %v2943_v0, 16 }
 0x250   : > { %v3048_v2 = vsel %vm790_vm2, %v3039_v7, %v3047_v51  ;;  %v3093_v5 = vor.u32 %v3092_v52, %v3089_v61  ;;  %v3127_v19 = vrot.slane %v3125_v42, 3  ;;  %v2945_v57 = vrot.slane %v5881_v3, 1  ;;  %v4430_v17 = vpop.f32.mrb[20].mxu0 }
 0x251   : > { %4769 = vmatmul.mubr.bf16.vlgmr.msra.gmra.mrb[4].mxu1 %v3048_v2  ;;  %v3130_v26 = vrot.slane %v3128_v15, 4  ;;  %v3135_v13 = vrot.slane %v3133_v11, 3  ;;  %v3138_v21 = vrot.slane %v3136_v55, 4  ;;  %v2946_v23 = vrot.slane %v2793_v38, 1  ;;  %v4431_v14 = vpop.f32.mrb[21].mxu0 }
 0x252   : > { %v3094_v16 = vsel %vm790_vm2, %v3085_v63, %v3093_v5  ;;  %v2948_v24 = vrot.slane %v5905_v46, 1  ;;  %v2949_v59 = vrot.slane %v2794_v1, 1  ;;  %v2951_v12 = vrot.slane %v5932_v47, 1  ;;  %v4433_v35 = vpop.f32.mrb[22].mxu0 }
 0x253   : > { %4772 = vmatprep.mubr.bf16.mxu1 %v3094_v16  ;;  %v3131_v29 = vor.u32 %v3130_v26, %v3127_v19  ;;  %v3139_v25 = vor.u32 %v3138_v21, %v3135_v13  ;;  %v2947_v34 = vsel %vm991_vm9, %v2945_v57, %v2946_v23  ;;  %v3179_v3 = vshrl.u32 %v2946_v23, 16  ;;  %v4434_v40 = vpop.f32.mrb[23].mxu0 }
 0x254   : > { %v3171_v48 = vshrl.u32 %v2947_v34, 16  ;;  %v3174_v18 = vshll.u32 %v2947_v34, 16  ;;  %v3182_v37 = vshll.u32 %v2946_v23, 16  ;;  %v2950_v28 = vsel %vm991_vm9, %v2948_v24, %v2949_v59 }
 0x255   : > { %v3140_v46 = vsel %vm790_vm2, %v3131_v29, %v3139_v25  ;;  %v3181_v0 = vrot.slane %v3179_v3, 3  ;;  %v3217_v6 = vshrl.u32 %v2950_v28, 16  ;;  %v3220_v47 = vshll.u32 %v2950_v28, 16 }
 0x256   : > { %v3173_v53 = vrot.slane %v3171_v48, 3  ;;  %v3176_v10 = vrot.slane %v3174_v18, 4  ;;  %v3184_v56 = vrot.slane %v3182_v37, 4  ;;  %v3225_v60 = vshrl.u32 %v2949_v59, 16 }
 0x257   : > { %v3219_v45 = vrot.slane %v3217_v6, 3  ;;  %v3222_v32 = vrot.slane %v3220_v47, 4  ;;  %v3228_v58 = vshll.u32 %v2949_v59, 16  ;;  %v2952_v9 = vrot.slane %v2795_v36, 1  ;;  %v5075_v47 = vld [vmem:[%s6273_s4 + $0x18] sm:$0xff]  }
 0x258   : > { %v3177_v49 = vor.u32 %v3176_v10, %v3173_v53  ;;  %v3185_v62 = vor.u32 %v3184_v56, %v3181_v0  ;;  %v3227_v31 = vrot.slane %v3225_v60, 3  ;;  %v820_v44 = vsel %vm5534_vm3, 0, %v819_v43 }
 0x259   : > { %4773 = vmatmul.mubr.bf16.gmra.mrb[8].mxu1 %v3140_v46  ;;  %v3230_v8 = vrot.slane %v3228_v58, 4  ;;  %v2953_v51 = vsel %vm991_vm9, %v2951_v12, %v2952_v9  ;;  %v3271_v50 = vshrl.u32 %v2952_v9, 16  ;;  %821 = vst [vmem:[#allocation2 + $0x98] sm:$0x10] %v820_v44  ;;  %v3274_v61 = vshll.u32 %v2952_v9, 16 }
 0x25a   : > { %v3186_v54 = vsel %vm790_vm2, %v3177_v49, %v3185_v62  ;;  %v3263_v39 = vshrl.u32 %v2953_v51, 16  ;;  %v3266_v7 = vshll.u32 %v2953_v51, 16  ;;  %v3223_v52 = vor.u32 %v3222_v32, %v3219_v45 }
 0x25b   : > { %4776 = vmatprep.mubr.bf16.mxu1 %v3186_v54  ;;  %v3231_v42 = vor.u32 %v3230_v8, %v3227_v31  ;;  %v3273_v38 = vrot.slane %v3271_v50, 3  ;;  %v4426_v20 = vadd.f32 %v5979_v22, %v5976_v4  ;;  %v3276_v11 = vrot.slane %v3274_v61, 4  ;;  %v5076_v8 = vld [vmem:[%s6273_s4 + $0x20] sm:$0xff]  }
 0x25c   : > { %v3265_v63 = vrot.slane %v3263_v39, 3  ;;  %v3268_v15 = vrot.slane %v3266_v7, 4  ;;  %v4429_v55 = vadd.f32 %v5987_v27, %v5981_v33  ;;  %v6014_v1 = vadd.f32 %v4431_v14, %v4430_v17  ;;  %v5074_v17 = vld [vmem:[%s6273_s4 + $0x10] sm:$0xff]  }
 0x25d   : > { %v6016_v2 = vadd.f32 %v4434_v40, %v4433_v35  ;;  %v3277_v19 = vor.u32 %v3276_v11, %v3273_v38  ;;  %v2954_v57 = vrot.slane %v5956_v41, 1  ;;  %v3232_v13 = vsel %vm790_vm2, %v3223_v52, %v3231_v42  ;;  %4788 = vmatprep.subr.bf16.mxu0 %v5074_v17 }
 0x25e   : > { %v3269_v5 = vor.u32 %v3268_v15, %v3265_v63  ;;  %4789 = vmatpush3.bf16.msra.mxu0 %v5074_v17 }
 0x25f   : > { %v4436_v26 = vpop.f32.mrb[24].mxu0  ;;  %4790 = vmatprep.subr.bf16.mxu0 %v5075_v47 }
 0x260   : > { %v2796_v21 = vld [vmem:[#allocation2 + $0x98] sm:$0x1f]  ;;  %v4437_v23 = vpop.f32.mrb[25].mxu0  ;;  %v3278_v4 = vsel %vm790_vm2, %v3269_v5, %v3277_v19  ;;  %v5077_v5 = vld [vmem:[%s6273_s4 + $0x28] sm:$0xff]  }
 0x261   : > { %4777 = vmatmul.mubr.bf16.gmra.mrb[12].mxu1 %v3232_v13  ;;  %v2955_v22 = vrot.slane %v2796_v21, 1  ;;  %v6021_v16 = vadd.f32 %v4437_v23, %v4436_v26  ;;  %v4439_v33 = vpop.f32.mrb[26].mxu0 }
 0x262   : > { %4780 = vmatprep.mubr.bf16.mxu1 %v3278_v4  ;;  %v4440_v27 = vpop.f32.mrb[27].mxu0  ;;  %4791 = vmatpush3.bf16.msra.mxu0 %v5075_v47 }
 0x263   : > { %v2956_v41 = vsel %vm991_vm9, %v2954_v57, %v2955_v22  ;;  %v3317_v24 = vshrl.u32 %v2955_v22, 16  ;;  %v3320_v59 = vshll.u32 %v2955_v22, 16  ;;  %v6027_v12 = vadd.f32 %v4440_v27, %v4439_v33  ;;  %4792 = vmatprep.subr.bf16.mxu0 %v5076_v8 }
 0x264   : > { %v3309_v14 = vshrl.u32 %v2956_v41, 16  ;;  %v3312_v29 = vshll.u32 %v2956_v41, 16 }
 0x265   : > { %v3319_v25 = vrot.slane %v3317_v24, 3  ;;  %v3322_v34 = vrot.slane %v3320_v59, 4  ;;  %v5078_v24 = vld [vmem:[%s6273_s4 + $0x30] sm:$0xff]  }
 0x266   : > { %v3311_v3 = vrot.slane %v3309_v14, 3  ;;  %v3314_v35 = vrot.slane %v3312_v29, 4  ;;  %4793 = vmatpush3.bf16.msra.mxu0 %v5076_v8 }
 0x267   : > { %v3323_v48 = vor.u32 %v3322_v34, %v3319_v25  ;;  %4794 = vmatprep.subr.bf16.mxu0 %v5077_v5 }
 0x268   : > { %v3315_v18 = vor.u32 %v3314_v35, %v3311_v3 }
 0x26a   : > { %v3324_v37 = vsel %vm790_vm2, %v3315_v18, %v3323_v48  ;;  %4795 = vmatpush3.bf16.msra.mxu0 %v5077_v5 }
 0x26b   : > { %4781 = vmatmul.mubr.bf16.gmra.mrb[16].mxu1 %v3324_v37  ;;  %4796 = vmatprep.subr.bf16.mxu0 %v5078_v24 }
 0x26e   : > { %4797 = vmatpush3.bf16.msra.mxu0 %v5078_v24 }
 0x26f   : > { %v4442_v28 = vpop.f32.mrb[28].mxu0 }
 0x270   : > { %v4443_v36 = vpop.f32.mrb[29].mxu0 }
 0x271   : > { %v6030_v40 = vadd.f32 %v4443_v36, %v4442_v28  ;;  %v4445_v46 = vpop.f32.mrb[30].mxu0 }
 0x272   : > { %v4446_v0 = vpop.f32.mrb[31].mxu0 }
 0x273   : > { %v4447_v6 = vadd.f32 %v4446_v0, %v4445_v46  ;;  %v5079_v46 = vld [vmem:[%s6273_s4 + $0x38] sm:$0xff]  }
 0x274   : > { %4798 = vmatprep.subr.bf16.mxu0 %v5079_v46 }
 0x275   : > { %4799 = vmatpush3.bf16.msra.mxu0 %v5079_v46 }
 0x277   : > { %v4504_v43 = vpop.f32.mrb[20].mxu1 }
 0x278   : > { %v4505_v30 = vpop.f32.mrb[21].mxu1 }
 0x279   : > { %v4506_v53 = vadd.f32 %v4505_v30, %v4504_v43  ;;  %v4507_v10 = vpop.f32.mrb[22].mxu1 }
 0x27a   : > { %v4508_v56 = vpop.f32.mrb[23].mxu1 }
 0x27b   : > { %v6035_v60 = vadd.f32 %v4506_v53, %v4426_v20  ;;  %v4509_v45 = vadd.f32 %v4508_v56, %v4507_v10 }
 0x27d   : > { %v6037_v32 = vadd.f32 %v4509_v45, %v4429_v55  ;;  %v4448_v58 = vpop.f32.mrb[32].mxu0 }
 0x27e   : > { %v4449_v9 = vpop.f32.mrb[33].mxu0 }
 0x27f   : > { %v6039_v49 = vadd.f32 %v4449_v9, %v4448_v58  ;;  %v4451_v62 = vpop.f32.mrb[34].mxu0 }
 0x280   : > { %v4452_v31 = vpop.f32.mrb[35].mxu0 }
 0x281   : > { %v6041_v44 = vadd.f32 %v4452_v31, %v4451_v62 }
 0x286   : > { %v4510_v51 = vpop.f32.mrb[24].mxu1 }
 0x287   : > { %v4511_v50 = vpop.f32.mrb[25].mxu1 }
 0x288   : > { %v4512_v54 = vadd.f32 %v4511_v50, %v4510_v51  ;;  %v4513_v39 = vpop.f32.mrb[26].mxu1 }
 0x289   : > { %v4514_v7 = vpop.f32.mrb[27].mxu1 }
 0x28a   : > { %v6047_v61 = vadd.f32 %v4512_v54, %v6014_v1  ;;  %v4515_v52 = vadd.f32 %v4514_v7, %v4513_v39 }
 0x28c   : > { %v6050_v42 = vadd.f32 %v4515_v52, %v6016_v2  ;;  %v4454_v38 = vpop.f32.mrb[36].mxu0 }
 0x28d   : > { %v4455_v20 = vpop.f32.mrb[37].mxu0 }
 0x28e   : > { %v4456_v63 = vadd.f32 %v4455_v20, %v4454_v38  ;;  %v4457_v15 = vpop.f32.mrb[38].mxu0 }
 0x28f   : > { %v4458_v11 = vpop.f32.mrb[39].mxu0 }
 0x290   : > { %v4459_v55 = vadd.f32 %v4458_v11, %v4457_v15 }
 0x295   : > { %v4516_v19 = vpop.f32.mrb[28].mxu1 }
 0x296   : > { %v4517_v57 = vpop.f32.mrb[29].mxu1 }
 0x297   : > { %v4518_v1 = vadd.f32 %v4517_v57, %v4516_v19  ;;  %v4519_v26 = vpop.f32.mrb[30].mxu1 }
 0x298   : > { %v4520_v13 = vpop.f32.mrb[31].mxu1 }
 0x299   : > { %v6056_v2 = vadd.f32 %v4518_v1, %v6021_v16  ;;  %v4521_v21 = vadd.f32 %v4520_v13, %v4519_v26 }
 0x29a   : > { %v4460_v23 = vpop.f32.mrb[40].mxu0 }
 0x29b   : > { %v6059_v4 = vadd.f32 %v4521_v21, %v6027_v12  ;;  %v4461_v22 = vpop.f32.mrb[41].mxu0 }
 0x29c   : > { %v4462_v33 = vadd.f32 %v4461_v22, %v4460_v23  ;;  %v4463_v27 = vpop.f32.mrb[42].mxu0 }
 0x29d   : > { %v4464_v17 = vpop.f32.mrb[43].mxu0 }
 0x29e   : > { %v4465_v41 = vadd.f32 %v4464_v17, %v4463_v27 }
 0x2a2   : > { %v4522_v59 = vpop.f32.mrb[32].mxu1 }
 0x2a3   : > { %v4523_v14 = vpop.f32.mrb[33].mxu1 }
 0x2a4   : > { %v4524_v16 = vadd.f32 %v4523_v14, %v4522_v59  ;;  %v4525_v29 = vpop.f32.mrb[34].mxu1 }
 0x2a5   : > { %v4526_v25 = vpop.f32.mrb[35].mxu1 }
 0x2a6   : > { %v6065_v34 = vadd.f32 %v4524_v16, %v6030_v40  ;;  %v4527_v12 = vadd.f32 %v4526_v25, %v4525_v29 }
 0x2a8   : > { %v6067_v3 = vadd.f32 %v4527_v12, %v4447_v6 }
 0x2a9   : > { %v4466_v35 = vpop.f32.mrb[44].mxu0 }
 0x2aa   : > { %v4467_v48 = vpop.f32.mrb[45].mxu0 }
 0x2ab   : > { %v4468_v18 = vadd.f32 %v4467_v48, %v4466_v35  ;;  %v4469_v37 = vpop.f32.mrb[46].mxu0 }
 0x2ac   : > { %v4470_v28 = vpop.f32.mrb[47].mxu0 }
 0x2ad   : > { %v4471_v36 = vadd.f32 %v4470_v28, %v4469_v37 }
 0x2b2   : > { %v4528_v0 = vpop.f32.mrb[36].mxu1 }
 0x2b3   : > { %v4529_v47 = vpop.f32.mrb[37].mxu1 }
 0x2b4   : > { %v4530_v43 = vadd.f32 %v4529_v47, %v4528_v0  ;;  %v4531_v40 = vpop.f32.mrb[38].mxu1 }
 0x2b5   : > { %v4532_v30 = vpop.f32.mrb[39].mxu1 }
 0x2b6   : > { %v6073_v6 = vadd.f32 %v4530_v43, %v6039_v49  ;;  %v4533_v53 = vadd.f32 %v4532_v30, %v4531_v40 }
 0x2b7   : > { %v4584_v10 = vpop.f32.mrb[48].mxu0 }
 0x2b8   : > { %v6076_v56 = vadd.f32 %v4533_v53, %v6041_v44  ;;  %v4585_v45 = vpop.f32.mrb[49].mxu0 }
 0x2b9   : > { %v4586_v58 = vadd.f32 %v4585_v45, %v4584_v10  ;;  %v4587_v9 = vpop.f32.mrb[50].mxu0 }
 0x2ba   : > { %v4588_v62 = vpop.f32.mrb[51].mxu0 }
 0x2bb   : > { %v4589_v31 = vadd.f32 %v4588_v62, %v4587_v9  ;;  %v6079_v8 = vadd.f32 %v6035_v60, %v4586_v58 }
 0x2bd   : > { %v6082_v51 = vadd.f32 %v6037_v32, %v4589_v31 }
 0x2bf   : > { %v4534_v50 = vpop.f32.mrb[40].mxu1 }
 0x2c0   : > { %v4535_v54 = vpop.f32.mrb[41].mxu1 }
 0x2c1   : > { %v4536_v49 = vadd.f32 %v4535_v54, %v4534_v50  ;;  %v4537_v39 = vpop.f32.mrb[42].mxu1 }
 0x2c2   : > { %v4538_v7 = vpop.f32.mrb[43].mxu1 }
 0x2c3   : > { %v4840_v52 = vadd.f32 %v4536_v49, %v4456_v63  ;;  %v4539_v38 = vadd.f32 %v4538_v7, %v4537_v39 }
 0x2c5   : > { %v4846_v44 = vadd.f32 %v4539_v38, %v4459_v55 }
 0x2c6   : > { %v4590_v20 = vpop.f32.mrb[52].mxu0 }
 0x2c7   : > { %v4591_v15 = vpop.f32.mrb[53].mxu0 }
 0x2c8   : > { %v4592_v11 = vadd.f32 %v4591_v15, %v4590_v20  ;;  %v4593_v5 = vpop.f32.mrb[54].mxu0 }
 0x2c9   : > { %v4594_v19 = vpop.f32.mrb[55].mxu0 }
 0x2ca   : > { %v4595_v57 = vadd.f32 %v4594_v19, %v4593_v5  ;;  %v6085_v60 = vadd.f32 %v6047_v61, %v4592_v11 }
 0x2cc   : > { %v6088_v32 = vadd.f32 %v6050_v42, %v4595_v57 }
 0x2cf   : > { %v4540_v1 = vpop.f32.mrb[44].mxu1 }
 0x2d0   : > { %v4541_v26 = vpop.f32.mrb[45].mxu1 }
 0x2d1   : > { %v4542_v13 = vadd.f32 %v4541_v26, %v4540_v1  ;;  %v4543_v21 = vpop.f32.mrb[46].mxu1 }
 0x2d2   : > { %v4544_v23 = vpop.f32.mrb[47].mxu1 }
 0x2d3   : > { %v4855_v63 = vadd.f32 %v4542_v13, %v4462_v33  ;;  %v4545_v22 = vadd.f32 %v4544_v23, %v4543_v21 }
 0x2d4   : > { %v4596_v55 = vpop.f32.mrb[56].mxu0 }
 0x2d5   : > { %v4861_v27 = vadd.f32 %v4545_v22, %v4465_v41  ;;  %v4597_v17 = vpop.f32.mrb[57].mxu0 }
 0x2d6   : > { %v4598_v24 = vadd.f32 %v4597_v17, %v4596_v55  ;;  %v4599_v59 = vpop.f32.mrb[58].mxu0 }
 0x2d7   : > { %v4600_v14 = vpop.f32.mrb[59].mxu0 }
 0x2d8   : > { %v4601_v16 = vadd.f32 %v4600_v14, %v4599_v59  ;;  %v6091_v61 = vadd.f32 %v6056_v2, %v4598_v24 }
 0x2da   : > { %v6094_v42 = vadd.f32 %v6059_v4, %v4601_v16 }
 0x2dc   : > { %v4546_v29 = vpop.f32.mrb[48].mxu1 }
 0x2dd   : > { %v4547_v25 = vpop.f32.mrb[49].mxu1 }
 0x2de   : > { %v4548_v12 = vadd.f32 %v4547_v25, %v4546_v29  ;;  %v4549_v35 = vpop.f32.mrb[50].mxu1 }
 0x2df   : > { %v4550_v48 = vpop.f32.mrb[51].mxu1 }
 0x2e0   : > { %v4852_v33 = vadd.f32 %v4548_v12, %v4468_v18  ;;  %v4551_v37 = vadd.f32 %v4550_v48, %v4549_v35 }
 0x2e2   : > { %v4858_v28 = vadd.f32 %v4551_v37, %v4471_v36  ;;  %v4602_v41 = vpop.f32.mrb[60].mxu0 }
 0x2e3   : > { %v4603_v46 = vpop.f32.mrb[61].mxu0 }
 0x2e4   : > { %v4604_v0 = vadd.f32 %v4603_v46, %v4602_v41  ;;  %v4605_v47 = vpop.f32.mrb[62].mxu0 }
 0x2e5   : > { %v4606_v43 = vpop.f32.mrb[63].mxu0 }
 0x2e6   : > { %v4607_v40 = vadd.f32 %v4606_v43, %v4605_v47  ;;  %v4829_v2 = vadd.f32 %v6065_v34, %v4604_v0 }
 0x2e8   : > { %v4835_v30 = vadd.f32 %v6067_v3, %v4607_v40 }
 0x2f4   : > { %v4608_v4 = vpop.f32.mrb[64].mxu0 }
 0x2f5   : > { %v4609_v53 = vpop.f32.mrb[65].mxu0 }
 0x2f6   : > { %v4610_v10 = vadd.f32 %v4609_v53, %v4608_v4  ;;  %v4611_v45 = vpop.f32.mrb[66].mxu0 }
 0x2f7   : > { %v4612_v58 = vpop.f32.mrb[67].mxu0 }
 0x2f8   : > { %v4613_v9 = vadd.f32 %v4612_v58, %v4611_v45  ;;  %v6099_v18 = vadd.f32 %v6073_v6, %v4610_v10 }
 0x2fa   : > { %v6102_v36 = vadd.f32 %v6076_v56, %v4613_v9 }
 0x302   : > { %v4614_v62 = vpop.f32.mrb[68].mxu0 }
 0x303   : > { %v4615_v31 = vpop.f32.mrb[69].mxu0 }
 0x304   : > { %v4616_v50 = vadd.f32 %v4615_v31, %v4614_v62  ;;  %v4617_v54 = vpop.f32.mrb[70].mxu0 }
 0x305   : > { %v4618_v49 = vpop.f32.mrb[71].mxu0 }
 0x306   : > { %v4619_v34 = vadd.f32 %v4618_v49, %v4617_v54  ;;  %v4841_v39 = vadd.f32 %v4840_v52, %v4616_v50  ;;  %v6111_v52 = vld [vmem:[%s6326_s19] ss:$0 sm:$0xff] }
 0x308   : > { %v4847_v3 = vadd.f32 %v4846_v44, %v4619_v34 }
 0x310   : > { %v4620_v7 = vpop.f32.mrb[72].mxu0 }
 0x311   : > { %v4621_v38 = vpop.f32.mrb[73].mxu0 }
 0x312   : > { %v4622_v20 = vadd.f32 %v4621_v38, %v4620_v7  ;;  %v4623_v15 = vpop.f32.mrb[74].mxu0 }
 0x313   : > { %v4624_v11 = vpop.f32.mrb[75].mxu0 }
 0x314   : > { %v4625_v5 = vadd.f32 %v4624_v11, %v4623_v15  ;;  %v6104_v19 = vadd.f32 %v4855_v63, %v4622_v20 }
 0x316   : > { %v6106_v6 = vadd.f32 %v4861_v27, %v4625_v5 }
 0x31e   : > { %v4626_v56 = vpop.f32.mrb[76].mxu0 }
 0x31f   : > { %v4627_v57 = vpop.f32.mrb[77].mxu0 }
 0x320   : > { %v4628_v1 = vadd.f32 %v4627_v57, %v4626_v56  ;;  %v4629_v26 = vpop.f32.mrb[78].mxu0 }
 0x321   : > { %v4630_v13 = vpop.f32.mrb[79].mxu0 }
 0x322   : > { %v4631_v21 = vadd.f32 %v4630_v13, %v4629_v26  ;;  %v4853_v23 = vadd.f32 %v4852_v33, %v4628_v1 }
 0x324   : > { %v4770_v22 = vpop.f32.mrb[4].mxu1  ;;  %v6113_v44 = vadd.f32 %v4858_v28, %v4631_v21 }
 0x325   : > { %v4818_v63 = vadd.f32 %v6085_v60, %v4770_v22  ;;  %v3672_v55 = vpop.f32.mrb[5].mxu1 }
 0x326   : > { %v4821_v27 = vadd.f32 %v6079_v8, %v3672_v55  ;;  %v4771_v17 = vpop.f32.mrb[6].mxu1 }
 0x327   : > { %v3760_v24 = vadd.f32 %v4818_v63, %v6111_v52  ;;  %v4824_v59 = vadd.f32 %v6088_v32, %v4771_v17  ;;  %v3675_v14 = vpop.f32.mrb[7].mxu1 }
 0x328   : > { %v3758_v16 = vadd.f32 %v4821_v27, %v6111_v52  ;;  %v4827_v29 = vadd.f32 %v6082_v51, %v3675_v14 }
 0x329   : > { %v3761_v25 = vadd.f32 %v4824_v59, %v6111_v52  ;;  %v3776_v35 = vmax.f32 %v3760_v24, 0.0 }
 0x32a   : > { %v3759_v12 = vadd.f32 %v4827_v29, %v6111_v52  ;;  %v3774_v60 = vmax.f32 %v3758_v16, 0.0 }
 0x32b   : > { %v3777_v48 = vmax.f32 %v3761_v25, 0.0 }
 0x32c   : > { %v3775_v33 = vmax.f32 %v3759_v12, 0.0  ;;  %v4774_v37 = vpop.f32.mrb[8].mxu1  ;;  %v5092_v12 = vld [vmem:[%s5496_s6 + $0x8] sm:$0xff]  }
 0x32d   : > { %v3791_v8 = vpack.c.bf16 %v3777_v48, %v3776_v35  ;;  %v4830_v28 = vadd.f32 %v4829_v2, %v4774_v37  ;;  %v3688_v41 = vpop.f32.mrb[9].mxu1  ;;  %v3968_v35 = vunpack.c.l.bf16 %v5092_v12  ;;  %v3969_v37 = vunpack.c.h.bf16 %v5092_v12 }
 0x32e   : > { %v4833_v46 = vadd.f32 %v6091_v61, %v3688_v41  ;;  %v4775_v32 = vpop.f32.mrb[10].mxu1  ;;  %v3790_v0 = vpack.c.bf16 %v3775_v33, %v3774_v60 }
 0x32f   : > { %v3764_v47 = vadd.f32 %v4830_v28, %v6111_v52  ;;  %v4836_v43 = vadd.f32 %v4835_v30, %v4775_v32  ;;  %v3691_v51 = vpop.f32.mrb[11].mxu1 }
 0x330   : > { %v3762_v40 = vadd.f32 %v4833_v46, %v6111_v52  ;;  %v4839_v4 = vadd.f32 %v6094_v42, %v3691_v51  ;;  %4800 = vmatprep.mubr.bf16.mxu0 %v3790_v0 }
 0x331   : > { %v3765_v53 = vadd.f32 %v4836_v43, %v6111_v52  ;;  %4801 = vmatmul.mubr.bf16.vlgmr.msra.gmra.mrb[80].mxu0 %v3791_v8  ;;  %v3780_v2 = vmax.f32 %v3764_v47, 0.0 }
 0x332   : > { %v3763_v10 = vadd.f32 %v4839_v4, %v6111_v52  ;;  %v3778_v58 = vmax.f32 %v3762_v40, 0.0 }
 0x333   : > { %v3781_v45 = vmax.f32 %v3765_v53, 0.0 }
 0x334   : > { %v3779_v61 = vmax.f32 %v3763_v10, 0.0  ;;  %v4778_v9 = vpop.f32.mrb[12].mxu1 }
 0x335   : > { %v4842_v62 = vadd.f32 %v4841_v39, %v4778_v9  ;;  %v3704_v31 = vpop.f32.mrb[13].mxu1  ;;  %v3793_v50 = vpack.c.bf16 %v3781_v45, %v3780_v2  ;;  %v5094_v45 = vld [vmem:[%s5496_s6 + $0x18] sm:$0xff]  }
 0x336   : > { %v4845_v30 = vadd.f32 %v6099_v18, %v3704_v31  ;;  %v4779_v54 = vpop.f32.mrb[14].mxu1  ;;  %v3792_v49 = vpack.c.bf16 %v3779_v61, %v3778_v58  ;;  %v3972_v58 = vunpack.c.l.bf16 %v5094_v45  ;;  %v5095_v31 = vld [vmem:[%s5496_s6 + $0x10] sm:$0xff]  }
 0x337   : > { %v3768_v42 = vadd.f32 %v4842_v62, %v6111_v52  ;;  %v4848_v34 = vadd.f32 %v4847_v3, %v4779_v54  ;;  %v3707_v7 = vpop.f32.mrb[15].mxu1 }
 0x338   : > { %v3766_v38 = vadd.f32 %v4845_v30, %v6111_v52  ;;  %v4851_v20 = vadd.f32 %v6102_v36, %v3707_v7  ;;  %4804 = vmatprep.mubr.bf16.mxu0 %v3792_v49 }
 0x339   : > { %v3769_v15 = vadd.f32 %v4848_v34, %v6111_v52  ;;  %4805 = vmatmul.mubr.bf16.gmra.mrb[84].mxu0 %v3793_v50  ;;  %v3784_v11 = vmax.f32 %v3768_v42, 0.0  ;;  %v3970_v50 = vunpack.c.l.bf16 %v5095_v31  ;;  %v3973_v42 = vunpack.c.h.bf16 %v5094_v45 }
 0x33a   : > { %v3767_v39 = vadd.f32 %v4851_v20, %v6111_v52  ;;  %v3782_v56 = vmax.f32 %v3766_v38, 0.0  ;;  %v3971_v20 = vunpack.c.h.bf16 %v5095_v31 }
 0x33b   : > { %v3785_v5 = vmax.f32 %v3769_v15, 0.0 }
 0x33c   : > { %v3783_v18 = vmax.f32 %v3767_v39, 0.0 }
 0x33d   : > { %v3795_v57 = vpack.c.bf16 %v3785_v5, %v3784_v11 }
 0x33e   : > { %v4782_v1 = vpop.f32.mrb[16].mxu1  ;;  %v3794_v26 = vpack.c.bf16 %v3783_v18, %v3782_v56 }
 0x33f   : > { %v4854_v13 = vadd.f32 %v4853_v23, %v4782_v1  ;;  %v3720_v3 = vpop.f32.mrb[17].mxu1 }
 0x340   : > { %v4857_v21 = vadd.f32 %v6104_v19, %v3720_v3  ;;  %v4783_v22 = vpop.f32.mrb[18].mxu1  ;;  %4808 = vmatprep.mubr.bf16.mxu0 %v3794_v26 }
 0x341   : > { %v3772_v36 = vadd.f32 %v4854_v13, %v6111_v52  ;;  %v4860_v63 = vadd.f32 %v6113_v44, %v4783_v22  ;;  %v3723_v55 = vpop.f32.mrb[19].mxu1  ;;  %4809 = vmatmul.mubr.bf16.gmra.mrb[88].mxu0 %v3795_v57  ;;  %v6145_v44 = vld [vmem:[%s6327_s3] ss:$0 sm:$0xff] }
 0x342   : > { %v3770_v27 = vadd.f32 %v4857_v21, %v6111_v52  ;;  %v4863_v17 = vadd.f32 %v6106_v6, %v3723_v55  ;;  %v5093_v6 = vld [vmem:[%s5496_s6] sm:$0xff]   ;;  %v5096_v21 = vld [vmem:[%s5496_s6 + $0x28] sm:$0xff]  }
 0x343   : > { %v3773_v24 = vadd.f32 %v4860_v63, %v6111_v52  ;;  %v3788_v59 = vmax.f32 %v3772_v36, 0.0  ;;  %v3966_v48 = vunpack.c.l.bf16 %v5093_v6  ;;  %v3967_v8 = vunpack.c.h.bf16 %v5093_v6 }
 0x344   : > { %v3771_v23 = vadd.f32 %v4863_v17, %v6111_v52  ;;  %v3786_v14 = vmax.f32 %v3770_v27, 0.0  ;;  %v3976_v22 = vunpack.c.l.bf16 %v5096_v21  ;;  %v5097_v27 = vld [vmem:[%s5496_s6 + $0x20] sm:$0xff]  }
 0x345   : > { %v3789_v19 = vmax.f32 %v3773_v24, 0.0  ;;  %v3974_v17 = vunpack.c.l.bf16 %v5097_v27 }
 0x346   : > { %v3787_v16 = vmax.f32 %v3771_v23, 0.0 }
 0x347   : > { %v3797_v29 = vpack.c.bf16 %v3789_v19, %v3788_v59  ;;  %v3977_v19 = vunpack.c.h.bf16 %v5096_v21 }
 0x348   : > { %v3796_v25 = vpack.c.bf16 %v3787_v16, %v3786_v14 }
 0x34a   : > { %4812 = vmatprep.mubr.bf16.mxu0 %v3796_v25  ;;  %v3975_v25 = vunpack.c.h.bf16 %v5097_v27 }
 0x34b   : > { %4813 = vmatmul.mubr.bf16.gmra.mrb[92].mxu0 %v3797_v29 }
 0x404   : > { %v4802_v60 = vpop.f32.mrb[80].mxu0 }
 0x405   : > { %v3912_v52 = vadd.f32 %v4802_v60, %v6145_v44  ;;  %v3903_v33 = vpop.f32.mrb[81].mxu0 }
 0x406   : > { %v3904_v28 = vadd.f32 %v6145_v44, %v3903_v33  ;;  %v4803_v41 = vpop.f32.mrb[82].mxu0 }
 0x407   : > { %v3984_v46 = vadd.f32 %v3968_v35, %v3912_v52  ;;  %v3915_v32 = vadd.f32 %v4803_v41, %v6145_v44  ;;  %v3906_v0 = vpop.f32.mrb[83].mxu0 }
 0x408   : > { %v3982_v47 = vadd.f32 %v3966_v48, %v3904_v28  ;;  %v3907_v43 = vadd.f32 %v6145_v44, %v3906_v0 }
 0x409   : > { %v4000_v51 = vmax.f32 %v3984_v46, 0.0  ;;  %v3985_v40 = vadd.f32 %v3969_v37, %v3915_v32 }
 0x40a   : > { %v3998_v4 = vmax.f32 %v3982_v47, 0.0  ;;  %v3983_v53 = vadd.f32 %v3967_v8, %v3907_v43  ;;  %v5098_v47 = vld [vmem:[%s5496_s6 + $0x38] sm:$0xff]  }
 0x40b   : > { %v4381_v10 = vpack.c.bf16 %v4000_v51, %v4000_v51  ;;  %v4001_v2 = vmax.f32 %v3985_v40, 0.0  ;;  %v3980_v43 = vunpack.c.l.bf16 %v5098_v47  ;;  %v3981_v45 = vunpack.c.h.bf16 %v5098_v47 }
 0x40c   : > { %v4379_v61 = vpack.c.bf16 %v3998_v4, %v3998_v4  ;;  %v3999_v9 = vmax.f32 %v3983_v53, 0.0  ;;  %v4806_v62 = vpop.f32.mrb[84].mxu0  ;;  %v5099_v4 = vld [vmem:[%s5496_s6 + $0x30] sm:$0xff]   ;;  %s4109_s6 = sadd.s32 %s4395_s26, %s4374_s7 }
 0x40d   : > { %4081 = vst.msk [vmem:[%s6157_s13 + $0x8] sm:$0xf] %vm4078_vm11, %v4381_v10  ;;  %v4382_v30 = vpack.c.bf16 %v4001_v2, %v4001_v2  ;;  %v3928_v54 = vadd.f32 %v4806_v62, %v6145_v44  ;;  %v3919_v49 = vpop.f32.mrb[85].mxu0  ;;  %v3978_v53 = vunpack.c.l.bf16 %v5099_v4  ;;  %s4375_s15 = sshll.u32 %s4109_s6, 6 }
 0x40e   : > { %4079 = vst.msk [vmem:[%s6157_s13] sm:$0xf] %vm4078_vm11, %v4379_v61  ;;  %v4380_v34 = vpack.c.bf16 %v3999_v9, %v3999_v9  ;;  %v3920_v7 = vadd.f32 %v6145_v44, %v3919_v49  ;;  %v4807_v38 = vpop.f32.mrb[86].mxu0  ;;  %v3979_v9 = vunpack.c.h.bf16 %v5099_v4  ;;  %s6211_s21 = scalar_lea.hbm %s6329_s20, %s4375_s15 }
 0x40f   : > { %4082 = vst.msk [vmem:[%s6157_s13 + $0xc] sm:$0xf] %vm4078_vm11, %v4382_v30  ;;  %v3988_v15 = vadd.f32 %v3972_v58, %v3928_v54  ;;  %v3931_v39 = vadd.f32 %v4807_v38, %v6145_v44  ;;  %v3922_v11 = vpop.f32.mrb[87].mxu0 }
 0x410   : > { %4080 = vst.msk [vmem:[%s6157_s13 + $0x4] sm:$0xf] %vm4078_vm11, %v4380_v34  ;;  %v3986_v5 = vadd.f32 %v3970_v50, %v3920_v7  ;;  %v3923_v56 = vadd.f32 %v6145_v44, %v3922_v11 }
 0x411   : > { %v4004_v18 = vmax.f32 %v3988_v15, 0.0  ;;  %v3989_v57 = vadd.f32 %v3973_v42, %v3931_v39 }
 0x412   : > { %v4002_v1 = vmax.f32 %v3986_v5, 0.0  ;;  %v3987_v26 = vadd.f32 %v3971_v20, %v3923_v56 }
 0x413   : > { %v4385_v13 = vpack.c.bf16 %v4004_v18, %v4004_v18  ;;  %v4005_v3 = vmax.f32 %v3989_v57, 0.0 }
 0x414   : > { %v4383_v36 = vpack.c.bf16 %v4002_v1, %v4002_v1  ;;  %v4003_v63 = vmax.f32 %v3987_v26, 0.0  ;;  %v4810_v55 = vpop.f32.mrb[88].mxu0 }
 0x415   : > { %4085 = vst.msk [vmem:[%s6157_s13 + $0x18] sm:$0xf] %vm4078_vm11, %v4385_v13  ;;  %v4386_v24 = vpack.c.bf16 %v4005_v3, %v4005_v3  ;;  %v3944_v23 = vadd.f32 %v4810_v55, %v6145_v44  ;;  %v3935_v59 = vpop.f32.mrb[89].mxu0 }
 0x416   : > { %4083 = vst.msk [vmem:[%s6157_s13 + $0x10] sm:$0xf] %vm4078_vm11, %v4383_v36  ;;  %v4384_v14 = vpack.c.bf16 %v4003_v63, %v4003_v63  ;;  %v3936_v16 = vadd.f32 %v6145_v44, %v3935_v59  ;;  %v4811_v29 = vpop.f32.mrb[90].mxu0 }
 0x417   : > { %4086 = vst.msk [vmem:[%s6157_s13 + $0x1c] sm:$0xf] %vm4078_vm11, %v4386_v24  ;;  %v3992_v12 = vadd.f32 %v3976_v22, %v3944_v23  ;;  %v3947_v35 = vadd.f32 %v4811_v29, %v6145_v44  ;;  %v3938_v6 = vpop.f32.mrb[91].mxu0 }
 0x418   : > { %4084 = vst.msk [vmem:[%s6157_s13 + $0x14] sm:$0xf] %vm4078_vm11, %v4384_v14  ;;  %v3990_v48 = vadd.f32 %v3974_v17, %v3936_v16  ;;  %v3939_v60 = vadd.f32 %v6145_v44, %v3938_v6 }
 0x419   : > { %v4008_v52 = vmax.f32 %v3992_v12, 0.0  ;;  %v3993_v33 = vadd.f32 %v3977_v19, %v3947_v35 }
 0x41a   : > { %v4006_v37 = vmax.f32 %v3990_v48, 0.0  ;;  %v3991_v8 = vadd.f32 %v3975_v25, %v3939_v60 }
 0x41b   : > { %v4389_v28 = vpack.c.bf16 %v4008_v52, %v4008_v52  ;;  %v4009_v41 = vmax.f32 %v3993_v33, 0.0 }
 0x41c   : > { %v4387_v46 = vpack.c.bf16 %v4006_v37, %v4006_v37  ;;  %v4007_v32 = vmax.f32 %v3991_v8, 0.0 }
 0x41d   : > { %4089 = vst.msk [vmem:[%s6157_s13 + $0x28] sm:$0xf] %vm4078_vm11, %v4389_v28  ;;  %v4390_v0 = vpack.c.bf16 %v4009_v41, %v4009_v41 }
 0x41e   : > { %4087 = vst.msk [vmem:[%s6157_s13 + $0x20] sm:$0xf] %vm4078_vm11, %v4387_v46  ;;  %v4388_v51 = vpack.c.bf16 %v4007_v32, %v4007_v32  ;;  %v4814_v40 = vpop.f32.mrb[92].mxu0 }
 0x41f   : > { %4090 = vst.msk [vmem:[%s6157_s13 + $0x2c] sm:$0xf] %vm4078_vm11, %v4390_v0  ;;  %v3960_v10 = vadd.f32 %v4814_v40, %v6145_v44  ;;  %v3951_v2 = vpop.f32.mrb[93].mxu0 }
 0x420   : > { %4088 = vst.msk [vmem:[%s6157_s13 + $0x24] sm:$0xf] %vm4078_vm11, %v4388_v51  ;;  %v3952_v58 = vadd.f32 %v6145_v44, %v3951_v2  ;;  %v4815_v61 = vpop.f32.mrb[94].mxu0 }
 0x421   : > { %v3996_v62 = vadd.f32 %v3980_v43, %v3960_v10  ;;  %v3963_v31 = vadd.f32 %v4815_v61, %v6145_v44  ;;  %v3954_v50 = vpop.f32.mrb[95].mxu0 }
 0x422   : > { %v3994_v30 = vadd.f32 %v3978_v53, %v3952_v58  ;;  %v3955_v54 = vadd.f32 %v6145_v44, %v3954_v50 }
 0x423   : > { %v4012_v49 = vmax.f32 %v3996_v62, 0.0  ;;  %v3997_v42 = vadd.f32 %v3981_v45, %v3963_v31 }
 0x424   : > { %v4010_v34 = vmax.f32 %v3994_v30, 0.0  ;;  %v3995_v7 = vadd.f32 %v3979_v9, %v3955_v54 }
 0x425   : > { %v4393_v38 = vpack.c.bf16 %v4012_v49, %v4012_v49  ;;  %v4013_v20 = vmax.f32 %v3997_v42, 0.0 }
 0x426   : > { %v4391_v15 = vpack.c.bf16 %v4010_v34, %v4010_v34  ;;  %v4011_v39 = vmax.f32 %v3995_v7, 0.0 }
 0x427   : > { %4093 = vst.msk [vmem:[%s6157_s13 + $0x38] sm:$0xf] %vm4078_vm11, %v4393_v38  ;;  %v4394_v11 = vpack.c.bf16 %v4013_v20, %v4013_v20 }
 0x428   : > { %4091 = vst.msk [vmem:[%s6157_s13 + $0x30] sm:$0xf] %vm4078_vm11, %v4391_v15  ;;  %v4392_v44 = vpack.c.bf16 %v4011_v39, %v4011_v39 }
 0x429   : > { %4094 = vst.msk [vmem:[%s6157_s13 + $0x3c] sm:$0xf] %vm4078_vm11, %v4394_v11 }
 0x42a   : > { %4092 = vst.msk [vmem:[%s6157_s13 + $0x34] sm:$0xf] %vm4078_vm11, %v4392_v44 }
 0x42b   : > { %5171 = shalt.err (!%p5168_p5)
}
 0x42c   : > { %s5172_s19 = scalar_lea.hbm %s6211_s21, 1024  ;;  %s5176_s3 = scalar_lea.hbm %s6329_s20, 4096 }
 0x42d   : > { %p5173_p9 = scmp.ne.s32.totalorder %s6211_s21, %s5172_s19  ;;  %p5177_p8 = scmp.lt.u32.totalorder %s6211_s21, %s6329_s20 }
 0x42e   : > { %p5178_p10 = scmp.lt.u32.totalorder %s5176_s3, %s5172_s19  ;;  %p5180_p13 = scmp.lt.u32.totalorder %s5172_s19, %s6211_s21 }
 0x42f   : > { %p5174_p0 = pnand %p5173_p9, %p5422_p11 }
 0x430   : > { %p5179_p12 = por %p5178_p10, %p5177_p8 }
 0x431   : > { %p5175_p6 = pneg %p5174_p0 }
 0x432   : > { %p5181_p3 = por %p5180_p13, %p5179_p12 }
 0x434   : > { %p5182_p7 = pnand %p5181_p3, %p5175_p6 }
 0x436   : > { %5185 = shalt.err (!%p5182_p7)
}
 0x437   : > { %s5267_s7 = smov 64   ;;  %s5268_s6 = smov 4  }
 0x438   : > { %4902 = dma.vmem_to_hbm [thread:$0]  (%p5422_p11), %s6204_s30, 1024, %s6211_s21, %s4096_s18, %s5267_s7, %s5267_s7, %s5268_s6  }
 0x439 PF: > { %s6330_s15 = sld [smem:[#allocation12_spill]]  ;;  %s6331_s14 = sld [smem:[#allocation14_spill]] }
 0x43a   : > { %p4919_p1 = scmp.ge.s32.totalorder %s5260_s12, 2 }
 0x43f   : > { %s4127_s22 = sand.u32 1, %s6330_s15   ;;  %p6332_p2 = scmp.ne.s32.totalorder %s6331_s14, 0 }
 0x440   : > { %s4128_s25 = scalar_lea.sflag [#allocation5], %s4127_s22 }
 0x441   : > { %p4913_p4 = pnand %p4919_p1, %p6332_p2 }
 0x443   : > { %5227 = dma.done.wait (!%p4913_p4), %s4128_s25, 1024  }
 0x444   : > { %5229 = vsyncadd (!%p4913_p4), %s4128_s25, 4294966272  ;;  %s25_s12 = sadd.s32 1, %s5260_s12   ;;  %s6333_s30 = sld [smem:[#allocation13_spill]] }
 0x445   : > { %p22_p5 = scmp.ge.s32.totalorder %s25_s12, 6   ;;  %s6334_s10 = sld [smem:[#allocation15_spill]] }
 0x446   : > { %s6335_s24 = sld [smem:[#allocation17_spill]]  ;;  %s6336_s27 = smov %s5236_s28 }
 0x447   : > { %s6337_s28 = smov %s5240_s29  ;;  %s6338_s29 = smov %s5439_s8 }
 0x448   : > { %s6339_s9 = smov %s5256_s11  ;;  %24 = sbr.rel (!%p22_p5) target bundleno = 13 (0xd), region = 107 }
 0x44c   : > { %s6340_s11 = smov %s6335_s24 }
 0x44f   :  { %4133 = vsyncpa [#allocation4], 1 }
 0x450   :  { %4135 = vsyncpa [#allocation4 + $0x1], 1 }
 0x451   :  { %4136 = vsyncpa [#allocation7], 1 }
 0x452   :  { %4137 = vsyncpa [#allocation5], 1 }
 0x453   :  { %4139 = vsyncpa [#allocation5 + $0x1], 1 }

</bundles_post_ra>
